<compile_context>
chip_gen: v7x
topology: tpu7x:2x2x1
jax: 0.10.0
libtpu: 0.0.40
codegen_flags: <defaults>
</compile_context>

<pallas_src>
import math

import jax
import jax.numpy as jnp
from jax.experimental import pallas as pl
from jax.experimental.pallas import tpu as pltpu

# ----------------------------- config (args) ---------------------------------
B = 2                 # batch
SEQ_LEN = 8           # args.sequence_length
NUM_PATCHES = 4       # "joint"
D_MODEL = 32
NHEADS = 4            # args.nheads
MLP_AMPLIFIER = 4     # args.mlp_amplifier
STAGE_DEPTH = 2       # num transformer layers
USE_RESIDUAL = True   # args.residual

LENGTH = SEQ_LEN + 1
D_FF = D_MODEL * MLP_AMPLIFIER
HEAD_DIM = D_MODEL // NHEADS
LN_EPS = 1e-5
N_SEQ = B * NUM_PATCHES
TOT = N_SEQ * LENGTH           # 72 packed rows (cls + seq per sequence)
NEG_INF = -1e30


# ------------------------------ kernel helpers --------------------------------
def _layernorm(x, w, b):
    mu = jnp.mean(x, axis=-1, keepdims=True)
    var = jnp.mean(jnp.square(x - mu), axis=-1, keepdims=True)
    return (x - mu) * jax.lax.rsqrt(var + LN_EPS) * w + b


def _gelu_exact(x):
    # PyTorch activation='gelu' (erf-based, not tanh approximation)
    return 0.5 * x * (1.0 + jax.lax.erf(x * (1.0 / math.sqrt(2.0))))


# ----------------- Pallas kernel: whole TemporalAttention stack ----------------
def fused_temporal_kernel(x_ref, cls_ref, pos_ref, mask_ref,
                          wqkv_ref, bqkv_ref, wo_ref, bo_ref, ln_ref,
                          w1_ref, b1_ref, w2_ref, b2_ref, fnorm_ref,
                          xout_ref, clsout_ref, h_scr):
    scale = 1.0 / math.sqrt(HEAD_DIM)

    # ---- assemble packed h = [cls; x_seq] per sequence, plus pos embedding ----
    cls_row = cls_ref[...] + pos_ref[pl.ds(0, 1), :]          # (1, D)
    pos_tail = pos_ref[pl.ds(1, SEQ_LEN), :]                  # (SEQ_LEN, D)
    for i in range(N_SEQ):
        h_scr[pl.ds(i * LENGTH, 1), :] = cls_row
        h_scr[pl.ds(i * LENGTH + 1, SEQ_LEN), :] = (
            x_ref[pl.ds(i * SEQ_LEN, SEQ_LEN), :] + pos_tail)

    h = h_scr[...]                                            # (TOT, D_MODEL)
    mask = mask_ref[...]                                      # (TOT, TOT) additive

    for l in range(STAGE_DEPTH):                              # static layer unroll
        # ---- self-attention block:  h = h + MHA(LN1(h)) ----
        hn = _layernorm(h, ln_ref[l, 0], ln_ref[l, 1])
        attn = jnp.zeros_like(h)
        for hh in range(NHEADS):                              # static head unroll
            q = jnp.dot(hn, wqkv_ref[l, 0, hh],
                        preferred_element_type=jnp.float32) + bqkv_ref[l, 0, hh]
            k = jnp.dot(hn, wqkv_ref[l, 1, hh],
                        preferred_element_type=jnp.float32) + bqkv_ref[l, 1, hh]
            v = jnp.dot(hn, wqkv_ref[l, 2, hh],
                        preferred_element_type=jnp.float32) + bqkv_ref[l, 2, hh]
            # all sequences at once; block-diagonal additive mask removes
            # cross-sequence attention (equivalent to per-sequence softmax)
            s = jax.lax.dot_general(q, k, (((1,), (1,)), ((), ())),
                                    preferred_element_type=jnp.float32)
            s = s * scale + mask
            s = s - jnp.max(s, axis=-1, keepdims=True)
            p = jnp.exp(s)
            p = p * pl.reciprocal(jnp.sum(p, axis=-1, keepdims=True), approx=True)
            o = jnp.dot(p, v, preferred_element_type=jnp.float32)
            # per-head slice of out-projection; summing over heads == concat @ Wo
            attn = attn + jnp.dot(o, wo_ref[l, hh],
                                  preferred_element_type=jnp.float32)
        h = h + attn + bo_ref[l]

        # ---- feed-forward block:  h = h + W2 @ gelu(W1 @ LN2(h)) ----
        hn2 = _layernorm(h, ln_ref[l, 2], ln_ref[l, 3])
        ff = jnp.dot(hn2, w1_ref[l], preferred_element_type=jnp.float32) + b1_ref[l]
        ff = _gelu_exact(ff)
        ff = jnp.dot(ff, w2_ref[l], preferred_element_type=jnp.float32) + b2_ref[l]
        h = h + ff

    # ---- final LayerNorm ----
    h = _layernorm(h, fnorm_ref[0], fnorm_ref[1])
    h_scr[...] = h

    # ---- split: cls rows -> ret, remaining rows (+ residual) -> x out ----
    for i in range(N_SEQ):
        clsout_ref[pl.ds(i, 1), :] = h_scr[pl.ds(i * LENGTH, 1), :]
        tail = h_scr[pl.ds(i * LENGTH + 1, SEQ_LEN), :]
        if USE_RESIDUAL:
            tail = tail + x_ref[pl.ds(i * SEQ_LEN, SEQ_LEN), :]
        xout_ref[pl.ds(i * SEQ_LEN, SEQ_LEN), :] = tail


# ------------------------------ pallas_call wrapper ----------------------------
def fused_forward(x_emb, p):
    n = x_emb.shape[0]
    assert n == N_SEQ and x_emb.shape == (N_SEQ, SEQ_LEN, D_MODEL)
    x2 = x_emb.reshape(n * SEQ_LEN, D_MODEL)

    # block-diagonal additive attention mask (constant, folded at trace time)
    seq_id = jnp.arange(TOT, dtype=jnp.int32) // LENGTH
    mask = jnp.where(seq_id[:, None] == seq_id[None, :], 0.0, NEG_INF)
    mask = mask.astype(jnp.float32)

    cls2 = p['cls_token'].reshape(1, D_MODEL)
    pos2 = p['pos_embed'].reshape(LENGTH, D_MODEL)

    out_shapes = (jax.ShapeDtypeStruct((n * SEQ_LEN, D_MODEL), jnp.float32),
                  jax.ShapeDtypeStruct((n, D_MODEL), jnp.float32))
    xout2, clsout = pl.pallas_call(
        fused_temporal_kernel,
        out_shape=out_shapes,
        scratch_shapes=[pltpu.VMEM((TOT, D_MODEL), jnp.float32)],
    )(x2, cls2, pos2, mask,
      p['wqkv'], p['bqkv'], p['wo'], p['bo'], p['ln'],
      p['w1'], p['b1'], p['w2'], p['b2'], p['fnorm'])
    return xout2.reshape(n, SEQ_LEN, D_MODEL), clsout


# ------------------------------ parameters ------------------------------------
def init_params(key):
    ks = jax.random.split(key, 7)
    scale = 0.02
    ones_col = jnp.ones((STAGE_DEPTH, 1, 1, D_MODEL), jnp.float32)
    zeros_col = jnp.zeros_like(ones_col)
    return {
        # nn.Parameter(torch.randn(1, 1, d_model))
        'cls_token': jax.random.normal(ks[0], (1, 1, D_MODEL), jnp.float32),
        # nn.Parameter(torch.zeros(1, length, d_model))
        'pos_embed': jnp.zeros((1, LENGTH, D_MODEL), jnp.float32),
        # per-head in-projection: x @ wqkv[l, {q,k,v}, h] + bqkv[l, {q,k,v}, h]
        'wqkv': scale * jax.random.normal(
            ks[1], (STAGE_DEPTH, 3, NHEADS, D_MODEL, HEAD_DIM), jnp.float32),
        'bqkv': jnp.zeros((STAGE_DEPTH, 3, NHEADS, 1, HEAD_DIM), jnp.float32),
        # per-head slice of the output projection (sum over heads == concat @ Wo^T)
        'wo': scale * jax.random.normal(
            ks[2], (STAGE_DEPTH, NHEADS, HEAD_DIM, D_MODEL), jnp.float32),
        'bo': jnp.zeros((STAGE_DEPTH, 1, D_MODEL), jnp.float32),
        # ln[l] = [ln1_w, ln1_b, ln2_w, ln2_b]
        'ln': jnp.concatenate([ones_col, zeros_col, ones_col, zeros_col], axis=1),
        'w1': scale * jax.random.normal(ks[3], (STAGE_DEPTH, D_MODEL, D_FF), jnp.float32),
        'b1': scale * jax.random.normal(ks[4], (STAGE_DEPTH, 1, D_FF), jnp.float32),
        'w2': scale * jax.random.normal(ks[5], (STAGE_DEPTH, D_FF, D_MODEL), jnp.float32),
        'b2': scale * jax.random.normal(ks[6], (STAGE_DEPTH, 1, D_MODEL), jnp.float32),
        # final LayerNorm: fnorm[0] = weight, fnorm[1] = bias
        'fnorm': jnp.concatenate([jnp.ones((1, 1, D_MODEL), jnp.float32),
                                  jnp.zeros((1, 1, D_MODEL), jnp.float32)], axis=0),
    }


# ------------------------------ forward (glue) ---------------------------------
def temporal_attention_forward(x, params):
    b, L_, J, C = x.shape
    assert (L_, J, C) == (SEQ_LEN, NUM_PATCHES, D_MODEL)
    n = b * J

    # Rearrange 'b len joint c -> (b joint) len c'
    x_emb = jnp.transpose(x, (0, 2, 1, 3)).reshape(n, L_, C)

    # cls concat, pos embed, encoder layers, final LN, residual: fused kernel
    x_seq, cls_out = fused_forward(x_emb, params)

    # ret = Rearrange('(b joint) len c -> b len (joint c)')(h)[:, 0]
    ret = cls_out.reshape(b, J * C)
    # '(b joint) len c -> b len joint c'
    x_out = jnp.transpose(x_seq.reshape(b, J, L_, C), (0, 2, 1, 3))
    return x_out, ret


# ------------------------------ pure-JAX reference -----------------------------
def reference_forward(x, p):
    b, L_, J, C = x.shape
    n = b * J
    x_emb = jnp.transpose(x, (0, 2, 1, 3)).reshape(n, L_, C)
    res = x_emb
    cls = jnp.broadcast_to(p['cls_token'], (n, 1, C))
    h = jnp.concatenate([cls, x_emb], axis=1) + p['pos_embed']
    scale = 1.0 / math.sqrt(HEAD_DIM)
    for l in range(STAGE_DEPTH):
        hn = _layernorm(h, p['ln'][l, 0], p['ln'][l, 1])
        attn = jnp.zeros_like(h)
        for hh in range(NHEADS):
            q = hn @ p['wqkv'][l, 0, hh] + p['bqkv'][l, 0, hh]
            k = hn @ p['wqkv'][l, 1, hh] + p['bqkv'][l, 1, hh]
            v = hn @ p['wqkv'][l, 2, hh] + p['bqkv'][l, 2, hh]
            s = jnp.einsum('bld,bmd->blm', q, k) * scale
            pr = jax.nn.softmax(s, axis=-1)
            attn = attn + jnp.einsum('blm,bmd->bld', pr, v) @ p['wo'][l, hh]
        h = h + attn + p['bo'][l]
        hn2 = _layernorm(h, p['ln'][l, 2], p['ln'][l, 3])
        ff = _gelu_exact(hn2 @ p['w1'][l] + p['b1'][l])
        h = h + (ff @ p['w2'][l] + p['b2'][l])
    h = _layernorm(h, p['fnorm'][0], p['fnorm'][1])
    ret = h[:, 0, :].reshape(b, J * C)
    x_out = h[:, 1:, :]
    if USE_RESIDUAL:
        x_out = x_out + res
    x_out = jnp.transpose(x_out.reshape(b, J, L_, C), (0, 2, 1, 3))
    return x_out, ret


# ----------------------------------- main --------------------------------------
if __name__ == "__main__":
    key = jax.random.PRNGKey(0)
    k_in, k_par = jax.random.split(key)
    x = jax.random.normal(k_in, (B, SEQ_LEN, NUM_PATCHES, D_MODEL), jnp.float32)
    params = init_params(k_par)

    fwd = jax.jit(temporal_attention_forward)
    x_out, ret = fwd(x, params)
    jax.block_until_ready((x_out, ret))

    assert x_out.shape == (B, SEQ_LEN, NUM_PATCHES, D_MODEL), x_out.shape
    assert ret.shape == (B, NUM_PATCHES * D_MODEL), ret.shape
    assert bool(jnp.all(jnp.isfinite(x_out))) and bool(jnp.all(jnp.isfinite(ret)))

    # correctness vs. a pure-JAX reference of the same forward
    x_ref_out, ret_ref = reference_forward(x, params)
    assert bool(jnp.allclose(x_out, x_ref_out, atol=2e-3, rtol=2e-3))
    assert bool(jnp.allclose(ret, ret_ref, atol=2e-3, rtol=2e-3))

    print("KERNEL_OK")
</pallas_src>

<mosaic_0001>
module attributes {stable_mosaic.version = 11 : i64} {
  func.func @fused_temporal_kernel(%arg0: memref<64x32xf32, #tpu.memory_space<vmem>>, %arg1: memref<1x32xf32, #tpu.memory_space<vmem>>, %arg2: memref<9x32xf32, #tpu.memory_space<vmem>>, %arg3: memref<72x72xf32, #tpu.memory_space<vmem>>, %arg4: memref<2x3x4x32x8xf32, #tpu.memory_space<vmem>>, %arg5: memref<2x3x4x1x8xf32, #tpu.memory_space<vmem>>, %arg6: memref<2x4x8x32xf32, #tpu.memory_space<vmem>>, %arg7: memref<2x1x32xf32, #tpu.memory_space<vmem>>, %arg8: memref<2x4x1x32xf32, #tpu.memory_space<vmem>>, %arg9: memref<2x32x128xf32, #tpu.memory_space<vmem>>, %arg10: memref<2x1x128xf32, #tpu.memory_space<vmem>>, %arg11: memref<2x128x32xf32, #tpu.memory_space<vmem>>, %arg12: memref<2x1x32xf32, #tpu.memory_space<vmem>>, %arg13: memref<2x1x32xf32, #tpu.memory_space<vmem>>, %arg14: memref<64x32xf32, #tpu.memory_space<vmem>>, %arg15: memref<8x32xf32, #tpu.memory_space<vmem>>, %arg16: memref<72x32xf32, #tpu.memory_space<vmem>>) attributes {dimension_semantics = [], scalar_prefetch = 0 : i64, scratch_operands = 1 : i64, tpu.core_type = #tpu.core_type<tc>} {
    %c0 = arith.constant 0 : index
    %c0_0 = arith.constant 0 : index
    %0 = vector.load %arg1[%c0, %c0_0] : memref<1x32xf32, #tpu.memory_space<vmem>>, vector<1x32xf32>
    %c0_1 = arith.constant 0 : index
    %c0_2 = arith.constant 0 : index
    %1 = vector.load %arg2[%c0_1, %c0_2] : memref<9x32xf32, #tpu.memory_space<vmem>>, vector<1x32xf32>
    %2 = arith.addf %0, %1 : vector<1x32xf32>
    %c1 = arith.constant 1 : index
    %c0_3 = arith.constant 0 : index
    %3 = vector.load %arg2[%c1, %c0_3] : memref<9x32xf32, #tpu.memory_space<vmem>>, vector<8x32xf32>
    %c0_4 = arith.constant 0 : index
    %c0_5 = arith.constant 0 : index
    %4 = vector.load %arg16[%c0_4, %c0_5] : memref<72x32xf32, #tpu.memory_space<vmem>>, vector<1x32xf32>
    tpu.vector_store %arg16[%c0_4, %c0_5], %2 {strides = array<i32>} : memref<72x32xf32, #tpu.memory_space<vmem>>, vector<1x32xf32>,
    %c0_6 = arith.constant 0 : index
    %c0_7 = arith.constant 0 : index
    %5 = vector.load %arg0[%c0_6, %c0_7] : memref<64x32xf32, #tpu.memory_space<vmem>>, vector<8x32xf32>
    %6 = arith.addf %5, %3 : vector<8x32xf32>
    %c1_8 = arith.constant 1 : index
    %c0_9 = arith.constant 0 : index
    %7 = vector.load %arg16[%c1_8, %c0_9] : memref<72x32xf32, #tpu.memory_space<vmem>>, vector<8x32xf32>
    tpu.vector_store %arg16[%c1_8, %c0_9], %6 {strides = array<i32>} : memref<72x32xf32, #tpu.memory_space<vmem>>, vector<8x32xf32>,
    %c9 = arith.constant 9 : index
    %c0_10 = arith.constant 0 : index
    %8 = vector.load %arg16[%c9, %c0_10] : memref<72x32xf32, #tpu.memory_space<vmem>>, vector<1x32xf32>
    tpu.vector_store %arg16[%c9, %c0_10], %2 {strides = array<i32>} : memref<72x32xf32, #tpu.memory_space<vmem>>, vector<1x32xf32>,
    %c8 = arith.constant 8 : index
    %c0_11 = arith.constant 0 : index
    %9 = vector.load %arg0[%c8, %c0_11] : memref<64x32xf32, #tpu.memory_space<vmem>>, vector<8x32xf32>
    %10 = arith.addf %9, %3 : vector<8x32xf32>
    %c10 = arith.constant 10 : index
    %c0_12 = arith.constant 0 : index
    %11 = vector.load %arg16[%c10, %c0_12] : memref<72x32xf32, #tpu.memory_space<vmem>>, vector<8x32xf32>
    tpu.vector_store %arg16[%c10, %c0_12], %10 {strides = array<i32>} : memref<72x32xf32, #tpu.memory_space<vmem>>, vector<8x32xf32>,
    %c18 = arith.constant 18 : index
    %c0_13 = arith.constant 0 : index
    %12 = vector.load %arg16[%c18, %c0_13] : memref<72x32xf32, #tpu.memory_space<vmem>>, vector<1x32xf32>
    tpu.vector_store %arg16[%c18, %c0_13], %2 {strides = array<i32>} : memref<72x32xf32, #tpu.memory_space<vmem>>, vector<1x32xf32>,
    %c16 = arith.constant 16 : index
    %c0_14 = arith.constant 0 : index
    %13 = vector.load %arg0[%c16, %c0_14] : memref<64x32xf32, #tpu.memory_space<vmem>>, vector<8x32xf32>
    %14 = arith.addf %13, %3 : vector<8x32xf32>
    %c19 = arith.constant 19 : index
    %c0_15 = arith.constant 0 : index
    %15 = vector.load %arg16[%c19, %c0_15] : memref<72x32xf32, #tpu.memory_space<vmem>>, vector<8x32xf32>
    tpu.vector_store %arg16[%c19, %c0_15], %14 {strides = array<i32>} : memref<72x32xf32, #tpu.memory_space<vmem>>, vector<8x32xf32>,
    %c27 = arith.constant 27 : index
    %c0_16 = arith.constant 0 : index
    %16 = vector.load %arg16[%c27, %c0_16] : memref<72x32xf32, #tpu.memory_space<vmem>>, vector<1x32xf32>
    tpu.vector_store %arg16[%c27, %c0_16], %2 {strides = array<i32>} : memref<72x32xf32, #tpu.memory_space<vmem>>, vector<1x32xf32>,
    %c24 = arith.constant 24 : index
    %c0_17 = arith.constant 0 : index
    %17 = vector.load %arg0[%c24, %c0_17] : memref<64x32xf32, #tpu.memory_space<vmem>>, vector<8x32xf32>
    %18 = arith.addf %17, %3 : vector<8x32xf32>
    %c28 = arith.constant 28 : index
    %c0_18 = arith.constant 0 : index
    %19 = vector.load %arg16[%c28, %c0_18] : memref<72x32xf32, #tpu.memory_space<vmem>>, vector<8x32xf32>
    tpu.vector_store %arg16[%c28, %c0_18], %18 {strides = array<i32>} : memref<72x32xf32, #tpu.memory_space<vmem>>, vector<8x32xf32>,
    %c36 = arith.constant 36 : index
    %c0_19 = arith.constant 0 : index
    %20 = vector.load %arg16[%c36, %c0_19] : memref<72x32xf32, #tpu.memory_space<vmem>>, vector<1x32xf32>
    tpu.vector_store %arg16[%c36, %c0_19], %2 {strides = array<i32>} : memref<72x32xf32, #tpu.memory_space<vmem>>, vector<1x32xf32>,
    %c32 = arith.constant 32 : index
    %c0_20 = arith.constant 0 : index
    %21 = vector.load %arg0[%c32, %c0_20] : memref<64x32xf32, #tpu.memory_space<vmem>>, vector<8x32xf32>
    %22 = arith.addf %21, %3 : vector<8x32xf32>
    %c37 = arith.constant 37 : index
    %c0_21 = arith.constant 0 : index
    %23 = vector.load %arg16[%c37, %c0_21] : memref<72x32xf32, #tpu.memory_space<vmem>>, vector<8x32xf32>
    tpu.vector_store %arg16[%c37, %c0_21], %22 {strides = array<i32>} : memref<72x32xf32, #tpu.memory_space<vmem>>, vector<8x32xf32>,
    %c45 = arith.constant 45 : index
    %c0_22 = arith.constant 0 : index
    %24 = vector.load %arg16[%c45, %c0_22] : memref<72x32xf32, #tpu.memory_space<vmem>>, vector<1x32xf32>
    tpu.vector_store %arg16[%c45, %c0_22], %2 {strides = array<i32>} : memref<72x32xf32, #tpu.memory_space<vmem>>, vector<1x32xf32>,
    %c40 = arith.constant 40 : index
    %c0_23 = arith.constant 0 : index
    %25 = vector.load %arg0[%c40, %c0_23] : memref<64x32xf32, #tpu.memory_space<vmem>>, vector<8x32xf32>
    %26 = arith.addf %25, %3 : vector<8x32xf32>
    %c46 = arith.constant 46 : index
    %c0_24 = arith.constant 0 : index
    %27 = vector.load %arg16[%c46, %c0_24] : memref<72x32xf32, #tpu.memory_space<vmem>>, vector<8x32xf32>
    tpu.vector_store %arg16[%c46, %c0_24], %26 {strides = array<i32>} : memref<72x32xf32, #tpu.memory_space<vmem>>, vector<8x32xf32>,
    %c54 = arith.constant 54 : index
    %c0_25 = arith.constant 0 : index
    %28 = vector.load %arg16[%c54, %c0_25] : memref<72x32xf32, #tpu.memory_space<vmem>>, vector<1x32xf32>
    tpu.vector_store %arg16[%c54, %c0_25], %2 {strides = array<i32>} : memref<72x32xf32, #tpu.memory_space<vmem>>, vector<1x32xf32>,
    %c48 = arith.constant 48 : index
    %c0_26 = arith.constant 0 : index
    %29 = vector.load %arg0[%c48, %c0_26] : memref<64x32xf32, #tpu.memory_space<vmem>>, vector<8x32xf32>
    %30 = arith.addf %29, %3 : vector<8x32xf32>
    %c55 = arith.constant 55 : index
    %c0_27 = arith.constant 0 : index
    %31 = vector.load %arg16[%c55, %c0_27] : memref<72x32xf32, #tpu.memory_space<vmem>>, vector<8x32xf32>
    tpu.vector_store %arg16[%c55, %c0_27], %30 {strides = array<i32>} : memref<72x32xf32, #tpu.memory_space<vmem>>, vector<8x32xf32>,
    %c63 = arith.constant 63 : index
    %c0_28 = arith.constant 0 : index
    %32 = vector.load %arg16[%c63, %c0_28] : memref<72x32xf32, #tpu.memory_space<vmem>>, vector<1x32xf32>
    tpu.vector_store %arg16[%c63, %c0_28], %2 {strides = array<i32>} : memref<72x32xf32, #tpu.memory_space<vmem>>, vector<1x32xf32>,
    %c56 = arith.constant 56 : index
    %c0_29 = arith.constant 0 : index
    %33 = vector.load %arg0[%c56, %c0_29] : memref<64x32xf32, #tpu.memory_space<vmem>>, vector<8x32xf32>
    %34 = arith.addf %33, %3 : vector<8x32xf32>
    %c64 = arith.constant 64 : index
    %c0_30 = arith.constant 0 : index
    %35 = vector.load %arg16[%c64, %c0_30] : memref<72x32xf32, #tpu.memory_space<vmem>>, vector<8x32xf32>
    tpu.vector_store %arg16[%c64, %c0_30], %34 {strides = array<i32>} : memref<72x32xf32, #tpu.memory_space<vmem>>, vector<8x32xf32>,
    %c0_31 = arith.constant 0 : index
    %c0_32 = arith.constant 0 : index
    %36 = vector.load %arg16[%c0_31, %c0_32] : memref<72x32xf32, #tpu.memory_space<vmem>>, vector<72x32xf32>
    %c0_33 = arith.constant 0 : index
    %c0_34 = arith.constant 0 : index
    %37 = vector.load %arg3[%c0_33, %c0_34] : memref<72x72xf32, #tpu.memory_space<vmem>>, vector<72x72xf32>
    %c0_35 = arith.constant 0 : index
    %c0_36 = arith.constant 0 : index
    %c0_37 = arith.constant 0 : index
    %c0_38 = arith.constant 0 : index
    %38 = vector.load %arg8[%c0_35, %c0_36, %c0_37, %c0_38] : memref<2x4x1x32xf32, #tpu.memory_space<vmem>>, vector<1x1x1x32xf32>
    %39 = vector.shape_cast %38 : vector<1x1x1x32xf32> to vector<1x32xf32>
    %c0_39 = arith.constant 0 : index
    %c1_40 = arith.constant 1 : index
    %c0_41 = arith.constant 0 : index
    %c0_42 = arith.constant 0 : index
    %40 = vector.load %arg8[%c0_39, %c1_40, %c0_41, %c0_42] : memref<2x4x1x32xf32, #tpu.memory_space<vmem>>, vector<1x1x1x32xf32>
    %41 = vector.shape_cast %40 : vector<1x1x1x32xf32> to vector<1x32xf32>
    %cst = arith.constant dense<0.000000e+00> : vector<72xf32>
    %42 = vector.multi_reduction <add>, %36, %cst [1] : vector<72x32xf32> to vector<72xf32>
    %43 = vector.shape_cast %42 : vector<72xf32> to vector<72x1xf32>
    %cst_43 = arith.constant 3.200000e+01 : f32
    %44 = vector.broadcast %cst_43 : f32 to vector<72x1xf32>
    %45 = arith.divf %43, %44 : vector<72x1xf32>
    %46 = vector.broadcast %45 : vector<72x1xf32> to vector<72x32xf32>
    %47 = arith.subf %36, %46 : vector<72x32xf32>
    %48 = arith.mulf %47, %47 : vector<72x32xf32>
    %cst_44 = arith.constant dense<0.000000e+00> : vector<72xf32>
    %49 = vector.multi_reduction <add>, %48, %cst_44 [1] : vector<72x32xf32> to vector<72xf32>
    %50 = vector.shape_cast %49 : vector<72xf32> to vector<72x1xf32>
    %cst_45 = arith.constant 3.200000e+01 : f32
    %51 = vector.broadcast %cst_45 : f32 to vector<72x1xf32>
    %52 = arith.divf %50, %51 : vector<72x1xf32>
    %53 = vector.broadcast %45 : vector<72x1xf32> to vector<72x32xf32>
    %54 = arith.subf %36, %53 : vector<72x32xf32>
    %cst_46 = arith.constant 9.99999974E-6 : f32
    %55 = vector.broadcast %cst_46 : f32 to vector<72x1xf32>
    %56 = arith.addf %52, %55 : vector<72x1xf32>
    %57 = math.rsqrt %56 : vector<72x1xf32>
    %58 = vector.broadcast %57 : vector<72x1xf32> to vector<72x32xf32>
    %59 = arith.mulf %54, %58 : vector<72x32xf32>
    %60 = vector.broadcast %39 : vector<1x32xf32> to vector<72x32xf32>
    %61 = arith.mulf %59, %60 : vector<72x32xf32>
    %62 = vector.broadcast %41 : vector<1x32xf32> to vector<72x32xf32>
    %63 = arith.addf %61, %62 : vector<72x32xf32>
    %cst_47 = arith.constant 0.000000e+00 : f32
    %64 = vector.broadcast %cst_47 : f32 to vector<72x32xf32>
    %c0_48 = arith.constant 0 : index
    %c0_49 = arith.constant 0 : index
    %c0_50 = arith.constant 0 : index
    %c0_51 = arith.constant 0 : index
    %c0_52 = arith.constant 0 : index
    %65 = vector.load %arg4[%c0_48, %c0_49, %c0_50, %c0_51, %c0_52] : memref<2x3x4x32x8xf32, #tpu.memory_space<vmem>>, vector<1x1x1x32x8xf32>
    %66 = vector.shape_cast %65 : vector<1x1x1x32x8xf32> to vector<32x8xf32>
    %cst_53 = arith.constant dense<0.000000e+00> : vector<72x8xf32>
    %67 = tpu.matmul %63, %66, %cst_53 {dimension_numbers = #tpu.dot_dimension_numbers<[1], [0], [0], [1], [0, 0, 1, 1], [], []>} : vector<72x32xf32>, vector<32x8xf32>, vector<72x8xf32> -> vector<72x8xf32>
    %c0_54 = arith.constant 0 : index
    %c0_55 = arith.constant 0 : index
    %c0_56 = arith.constant 0 : index
    %c0_57 = arith.constant 0 : index
    %c0_58 = arith.constant 0 : index
    %68 = vector.load %arg5[%c0_54, %c0_55, %c0_56, %c0_57, %c0_58] : memref<2x3x4x1x8xf32, #tpu.memory_space<vmem>>, vector<1x1x1x1x8xf32>
    %69 = vector.shape_cast %68 : vector<1x1x1x1x8xf32> to vector<1x8xf32>
    %70 = vector.broadcast %69 : vector<1x8xf32> to vector<72x8xf32>
    %71 = arith.addf %67, %70 : vector<72x8xf32>
    %c0_59 = arith.constant 0 : index
    %c1_60 = arith.constant 1 : index
    %c0_61 = arith.constant 0 : index
    %c0_62 = arith.constant 0 : index
    %c0_63 = arith.constant 0 : index
    %72 = vector.load %arg4[%c0_59, %c1_60, %c0_61, %c0_62, %c0_63] : memref<2x3x4x32x8xf32, #tpu.memory_space<vmem>>, vector<1x1x1x32x8xf32>
    %73 = vector.shape_cast %72 : vector<1x1x1x32x8xf32> to vector<32x8xf32>
    %cst_64 = arith.constant dense<0.000000e+00> : vector<72x8xf32>
    %74 = tpu.matmul %63, %73, %cst_64 {dimension_numbers = #tpu.dot_dimension_numbers<[1], [0], [0], [1], [0, 0, 1, 1], [], []>} : vector<72x32xf32>, vector<32x8xf32>, vector<72x8xf32> -> vector<72x8xf32>
    %c0_65 = arith.constant 0 : index
    %c1_66 = arith.constant 1 : index
    %c0_67 = arith.constant 0 : index
    %c0_68 = arith.constant 0 : index
    %c0_69 = arith.constant 0 : index
    %75 = vector.load %arg5[%c0_65, %c1_66, %c0_67, %c0_68, %c0_69] : memref<2x3x4x1x8xf32, #tpu.memory_space<vmem>>, vector<1x1x1x1x8xf32>
    %76 = vector.shape_cast %75 : vector<1x1x1x1x8xf32> to vector<1x8xf32>
    %77 = vector.broadcast %76 : vector<1x8xf32> to vector<72x8xf32>
    %78 = arith.addf %74, %77 : vector<72x8xf32>
    %c0_70 = arith.constant 0 : index
    %c2 = arith.constant 2 : index
    %c0_71 = arith.constant 0 : index
    %c0_72 = arith.constant 0 : index
    %c0_73 = arith.constant 0 : index
    %79 = vector.load %arg4[%c0_70, %c2, %c0_71, %c0_72, %c0_73] : memref<2x3x4x32x8xf32, #tpu.memory_space<vmem>>, vector<1x1x1x32x8xf32>
    %80 = vector.shape_cast %79 : vector<1x1x1x32x8xf32> to vector<32x8xf32>
    %cst_74 = arith.constant dense<0.000000e+00> : vector<72x8xf32>
    %81 = tpu.matmul %63, %80, %cst_74 {dimension_numbers = #tpu.dot_dimension_numbers<[1], [0], [0], [1], [0, 0, 1, 1], [], []>} : vector<72x32xf32>, vector<32x8xf32>, vector<72x8xf32> -> vector<72x8xf32>
    %c0_75 = arith.constant 0 : index
    %c2_76 = arith.constant 2 : index
    %c0_77 = arith.constant 0 : index
    %c0_78 = arith.constant 0 : index
    %c0_79 = arith.constant 0 : index
    %82 = vector.load %arg5[%c0_75, %c2_76, %c0_77, %c0_78, %c0_79] : memref<2x3x4x1x8xf32, #tpu.memory_space<vmem>>, vector<1x1x1x1x8xf32>
    %83 = vector.shape_cast %82 : vector<1x1x1x1x8xf32> to vector<1x8xf32>
    %84 = vector.broadcast %83 : vector<1x8xf32> to vector<72x8xf32>
    %85 = arith.addf %81, %84 : vector<72x8xf32>
    %cst_80 = arith.constant dense<0.000000e+00> : vector<72x72xf32>
    %86 = tpu.matmul %71, %78, %cst_80 {dimension_numbers = #tpu.dot_dimension_numbers<[1], [1], [0], [0], [0, 0, 1, 0], [], []>} : vector<72x8xf32>, vector<72x8xf32>, vector<72x72xf32> -> vector<72x72xf32>
    %cst_81 = arith.constant 0.353553385 : f32
    %87 = vector.broadcast %cst_81 : f32 to vector<72x72xf32>
    %88 = arith.mulf %86, %87 : vector<72x72xf32>
    %89 = arith.addf %88, %37 : vector<72x72xf32>
    %cst_82 = arith.constant dense<0xFF800000> : vector<72xf32>
    %90 = vector.multi_reduction <maximumf>, %89, %cst_82 [1] : vector<72x72xf32> to vector<72xf32>
    %91 = vector.shape_cast %90 : vector<72xf32> to vector<72x1xf32>
    %92 = vector.broadcast %91 : vector<72x1xf32> to vector<72x72xf32>
    %93 = arith.subf %89, %92 : vector<72x72xf32>
    %94 = math.exp %93 : vector<72x72xf32>
    %cst_83 = arith.constant dense<0.000000e+00> : vector<72xf32>
    %95 = vector.multi_reduction <add>, %94, %cst_83 [1] : vector<72x72xf32> to vector<72xf32>
    %96 = vector.shape_cast %95 : vector<72xf32> to vector<72x1xf32>
    %97 = tpu.reciprocal %96 {approx = true} : vector<72x1xf32> -> vector<72x1xf32>
    %98 = vector.broadcast %97 : vector<72x1xf32> to vector<72x72xf32>
    %99 = arith.mulf %94, %98 : vector<72x72xf32>
    %cst_84 = arith.constant dense<0.000000e+00> : vector<72x8xf32>
    %100 = tpu.matmul %99, %85, %cst_84 {dimension_numbers = #tpu.dot_dimension_numbers<[1], [0], [0], [1], [0, 0, 1, 1], [], []>} : vector<72x72xf32>, vector<72x8xf32>, vector<72x8xf32> -> vector<72x8xf32>
    %c0_85 = arith.constant 0 : index
    %c0_86 = arith.constant 0 : index
    %c0_87 = arith.constant 0 : index
    %c0_88 = arith.constant 0 : index
    %101 = vector.load %arg6[%c0_85, %c0_86, %c0_87, %c0_88] : memref<2x4x8x32xf32, #tpu.memory_space<vmem>>, vector<1x1x8x32xf32>
    %102 = vector.shape_cast %101 : vector<1x1x8x32xf32> to vector<8x32xf32>
    %cst_89 = arith.constant dense<0.000000e+00> : vector<72x32xf32>
    %103 = tpu.matmul %100, %102, %cst_89 {dimension_numbers = #tpu.dot_dimension_numbers<[1], [0], [0], [1], [0, 0, 1, 1], [], []>} : vector<72x8xf32>, vector<8x32xf32>, vector<72x32xf32> -> vector<72x32xf32>
    %104 = arith.addf %64, %103 : vector<72x32xf32>
    %c0_90 = arith.constant 0 : index
    %c0_91 = arith.constant 0 : index
    %c1_92 = arith.constant 1 : index
    %c0_93 = arith.constant 0 : index
    %c0_94 = arith.constant 0 : index
    %105 = vector.load %arg4[%c0_90, %c0_91, %c1_92, %c0_93, %c0_94] : memref<2x3x4x32x8xf32, #tpu.memory_space<vmem>>, vector<1x1x1x32x8xf32>
    %106 = vector.shape_cast %105 : vector<1x1x1x32x8xf32> to vector<32x8xf32>
    %cst_95 = arith.constant dense<0.000000e+00> : vector<72x8xf32>
    %107 = tpu.matmul %63, %106, %cst_95 {dimension_numbers = #tpu.dot_dimension_numbers<[1], [0], [0], [1], [0, 0, 1, 1], [], []>} : vector<72x32xf32>, vector<32x8xf32>, vector<72x8xf32> -> vector<72x8xf32>
    %c0_96 = arith.constant 0 : index
    %c0_97 = arith.constant 0 : index
    %c1_98 = arith.constant 1 : index
    %c0_99 = arith.constant 0 : index
    %c0_100 = arith.constant 0 : index
    %108 = vector.load %arg5[%c0_96, %c0_97, %c1_98, %c0_99, %c0_100] : memref<2x3x4x1x8xf32, #tpu.memory_space<vmem>>, vector<1x1x1x1x8xf32>
    %109 = vector.shape_cast %108 : vector<1x1x1x1x8xf32> to vector<1x8xf32>
    %110 = vector.broadcast %109 : vector<1x8xf32> to vector<72x8xf32>
    %111 = arith.addf %107, %110 : vector<72x8xf32>
    %c0_101 = arith.constant 0 : index
    %c1_102 = arith.constant 1 : index
    %c1_103 = arith.constant 1 : index
    %c0_104 = arith.constant 0 : index
    %c0_105 = arith.constant 0 : index
    %112 = vector.load %arg4[%c0_101, %c1_102, %c1_103, %c0_104, %c0_105] : memref<2x3x4x32x8xf32, #tpu.memory_space<vmem>>, vector<1x1x1x32x8xf32>
    %113 = vector.shape_cast %112 : vector<1x1x1x32x8xf32> to vector<32x8xf32>
    %cst_106 = arith.constant dense<0.000000e+00> : vector<72x8xf32>
    %114 = tpu.matmul %63, %113, %cst_106 {dimension_numbers = #tpu.dot_dimension_numbers<[1], [0], [0], [1], [0, 0, 1, 1], [], []>} : vector<72x32xf32>, vector<32x8xf32>, vector<72x8xf32> -> vector<72x8xf32>
    %c0_107 = arith.constant 0 : index
    %c1_108 = arith.constant 1 : index
    %c1_109 = arith.constant 1 : index
    %c0_110 = arith.constant 0 : index
    %c0_111 = arith.constant 0 : index
    %115 = vector.load %arg5[%c0_107, %c1_108, %c1_109, %c0_110, %c0_111] : memref<2x3x4x1x8xf32, #tpu.memory_space<vmem>>, vector<1x1x1x1x8xf32>
    %116 = vector.shape_cast %115 : vector<1x1x1x1x8xf32> to vector<1x8xf32>
    %117 = vector.broadcast %116 : vector<1x8xf32> to vector<72x8xf32>
    %118 = arith.addf %114, %117 : vector<72x8xf32>
    %c0_112 = arith.constant 0 : index
    %c2_113 = arith.constant 2 : index
    %c1_114 = arith.constant 1 : index
    %c0_115 = arith.constant 0 : index
    %c0_116 = arith.constant 0 : index
    %119 = vector.load %arg4[%c0_112, %c2_113, %c1_114, %c0_115, %c0_116] : memref<2x3x4x32x8xf32, #tpu.memory_space<vmem>>, vector<1x1x1x32x8xf32>
    %120 = vector.shape_cast %119 : vector<1x1x1x32x8xf32> to vector<32x8xf32>
    %cst_117 = arith.constant dense<0.000000e+00> : vector<72x8xf32>
    %121 = tpu.matmul %63, %120, %cst_117 {dimension_numbers = #tpu.dot_dimension_numbers<[1], [0], [0], [1], [0, 0, 1, 1], [], []>} : vector<72x32xf32>, vector<32x8xf32>, vector<72x8xf32> -> vector<72x8xf32>
    %c0_118 = arith.constant 0 : index
    %c2_119 = arith.constant 2 : index
    %c1_120 = arith.constant 1 : index
    %c0_121 = arith.constant 0 : index
    %c0_122 = arith.constant 0 : index
    %122 = vector.load %arg5[%c0_118, %c2_119, %c1_120, %c0_121, %c0_122] : memref<2x3x4x1x8xf32, #tpu.memory_space<vmem>>, vector<1x1x1x1x8xf32>
    %123 = vector.shape_cast %122 : vector<1x1x1x1x8xf32> to vector<1x8xf32>
    %124 = vector.broadcast %123 : vector<1x8xf32> to vector<72x8xf32>
    %125 = arith.addf %121, %124 : vector<72x8xf32>
    %cst_123 = arith.constant dense<0.000000e+00> : vector<72x72xf32>
    %126 = tpu.matmul %111, %118, %cst_123 {dimension_numbers = #tpu.dot_dimension_numbers<[1], [1], [0], [0], [0, 0, 1, 0], [], []>} : vector<72x8xf32>, vector<72x8xf32>, vector<72x72xf32> -> vector<72x72xf32>
    %cst_124 = arith.constant 0.353553385 : f32
    %127 = vector.broadcast %cst_124 : f32 to vector<72x72xf32>
    %128 = arith.mulf %126, %127 : vector<72x72xf32>
    %129 = arith.addf %128, %37 : vector<72x72xf32>
    %cst_125 = arith.constant dense<0xFF800000> : vector<72xf32>
    %130 = vector.multi_reduction <maximumf>, %129, %cst_125 [1] : vector<72x72xf32> to vector<72xf32>
    %131 = vector.shape_cast %130 : vector<72xf32> to vector<72x1xf32>
    %132 = vector.broadcast %131 : vector<72x1xf32> to vector<72x72xf32>
    %133 = arith.subf %129, %132 : vector<72x72xf32>
    %134 = math.exp %133 : vector<72x72xf32>
    %cst_126 = arith.constant dense<0.000000e+00> : vector<72xf32>
    %135 = vector.multi_reduction <add>, %134, %cst_126 [1] : vector<72x72xf32> to vector<72xf32>
    %136 = vector.shape_cast %135 : vector<72xf32> to vector<72x1xf32>
    %137 = tpu.reciprocal %136 {approx = true} : vector<72x1xf32> -> vector<72x1xf32>
    %138 = vector.broadcast %137 : vector<72x1xf32> to vector<72x72xf32>
    %139 = arith.mulf %134, %138 : vector<72x72xf32>
    %cst_127 = arith.constant dense<0.000000e+00> : vector<72x8xf32>
    %140 = tpu.matmul %139, %125, %cst_127 {dimension_numbers = #tpu.dot_dimension_numbers<[1], [0], [0], [1], [0, 0, 1, 1], [], []>} : vector<72x72xf32>, vector<72x8xf32>, vector<72x8xf32> -> vector<72x8xf32>
    %c0_128 = arith.constant 0 : index
    %c1_129 = arith.constant 1 : index
    %c0_130 = arith.constant 0 : index
    %c0_131 = arith.constant 0 : index
    %141 = vector.load %arg6[%c0_128, %c1_129, %c0_130, %c0_131] : memref<2x4x8x32xf32, #tpu.memory_space<vmem>>, vector<1x1x8x32xf32>
    %142 = vector.shape_cast %141 : vector<1x1x8x32xf32> to vector<8x32xf32>
    %cst_132 = arith.constant dense<0.000000e+00> : vector<72x32xf32>
    %143 = tpu.matmul %140, %142, %cst_132 {dimension_numbers = #tpu.dot_dimension_numbers<[1], [0], [0], [1], [0, 0, 1, 1], [], []>} : vector<72x8xf32>, vector<8x32xf32>, vector<72x32xf32> -> vector<72x32xf32>
    %144 = arith.addf %104, %143 : vector<72x32xf32>
    %c0_133 = arith.constant 0 : index
    %c0_134 = arith.constant 0 : index
    %c2_135 = arith.constant 2 : index
    %c0_136 = arith.constant 0 : index
    %c0_137 = arith.constant 0 : index
    %145 = vector.load %arg4[%c0_133, %c0_134, %c2_135, %c0_136, %c0_137] : memref<2x3x4x32x8xf32, #tpu.memory_space<vmem>>, vector<1x1x1x32x8xf32>
    %146 = vector.shape_cast %145 : vector<1x1x1x32x8xf32> to vector<32x8xf32>
    %cst_138 = arith.constant dense<0.000000e+00> : vector<72x8xf32>
    %147 = tpu.matmul %63, %146, %cst_138 {dimension_numbers = #tpu.dot_dimension_numbers<[1], [0], [0], [1], [0, 0, 1, 1], [], []>} : vector<72x32xf32>, vector<32x8xf32>, vector<72x8xf32> -> vector<72x8xf32>
    %c0_139 = arith.constant 0 : index
    %c0_140 = arith.constant 0 : index
    %c2_141 = arith.constant 2 : index
    %c0_142 = arith.constant 0 : index
    %c0_143 = arith.constant 0 : index
    %148 = vector.load %arg5[%c0_139, %c0_140, %c2_141, %c0_142, %c0_143] : memref<2x3x4x1x8xf32, #tpu.memory_space<vmem>>, vector<1x1x1x1x8xf32>
    %149 = vector.shape_cast %148 : vector<1x1x1x1x8xf32> to vector<1x8xf32>
    %150 = vector.broadcast %149 : vector<1x8xf32> to vector<72x8xf32>
    %151 = arith.addf %147, %150 : vector<72x8xf32>
    %c0_144 = arith.constant 0 : index
    %c1_145 = arith.constant 1 : index
    %c2_146 = arith.constant 2 : index
    %c0_147 = arith.constant 0 : index
    %c0_148 = arith.constant 0 : index
    %152 = vector.load %arg4[%c0_144, %c1_145, %c2_146, %c0_147, %c0_148] : memref<2x3x4x32x8xf32, #tpu.memory_space<vmem>>, vector<1x1x1x32x8xf32>
    %153 = vector.shape_cast %152 : vector<1x1x1x32x8xf32> to vector<32x8xf32>
    %cst_149 = arith.constant dense<0.000000e+00> : vector<72x8xf32>
    %154 = tpu.matmul %63, %153, %cst_149 {dimension_numbers = #tpu.dot_dimension_numbers<[1], [0], [0], [1], [0, 0, 1, 1], [], []>} : vector<72x32xf32>, vector<32x8xf32>, vector<72x8xf32> -> vector<72x8xf32>
    %c0_150 = arith.constant 0 : index
    %c1_151 = arith.constant 1 : index
    %c2_152 = arith.constant 2 : index
    %c0_153 = arith.constant 0 : index
    %c0_154 = arith.constant 0 : index
    %155 = vector.load %arg5[%c0_150, %c1_151, %c2_152, %c0_153, %c0_154] : memref<2x3x4x1x8xf32, #tpu.memory_space<vmem>>, vector<1x1x1x1x8xf32>
    %156 = vector.shape_cast %155 : vector<1x1x1x1x8xf32> to vector<1x8xf32>
    %157 = vector.broadcast %156 : vector<1x8xf32> to vector<72x8xf32>
    %158 = arith.addf %154, %157 : vector<72x8xf32>
    %c0_155 = arith.constant 0 : index
    %c2_156 = arith.constant 2 : index
    %c2_157 = arith.constant 2 : index
    %c0_158 = arith.constant 0 : index
    %c0_159 = arith.constant 0 : index
    %159 = vector.load %arg4[%c0_155, %c2_156, %c2_157, %c0_158, %c0_159] : memref<2x3x4x32x8xf32, #tpu.memory_space<vmem>>, vector<1x1x1x32x8xf32>
    %160 = vector.shape_cast %159 : vector<1x1x1x32x8xf32> to vector<32x8xf32>
    %cst_160 = arith.constant dense<0.000000e+00> : vector<72x8xf32>
    %161 = tpu.matmul %63, %160, %cst_160 {dimension_numbers = #tpu.dot_dimension_numbers<[1], [0], [0], [1], [0, 0, 1, 1], [], []>} : vector<72x32xf32>, vector<32x8xf32>, vector<72x8xf32> -> vector<72x8xf32>
    %c0_161 = arith.constant 0 : index
    %c2_162 = arith.constant 2 : index
    %c2_163 = arith.constant 2 : index
    %c0_164 = arith.constant 0 : index
    %c0_165 = arith.constant 0 : index
    %162 = vector.load %arg5[%c0_161, %c2_162, %c2_163, %c0_164, %c0_165] : memref<2x3x4x1x8xf32, #tpu.memory_space<vmem>>, vector<1x1x1x1x8xf32>
    %163 = vector.shape_cast %162 : vector<1x1x1x1x8xf32> to vector<1x8xf32>
    %164 = vector.broadcast %163 : vector<1x8xf32> to vector<72x8xf32>
    %165 = arith.addf %161, %164 : vector<72x8xf32>
    %cst_166 = arith.constant dense<0.000000e+00> : vector<72x72xf32>
    %166 = tpu.matmul %151, %158, %cst_166 {dimension_numbers = #tpu.dot_dimension_numbers<[1], [1], [0], [0], [0, 0, 1, 0], [], []>} : vector<72x8xf32>, vector<72x8xf32>, vector<72x72xf32> -> vector<72x72xf32>
    %cst_167 = arith.constant 0.353553385 : f32
    %167 = vector.broadcast %cst_167 : f32 to vector<72x72xf32>
    %168 = arith.mulf %166, %167 : vector<72x72xf32>
    %169 = arith.addf %168, %37 : vector<72x72xf32>
    %cst_168 = arith.constant dense<0xFF800000> : vector<72xf32>
    %170 = vector.multi_reduction <maximumf>, %169, %cst_168 [1] : vector<72x72xf32> to vector<72xf32>
    %171 = vector.shape_cast %170 : vector<72xf32> to vector<72x1xf32>
    %172 = vector.broadcast %171 : vector<72x1xf32> to vector<72x72xf32>
    %173 = arith.subf %169, %172 : vector<72x72xf32>
    %174 = math.exp %173 : vector<72x72xf32>
    %cst_169 = arith.constant dense<0.000000e+00> : vector<72xf32>
    %175 = vector.multi_reduction <add>, %174, %cst_169 [1] : vector<72x72xf32> to vector<72xf32>
    %176 = vector.shape_cast %175 : vector<72xf32> to vector<72x1xf32>
    %177 = tpu.reciprocal %176 {approx = true} : vector<72x1xf32> -> vector<72x1xf32>
    %178 = vector.broadcast %177 : vector<72x1xf32> to vector<72x72xf32>
    %179 = arith.mulf %174, %178 : vector<72x72xf32>
    %cst_170 = arith.constant dense<0.000000e+00> : vector<72x8xf32>
    %180 = tpu.matmul %179, %165, %cst_170 {dimension_numbers = #tpu.dot_dimension_numbers<[1], [0], [0], [1], [0, 0, 1, 1], [], []>} : vector<72x72xf32>, vector<72x8xf32>, vector<72x8xf32> -> vector<72x8xf32>
    %c0_171 = arith.constant 0 : index
    %c2_172 = arith.constant 2 : index
    %c0_173 = arith.constant 0 : index
    %c0_174 = arith.constant 0 : index
    %181 = vector.load %arg6[%c0_171, %c2_172, %c0_173, %c0_174] : memref<2x4x8x32xf32, #tpu.memory_space<vmem>>, vector<1x1x8x32xf32>
    %182 = vector.shape_cast %181 : vector<1x1x8x32xf32> to vector<8x32xf32>
    %cst_175 = arith.constant dense<0.000000e+00> : vector<72x32xf32>
    %183 = tpu.matmul %180, %182, %cst_175 {dimension_numbers = #tpu.dot_dimension_numbers<[1], [0], [0], [1], [0, 0, 1, 1], [], []>} : vector<72x8xf32>, vector<8x32xf32>, vector<72x32xf32> -> vector<72x32xf32>
    %184 = arith.addf %144, %183 : vector<72x32xf32>
    %c0_176 = arith.constant 0 : index
    %c0_177 = arith.constant 0 : index
    %c3 = arith.constant 3 : index
    %c0_178 = arith.constant 0 : index
    %c0_179 = arith.constant 0 : index
    %185 = vector.load %arg4[%c0_176, %c0_177, %c3, %c0_178, %c0_179] : memref<2x3x4x32x8xf32, #tpu.memory_space<vmem>>, vector<1x1x1x32x8xf32>
    %186 = vector.shape_cast %185 : vector<1x1x1x32x8xf32> to vector<32x8xf32>
    %cst_180 = arith.constant dense<0.000000e+00> : vector<72x8xf32>
    %187 = tpu.matmul %63, %186, %cst_180 {dimension_numbers = #tpu.dot_dimension_numbers<[1], [0], [0], [1], [0, 0, 1, 1], [], []>} : vector<72x32xf32>, vector<32x8xf32>, vector<72x8xf32> -> vector<72x8xf32>
    %c0_181 = arith.constant 0 : index
    %c0_182 = arith.constant 0 : index
    %c3_183 = arith.constant 3 : index
    %c0_184 = arith.constant 0 : index
    %c0_185 = arith.constant 0 : index
    %188 = vector.load %arg5[%c0_181, %c0_182, %c3_183, %c0_184, %c0_185] : memref<2x3x4x1x8xf32, #tpu.memory_space<vmem>>, vector<1x1x1x1x8xf32>
    %189 = vector.shape_cast %188 : vector<1x1x1x1x8xf32> to vector<1x8xf32>
    %190 = vector.broadcast %189 : vector<1x8xf32> to vector<72x8xf32>
    %191 = arith.addf %187, %190 : vector<72x8xf32>
    %c0_186 = arith.constant 0 : index
    %c1_187 = arith.constant 1 : index
    %c3_188 = arith.constant 3 : index
    %c0_189 = arith.constant 0 : index
    %c0_190 = arith.constant 0 : index
    %192 = vector.load %arg4[%c0_186, %c1_187, %c3_188, %c0_189, %c0_190] : memref<2x3x4x32x8xf32, #tpu.memory_space<vmem>>, vector<1x1x1x32x8xf32>
    %193 = vector.shape_cast %192 : vector<1x1x1x32x8xf32> to vector<32x8xf32>
    %cst_191 = arith.constant dense<0.000000e+00> : vector<72x8xf32>
    %194 = tpu.matmul %63, %193, %cst_191 {dimension_numbers = #tpu.dot_dimension_numbers<[1], [0], [0], [1], [0, 0, 1, 1], [], []>} : vector<72x32xf32>, vector<32x8xf32>, vector<72x8xf32> -> vector<72x8xf32>
    %c0_192 = arith.constant 0 : index
    %c1_193 = arith.constant 1 : index
    %c3_194 = arith.constant 3 : index
    %c0_195 = arith.constant 0 : index
    %c0_196 = arith.constant 0 : index
    %195 = vector.load %arg5[%c0_192, %c1_193, %c3_194, %c0_195, %c0_196] : memref<2x3x4x1x8xf32, #tpu.memory_space<vmem>>, vector<1x1x1x1x8xf32>
    %196 = vector.shape_cast %195 : vector<1x1x1x1x8xf32> to vector<1x8xf32>
    %197 = vector.broadcast %196 : vector<1x8xf32> to vector<72x8xf32>
    %198 = arith.addf %194, %197 : vector<72x8xf32>
    %c0_197 = arith.constant 0 : index
    %c2_198 = arith.constant 2 : index
    %c3_199 = arith.constant 3 : index
    %c0_200 = arith.constant 0 : index
    %c0_201 = arith.constant 0 : index
    %199 = vector.load %arg4[%c0_197, %c2_198, %c3_199, %c0_200, %c0_201] : memref<2x3x4x32x8xf32, #tpu.memory_space<vmem>>, vector<1x1x1x32x8xf32>
    %200 = vector.shape_cast %199 : vector<1x1x1x32x8xf32> to vector<32x8xf32>
    %cst_202 = arith.constant dense<0.000000e+00> : vector<72x8xf32>
    %201 = tpu.matmul %63, %200, %cst_202 {dimension_numbers = #tpu.dot_dimension_numbers<[1], [0], [0], [1], [0, 0, 1, 1], [], []>} : vector<72x32xf32>, vector<32x8xf32>, vector<72x8xf32> -> vector<72x8xf32>
    %c0_203 = arith.constant 0 : index
    %c2_204 = arith.constant 2 : index
    %c3_205 = arith.constant 3 : index
    %c0_206 = arith.constant 0 : index
    %c0_207 = arith.constant 0 : index
    %202 = vector.load %arg5[%c0_203, %c2_204, %c3_205, %c0_206, %c0_207] : memref<2x3x4x1x8xf32, #tpu.memory_space<vmem>>, vector<1x1x1x1x8xf32>
    %203 = vector.shape_cast %202 : vector<1x1x1x1x8xf32> to vector<1x8xf32>
    %204 = vector.broadcast %203 : vector<1x8xf32> to vector<72x8xf32>
    %205 = arith.addf %201, %204 : vector<72x8xf32>
    %cst_208 = arith.constant dense<0.000000e+00> : vector<72x72xf32>
    %206 = tpu.matmul %191, %198, %cst_208 {dimension_numbers = #tpu.dot_dimension_numbers<[1], [1], [0], [0], [0, 0, 1, 0], [], []>} : vector<72x8xf32>, vector<72x8xf32>, vector<72x72xf32> -> vector<72x72xf32>
    %cst_209 = arith.constant 0.353553385 : f32
    %207 = vector.broadcast %cst_209 : f32 to vector<72x72xf32>
    %208 = arith.mulf %206, %207 : vector<72x72xf32>
    %209 = arith.addf %208, %37 : vector<72x72xf32>
    %cst_210 = arith.constant dense<0xFF800000> : vector<72xf32>
    %210 = vector.multi_reduction <maximumf>, %209, %cst_210 [1] : vector<72x72xf32> to vector<72xf32>
    %211 = vector.shape_cast %210 : vector<72xf32> to vector<72x1xf32>
    %212 = vector.broadcast %211 : vector<72x1xf32> to vector<72x72xf32>
    %213 = arith.subf %209, %212 : vector<72x72xf32>
    %214 = math.exp %213 : vector<72x72xf32>
    %cst_211 = arith.constant dense<0.000000e+00> : vector<72xf32>
    %215 = vector.multi_reduction <add>, %214, %cst_211 [1] : vector<72x72xf32> to vector<72xf32>
    %216 = vector.shape_cast %215 : vector<72xf32> to vector<72x1xf32>
    %217 = tpu.reciprocal %216 {approx = true} : vector<72x1xf32> -> vector<72x1xf32>
    %218 = vector.broadcast %217 : vector<72x1xf32> to vector<72x72xf32>
    %219 = arith.mulf %214, %218 : vector<72x72xf32>
    %cst_212 = arith.constant dense<0.000000e+00> : vector<72x8xf32>
    %220 = tpu.matmul %219, %205, %cst_212 {dimension_numbers = #tpu.dot_dimension_numbers<[1], [0], [0], [1], [0, 0, 1, 1], [], []>} : vector<72x72xf32>, vector<72x8xf32>, vector<72x8xf32> -> vector<72x8xf32>
    %c0_213 = arith.constant 0 : index
    %c3_214 = arith.constant 3 : index
    %c0_215 = arith.constant 0 : index
    %c0_216 = arith.constant 0 : index
    %221 = vector.load %arg6[%c0_213, %c3_214, %c0_215, %c0_216] : memref<2x4x8x32xf32, #tpu.memory_space<vmem>>, vector<1x1x8x32xf32>
    %222 = vector.shape_cast %221 : vector<1x1x8x32xf32> to vector<8x32xf32>
    %cst_217 = arith.constant dense<0.000000e+00> : vector<72x32xf32>
    %223 = tpu.matmul %220, %222, %cst_217 {dimension_numbers = #tpu.dot_dimension_numbers<[1], [0], [0], [1], [0, 0, 1, 1], [], []>} : vector<72x8xf32>, vector<8x32xf32>, vector<72x32xf32> -> vector<72x32xf32>
    %224 = arith.addf %184, %223 : vector<72x32xf32>
    %225 = arith.addf %36, %224 : vector<72x32xf32>
    %c0_218 = arith.constant 0 : index
    %c0_219 = arith.constant 0 : index
    %c0_220 = arith.constant 0 : index
    %226 = vector.load %arg7[%c0_218, %c0_219, %c0_220] : memref<2x1x32xf32, #tpu.memory_space<vmem>>, vector<1x1x32xf32>
    %227 = vector.shape_cast %226 : vector<1x1x32xf32> to vector<1x32xf32>
    %228 = vector.broadcast %227 : vector<1x32xf32> to vector<72x32xf32>
    %229 = arith.addf %225, %228 : vector<72x32xf32>
    %c0_221 = arith.constant 0 : index
    %c2_222 = arith.constant 2 : index
    %c0_223 = arith.constant 0 : index
    %c0_224 = arith.constant 0 : index
    %230 = vector.load %arg8[%c0_221, %c2_222, %c0_223, %c0_224] : memref<2x4x1x32xf32, #tpu.memory_space<vmem>>, vector<1x1x1x32xf32>
    %231 = vector.shape_cast %230 : vector<1x1x1x32xf32> to vector<1x32xf32>
    %c0_225 = arith.constant 0 : index
    %c3_226 = arith.constant 3 : index
    %c0_227 = arith.constant 0 : index
    %c0_228 = arith.constant 0 : index
    %232 = vector.load %arg8[%c0_225, %c3_226, %c0_227, %c0_228] : memref<2x4x1x32xf32, #tpu.memory_space<vmem>>, vector<1x1x1x32xf32>
    %233 = vector.shape_cast %232 : vector<1x1x1x32xf32> to vector<1x32xf32>
    %cst_229 = arith.constant dense<0.000000e+00> : vector<72xf32>
    %234 = vector.multi_reduction <add>, %229, %cst_229 [1] : vector<72x32xf32> to vector<72xf32>
    %235 = vector.shape_cast %234 : vector<72xf32> to vector<72x1xf32>
    %cst_230 = arith.constant 3.200000e+01 : f32
    %236 = vector.broadcast %cst_230 : f32 to vector<72x1xf32>
    %237 = arith.divf %235, %236 : vector<72x1xf32>
    %238 = vector.broadcast %237 : vector<72x1xf32> to vector<72x32xf32>
    %239 = arith.subf %229, %238 : vector<72x32xf32>
    %240 = arith.mulf %239, %239 : vector<72x32xf32>
    %cst_231 = arith.constant dense<0.000000e+00> : vector<72xf32>
    %241 = vector.multi_reduction <add>, %240, %cst_231 [1] : vector<72x32xf32> to vector<72xf32>
    %242 = vector.shape_cast %241 : vector<72xf32> to vector<72x1xf32>
    %cst_232 = arith.constant 3.200000e+01 : f32
    %243 = vector.broadcast %cst_232 : f32 to vector<72x1xf32>
    %244 = arith.divf %242, %243 : vector<72x1xf32>
    %245 = vector.broadcast %237 : vector<72x1xf32> to vector<72x32xf32>
    %246 = arith.subf %229, %245 : vector<72x32xf32>
    %cst_233 = arith.constant 9.99999974E-6 : f32
    %247 = vector.broadcast %cst_233 : f32 to vector<72x1xf32>
    %248 = arith.addf %244, %247 : vector<72x1xf32>
    %249 = math.rsqrt %248 : vector<72x1xf32>
    %250 = vector.broadcast %249 : vector<72x1xf32> to vector<72x32xf32>
    %251 = arith.mulf %246, %250 : vector<72x32xf32>
    %252 = vector.broadcast %231 : vector<1x32xf32> to vector<72x32xf32>
    %253 = arith.mulf %251, %252 : vector<72x32xf32>
    %254 = vector.broadcast %233 : vector<1x32xf32> to vector<72x32xf32>
    %255 = arith.addf %253, %254 : vector<72x32xf32>
    %c0_234 = arith.constant 0 : index
    %c0_235 = arith.constant 0 : index
    %c0_236 = arith.constant 0 : index
    %256 = vector.load %arg9[%c0_234, %c0_235, %c0_236] : memref<2x32x128xf32, #tpu.memory_space<vmem>>, vector<1x32x128xf32>
    %257 = vector.shape_cast %256 : vector<1x32x128xf32> to vector<32x128xf32>
    %cst_237 = arith.constant dense<0.000000e+00> : vector<72x128xf32>
    %258 = tpu.matmul %255, %257, %cst_237 {dimension_numbers = #tpu.dot_dimension_numbers<[1], [0], [0], [1], [0, 0, 1, 1], [], []>} : vector<72x32xf32>, vector<32x128xf32>, vector<72x128xf32> -> vector<72x128xf32>
    %c0_238 = arith.constant 0 : index
    %c0_239 = arith.constant 0 : index
    %c0_240 = arith.constant 0 : index
    %259 = vector.load %arg10[%c0_238, %c0_239, %c0_240] : memref<2x1x128xf32, #tpu.memory_space<vmem>>, vector<1x1x128xf32>
    %260 = vector.shape_cast %259 : vector<1x1x128xf32> to vector<1x128xf32>
    %261 = vector.broadcast %260 : vector<1x128xf32> to vector<72x128xf32>
    %262 = arith.addf %258, %261 : vector<72x128xf32>
    %cst_241 = arith.constant 5.000000e-01 : f32
    %263 = vector.broadcast %cst_241 : f32 to vector<72x128xf32>
    %264 = arith.mulf %263, %262 : vector<72x128xf32>
    %cst_242 = arith.constant 0.707106769 : f32
    %265 = vector.broadcast %cst_242 : f32 to vector<72x128xf32>
    %266 = arith.mulf %262, %265 : vector<72x128xf32>
    %267 = math.erf %266 : vector<72x128xf32>
    %cst_243 = arith.constant 1.000000e+00 : f32
    %268 = vector.broadcast %cst_243 : f32 to vector<72x128xf32>
    %269 = arith.addf %268, %267 : vector<72x128xf32>
    %270 = arith.mulf %264, %269 : vector<72x128xf32>
    %c0_244 = arith.constant 0 : index
    %c0_245 = arith.constant 0 : index
    %c0_246 = arith.constant 0 : index
    %271 = vector.load %arg11[%c0_244, %c0_245, %c0_246] : memref<2x128x32xf32, #tpu.memory_space<vmem>>, vector<1x128x32xf32>
    %272 = vector.shape_cast %271 : vector<1x128x32xf32> to vector<128x32xf32>
    %cst_247 = arith.constant dense<0.000000e+00> : vector<72x32xf32>
    %273 = tpu.matmul %270, %272, %cst_247 {dimension_numbers = #tpu.dot_dimension_numbers<[1], [0], [0], [1], [0, 0, 1, 1], [], []>} : vector<72x128xf32>, vector<128x32xf32>, vector<72x32xf32> -> vector<72x32xf32>
    %c0_248 = arith.constant 0 : index
    %c0_249 = arith.constant 0 : index
    %c0_250 = arith.constant 0 : index
    %274 = vector.load %arg12[%c0_248, %c0_249, %c0_250] : memref<2x1x32xf32, #tpu.memory_space<vmem>>, vector<1x1x32xf32>
    %275 = vector.shape_cast %274 : vector<1x1x32xf32> to vector<1x32xf32>
    %276 = vector.broadcast %275 : vector<1x32xf32> to vector<72x32xf32>
    %277 = arith.addf %273, %276 : vector<72x32xf32>
    %278 = arith.addf %229, %277 : vector<72x32xf32>
    %c1_251 = arith.constant 1 : index
    %c0_252 = arith.constant 0 : index
    %c0_253 = arith.constant 0 : index
    %c0_254 = arith.constant 0 : index
    %279 = vector.load %arg8[%c1_251, %c0_252, %c0_253, %c0_254] : memref<2x4x1x32xf32, #tpu.memory_space<vmem>>, vector<1x1x1x32xf32>
    %280 = vector.shape_cast %279 : vector<1x1x1x32xf32> to vector<1x32xf32>
    %c1_255 = arith.constant 1 : index
    %c1_256 = arith.constant 1 : index
    %c0_257 = arith.constant 0 : index
    %c0_258 = arith.constant 0 : index
    %281 = vector.load %arg8[%c1_255, %c1_256, %c0_257, %c0_258] : memref<2x4x1x32xf32, #tpu.memory_space<vmem>>, vector<1x1x1x32xf32>
    %282 = vector.shape_cast %281 : vector<1x1x1x32xf32> to vector<1x32xf32>
    %cst_259 = arith.constant dense<0.000000e+00> : vector<72xf32>
    %283 = vector.multi_reduction <add>, %278, %cst_259 [1] : vector<72x32xf32> to vector<72xf32>
    %284 = vector.shape_cast %283 : vector<72xf32> to vector<72x1xf32>
    %cst_260 = arith.constant 3.200000e+01 : f32
    %285 = vector.broadcast %cst_260 : f32 to vector<72x1xf32>
    %286 = arith.divf %284, %285 : vector<72x1xf32>
    %287 = vector.broadcast %286 : vector<72x1xf32> to vector<72x32xf32>
    %288 = arith.subf %278, %287 : vector<72x32xf32>
    %289 = arith.mulf %288, %288 : vector<72x32xf32>
    %cst_261 = arith.constant dense<0.000000e+00> : vector<72xf32>
    %290 = vector.multi_reduction <add>, %289, %cst_261 [1] : vector<72x32xf32> to vector<72xf32>
    %291 = vector.shape_cast %290 : vector<72xf32> to vector<72x1xf32>
    %cst_262 = arith.constant 3.200000e+01 : f32
    %292 = vector.broadcast %cst_262 : f32 to vector<72x1xf32>
    %293 = arith.divf %291, %292 : vector<72x1xf32>
    %294 = vector.broadcast %286 : vector<72x1xf32> to vector<72x32xf32>
    %295 = arith.subf %278, %294 : vector<72x32xf32>
    %cst_263 = arith.constant 9.99999974E-6 : f32
    %296 = vector.broadcast %cst_263 : f32 to vector<72x1xf32>
    %297 = arith.addf %293, %296 : vector<72x1xf32>
    %298 = math.rsqrt %297 : vector<72x1xf32>
    %299 = vector.broadcast %298 : vector<72x1xf32> to vector<72x32xf32>
    %300 = arith.mulf %295, %299 : vector<72x32xf32>
    %301 = vector.broadcast %280 : vector<1x32xf32> to vector<72x32xf32>
    %302 = arith.mulf %300, %301 : vector<72x32xf32>
    %303 = vector.broadcast %282 : vector<1x32xf32> to vector<72x32xf32>
    %304 = arith.addf %302, %303 : vector<72x32xf32>
    %cst_264 = arith.constant 0.000000e+00 : f32
    %305 = vector.broadcast %cst_264 : f32 to vector<72x32xf32>
    %c1_265 = arith.constant 1 : index
    %c0_266 = arith.constant 0 : index
    %c0_267 = arith.constant 0 : index
    %c0_268 = arith.constant 0 : index
    %c0_269 = arith.constant 0 : index
    %306 = vector.load %arg4[%c1_265, %c0_266, %c0_267, %c0_268, %c0_269] : memref<2x3x4x32x8xf32, #tpu.memory_space<vmem>>, vector<1x1x1x32x8xf32>
    %307 = vector.shape_cast %306 : vector<1x1x1x32x8xf32> to vector<32x8xf32>
    %cst_270 = arith.constant dense<0.000000e+00> : vector<72x8xf32>
    %308 = tpu.matmul %304, %307, %cst_270 {dimension_numbers = #tpu.dot_dimension_numbers<[1], [0], [0], [1], [0, 0, 1, 1], [], []>} : vector<72x32xf32>, vector<32x8xf32>, vector<72x8xf32> -> vector<72x8xf32>
    %c1_271 = arith.constant 1 : index
    %c0_272 = arith.constant 0 : index
    %c0_273 = arith.constant 0 : index
    %c0_274 = arith.constant 0 : index
    %c0_275 = arith.constant 0 : index
    %309 = vector.load %arg5[%c1_271, %c0_272, %c0_273, %c0_274, %c0_275] : memref<2x3x4x1x8xf32, #tpu.memory_space<vmem>>, vector<1x1x1x1x8xf32>
    %310 = vector.shape_cast %309 : vector<1x1x1x1x8xf32> to vector<1x8xf32>
    %311 = vector.broadcast %310 : vector<1x8xf32> to vector<72x8xf32>
    %312 = arith.addf %308, %311 : vector<72x8xf32>
    %c1_276 = arith.constant 1 : index
    %c1_277 = arith.constant 1 : index
    %c0_278 = arith.constant 0 : index
    %c0_279 = arith.constant 0 : index
    %c0_280 = arith.constant 0 : index
    %313 = vector.load %arg4[%c1_276, %c1_277, %c0_278, %c0_279, %c0_280] : memref<2x3x4x32x8xf32, #tpu.memory_space<vmem>>, vector<1x1x1x32x8xf32>
    %314 = vector.shape_cast %313 : vector<1x1x1x32x8xf32> to vector<32x8xf32>
    %cst_281 = arith.constant dense<0.000000e+00> : vector<72x8xf32>
    %315 = tpu.matmul %304, %314, %cst_281 {dimension_numbers = #tpu.dot_dimension_numbers<[1], [0], [0], [1], [0, 0, 1, 1], [], []>} : vector<72x32xf32>, vector<32x8xf32>, vector<72x8xf32> -> vector<72x8xf32>
    %c1_282 = arith.constant 1 : index
    %c1_283 = arith.constant 1 : index
    %c0_284 = arith.constant 0 : index
    %c0_285 = arith.constant 0 : index
    %c0_286 = arith.constant 0 : index
    %316 = vector.load %arg5[%c1_282, %c1_283, %c0_284, %c0_285, %c0_286] : memref<2x3x4x1x8xf32, #tpu.memory_space<vmem>>, vector<1x1x1x1x8xf32>
    %317 = vector.shape_cast %316 : vector<1x1x1x1x8xf32> to vector<1x8xf32>
    %318 = vector.broadcast %317 : vector<1x8xf32> to vector<72x8xf32>
    %319 = arith.addf %315, %318 : vector<72x8xf32>
    %c1_287 = arith.constant 1 : index
    %c2_288 = arith.constant 2 : index
    %c0_289 = arith.constant 0 : index
    %c0_290 = arith.constant 0 : index
    %c0_291 = arith.constant 0 : index
    %320 = vector.load %arg4[%c1_287, %c2_288, %c0_289, %c0_290, %c0_291] : memref<2x3x4x32x8xf32, #tpu.memory_space<vmem>>, vector<1x1x1x32x8xf32>
    %321 = vector.shape_cast %320 : vector<1x1x1x32x8xf32> to vector<32x8xf32>
    %cst_292 = arith.constant dense<0.000000e+00> : vector<72x8xf32>
    %322 = tpu.matmul %304, %321, %cst_292 {dimension_numbers = #tpu.dot_dimension_numbers<[1], [0], [0], [1], [0, 0, 1, 1], [], []>} : vector<72x32xf32>, vector<32x8xf32>, vector<72x8xf32> -> vector<72x8xf32>
    %c1_293 = arith.constant 1 : index
    %c2_294 = arith.constant 2 : index
    %c0_295 = arith.constant 0 : index
    %c0_296 = arith.constant 0 : index
    %c0_297 = arith.constant 0 : index
    %323 = vector.load %arg5[%c1_293, %c2_294, %c0_295, %c0_296, %c0_297] : memref<2x3x4x1x8xf32, #tpu.memory_space<vmem>>, vector<1x1x1x1x8xf32>
    %324 = vector.shape_cast %323 : vector<1x1x1x1x8xf32> to vector<1x8xf32>
    %325 = vector.broadcast %324 : vector<1x8xf32> to vector<72x8xf32>
    %326 = arith.addf %322, %325 : vector<72x8xf32>
    %cst_298 = arith.constant dense<0.000000e+00> : vector<72x72xf32>
    %327 = tpu.matmul %312, %319, %cst_298 {dimension_numbers = #tpu.dot_dimension_numbers<[1], [1], [0], [0], [0, 0, 1, 0], [], []>} : vector<72x8xf32>, vector<72x8xf32>, vector<72x72xf32> -> vector<72x72xf32>
    %cst_299 = arith.constant 0.353553385 : f32
    %328 = vector.broadcast %cst_299 : f32 to vector<72x72xf32>
    %329 = arith.mulf %327, %328 : vector<72x72xf32>
    %330 = arith.addf %329, %37 : vector<72x72xf32>
    %cst_300 = arith.constant dense<0xFF800000> : vector<72xf32>
    %331 = vector.multi_reduction <maximumf>, %330, %cst_300 [1] : vector<72x72xf32> to vector<72xf32>
    %332 = vector.shape_cast %331 : vector<72xf32> to vector<72x1xf32>
    %333 = vector.broadcast %332 : vector<72x1xf32> to vector<72x72xf32>
    %334 = arith.subf %330, %333 : vector<72x72xf32>
    %335 = math.exp %334 : vector<72x72xf32>
    %cst_301 = arith.constant dense<0.000000e+00> : vector<72xf32>
    %336 = vector.multi_reduction <add>, %335, %cst_301 [1] : vector<72x72xf32> to vector<72xf32>
    %337 = vector.shape_cast %336 : vector<72xf32> to vector<72x1xf32>
    %338 = tpu.reciprocal %337 {approx = true} : vector<72x1xf32> -> vector<72x1xf32>
    %339 = vector.broadcast %338 : vector<72x1xf32> to vector<72x72xf32>
    %340 = arith.mulf %335, %339 : vector<72x72xf32>
    %cst_302 = arith.constant dense<0.000000e+00> : vector<72x8xf32>
    %341 = tpu.matmul %340, %326, %cst_302 {dimension_numbers = #tpu.dot_dimension_numbers<[1], [0], [0], [1], [0, 0, 1, 1], [], []>} : vector<72x72xf32>, vector<72x8xf32>, vector<72x8xf32> -> vector<72x8xf32>
    %c1_303 = arith.constant 1 : index
    %c0_304 = arith.constant 0 : index
    %c0_305 = arith.constant 0 : index
    %c0_306 = arith.constant 0 : index
    %342 = vector.load %arg6[%c1_303, %c0_304, %c0_305, %c0_306] : memref<2x4x8x32xf32, #tpu.memory_space<vmem>>, vector<1x1x8x32xf32>
    %343 = vector.shape_cast %342 : vector<1x1x8x32xf32> to vector<8x32xf32>
    %cst_307 = arith.constant dense<0.000000e+00> : vector<72x32xf32>
    %344 = tpu.matmul %341, %343, %cst_307 {dimension_numbers = #tpu.dot_dimension_numbers<[1], [0], [0], [1], [0, 0, 1, 1], [], []>} : vector<72x8xf32>, vector<8x32xf32>, vector<72x32xf32> -> vector<72x32xf32>
    %345 = arith.addf %305, %344 : vector<72x32xf32>
    %c1_308 = arith.constant 1 : index
    %c0_309 = arith.constant 0 : index
    %c1_310 = arith.constant 1 : index
    %c0_311 = arith.constant 0 : index
    %c0_312 = arith.constant 0 : index
    %346 = vector.load %arg4[%c1_308, %c0_309, %c1_310, %c0_311, %c0_312] : memref<2x3x4x32x8xf32, #tpu.memory_space<vmem>>, vector<1x1x1x32x8xf32>
    %347 = vector.shape_cast %346 : vector<1x1x1x32x8xf32> to vector<32x8xf32>
    %cst_313 = arith.constant dense<0.000000e+00> : vector<72x8xf32>
    %348 = tpu.matmul %304, %347, %cst_313 {dimension_numbers = #tpu.dot_dimension_numbers<[1], [0], [0], [1], [0, 0, 1, 1], [], []>} : vector<72x32xf32>, vector<32x8xf32>, vector<72x8xf32> -> vector<72x8xf32>
    %c1_314 = arith.constant 1 : index
    %c0_315 = arith.constant 0 : index
    %c1_316 = arith.constant 1 : index
    %c0_317 = arith.constant 0 : index
    %c0_318 = arith.constant 0 : index
    %349 = vector.load %arg5[%c1_314, %c0_315, %c1_316, %c0_317, %c0_318] : memref<2x3x4x1x8xf32, #tpu.memory_space<vmem>>, vector<1x1x1x1x8xf32>
    %350 = vector.shape_cast %349 : vector<1x1x1x1x8xf32> to vector<1x8xf32>
    %351 = vector.broadcast %350 : vector<1x8xf32> to vector<72x8xf32>
    %352 = arith.addf %348, %351 : vector<72x8xf32>
    %c1_319 = arith.constant 1 : index
    %c1_320 = arith.constant 1 : index
    %c1_321 = arith.constant 1 : index
    %c0_322 = arith.constant 0 : index
    %c0_323 = arith.constant 0 : index
    %353 = vector.load %arg4[%c1_319, %c1_320, %c1_321, %c0_322, %c0_323] : memref<2x3x4x32x8xf32, #tpu.memory_space<vmem>>, vector<1x1x1x32x8xf32>
    %354 = vector.shape_cast %353 : vector<1x1x1x32x8xf32> to vector<32x8xf32>
    %cst_324 = arith.constant dense<0.000000e+00> : vector<72x8xf32>
    %355 = tpu.matmul %304, %354, %cst_324 {dimension_numbers = #tpu.dot_dimension_numbers<[1], [0], [0], [1], [0, 0, 1, 1], [], []>} : vector<72x32xf32>, vector<32x8xf32>, vector<72x8xf32> -> vector<72x8xf32>
    %c1_325 = arith.constant 1 : index
    %c1_326 = arith.constant 1 : index
    %c1_327 = arith.constant 1 : index
    %c0_328 = arith.constant 0 : index
    %c0_329 = arith.constant 0 : index
    %356 = vector.load %arg5[%c1_325, %c1_326, %c1_327, %c0_328, %c0_329] : memref<2x3x4x1x8xf32, #tpu.memory_space<vmem>>, vector<1x1x1x1x8xf32>
    %357 = vector.shape_cast %356 : vector<1x1x1x1x8xf32> to vector<1x8xf32>
    %358 = vector.broadcast %357 : vector<1x8xf32> to vector<72x8xf32>
    %359 = arith.addf %355, %358 : vector<72x8xf32>
    %c1_330 = arith.constant 1 : index
    %c2_331 = arith.constant 2 : index
    %c1_332 = arith.constant 1 : index
    %c0_333 = arith.constant 0 : index
    %c0_334 = arith.constant 0 : index
    %360 = vector.load %arg4[%c1_330, %c2_331, %c1_332, %c0_333, %c0_334] : memref<2x3x4x32x8xf32, #tpu.memory_space<vmem>>, vector<1x1x1x32x8xf32>
    %361 = vector.shape_cast %360 : vector<1x1x1x32x8xf32> to vector<32x8xf32>
    %cst_335 = arith.constant dense<0.000000e+00> : vector<72x8xf32>
    %362 = tpu.matmul %304, %361, %cst_335 {dimension_numbers = #tpu.dot_dimension_numbers<[1], [0], [0], [1], [0, 0, 1, 1], [], []>} : vector<72x32xf32>, vector<32x8xf32>, vector<72x8xf32> -> vector<72x8xf32>
    %c1_336 = arith.constant 1 : index
    %c2_337 = arith.constant 2 : index
    %c1_338 = arith.constant 1 : index
    %c0_339 = arith.constant 0 : index
    %c0_340 = arith.constant 0 : index
    %363 = vector.load %arg5[%c1_336, %c2_337, %c1_338, %c0_339, %c0_340] : memref<2x3x4x1x8xf32, #tpu.memory_space<vmem>>, vector<1x1x1x1x8xf32>
    %364 = vector.shape_cast %363 : vector<1x1x1x1x8xf32> to vector<1x8xf32>
    %365 = vector.broadcast %364 : vector<1x8xf32> to vector<72x8xf32>
    %366 = arith.addf %362, %365 : vector<72x8xf32>
    %cst_341 = arith.constant dense<0.000000e+00> : vector<72x72xf32>
    %367 = tpu.matmul %352, %359, %cst_341 {dimension_numbers = #tpu.dot_dimension_numbers<[1], [1], [0], [0], [0, 0, 1, 0], [], []>} : vector<72x8xf32>, vector<72x8xf32>, vector<72x72xf32> -> vector<72x72xf32>
    %cst_342 = arith.constant 0.353553385 : f32
    %368 = vector.broadcast %cst_342 : f32 to vector<72x72xf32>
    %369 = arith.mulf %367, %368 : vector<72x72xf32>
    %370 = arith.addf %369, %37 : vector<72x72xf32>
    %cst_343 = arith.constant dense<0xFF800000> : vector<72xf32>
    %371 = vector.multi_reduction <maximumf>, %370, %cst_343 [1] : vector<72x72xf32> to vector<72xf32>
    %372 = vector.shape_cast %371 : vector<72xf32> to vector<72x1xf32>
    %373 = vector.broadcast %372 : vector<72x1xf32> to vector<72x72xf32>
    %374 = arith.subf %370, %373 : vector<72x72xf32>
    %375 = math.exp %374 : vector<72x72xf32>
    %cst_344 = arith.constant dense<0.000000e+00> : vector<72xf32>
    %376 = vector.multi_reduction <add>, %375, %cst_344 [1] : vector<72x72xf32> to vector<72xf32>
    %377 = vector.shape_cast %376 : vector<72xf32> to vector<72x1xf32>
    %378 = tpu.reciprocal %377 {approx = true} : vector<72x1xf32> -> vector<72x1xf32>
    %379 = vector.broadcast %378 : vector<72x1xf32> to vector<72x72xf32>
    %380 = arith.mulf %375, %379 : vector<72x72xf32>
    %cst_345 = arith.constant dense<0.000000e+00> : vector<72x8xf32>
    %381 = tpu.matmul %380, %366, %cst_345 {dimension_numbers = #tpu.dot_dimension_numbers<[1], [0], [0], [1], [0, 0, 1, 1], [], []>} : vector<72x72xf32>, vector<72x8xf32>, vector<72x8xf32> -> vector<72x8xf32>
    %c1_346 = arith.constant 1 : index
    %c1_347 = arith.constant 1 : index
    %c0_348 = arith.constant 0 : index
    %c0_349 = arith.constant 0 : index
    %382 = vector.load %arg6[%c1_346, %c1_347, %c0_348, %c0_349] : memref<2x4x8x32xf32, #tpu.memory_space<vmem>>, vector<1x1x8x32xf32>
    %383 = vector.shape_cast %382 : vector<1x1x8x32xf32> to vector<8x32xf32>
    %cst_350 = arith.constant dense<0.000000e+00> : vector<72x32xf32>
    %384 = tpu.matmul %381, %383, %cst_350 {dimension_numbers = #tpu.dot_dimension_numbers<[1], [0], [0], [1], [0, 0, 1, 1], [], []>} : vector<72x8xf32>, vector<8x32xf32>, vector<72x32xf32> -> vector<72x32xf32>
    %385 = arith.addf %345, %384 : vector<72x32xf32>
    %c1_351 = arith.constant 1 : index
    %c0_352 = arith.constant 0 : index
    %c2_353 = arith.constant 2 : index
    %c0_354 = arith.constant 0 : index
    %c0_355 = arith.constant 0 : index
    %386 = vector.load %arg4[%c1_351, %c0_352, %c2_353, %c0_354, %c0_355] : memref<2x3x4x32x8xf32, #tpu.memory_space<vmem>>, vector<1x1x1x32x8xf32>
    %387 = vector.shape_cast %386 : vector<1x1x1x32x8xf32> to vector<32x8xf32>
    %cst_356 = arith.constant dense<0.000000e+00> : vector<72x8xf32>
    %388 = tpu.matmul %304, %387, %cst_356 {dimension_numbers = #tpu.dot_dimension_numbers<[1], [0], [0], [1], [0, 0, 1, 1], [], []>} : vector<72x32xf32>, vector<32x8xf32>, vector<72x8xf32> -> vector<72x8xf32>
    %c1_357 = arith.constant 1 : index
    %c0_358 = arith.constant 0 : index
    %c2_359 = arith.constant 2 : index
    %c0_360 = arith.constant 0 : index
    %c0_361 = arith.constant 0 : index
    %389 = vector.load %arg5[%c1_357, %c0_358, %c2_359, %c0_360, %c0_361] : memref<2x3x4x1x8xf32, #tpu.memory_space<vmem>>, vector<1x1x1x1x8xf32>
    %390 = vector.shape_cast %389 : vector<1x1x1x1x8xf32> to vector<1x8xf32>
    %391 = vector.broadcast %390 : vector<1x8xf32> to vector<72x8xf32>
    %392 = arith.addf %388, %391 : vector<72x8xf32>
    %c1_362 = arith.constant 1 : index
    %c1_363 = arith.constant 1 : index
    %c2_364 = arith.constant 2 : index
    %c0_365 = arith.constant 0 : index
    %c0_366 = arith.constant 0 : index
    %393 = vector.load %arg4[%c1_362, %c1_363, %c2_364, %c0_365, %c0_366] : memref<2x3x4x32x8xf32, #tpu.memory_space<vmem>>, vector<1x1x1x32x8xf32>
    %394 = vector.shape_cast %393 : vector<1x1x1x32x8xf32> to vector<32x8xf32>
    %cst_367 = arith.constant dense<0.000000e+00> : vector<72x8xf32>
    %395 = tpu.matmul %304, %394, %cst_367 {dimension_numbers = #tpu.dot_dimension_numbers<[1], [0], [0], [1], [0, 0, 1, 1], [], []>} : vector<72x32xf32>, vector<32x8xf32>, vector<72x8xf32> -> vector<72x8xf32>
    %c1_368 = arith.constant 1 : index
    %c1_369 = arith.constant 1 : index
    %c2_370 = arith.constant 2 : index
    %c0_371 = arith.constant 0 : index
    %c0_372 = arith.constant 0 : index
    %396 = vector.load %arg5[%c1_368, %c1_369, %c2_370, %c0_371, %c0_372] : memref<2x3x4x1x8xf32, #tpu.memory_space<vmem>>, vector<1x1x1x1x8xf32>
    %397 = vector.shape_cast %396 : vector<1x1x1x1x8xf32> to vector<1x8xf32>
    %398 = vector.broadcast %397 : vector<1x8xf32> to vector<72x8xf32>
    %399 = arith.addf %395, %398 : vector<72x8xf32>
    %c1_373 = arith.constant 1 : index
    %c2_374 = arith.constant 2 : index
    %c2_375 = arith.constant 2 : index
    %c0_376 = arith.constant 0 : index
    %c0_377 = arith.constant 0 : index
    %400 = vector.load %arg4[%c1_373, %c2_374, %c2_375, %c0_376, %c0_377] : memref<2x3x4x32x8xf32, #tpu.memory_space<vmem>>, vector<1x1x1x32x8xf32>
    %401 = vector.shape_cast %400 : vector<1x1x1x32x8xf32> to vector<32x8xf32>
    %cst_378 = arith.constant dense<0.000000e+00> : vector<72x8xf32>
    %402 = tpu.matmul %304, %401, %cst_378 {dimension_numbers = #tpu.dot_dimension_numbers<[1], [0], [0], [1], [0, 0, 1, 1], [], []>} : vector<72x32xf32>, vector<32x8xf32>, vector<72x8xf32> -> vector<72x8xf32>
    %c1_379 = arith.constant 1 : index
    %c2_380 = arith.constant 2 : index
    %c2_381 = arith.constant 2 : index
    %c0_382 = arith.constant 0 : index
    %c0_383 = arith.constant 0 : index
    %403 = vector.load %arg5[%c1_379, %c2_380, %c2_381, %c0_382, %c0_383] : memref<2x3x4x1x8xf32, #tpu.memory_space<vmem>>, vector<1x1x1x1x8xf32>
    %404 = vector.shape_cast %403 : vector<1x1x1x1x8xf32> to vector<1x8xf32>
    %405 = vector.broadcast %404 : vector<1x8xf32> to vector<72x8xf32>
    %406 = arith.addf %402, %405 : vector<72x8xf32>
    %cst_384 = arith.constant dense<0.000000e+00> : vector<72x72xf32>
    %407 = tpu.matmul %392, %399, %cst_384 {dimension_numbers = #tpu.dot_dimension_numbers<[1], [1], [0], [0], [0, 0, 1, 0], [], []>} : vector<72x8xf32>, vector<72x8xf32>, vector<72x72xf32> -> vector<72x72xf32>
    %cst_385 = arith.constant 0.353553385 : f32
    %408 = vector.broadcast %cst_385 : f32 to vector<72x72xf32>
    %409 = arith.mulf %407, %408 : vector<72x72xf32>
    %410 = arith.addf %409, %37 : vector<72x72xf32>
    %cst_386 = arith.constant dense<0xFF800000> : vector<72xf32>
    %411 = vector.multi_reduction <maximumf>, %410, %cst_386 [1] : vector<72x72xf32> to vector<72xf32>
    %412 = vector.shape_cast %411 : vector<72xf32> to vector<72x1xf32>
    %413 = vector.broadcast %412 : vector<72x1xf32> to vector<72x72xf32>
    %414 = arith.subf %410, %413 : vector<72x72xf32>
    %415 = math.exp %414 : vector<72x72xf32>
    %cst_387 = arith.constant dense<0.000000e+00> : vector<72xf32>
    %416 = vector.multi_reduction <add>, %415, %cst_387 [1] : vector<72x72xf32> to vector<72xf32>
    %417 = vector.shape_cast %416 : vector<72xf32> to vector<72x1xf32>
    %418 = tpu.reciprocal %417 {approx = true} : vector<72x1xf32> -> vector<72x1xf32>
    %419 = vector.broadcast %418 : vector<72x1xf32> to vector<72x72xf32>
    %420 = arith.mulf %415, %419 : vector<72x72xf32>
    %cst_388 = arith.constant dense<0.000000e+00> : vector<72x8xf32>
    %421 = tpu.matmul %420, %406, %cst_388 {dimension_numbers = #tpu.dot_dimension_numbers<[1], [0], [0], [1], [0, 0, 1, 1], [], []>} : vector<72x72xf32>, vector<72x8xf32>, vector<72x8xf32> -> vector<72x8xf32>
    %c1_389 = arith.constant 1 : index
    %c2_390 = arith.constant 2 : index
    %c0_391 = arith.constant 0 : index
    %c0_392 = arith.constant 0 : index
    %422 = vector.load %arg6[%c1_389, %c2_390, %c0_391, %c0_392] : memref<2x4x8x32xf32, #tpu.memory_space<vmem>>, vector<1x1x8x32xf32>
    %423 = vector.shape_cast %422 : vector<1x1x8x32xf32> to vector<8x32xf32>
    %cst_393 = arith.constant dense<0.000000e+00> : vector<72x32xf32>
    %424 = tpu.matmul %421, %423, %cst_393 {dimension_numbers = #tpu.dot_dimension_numbers<[1], [0], [0], [1], [0, 0, 1, 1], [], []>} : vector<72x8xf32>, vector<8x32xf32>, vector<72x32xf32> -> vector<72x32xf32>
    %425 = arith.addf %385, %424 : vector<72x32xf32>
    %c1_394 = arith.constant 1 : index
    %c0_395 = arith.constant 0 : index
    %c3_396 = arith.constant 3 : index
    %c0_397 = arith.constant 0 : index
    %c0_398 = arith.constant 0 : index
    %426 = vector.load %arg4[%c1_394, %c0_395, %c3_396, %c0_397, %c0_398] : memref<2x3x4x32x8xf32, #tpu.memory_space<vmem>>, vector<1x1x1x32x8xf32>
    %427 = vector.shape_cast %426 : vector<1x1x1x32x8xf32> to vector<32x8xf32>
    %cst_399 = arith.constant dense<0.000000e+00> : vector<72x8xf32>
    %428 = tpu.matmul %304, %427, %cst_399 {dimension_numbers = #tpu.dot_dimension_numbers<[1], [0], [0], [1], [0, 0, 1, 1], [], []>} : vector<72x32xf32>, vector<32x8xf32>, vector<72x8xf32> -> vector<72x8xf32>
    %c1_400 = arith.constant 1 : index
    %c0_401 = arith.constant 0 : index
    %c3_402 = arith.constant 3 : index
    %c0_403 = arith.constant 0 : index
    %c0_404 = arith.constant 0 : index
    %429 = vector.load %arg5[%c1_400, %c0_401, %c3_402, %c0_403, %c0_404] : memref<2x3x4x1x8xf32, #tpu.memory_space<vmem>>, vector<1x1x1x1x8xf32>
    %430 = vector.shape_cast %429 : vector<1x1x1x1x8xf32> to vector<1x8xf32>
    %431 = vector.broadcast %430 : vector<1x8xf32> to vector<72x8xf32>
    %432 = arith.addf %428, %431 : vector<72x8xf32>
    %c1_405 = arith.constant 1 : index
    %c1_406 = arith.constant 1 : index
    %c3_407 = arith.constant 3 : index
    %c0_408 = arith.constant 0 : index
    %c0_409 = arith.constant 0 : index
    %433 = vector.load %arg4[%c1_405, %c1_406, %c3_407, %c0_408, %c0_409] : memref<2x3x4x32x8xf32, #tpu.memory_space<vmem>>, vector<1x1x1x32x8xf32>
    %434 = vector.shape_cast %433 : vector<1x1x1x32x8xf32> to vector<32x8xf32>
    %cst_410 = arith.constant dense<0.000000e+00> : vector<72x8xf32>
    %435 = tpu.matmul %304, %434, %cst_410 {dimension_numbers = #tpu.dot_dimension_numbers<[1], [0], [0], [1], [0, 0, 1, 1], [], []>} : vector<72x32xf32>, vector<32x8xf32>, vector<72x8xf32> -> vector<72x8xf32>
    %c1_411 = arith.constant 1 : index
    %c1_412 = arith.constant 1 : index
    %c3_413 = arith.constant 3 : index
    %c0_414 = arith.constant 0 : index
    %c0_415 = arith.constant 0 : index
    %436 = vector.load %arg5[%c1_411, %c1_412, %c3_413, %c0_414, %c0_415] : memref<2x3x4x1x8xf32, #tpu.memory_space<vmem>>, vector<1x1x1x1x8xf32>
    %437 = vector.shape_cast %436 : vector<1x1x1x1x8xf32> to vector<1x8xf32>
    %438 = vector.broadcast %437 : vector<1x8xf32> to vector<72x8xf32>
    %439 = arith.addf %435, %438 : vector<72x8xf32>
    %c1_416 = arith.constant 1 : index
    %c2_417 = arith.constant 2 : index
    %c3_418 = arith.constant 3 : index
    %c0_419 = arith.constant 0 : index
    %c0_420 = arith.constant 0 : index
    %440 = vector.load %arg4[%c1_416, %c2_417, %c3_418, %c0_419, %c0_420] : memref<2x3x4x32x8xf32, #tpu.memory_space<vmem>>, vector<1x1x1x32x8xf32>
    %441 = vector.shape_cast %440 : vector<1x1x1x32x8xf32> to vector<32x8xf32>
    %cst_421 = arith.constant dense<0.000000e+00> : vector<72x8xf32>
    %442 = tpu.matmul %304, %441, %cst_421 {dimension_numbers = #tpu.dot_dimension_numbers<[1], [0], [0], [1], [0, 0, 1, 1], [], []>} : vector<72x32xf32>, vector<32x8xf32>, vector<72x8xf32> -> vector<72x8xf32>
    %c1_422 = arith.constant 1 : index
    %c2_423 = arith.constant 2 : index
    %c3_424 = arith.constant 3 : index
    %c0_425 = arith.constant 0 : index
    %c0_426 = arith.constant 0 : index
    %443 = vector.load %arg5[%c1_422, %c2_423, %c3_424, %c0_425, %c0_426] : memref<2x3x4x1x8xf32, #tpu.memory_space<vmem>>, vector<1x1x1x1x8xf32>
    %444 = vector.shape_cast %443 : vector<1x1x1x1x8xf32> to vector<1x8xf32>
    %445 = vector.broadcast %444 : vector<1x8xf32> to vector<72x8xf32>
    %446 = arith.addf %442, %445 : vector<72x8xf32>
    %cst_427 = arith.constant dense<0.000000e+00> : vector<72x72xf32>
    %447 = tpu.matmul %432, %439, %cst_427 {dimension_numbers = #tpu.dot_dimension_numbers<[1], [1], [0], [0], [0, 0, 1, 0], [], []>} : vector<72x8xf32>, vector<72x8xf32>, vector<72x72xf32> -> vector<72x72xf32>
    %cst_428 = arith.constant 0.353553385 : f32
    %448 = vector.broadcast %cst_428 : f32 to vector<72x72xf32>
    %449 = arith.mulf %447, %448 : vector<72x72xf32>
    %450 = arith.addf %449, %37 : vector<72x72xf32>
    %cst_429 = arith.constant dense<0xFF800000> : vector<72xf32>
    %451 = vector.multi_reduction <maximumf>, %450, %cst_429 [1] : vector<72x72xf32> to vector<72xf32>
    %452 = vector.shape_cast %451 : vector<72xf32> to vector<72x1xf32>
    %453 = vector.broadcast %452 : vector<72x1xf32> to vector<72x72xf32>
    %454 = arith.subf %450, %453 : vector<72x72xf32>
    %455 = math.exp %454 : vector<72x72xf32>
    %cst_430 = arith.constant dense<0.000000e+00> : vector<72xf32>
    %456 = vector.multi_reduction <add>, %455, %cst_430 [1] : vector<72x72xf32> to vector<72xf32>
    %457 = vector.shape_cast %456 : vector<72xf32> to vector<72x1xf32>
    %458 = tpu.reciprocal %457 {approx = true} : vector<72x1xf32> -> vector<72x1xf32>
    %459 = vector.broadcast %458 : vector<72x1xf32> to vector<72x72xf32>
    %460 = arith.mulf %455, %459 : vector<72x72xf32>
    %cst_431 = arith.constant dense<0.000000e+00> : vector<72x8xf32>
    %461 = tpu.matmul %460, %446, %cst_431 {dimension_numbers = #tpu.dot_dimension_numbers<[1], [0], [0], [1], [0, 0, 1, 1], [], []>} : vector<72x72xf32>, vector<72x8xf32>, vector<72x8xf32> -> vector<72x8xf32>
    %c1_432 = arith.constant 1 : index
    %c3_433 = arith.constant 3 : index
    %c0_434 = arith.constant 0 : index
    %c0_435 = arith.constant 0 : index
    %462 = vector.load %arg6[%c1_432, %c3_433, %c0_434, %c0_435] : memref<2x4x8x32xf32, #tpu.memory_space<vmem>>, vector<1x1x8x32xf32>
    %463 = vector.shape_cast %462 : vector<1x1x8x32xf32> to vector<8x32xf32>
    %cst_436 = arith.constant dense<0.000000e+00> : vector<72x32xf32>
    %464 = tpu.matmul %461, %463, %cst_436 {dimension_numbers = #tpu.dot_dimension_numbers<[1], [0], [0], [1], [0, 0, 1, 1], [], []>} : vector<72x8xf32>, vector<8x32xf32>, vector<72x32xf32> -> vector<72x32xf32>
    %465 = arith.addf %425, %464 : vector<72x32xf32>
    %466 = arith.addf %278, %465 : vector<72x32xf32>
    %c1_437 = arith.constant 1 : index
    %c0_438 = arith.constant 0 : index
    %c0_439 = arith.constant 0 : index
    %467 = vector.load %arg7[%c1_437, %c0_438, %c0_439] : memref<2x1x32xf32, #tpu.memory_space<vmem>>, vector<1x1x32xf32>
    %468 = vector.shape_cast %467 : vector<1x1x32xf32> to vector<1x32xf32>
    %469 = vector.broadcast %468 : vector<1x32xf32> to vector<72x32xf32>
    %470 = arith.addf %466, %469 : vector<72x32xf32>
    %c1_440 = arith.constant 1 : index
    %c2_441 = arith.constant 2 : index
    %c0_442 = arith.constant 0 : index
    %c0_443 = arith.constant 0 : index
    %471 = vector.load %arg8[%c1_440, %c2_441, %c0_442, %c0_443] : memref<2x4x1x32xf32, #tpu.memory_space<vmem>>, vector<1x1x1x32xf32>
    %472 = vector.shape_cast %471 : vector<1x1x1x32xf32> to vector<1x32xf32>
    %c1_444 = arith.constant 1 : index
    %c3_445 = arith.constant 3 : index
    %c0_446 = arith.constant 0 : index
    %c0_447 = arith.constant 0 : index
    %473 = vector.load %arg8[%c1_444, %c3_445, %c0_446, %c0_447] : memref<2x4x1x32xf32, #tpu.memory_space<vmem>>, vector<1x1x1x32xf32>
    %474 = vector.shape_cast %473 : vector<1x1x1x32xf32> to vector<1x32xf32>
    %cst_448 = arith.constant dense<0.000000e+00> : vector<72xf32>
    %475 = vector.multi_reduction <add>, %470, %cst_448 [1] : vector<72x32xf32> to vector<72xf32>
    %476 = vector.shape_cast %475 : vector<72xf32> to vector<72x1xf32>
    %cst_449 = arith.constant 3.200000e+01 : f32
    %477 = vector.broadcast %cst_449 : f32 to vector<72x1xf32>
    %478 = arith.divf %476, %477 : vector<72x1xf32>
    %479 = vector.broadcast %478 : vector<72x1xf32> to vector<72x32xf32>
    %480 = arith.subf %470, %479 : vector<72x32xf32>
    %481 = arith.mulf %480, %480 : vector<72x32xf32>
    %cst_450 = arith.constant dense<0.000000e+00> : vector<72xf32>
    %482 = vector.multi_reduction <add>, %481, %cst_450 [1] : vector<72x32xf32> to vector<72xf32>
    %483 = vector.shape_cast %482 : vector<72xf32> to vector<72x1xf32>
    %cst_451 = arith.constant 3.200000e+01 : f32
    %484 = vector.broadcast %cst_451 : f32 to vector<72x1xf32>
    %485 = arith.divf %483, %484 : vector<72x1xf32>
    %486 = vector.broadcast %478 : vector<72x1xf32> to vector<72x32xf32>
    %487 = arith.subf %470, %486 : vector<72x32xf32>
    %cst_452 = arith.constant 9.99999974E-6 : f32
    %488 = vector.broadcast %cst_452 : f32 to vector<72x1xf32>
    %489 = arith.addf %485, %488 : vector<72x1xf32>
    %490 = math.rsqrt %489 : vector<72x1xf32>
    %491 = vector.broadcast %490 : vector<72x1xf32> to vector<72x32xf32>
    %492 = arith.mulf %487, %491 : vector<72x32xf32>
    %493 = vector.broadcast %472 : vector<1x32xf32> to vector<72x32xf32>
    %494 = arith.mulf %492, %493 : vector<72x32xf32>
    %495 = vector.broadcast %474 : vector<1x32xf32> to vector<72x32xf32>
    %496 = arith.addf %494, %495 : vector<72x32xf32>
    %c1_453 = arith.constant 1 : index
    %c0_454 = arith.constant 0 : index
    %c0_455 = arith.constant 0 : index
    %497 = vector.load %arg9[%c1_453, %c0_454, %c0_455] : memref<2x32x128xf32, #tpu.memory_space<vmem>>, vector<1x32x128xf32>
    %498 = vector.shape_cast %497 : vector<1x32x128xf32> to vector<32x128xf32>
    %cst_456 = arith.constant dense<0.000000e+00> : vector<72x128xf32>
    %499 = tpu.matmul %496, %498, %cst_456 {dimension_numbers = #tpu.dot_dimension_numbers<[1], [0], [0], [1], [0, 0, 1, 1], [], []>} : vector<72x32xf32>, vector<32x128xf32>, vector<72x128xf32> -> vector<72x128xf32>
    %c1_457 = arith.constant 1 : index
    %c0_458 = arith.constant 0 : index
    %c0_459 = arith.constant 0 : index
    %500 = vector.load %arg10[%c1_457, %c0_458, %c0_459] : memref<2x1x128xf32, #tpu.memory_space<vmem>>, vector<1x1x128xf32>
    %501 = vector.shape_cast %500 : vector<1x1x128xf32> to vector<1x128xf32>
    %502 = vector.broadcast %501 : vector<1x128xf32> to vector<72x128xf32>
    %503 = arith.addf %499, %502 : vector<72x128xf32>
    %cst_460 = arith.constant 5.000000e-01 : f32
    %504 = vector.broadcast %cst_460 : f32 to vector<72x128xf32>
    %505 = arith.mulf %504, %503 : vector<72x128xf32>
    %cst_461 = arith.constant 0.707106769 : f32
    %506 = vector.broadcast %cst_461 : f32 to vector<72x128xf32>
    %507 = arith.mulf %503, %506 : vector<72x128xf32>
    %508 = math.erf %507 : vector<72x128xf32>
    %cst_462 = arith.constant 1.000000e+00 : f32
    %509 = vector.broadcast %cst_462 : f32 to vector<72x128xf32>
    %510 = arith.addf %509, %508 : vector<72x128xf32>
    %511 = arith.mulf %505, %510 : vector<72x128xf32>
    %c1_463 = arith.constant 1 : index
    %c0_464 = arith.constant 0 : index
    %c0_465 = arith.constant 0 : index
    %512 = vector.load %arg11[%c1_463, %c0_464, %c0_465] : memref<2x128x32xf32, #tpu.memory_space<vmem>>, vector<1x128x32xf32>
    %513 = vector.shape_cast %512 : vector<1x128x32xf32> to vector<128x32xf32>
    %cst_466 = arith.constant dense<0.000000e+00> : vector<72x32xf32>
    %514 = tpu.matmul %511, %513, %cst_466 {dimension_numbers = #tpu.dot_dimension_numbers<[1], [0], [0], [1], [0, 0, 1, 1], [], []>} : vector<72x128xf32>, vector<128x32xf32>, vector<72x32xf32> -> vector<72x32xf32>
    %c1_467 = arith.constant 1 : index
    %c0_468 = arith.constant 0 : index
    %c0_469 = arith.constant 0 : index
    %515 = vector.load %arg12[%c1_467, %c0_468, %c0_469] : memref<2x1x32xf32, #tpu.memory_space<vmem>>, vector<1x1x32xf32>
    %516 = vector.shape_cast %515 : vector<1x1x32xf32> to vector<1x32xf32>
    %517 = vector.broadcast %516 : vector<1x32xf32> to vector<72x32xf32>
    %518 = arith.addf %514, %517 : vector<72x32xf32>
    %519 = arith.addf %470, %518 : vector<72x32xf32>
    %c0_470 = arith.constant 0 : index
    %c0_471 = arith.constant 0 : index
    %c0_472 = arith.constant 0 : index
    %520 = vector.load %arg13[%c0_470, %c0_471, %c0_472] : memref<2x1x32xf32, #tpu.memory_space<vmem>>, vector<1x1x32xf32>
    %521 = vector.shape_cast %520 : vector<1x1x32xf32> to vector<1x32xf32>
    %c1_473 = arith.constant 1 : index
    %c0_474 = arith.constant 0 : index
    %c0_475 = arith.constant 0 : index
    %522 = vector.load %arg13[%c1_473, %c0_474, %c0_475] : memref<2x1x32xf32, #tpu.memory_space<vmem>>, vector<1x1x32xf32>
    %523 = vector.shape_cast %522 : vector<1x1x32xf32> to vector<1x32xf32>
    %cst_476 = arith.constant dense<0.000000e+00> : vector<72xf32>
    %524 = vector.multi_reduction <add>, %519, %cst_476 [1] : vector<72x32xf32> to vector<72xf32>
    %525 = vector.shape_cast %524 : vector<72xf32> to vector<72x1xf32>
    %cst_477 = arith.constant 3.200000e+01 : f32
    %526 = vector.broadcast %cst_477 : f32 to vector<72x1xf32>
    %527 = arith.divf %525, %526 : vector<72x1xf32>
    %528 = vector.broadcast %527 : vector<72x1xf32> to vector<72x32xf32>
    %529 = arith.subf %519, %528 : vector<72x32xf32>
    %530 = arith.mulf %529, %529 : vector<72x32xf32>
    %cst_478 = arith.constant dense<0.000000e+00> : vector<72xf32>
    %531 = vector.multi_reduction <add>, %530, %cst_478 [1] : vector<72x32xf32> to vector<72xf32>
    %532 = vector.shape_cast %531 : vector<72xf32> to vector<72x1xf32>
    %cst_479 = arith.constant 3.200000e+01 : f32
    %533 = vector.broadcast %cst_479 : f32 to vector<72x1xf32>
    %534 = arith.divf %532, %533 : vector<72x1xf32>
    %535 = vector.broadcast %527 : vector<72x1xf32> to vector<72x32xf32>
    %536 = arith.subf %519, %535 : vector<72x32xf32>
    %cst_480 = arith.constant 9.99999974E-6 : f32
    %537 = vector.broadcast %cst_480 : f32 to vector<72x1xf32>
    %538 = arith.addf %534, %537 : vector<72x1xf32>
    %539 = math.rsqrt %538 : vector<72x1xf32>
    %540 = vector.broadcast %539 : vector<72x1xf32> to vector<72x32xf32>
    %541 = arith.mulf %536, %540 : vector<72x32xf32>
    %542 = vector.broadcast %521 : vector<1x32xf32> to vector<72x32xf32>
    %543 = arith.mulf %541, %542 : vector<72x32xf32>
    %544 = vector.broadcast %523 : vector<1x32xf32> to vector<72x32xf32>
    %545 = arith.addf %543, %544 : vector<72x32xf32>
    %c0_481 = arith.constant 0 : index
    %c0_482 = arith.constant 0 : index
    %546 = vector.load %arg16[%c0_481, %c0_482] : memref<72x32xf32, #tpu.memory_space<vmem>>, vector<72x32xf32>
    tpu.vector_store %arg16[%c0_481, %c0_482], %545 {strides = array<i32>} : memref<72x32xf32, #tpu.memory_space<vmem>>, vector<72x32xf32>,
    %c0_483 = arith.constant 0 : index
    %c0_484 = arith.constant 0 : index
    %547 = vector.load %arg16[%c0_483, %c0_484] : memref<72x32xf32, #tpu.memory_space<vmem>>, vector<1x32xf32>
    %c0_485 = arith.constant 0 : index
    %c0_486 = arith.constant 0 : index
    %548 = vector.load %arg15[%c0_485, %c0_486] : memref<8x32xf32, #tpu.memory_space<vmem>>, vector<1x32xf32>
    tpu.vector_store %arg15[%c0_485, %c0_486], %547 {strides = array<i32>} : memref<8x32xf32, #tpu.memory_space<vmem>>, vector<1x32xf32>,
    %c1_487 = arith.constant 1 : index
    %c0_488 = arith.constant 0 : index
    %549 = vector.load %arg16[%c1_487, %c0_488] : memref<72x32xf32, #tpu.memory_space<vmem>>, vector<8x32xf32>
    %c0_489 = arith.constant 0 : index
    %c0_490 = arith.constant 0 : index
    %550 = vector.load %arg0[%c0_489, %c0_490] : memref<64x32xf32, #tpu.memory_space<vmem>>, vector<8x32xf32>
    %551 = arith.addf %549, %550 : vector<8x32xf32>
    %c0_491 = arith.constant 0 : index
    %c0_492 = arith.constant 0 : index
    %552 = vector.load %arg14[%c0_491, %c0_492] : memref<64x32xf32, #tpu.memory_space<vmem>>, vector<8x32xf32>
    tpu.vector_store %arg14[%c0_491, %c0_492], %551 {strides = array<i32>} : memref<64x32xf32, #tpu.memory_space<vmem>>, vector<8x32xf32>,
    %c9_493 = arith.constant 9 : index
    %c0_494 = arith.constant 0 : index
    %553 = vector.load %arg16[%c9_493, %c0_494] : memref<72x32xf32, #tpu.memory_space<vmem>>, vector<1x32xf32>
    %c1_495 = arith.constant 1 : index
    %c0_496 = arith.constant 0 : index
    %554 = vector.load %arg15[%c1_495, %c0_496] : memref<8x32xf32, #tpu.memory_space<vmem>>, vector<1x32xf32>
    tpu.vector_store %arg15[%c1_495, %c0_496], %553 {strides = array<i32>} : memref<8x32xf32, #tpu.memory_space<vmem>>, vector<1x32xf32>,
    %c10_497 = arith.constant 10 : index
    %c0_498 = arith.constant 0 : index
    %555 = vector.load %arg16[%c10_497, %c0_498] : memref<72x32xf32, #tpu.memory_space<vmem>>, vector<8x32xf32>
    %c8_499 = arith.constant 8 : index
    %c0_500 = arith.constant 0 : index
    %556 = vector.load %arg0[%c8_499, %c0_500] : memref<64x32xf32, #tpu.memory_space<vmem>>, vector<8x32xf32>
    %557 = arith.addf %555, %556 : vector<8x32xf32>
    %c8_501 = arith.constant 8 : index
    %c0_502 = arith.constant 0 : index
    %558 = vector.load %arg14[%c8_501, %c0_502] : memref<64x32xf32, #tpu.memory_space<vmem>>, vector<8x32xf32>
    tpu.vector_store %arg14[%c8_501, %c0_502], %557 {strides = array<i32>} : memref<64x32xf32, #tpu.memory_space<vmem>>, vector<8x32xf32>,
    %c18_503 = arith.constant 18 : index
    %c0_504 = arith.constant 0 : index
    %559 = vector.load %arg16[%c18_503, %c0_504] : memref<72x32xf32, #tpu.memory_space<vmem>>, vector<1x32xf32>
    %c2_505 = arith.constant 2 : index
    %c0_506 = arith.constant 0 : index
    %560 = vector.load %arg15[%c2_505, %c0_506] : memref<8x32xf32, #tpu.memory_space<vmem>>, vector<1x32xf32>
    tpu.vector_store %arg15[%c2_505, %c0_506], %559 {strides = array<i32>} : memref<8x32xf32, #tpu.memory_space<vmem>>, vector<1x32xf32>,
    %c19_507 = arith.constant 19 : index
    %c0_508 = arith.constant 0 : index
    %561 = vector.load %arg16[%c19_507, %c0_508] : memref<72x32xf32, #tpu.memory_space<vmem>>, vector<8x32xf32>
    %c16_509 = arith.constant 16 : index
    %c0_510 = arith.constant 0 : index
    %562 = vector.load %arg0[%c16_509, %c0_510] : memref<64x32xf32, #tpu.memory_space<vmem>>, vector<8x32xf32>
    %563 = arith.addf %561, %562 : vector<8x32xf32>
    %c16_511 = arith.constant 16 : index
    %c0_512 = arith.constant 0 : index
    %564 = vector.load %arg14[%c16_511, %c0_512] : memref<64x32xf32, #tpu.memory_space<vmem>>, vector<8x32xf32>
    tpu.vector_store %arg14[%c16_511, %c0_512], %563 {strides = array<i32>} : memref<64x32xf32, #tpu.memory_space<vmem>>, vector<8x32xf32>,
    %c27_513 = arith.constant 27 : index
    %c0_514 = arith.constant 0 : index
    %565 = vector.load %arg16[%c27_513, %c0_514] : memref<72x32xf32, #tpu.memory_space<vmem>>, vector<1x32xf32>
    %c3_515 = arith.constant 3 : index
    %c0_516 = arith.constant 0 : index
    %566 = vector.load %arg15[%c3_515, %c0_516] : memref<8x32xf32, #tpu.memory_space<vmem>>, vector<1x32xf32>
    tpu.vector_store %arg15[%c3_515, %c0_516], %565 {strides = array<i32>} : memref<8x32xf32, #tpu.memory_space<vmem>>, vector<1x32xf32>,
    %c28_517 = arith.constant 28 : index
    %c0_518 = arith.constant 0 : index
    %567 = vector.load %arg16[%c28_517, %c0_518] : memref<72x32xf32, #tpu.memory_space<vmem>>, vector<8x32xf32>
    %c24_519 = arith.constant 24 : index
    %c0_520 = arith.constant 0 : index
    %568 = vector.load %arg0[%c24_519, %c0_520] : memref<64x32xf32, #tpu.memory_space<vmem>>, vector<8x32xf32>
    %569 = arith.addf %567, %568 : vector<8x32xf32>
    %c24_521 = arith.constant 24 : index
    %c0_522 = arith.constant 0 : index
    %570 = vector.load %arg14[%c24_521, %c0_522] : memref<64x32xf32, #tpu.memory_space<vmem>>, vector<8x32xf32>
    tpu.vector_store %arg14[%c24_521, %c0_522], %569 {strides = array<i32>} : memref<64x32xf32, #tpu.memory_space<vmem>>, vector<8x32xf32>,
    %c36_523 = arith.constant 36 : index
    %c0_524 = arith.constant 0 : index
    %571 = vector.load %arg16[%c36_523, %c0_524] : memref<72x32xf32, #tpu.memory_space<vmem>>, vector<1x32xf32>
    %c4 = arith.constant 4 : index
    %c0_525 = arith.constant 0 : index
    %572 = vector.load %arg15[%c4, %c0_525] : memref<8x32xf32, #tpu.memory_space<vmem>>, vector<1x32xf32>
    tpu.vector_store %arg15[%c4, %c0_525], %571 {strides = array<i32>} : memref<8x32xf32, #tpu.memory_space<vmem>>, vector<1x32xf32>,
    %c37_526 = arith.constant 37 : index
    %c0_527 = arith.constant 0 : index
    %573 = vector.load %arg16[%c37_526, %c0_527] : memref<72x32xf32, #tpu.memory_space<vmem>>, vector<8x32xf32>
    %c32_528 = arith.constant 32 : index
    %c0_529 = arith.constant 0 : index
    %574 = vector.load %arg0[%c32_528, %c0_529] : memref<64x32xf32, #tpu.memory_space<vmem>>, vector<8x32xf32>
    %575 = arith.addf %573, %574 : vector<8x32xf32>
    %c32_530 = arith.constant 32 : index
    %c0_531 = arith.constant 0 : index
    %576 = vector.load %arg14[%c32_530, %c0_531] : memref<64x32xf32, #tpu.memory_space<vmem>>, vector<8x32xf32>
    tpu.vector_store %arg14[%c32_530, %c0_531], %575 {strides = array<i32>} : memref<64x32xf32, #tpu.memory_space<vmem>>, vector<8x32xf32>,
    %c45_532 = arith.constant 45 : index
    %c0_533 = arith.constant 0 : index
    %577 = vector.load %arg16[%c45_532, %c0_533] : memref<72x32xf32, #tpu.memory_space<vmem>>, vector<1x32xf32>
    %c5 = arith.constant 5 : index
    %c0_534 = arith.constant 0 : index
    %578 = vector.load %arg15[%c5, %c0_534] : memref<8x32xf32, #tpu.memory_space<vmem>>, vector<1x32xf32>
    tpu.vector_store %arg15[%c5, %c0_534], %577 {strides = array<i32>} : memref<8x32xf32, #tpu.memory_space<vmem>>, vector<1x32xf32>,
    %c46_535 = arith.constant 46 : index
    %c0_536 = arith.constant 0 : index
    %579 = vector.load %arg16[%c46_535, %c0_536] : memref<72x32xf32, #tpu.memory_space<vmem>>, vector<8x32xf32>
    %c40_537 = arith.constant 40 : index
    %c0_538 = arith.constant 0 : index
    %580 = vector.load %arg0[%c40_537, %c0_538] : memref<64x32xf32, #tpu.memory_space<vmem>>, vector<8x32xf32>
    %581 = arith.addf %579, %580 : vector<8x32xf32>
    %c40_539 = arith.constant 40 : index
    %c0_540 = arith.constant 0 : index
    %582 = vector.load %arg14[%c40_539, %c0_540] : memref<64x32xf32, #tpu.memory_space<vmem>>, vector<8x32xf32>
    tpu.vector_store %arg14[%c40_539, %c0_540], %581 {strides = array<i32>} : memref<64x32xf32, #tpu.memory_space<vmem>>, vector<8x32xf32>,
    %c54_541 = arith.constant 54 : index
    %c0_542 = arith.constant 0 : index
    %583 = vector.load %arg16[%c54_541, %c0_542] : memref<72x32xf32, #tpu.memory_space<vmem>>, vector<1x32xf32>
    %c6 = arith.constant 6 : index
    %c0_543 = arith.constant 0 : index
    %584 = vector.load %arg15[%c6, %c0_543] : memref<8x32xf32, #tpu.memory_space<vmem>>, vector<1x32xf32>
    tpu.vector_store %arg15[%c6, %c0_543], %583 {strides = array<i32>} : memref<8x32xf32, #tpu.memory_space<vmem>>, vector<1x32xf32>,
    %c55_544 = arith.constant 55 : index
    %c0_545 = arith.constant 0 : index
    %585 = vector.load %arg16[%c55_544, %c0_545] : memref<72x32xf32, #tpu.memory_space<vmem>>, vector<8x32xf32>
    %c48_546 = arith.constant 48 : index
    %c0_547 = arith.constant 0 : index
    %586 = vector.load %arg0[%c48_546, %c0_547] : memref<64x32xf32, #tpu.memory_space<vmem>>, vector<8x32xf32>
    %587 = arith.addf %585, %586 : vector<8x32xf32>
    %c48_548 = arith.constant 48 : index
    %c0_549 = arith.constant 0 : index
    %588 = vector.load %arg14[%c48_548, %c0_549] : memref<64x32xf32, #tpu.memory_space<vmem>>, vector<8x32xf32>
    tpu.vector_store %arg14[%c48_548, %c0_549], %587 {strides = array<i32>} : memref<64x32xf32, #tpu.memory_space<vmem>>, vector<8x32xf32>,
    %c63_550 = arith.constant 63 : index
    %c0_551 = arith.constant 0 : index
    %589 = vector.load %arg16[%c63_550, %c0_551] : memref<72x32xf32, #tpu.memory_space<vmem>>, vector<1x32xf32>
    %c7 = arith.constant 7 : index
    %c0_552 = arith.constant 0 : index
    %590 = vector.load %arg15[%c7, %c0_552] : memref<8x32xf32, #tpu.memory_space<vmem>>, vector<1x32xf32>
    tpu.vector_store %arg15[%c7, %c0_552], %589 {strides = array<i32>} : memref<8x32xf32, #tpu.memory_space<vmem>>, vector<1x32xf32>,
    %c64_553 = arith.constant 64 : index
    %c0_554 = arith.constant 0 : index
    %591 = vector.load %arg16[%c64_553, %c0_554] : memref<72x32xf32, #tpu.memory_space<vmem>>, vector<8x32xf32>
    %c56_555 = arith.constant 56 : index
    %c0_556 = arith.constant 0 : index
    %592 = vector.load %arg0[%c56_555, %c0_556] : memref<64x32xf32, #tpu.memory_space<vmem>>, vector<8x32xf32>
    %593 = arith.addf %591, %592 : vector<8x32xf32>
    %c56_557 = arith.constant 56 : index
    %c0_558 = arith.constant 0 : index
    %594 = vector.load %arg14[%c56_557, %c0_558] : memref<64x32xf32, #tpu.memory_space<vmem>>, vector<8x32xf32>
    tpu.vector_store %arg14[%c56_557, %c0_558], %593 {strides = array<i32>} : memref<64x32xf32, #tpu.memory_space<vmem>>, vector<8x32xf32>,
    return
  }
}

</mosaic_0001>

<bundles_post_ra>
// kernel: temporal_attention_forward.1
= control target key start
LH: loop header
LB: loop body
LE: loop exit
PB: predicated region body
PF: predicated region fallthrough
CT: control target
= control target key end

     0   :  { %vm53_vm0 = vcmask 253952   ;;  %vm57_vm1 = vcmask 261120   ;;  %vm13479_vm2 = vmmov 0   ;;  %vm650_vm3 = vcmask 64512   ;;  %s17718_s0 = inlined_call_operand.vmem [shape: f32[64,32], index: 0, kind: input, shape index: {}]   ;;  %s17719_s1 = inlined_call_operand.vmem [shape: f32[1,32], index: 1, kind: input, shape index: {}]   ;;  %s17720_s2 = inlined_call_operand.vmem [shape: f32[9,32], index: 2, kind: input, shape index: {}]   ;;  %s17721_s4 = inlined_call_operand.vmem [shape: f32[2,3,4,32,8], index: 4, kind: input, shape index: {}]   ;;  %s17722_s8 = inlined_call_operand.vmem [shape: f32[2,4,1,32], index: 8, kind: input, shape index: {}]   ;;  %s17723_s5 = inlined_call_operand.vmem [shape: f32[2,3,4,1,8], index: 5, kind: input, shape index: {}]   ;;  %s17724_s3 = inlined_call_operand.vmem [shape: f32[72,72], index: 3, kind: input, shape index: {}]   ;;  %s17725_s6 = inlined_call_operand.vmem [shape: f32[2,4,8,32], index: 6, kind: input, shape index: {}]   ;;  %s17726_s7 = inlined_call_operand.vmem [shape: f32[2,1,32], index: 7, kind: input, shape index: {}]   ;;  %s17727_s9 = inlined_call_operand.vmem [shape: f32[2,32,128], index: 9, kind: input, shape index: {}]   ;;  %s17728_s11 = inlined_call_operand.vmem [shape: f32[2,128,32], index: 11, kind: input, shape index: {}]   ;;  %s17729_s10 = inlined_call_operand.vmem [shape: f32[2,1,128], index: 10, kind: input, shape index: {}]   ;;  %s17730_s12 = inlined_call_operand.vmem [shape: f32[2,1,32], index: 12, kind: input, shape index: {}]   ;;  %s17731_s13 = inlined_call_operand.vmem [shape: f32[2,1,32], index: 13, kind: input, shape index: {}]   ;;  %s17732_s15 = inlined_call_operand.vmem [shape: f32[8,32], index: 15, kind: output, shape index: {1}]   ;;  %s17733_s14 = inlined_call_operand.vmem [shape: f32[64,32], index: 14, kind: output, shape index: {0}]  }
   0x1   :  { %v49_v0 = vld [vmem:[%s17719_s1] sm:$0x1]  ;;  %v52_v2 = vld [vmem:[%s17720_s2 + $0x1] sm:$0xff]  ;;  %v64_v6 = vld [vmem:[%s17718_s0 + $0x10] sm:$0xff]  ;;  %vm833_vm5 = vcmask 588800  }
   0x2   :  { %v50_v1 = vld [vmem:[%s17720_s2] sm:$0x1]  ;;  %v60_v5 = vld [vmem:[%s17718_s0 + $0x8] sm:$0xff]  ;;  %v65_v9 = vadd.f32 %v64_v6, %v52_v2  ;;  %v68_v10 = vld [vmem:[%s17718_s0 + $0x18] sm:$0xff] }
   0x3   :  { %v51_v3 = vadd.f32 %v50_v1, %v49_v0  ;;  %v55_v4 = vld [vmem:[%s17718_s0] sm:$0xff]  ;;  %v61_v8 = vadd.f32 %v60_v5, %v52_v2  ;;  %v76_v12 = vld [vmem:[%s17718_s0 + $0x28] sm:$0xff]  ;;  %v69_v13 = vadd.f32 %v68_v10, %v52_v2  ;;  %v80_v16 = vld [vmem:[%s17718_s0 + $0x30] sm:$0xff] }
   0x4   :  { %v56_v7 = vadd.f32 %v55_v4, %v52_v2  ;;  %v72_v11 = vld [vmem:[%s17718_s0 + $0x20] sm:$0xff]  ;;  %v77_v15 = vadd.f32 %v76_v12, %v52_v2  ;;  %v84_v17 = vld [vmem:[%s17718_s0 + $0x38] sm:$0xff]  ;;  %66 = vst.msk [vmem:[#allocation2 + $0x13] sm:$0xff] %vm57_vm1, %v65_v9  ;;  %v81_v18 = vadd.f32 %v80_v16, %v52_v2  ;;  %vm13884_vm4 = vmpackc.low %vm650_vm3, %vm650_vm3 }
   0x5   :  { %54 = vst.msk [vmem:[#allocation2] sm:$0x1] %vm53_vm0, %v51_v3  ;;  %59 = vst.msk [vmem:[#allocation2 + $0x9] sm:$0x1] %vm53_vm0, %v51_v3  ;;  %v73_v14 = vadd.f32 %v72_v11, %v52_v2  ;;  %v85_v19 = vadd.f32 %v84_v17, %v52_v2 }
   0x6   :  { %63 = vst.msk [vmem:[#allocation2 + $0x12] sm:$0x1] %vm53_vm0, %v51_v3  ;;  %67 = vst.msk [vmem:[#allocation2 + $0x1b] sm:$0x1] %vm53_vm0, %v51_v3 }
   0x7   :  { %71 = vst.msk [vmem:[#allocation2 + $0x24] sm:$0x1] %vm53_vm0, %v51_v3  ;;  %75 = vst.msk [vmem:[#allocation2 + $0x2d] sm:$0x1] %vm53_vm0, %v51_v3 }
   0x8   :  { %79 = vst.msk [vmem:[#allocation2 + $0x36] sm:$0x1] %vm53_vm0, %v51_v3  ;;  %83 = vst.msk [vmem:[#allocation2 + $0x3f] sm:$0x1] %vm53_vm0, %v51_v3 }
   0x9   :  { %58 = vst.msk [vmem:[#allocation2 + $0x1] sm:$0xff] %vm57_vm1, %v56_v7  ;;  %62 = vst.msk [vmem:[#allocation2 + $0xa] sm:$0xff] %vm57_vm1, %v61_v8 }
   0xa   :  { %70 = vst.msk [vmem:[#allocation2 + $0x1c] sm:$0xff] %vm57_vm1, %v69_v13  ;;  %74 = vst.msk [vmem:[#allocation2 + $0x25] sm:$0xff] %vm57_vm1, %v73_v14 }
   0xb   :  { %78 = vst.msk [vmem:[#allocation2 + $0x2e] sm:$0xff] %vm57_vm1, %v77_v15  ;;  %82 = vst.msk [vmem:[#allocation2 + $0x37] sm:$0xff] %vm57_vm1, %v81_v18 }
   0xc   :  { %86 = vst.msk [vmem:[#allocation2 + $0x40] sm:$0xff] %vm57_vm1, %v85_v19  ;;  %v256_v19 = vld [vmem:[%s17721_s4] sm:$0xff] }
  0x10   :  { %v87_v20 = vld [vmem:[#allocation2] sm:$0xff]  ;;  %v89_v21 = vld [vmem:[#allocation2 + $0x10] sm:$0xff]  ;;  %v88_v22 = vld [vmem:[#allocation2 + $0x8] sm:$0xff] }
  0x11   :  { %v108_v23 = vsel %vm57_vm1, %v87_v20, 0.0  ;;  %v114_v24 = vsel %vm57_vm1, %v89_v21, 0.0  ;;  %v90_v25 = vld [vmem:[#allocation2 + $0x18] sm:$0xff]  ;;  %v111_v26 = vsel %vm57_vm1, %v88_v22, 0.0  ;;  %v91_v28 = vld [vmem:[#allocation2 + $0x20] sm:$0xff] }
  0x12   :  { %109 = vadd.xlane.f32.xlu0 %v108_v23  ;;  %115 = vadd.xlane.f32.xlu1 %v114_v24  ;;  %v117_v27 = vsel %vm57_vm1, %v90_v25, 0.0  ;;  %v92_v29 = vld [vmem:[#allocation2 + $0x28] sm:$0xff]  ;;  %v120_v30 = vsel %vm57_vm1, %v91_v28, 0.0  ;;  %v93_v32 = vld [vmem:[#allocation2 + $0x30] sm:$0xff]  ;;  %v94_v33 = vld [vmem:[#allocation2 + $0x38] sm:$0xff]  ;;  %v13478_v24 = vmov 0.0|0.0  }
  0x13   :  { %v123_v31 = vsel %vm57_vm1, %v92_v29, 0.0  ;;  %v126_v34 = vsel %vm57_vm1, %v93_v32, 0.0  ;;  %v129_v35 = vsel %vm57_vm1, %v94_v33, 0.0  ;;  %v95_v36 = vld [vmem:[#allocation2 + $0x40] sm:$0xff]  ;;  %v9160_v23 = vld [vmem:[%s17721_s4 + $0x88] sm:$0xff]  ;;  %12597 = vmatprep.subr.bf16.mxu0 %v13478_v24  ;;  %12603 = vmatprep.subr.bf16.mxu1 %v13478_v24 }
  0x14   :  { %v132_v37 = vsel %vm57_vm1, %v95_v36, 0.0 }
  0x16   :  { %112 = vadd.xlane.f32.xlu0 %v111_v26  ;;  %118 = vadd.xlane.f32.xlu1 %v117_v27  ;;  %v258_v26 = vld [vmem:[%s17721_s4 + $0x10] sm:$0xff]  ;;  %v259_v27 = vld [vmem:[%s17721_s4 + $0x18] sm:$0xff] }
  0x1a   :  { %121 = vadd.xlane.f32.xlu0 %v120_v30  ;;  %124 = vadd.xlane.f32.xlu1 %v123_v31  ;;  %v9162_v30 = vld [vmem:[%s17721_s4 + $0x98] sm:$0xff] }
  0x1e   :  { %127 = vadd.xlane.f32.xlu0 %v126_v34  ;;  %130 = vadd.xlane.f32.xlu1 %v129_v35 }
  0x22   :  { %133 = vadd.xlane.f32.xlu0 %v132_v37 }
  0x9f   :  { %v110_v38 = vpop.xlane.xlu0 %109  ;;  %v116_v39 = vpop.xlane.xlu1 %115 }
  0xa0   :  { %v136_v40 = vmul.f32 0.03125, %v110_v38  ;;  %v138_v41 = vmul.f32 0.03125, %v116_v39 }
  0xa2   :  { %v13619_v42 = vsub.f32 %v87_v20, %v136_v40  ;;  %v13621_v43 = vsub.f32 %v89_v21, %v138_v41  ;;  %v257_v20 = vld [vmem:[%s17721_s4 + $0x8] sm:$0xff]  ;;  %v9159_v21 = vld [vmem:[%s17721_s4 + $0x80] sm:$0xff] }
  0xa3   :  { %v113_v44 = vpop.xlane.xlu0 %112  ;;  %v119_v45 = vpop.xlane.xlu1 %118 }
  0xa4   :  { %v137_v46 = vmul.f32 0.03125, %v113_v44  ;;  %v139_v47 = vmul.f32 0.03125, %v119_v45  ;;  %v154_v48 = vmul.f32 %v13619_v42, %v13619_v42  ;;  %v156_v49 = vmul.f32 %v13621_v43, %v13621_v43 }
  0xa6   :  { %v13627_v50 = vsub.f32 %v88_v22, %v137_v46  ;;  %v13629_v51 = vsub.f32 %v90_v25, %v139_v47  ;;  %v163_v52 = vsel %vm57_vm1, %v154_v48, 0.0  ;;  %v169_v55 = vsel %vm57_vm1, %v156_v49, 0.0 }
  0xa7   :  { %164 = vadd.xlane.f32.xlu1 %v163_v52  ;;  %v122_v53 = vpop.xlane.xlu0 %121  ;;  %v125_v54 = vpop.xlane.xlu1 %124  ;;  %v12598_v22 = vpack.c.bf16 %v257_v20, %v256_v19  ;;  %v12604_v25 = vpack.c.bf16 %v9160_v23, %v9159_v21 }
  0xa8   :  { %v140_v56 = vmul.f32 0.03125, %v122_v53  ;;  %v141_v57 = vmul.f32 0.03125, %v125_v54  ;;  %v155_v58 = vmul.f32 %v13627_v50, %v13627_v50  ;;  %v157_v59 = vmul.f32 %v13629_v51, %v13629_v51 }
  0xa9   :  { %12599 = vmatpush3.bf16.msra.mxu0 %v12598_v22  ;;  %12605 = vmatpush3.bf16.msra.mxu1 %v12604_v25 }
  0xaa   :  { %v13637_v60 = vsub.f32 %v91_v28, %v140_v56  ;;  %v13639_v61 = vsub.f32 %v92_v29, %v141_v57  ;;  %v166_v62 = vsel %vm57_vm1, %v155_v58, 0.0  ;;  %v172_v1 = vsel %vm57_vm1, %v157_v59, 0.0  ;;  %12600 = vmatprep.subr.bf16.mxu0 %v13478_v24  ;;  %v9161_v28 = vld [vmem:[%s17721_s4 + $0x90] sm:$0xff]  ;;  %12606 = vmatprep.subr.bf16.mxu1 %v13478_v24  ;;  %v13701_v56 = vld [vmem:[%s17722_s8] ss:$0 sm:$0xff] }
  0xab   :  { %170 = vadd.xlane.f32.xlu1 %v169_v55  ;;  %167 = vadd.xlane.f32.xlu0 %v166_v62  ;;  %v128_v63 = vpop.xlane.xlu0 %127  ;;  %v131_v0 = vpop.xlane.xlu1 %130  ;;  %v12601_v29 = vpack.c.bf16 %v259_v27, %v258_v26  ;;  %v12607_v31 = vpack.c.bf16 %v9162_v30, %v9161_v28  ;;  %v9174_v62 = vld [vmem:[%s17721_s4 + $0x100] sm:$0xff] }
  0xac   :  { %v142_v2 = vmul.f32 0.03125, %v128_v63  ;;  %v143_v3 = vmul.f32 0.03125, %v131_v0  ;;  %v158_v4 = vmul.f32 %v13637_v60, %v13637_v60  ;;  %v159_v5 = vmul.f32 %v13639_v61, %v13639_v61  ;;  %v9175_v63 = vld [vmem:[%s17721_s4 + $0x108] sm:$0xff]  ;;  %v13713_v0 = vld [vmem:[%s17722_s8 + $0x1] ss:$0 sm:$0xff] }
  0xad   :  { %12602 = vmatpush3.bf16.msra.mxu0 %v12601_v29  ;;  %12608 = vmatpush3.bf16.msra.mxu1 %v12607_v31 }
  0xae   :  { %v13647_v6 = vsub.f32 %v93_v32, %v142_v2  ;;  %v13649_v7 = vsub.f32 %v94_v33, %v143_v3  ;;  %v175_v8 = vsel %vm57_vm1, %v158_v4, 0.0  ;;  %v178_v11 = vsel %vm57_vm1, %v159_v5, 0.0  ;;  %12609 = vmatprep.subr.bf16.mxu0 %v13478_v24  ;;  %12615 = vmatprep.subr.bf16.mxu1 %v13478_v24 }
  0xaf   :  { %173 = vadd.xlane.f32.xlu0 %v172_v1  ;;  %176 = vadd.xlane.f32.xlu1 %v175_v8  ;;  %v134_v9 = vpop.xlane.xlu0 %133  ;;  %v17734_v32 = vmov 0.0   ;;  %v12610_v3 = vpack.c.bf16 %v9175_v63, %v9174_v62 }
  0xb0   :  { %v144_v10 = vmul.f32 0.03125, %v134_v9  ;;  %v160_v12 = vmul.f32 %v13647_v6, %v13647_v6  ;;  %v161_v13 = vmul.f32 %v13649_v7, %v13649_v7  ;;  %10625 = vmatprep.mubr.msk.f32.mxu0 %vm13479_vm2, %v17734_v32  ;;  %10660 = vmatprep.mubr.msk.f32.mxu1 %vm13479_vm2, %v17734_v32 }
  0xb2   :  { %v13657_v14 = vsub.f32 %v95_v36, %v144_v10  ;;  %v181_v15 = vsel %vm57_vm1, %v160_v12, 0.0  ;;  %v184_v16 = vsel %vm57_vm1, %v161_v13, 0.0  ;;  %v9176_v13 = vld [vmem:[%s17721_s4 + $0x110] sm:$0xff] }
  0xb3   :  { %179 = vadd.xlane.f32.xlu0 %v178_v11  ;;  %182 = vadd.xlane.f32.xlu1 %v181_v15  ;;  %v9177_v15 = vld [vmem:[%s17721_s4 + $0x118] sm:$0xff] }
  0xb4   :  { %v162_v17 = vmul.f32 %v13657_v14, %v13657_v14  ;;  %v12613_v21 = vpack.c.bf16 %v9177_v15, %v9176_v13 }
  0xb6   :  { %v187_v18 = vsel %vm57_vm1, %v162_v17, 0.0 }
  0xb7   :  { %185 = vadd.xlane.f32.xlu0 %v184_v16  ;;  %188 = vadd.xlane.f32.xlu1 %v187_v18 }
 0x134   :  { %v165_v33 = vpop.xlane.xlu1 %164 }
 0x135   :  { %v190_v34 = vmul.f32 0.03125, %v165_v33 }
 0x137   :  { %v199_v35 = vadd.f32 1e-05, %v190_v34 }
 0x138   :  { %v171_v36 = vpop.xlane.xlu1 %170  ;;  %v168_v37 = vpop.xlane.xlu0 %167 }
 0x139   :  { %13028 = vrsqrt.f32 %v199_v35  ;;  %v192_v38 = vmul.f32 0.03125, %v171_v36  ;;  %v191_v39 = vmul.f32 0.03125, %v168_v37 }
 0x13b   :  { %v201_v40 = vadd.f32 1e-05, %v192_v38  ;;  %v200_v41 = vadd.f32 1e-05, %v191_v39 }
 0x13c   :  { %v177_v44 = vpop.xlane.xlu1 %176  ;;  %v174_v45 = vpop.xlane.xlu0 %173 }
 0x13d   :  { %13030 = vrsqrt.f32 %v201_v40  ;;  %v194_v46 = vmul.f32 0.03125, %v177_v44  ;;  %v193_v47 = vmul.f32 0.03125, %v174_v45 }
 0x13e   :  { %13032 = vrsqrt.f32 %v200_v41 }
 0x13f   :  { %v202_v48 = vadd.f32 1e-05, %v193_v47  ;;  %v203_v49 = vadd.f32 1e-05, %v194_v46 }
 0x140   :  { %v180_v52 = vpop.xlane.xlu0 %179  ;;  %v183_v53 = vpop.xlane.xlu1 %182 }
 0x141   :  { %v195_v54 = vmul.f32 0.03125, %v180_v52  ;;  %13034 = vrsqrt.f32 %v202_v48  ;;  %v196_v58 = vmul.f32 0.03125, %v183_v53  ;;  %v9164_v48 = vld [vmem:[%s17723_s5 + $0x4] ss:$0 sm:$0xff] }
 0x142   :  { %13036 = vrsqrt.f32 %v203_v49 }
 0x143   :  { %v13029_v55 = vpop.eup %13028  ;;  %v204_v59 = vadd.f32 1e-05, %v195_v54  ;;  %v205_v8 = vadd.f32 1e-05, %v196_v58 }
 0x144   :  { %v217_v57 = vmul.f32 %v13029_v55, %v13619_v42  ;;  %v186_v1 = vpop.xlane.xlu0 %185  ;;  %v189_v12 = vpop.xlane.xlu1 %188 }
 0x145   :  { %13038 = vrsqrt.f32 %v204_v59  ;;  %v197_v9 = vmul.f32 0.03125, %v186_v1 }
 0x146   :  { %v232_v2 = vmul.f32 %v13701_v56, %v217_v57  ;;  %13040 = vrsqrt.f32 %v205_v8 }
 0x147   :  { %v13031_v42 = vpop.eup %13030  ;;  %v206_v17 = vadd.f32 1e-05, %v197_v9 }
 0x148   :  { %v13033_v4 = vpop.eup %13032  ;;  %v13717_v5 = vadd.f32 %v13713_v0, %v232_v2  ;;  %v219_v10 = vmul.f32 %v13031_v42, %v13621_v43 }
 0x149   :  { %v218_v11 = vmul.f32 %v13033_v4, %v13627_v50  ;;  %v198_v50 = vmul.f32 0.03125, %v189_v12  ;;  %13042 = vrsqrt.f32 %v206_v17 }
 0x14a   :  { %10626 = vmatmul.mubr.msk.f32.vlgmr.msra.gmra.mrb[0].mxu0 %vm57_vm1, %v13717_v5  ;;  %10661 = vmatmul.mubr.msk.f32.vlgmr.msra.gmra.mrb[0].mxu1 %vm57_vm1, %v13717_v5  ;;  %v234_v18 = vmul.f32 %v13701_v56, %v219_v10 }
 0x14b   :  { %v233_v16 = vmul.f32 %v13701_v56, %v218_v11  ;;  %10628 = vmatprep.mubr.msk.f32.mxu0 %vm13479_vm2, %v17734_v32  ;;  %10663 = vmatprep.mubr.msk.f32.mxu1 %vm13479_vm2, %v17734_v32  ;;  %v13035_v43 = vpop.eup %13034  ;;  %v207_v23 = vadd.f32 1e-05, %v198_v50 }
 0x14c   :  { %12611 = vmatpush3.bf16.msra.mxu0 %v12610_v3  ;;  %v220_v20 = vmul.f32 %v13035_v43, %v13629_v51  ;;  %v13037_v22 = vpop.eup %13036  ;;  %v13751_v51 = vadd.f32 %v13713_v0, %v234_v18 }
 0x14d   :  { %v13738_v19 = vadd.f32 %v13713_v0, %v233_v16  ;;  %12612 = vmatprep.subr.bf16.mxu0 %v13478_v24  ;;  %v221_v25 = vmul.f32 %v13037_v22, %v13637_v60  ;;  %13044 = vrsqrt.f32 %v207_v23 }
 0x14e   :  { %v235_v26 = vmul.f32 %v13701_v56, %v220_v20 }
 0x14f   :  { %10629 = vmatmul.mubr.msk.f32.gmra.mrb[2].mxu0 %vm57_vm1, %v13738_v19  ;;  %10664 = vmatmul.mubr.msk.f32.gmra.mrb[2].mxu1 %vm57_vm1, %v13738_v19  ;;  %v13039_v27 = vpop.eup %13038  ;;  %v236_v60 = vmul.f32 %v13701_v56, %v221_v25 }
 0x150   :  { %10631 = vmatprep.mubr.msk.f32.mxu0 %vm13479_vm2, %v17734_v32  ;;  %10666 = vmatprep.mubr.msk.f32.mxu1 %vm13479_vm2, %v17734_v32  ;;  %v13766_v28 = vadd.f32 %v13713_v0, %v235_v26  ;;  %v222_v29 = vmul.f32 %v13039_v27, %v13639_v61  ;;  %v13041_v30 = vpop.eup %13040 }
 0x151   :  { %12614 = vmatpush3.bf16.msra.mxu0 %v12613_v21  ;;  %v13778_v31 = vadd.f32 %v13713_v0, %v236_v60  ;;  %v223_v33 = vmul.f32 %v13041_v30, %v13647_v6 }
 0x152   :  { %12631 = vmatprep.subr.bf16.mxu0 %v13478_v24  ;;  %v237_v61 = vmul.f32 %v13701_v56, %v222_v29 }
 0x153   :  { %10632 = vmatmul.mubr.msk.f32.gmra.mrb[4].mxu0 %vm57_vm1, %v13751_v51  ;;  %10667 = vmatmul.mubr.msk.f32.gmra.mrb[4].mxu1 %vm57_vm1, %v13751_v51  ;;  %v13043_v34 = vpop.eup %13042  ;;  %v238_v35 = vmul.f32 %v13701_v56, %v223_v33 }
 0x154   :  { %10634 = vmatprep.mubr.msk.f32.mxu0 %vm13479_vm2, %v17734_v32  ;;  %10669 = vmatprep.mubr.msk.f32.mxu1 %vm13479_vm2, %v17734_v32  ;;  %v13792_v36 = vadd.f32 %v13713_v0, %v237_v61  ;;  %v224_v6 = vmul.f32 %v13043_v34, %v13649_v7 }
 0x155   :  { %v13804_v38 = vadd.f32 %v13713_v0, %v238_v35 }
 0x156   :  { %v239_v7 = vmul.f32 %v13701_v56, %v224_v6 }
 0x157   :  { %10635 = vmatmul.mubr.msk.f32.gmra.mrb[6].mxu0 %vm57_vm1, %v13766_v28  ;;  %10670 = vmatmul.mubr.msk.f32.gmra.mrb[6].mxu1 %vm57_vm1, %v13766_v28  ;;  %v13045_v37 = vpop.eup %13044 }
 0x158   :  { %10637 = vmatprep.mubr.msk.f32.mxu0 %vm13479_vm2, %v17734_v32  ;;  %10672 = vmatprep.mubr.msk.f32.mxu1 %vm13479_vm2, %v17734_v32  ;;  %v225_v39 = vmul.f32 %v13045_v37, %v13657_v14  ;;  %v13818_v41 = vadd.f32 %v13713_v0, %v239_v7 }
 0x15a   :  { %v240_v40 = vmul.f32 %v13701_v56, %v225_v39 }
 0x15b   :  { %10638 = vmatmul.mubr.msk.f32.gmra.mrb[8].mxu0 %vm57_vm1, %v13778_v31  ;;  %10673 = vmatmul.mubr.msk.f32.gmra.mrb[8].mxu1 %vm57_vm1, %v13778_v31 }
 0x15c   :  { %10640 = vmatprep.mubr.msk.f32.mxu0 %vm13479_vm2, %v17734_v32  ;;  %10675 = vmatprep.mubr.msk.f32.mxu1 %vm13479_vm2, %v17734_v32  ;;  %v13829_v14 = vadd.f32 %v13713_v0, %v240_v40  ;;  %v13917_v40 = vld [vmem:[%s17723_s5 + $0x8] ss:$0 sm:$0xff] }
 0x15f   :  { %10641 = vmatmul.mubr.msk.f32.gmra.mrb[10].mxu0 %vm57_vm1, %v13792_v36  ;;  %10676 = vmatmul.mubr.msk.f32.gmra.mrb[10].mxu1 %vm57_vm1, %v13792_v36 }
 0x160   :  { %10643 = vmatprep.mubr.msk.f32.mxu0 %vm13479_vm2, %v17734_v32  ;;  %10678 = vmatprep.mubr.msk.f32.mxu1 %vm13479_vm2, %v17734_v32 }
 0x163   :  { %10644 = vmatmul.mubr.msk.f32.gmra.mrb[12].mxu0 %vm57_vm1, %v13804_v38  ;;  %10679 = vmatmul.mubr.msk.f32.gmra.mrb[12].mxu1 %vm57_vm1, %v13804_v38 }
 0x164   :  { %10646 = vmatprep.mubr.msk.f32.mxu0 %vm13479_vm2, %v17734_v32  ;;  %10681 = vmatprep.mubr.msk.f32.mxu1 %vm13479_vm2, %v17734_v32 }
 0x167   :  { %10647 = vmatmul.mubr.msk.f32.gmra.mrb[14].mxu0 %vm57_vm1, %v13818_v41  ;;  %10682 = vmatmul.mubr.msk.f32.gmra.mrb[14].mxu1 %vm57_vm1, %v13818_v41 }
 0x168   :  { %10649 = vmatprep.mubr.msk.f32.mxu0 %vm13479_vm2, %v17734_v32  ;;  %10684 = vmatprep.mubr.msk.f32.mxu1 %vm13479_vm2, %v17734_v32 }
 0x16b   :  { %10650 = vmatmul.mubr.msk.f32.gmra.mrb[16].mxu0 %vm57_vm1, %v13829_v14  ;;  %10685 = vmatmul.mubr.msk.f32.gmra.mrb[16].mxu1 %vm57_vm1, %v13829_v14 }
 0x16c   :  { %10695 = vmatprep.mubr.msk.f32.mxu0 %vm13479_vm2, %v17734_v32  ;;  %10740 = vmatprep.mubr.msk.f32.mxu1 %vm13479_vm2, %v17734_v32 }
 0x16f   :  { %10696 = vmatmul.mubr.msk.f32.vlgmr.msra.gmra.mrb[18].mxu0 %vm57_vm1, %v13717_v5 }
 0x170   :  { %10698 = vmatprep.mubr.msk.f32.mxu0 %vm13479_vm2, %v17734_v32 }
 0x173   :  { %10699 = vmatmul.mubr.msk.f32.gmra.mrb[20].mxu0 %vm57_vm1, %v13738_v19 }
 0x174   :  { %10701 = vmatprep.mubr.msk.f32.mxu0 %vm13479_vm2, %v17734_v32 }
 0x177   :  { %10702 = vmatmul.mubr.msk.f32.gmra.mrb[22].mxu0 %vm57_vm1, %v13751_v51 }
 0x178   :  { %10704 = vmatprep.mubr.msk.f32.mxu0 %vm13479_vm2, %v17734_v32 }
 0x17b   :  { %10705 = vmatmul.mubr.msk.f32.gmra.mrb[24].mxu0 %vm57_vm1, %v13766_v28 }
 0x17c   :  { %10707 = vmatprep.mubr.msk.f32.mxu0 %vm13479_vm2, %v17734_v32 }
 0x17f   :  { %10708 = vmatmul.mubr.msk.f32.gmra.mrb[26].mxu0 %vm57_vm1, %v13778_v31 }
 0x180   :  { %10710 = vmatprep.mubr.msk.f32.mxu0 %vm13479_vm2, %v17734_v32 }
 0x183   :  { %10711 = vmatmul.mubr.msk.f32.gmra.mrb[28].mxu0 %vm57_vm1, %v13792_v36 }
 0x184   :  { %10713 = vmatprep.mubr.msk.f32.mxu0 %vm13479_vm2, %v17734_v32 }
 0x187   :  { %10714 = vmatmul.mubr.msk.f32.gmra.mrb[30].mxu0 %vm57_vm1, %v13804_v38 }
 0x188   :  { %10716 = vmatprep.mubr.msk.f32.mxu0 %vm13479_vm2, %v17734_v32 }
 0x18b   :  { %10717 = vmatmul.mubr.msk.f32.gmra.mrb[32].mxu0 %vm57_vm1, %v13818_v41 }
 0x18c   :  { %10719 = vmatprep.mubr.msk.f32.mxu0 %vm13479_vm2, %v17734_v32 }
 0x18f   :  { %10720 = vmatmul.mubr.msk.f32.gmra.mrb[34].mxu0 %vm57_vm1, %v13829_v14 }
 0x190   :  { %10785 = vmatprep.mubr.msk.f32.mxu0 %vm13479_vm2, %v17734_v32 }
 0x21d   :  { %v13875_v44 = vpop.f32.mrb[0].mxu0  ;;  %v483_v45 = vpop.f32.mrb[0].mxu1 }
 0x21e   :  { %v10627_v46 = vpop.f32.mrb[1].mxu0  ;;  %v10662_v47 = vpop.f32.mrb[1].mxu1  ;;  %v484_v53 = vadd.f32 %v9164_v48, %v483_v45  ;;  %v13922_v45 = vld [vmem:[%s17723_s5] ss:$0 sm:$0xff] }
 0x21f   :  { %v9216_v47 = vld [vmem:[%s17721_s4 + $0x20] sm:$0xff] }
 0x222   :  { %v13880_v49 = vpop.f32.mrb[2].mxu0  ;;  %v488_v52 = vpop.f32.mrb[2].mxu1 }
 0x223   :  { %v489_v54 = vadd.f32 %v9164_v48, %v488_v52  ;;  %v10630_v55 = vpop.f32.mrb[3].mxu0  ;;  %v10665_v56 = vpop.f32.mrb[3].mxu1  ;;  %v9217_v52 = vld [vmem:[%s17721_s4 + $0x28] sm:$0xff] }
 0x225   :  { %v12616_v58 = vpack.c.bf16 %v489_v54, %v484_v53 }
 0x226   :  { %v13888_v59 = vpop.f32.mrb[4].mxu0  ;;  %v493_v62 = vpop.f32.mrb[4].mxu1 }
 0x227   :  { %v10633_v63 = vpop.f32.mrb[5].mxu0  ;;  %v10668_v0 = vpop.f32.mrb[5].mxu1  ;;  %12618 = vmatpush3.bf16.xpose.msk.msra.mxu1 %vm13884_vm4, %v12616_v58  ;;  %v494_v42 = vadd.f32 %v9164_v48, %v493_v62  ;;  %v361_v58 = vadd.f32 %v13922_v45, %v13875_v44  ;;  %v366_v44 = vadd.f32 %v13922_v45, %v13880_v49  ;;  %v371_v49 = vadd.f32 %v13922_v45, %v13888_v59 }
 0x228   :  { %12619 = vmatprep.subr.bf16.mxu1 %v13478_v24  ;;  %v9218_v63 = vld [vmem:[%s17721_s4 + $0x30] sm:$0xff]  ;;  %v9219_v0 = vld [vmem:[%s17721_s4 + $0x38] sm:$0xff] }
 0x22a   :  { %v13893_v1 = vpop.f32.mrb[6].mxu0  ;;  %v498_v2 = vpop.f32.mrb[6].mxu1 }
 0x22b   :  { %v499_v3 = vadd.f32 %v9164_v48, %v498_v2  ;;  %v10636_v4 = vpop.f32.mrb[7].mxu0  ;;  %v10671_v8 = vpop.f32.mrb[7].mxu1 }
 0x22d   :  { %v12620_v9 = vpack.c.bf16 %v499_v3, %v494_v42  ;;  %v12647_v3 = vpack.c.bf16 %v9219_v0, %v9218_v63  ;;  %v14106_v0 = vld [vmem:[%s17724_s3 + $0x10] sm:$0xff] }
 0x22e   :  { %v13895_v10 = vpop.f32.mrb[8].mxu0  ;;  %v503_v11 = vpop.f32.mrb[8].mxu1 }
 0x22f   :  { %v10639_v12 = vpop.f32.mrb[9].mxu0  ;;  %v10674_v13 = vpop.f32.mrb[9].mxu1  ;;  %12622 = vmatpush3.bf16.xpose.msk.msra.mxu1 %vm13884_vm4, %v12620_v9  ;;  %v504_v43 = vadd.f32 %v9164_v48, %v503_v11 }
 0x230   :  { %12623 = vmatprep.subr.bf16.mxu1 %v13478_v24 }
 0x232   :  { %v13900_v15 = vpop.f32.mrb[10].mxu0  ;;  %v508_v16 = vpop.f32.mrb[10].mxu1 }
 0x233   :  { %v509_v50 = vadd.f32 %v9164_v48, %v508_v16  ;;  %v10642_v17 = vpop.f32.mrb[11].mxu0  ;;  %v10677_v18 = vpop.f32.mrb[11].mxu1 }
 0x235   :  { %v12624_v20 = vpack.c.bf16 %v509_v50, %v504_v43  ;;  %v376_v43 = vadd.f32 %v13922_v45, %v13893_v1 }
 0x236   :  { %v13902_v21 = vpop.f32.mrb[12].mxu0  ;;  %v513_v22 = vpop.f32.mrb[12].mxu1 }
 0x237   :  { %v10645_v23 = vpop.f32.mrb[13].mxu0  ;;  %v10680_v25 = vpop.f32.mrb[13].mxu1  ;;  %12626 = vmatpush3.bf16.xpose.msk.msra.mxu1 %vm13884_vm4, %v12624_v20  ;;  %v514_v60 = vadd.f32 %v9164_v48, %v513_v22  ;;  %v381_v20 = vadd.f32 %v13922_v45, %v13895_v10 }
 0x238   :  { %12627 = vmatprep.subr.bf16.mxu1 %v13478_v24  ;;  %v386_v25 = vadd.f32 %v13922_v45, %v13900_v15 }
 0x23a   :  { %v13907_v26 = vpop.f32.mrb[14].mxu0  ;;  %v518_v27 = vpop.f32.mrb[14].mxu1 }
 0x23b   :  { %v519_v29 = vadd.f32 %v9164_v48, %v518_v27  ;;  %v10648_v30 = vpop.f32.mrb[15].mxu0  ;;  %v10683_v33 = vpop.f32.mrb[15].mxu1 }
 0x23c   :  { %v391_v30 = vadd.f32 %v13922_v45, %v13902_v21 }
 0x23d   :  { %v12628_v61 = vpack.c.bf16 %v519_v29, %v514_v60 }
 0x23e   :  { %v13909_v34 = vpop.f32.mrb[16].mxu0  ;;  %v523_v35 = vpop.f32.mrb[16].mxu1 }
 0x23f   :  { %v10651_v6 = vpop.f32.mrb[17].mxu0  ;;  %v10686_v37 = vpop.f32.mrb[17].mxu1  ;;  %12630 = vmatpush3.bf16.xpose.msk.msra.mxu1 %vm13884_vm4, %v12628_v61  ;;  %v524_v46 = vadd.f32 %v9164_v48, %v523_v35  ;;  %v12644_v48 = vpack.c.bf16 %v9217_v52, %v9216_v47  ;;  %v396_v35 = vadd.f32 %v13922_v45, %v13907_v26  ;;  %v401_v21 = vadd.f32 %v13922_v45, %v13909_v34  ;;  %v9247_v26 = vld [vmem:[%s17721_s4 + $0x128] sm:$0xff]  ;;  %v9248_v34 = vld [vmem:[%s17721_s4 + $0x130] sm:$0xff] }
 0x240   :  { %10738 = vmatprep.subr.mxu1 %v17734_v32  ;;  %v9246_v37 = vld [vmem:[%s17721_s4 + $0x120] sm:$0xff] }
 0x242   :  { %v606_v39 = vpop.f32.mrb[18].mxu0 }
 0x243   :  { %v10697_v7 = vpop.f32.mrb[19].mxu0  ;;  %v607_v54 = vadd.f32 %v13917_v40, %v606_v39  ;;  %v12656_v39 = vpack.c.bf16 %v9247_v26, %v9246_v37 }
 0x244   :  { %v9249_v7 = vld [vmem:[%s17721_s4 + $0x138] sm:$0xff] }
 0x246   :  { %v611_v53 = vpop.f32.mrb[20].mxu0 }
 0x247   :  { %v612_v55 = vadd.f32 %v13917_v40, %v611_v53  ;;  %v10700_v56 = vpop.f32.mrb[21].mxu0  ;;  %10739 = vmatpush3.xpose.msk.msra.mxu1 %vm650_vm3, %v524_v46  ;;  %v14088_v46 = vld [vmem:[%s17724_s3] sm:$0xff] }
 0x248   :  { %12643 = vmatprep.subr.bf16.mxu1 %v13478_v24 }
 0x249   :  { %v12632_v62 = vpack.c.bf16 %v612_v55, %v607_v54  ;;  %v14096_v55 = vld [vmem:[%s17724_s3 + $0x8] sm:$0xff] }
 0x24a   :  { %v616_v2 = vpop.f32.mrb[22].mxu0  ;;  %10741 = vmatmul.mubr.msk.f32.vlgmr.msra.gmra.mrb[18].mxu1 %vm650_vm3, %v361_v58 }
 0x24b   :  { %v10703_v42 = vpop.f32.mrb[23].mxu0  ;;  %12633 = vmatpush3.bf16.msra.mxu0 %v12632_v62  ;;  %10743 = vmatprep.mubr.msk.f32.mxu1 %vm13479_vm2, %v17734_v32  ;;  %v617_v8 = vadd.f32 %v13917_v40, %v616_v2 }
 0x24c   :  { %12634 = vmatprep.subr.bf16.mxu0 %v13478_v24  ;;  %12645 = vmatpush3.bf16.msra.mxu1 %v12644_v48 }
 0x24d   :  { %12646 = vmatprep.subr.bf16.mxu1 %v13478_v24 }
 0x24e   :  { %v621_v4 = vpop.f32.mrb[24].mxu0  ;;  %10744 = vmatmul.mubr.msk.f32.gmra.mrb[20].mxu1 %vm650_vm3, %v366_v44 }
 0x24f   :  { %v622_v9 = vadd.f32 %v13917_v40, %v621_v4  ;;  %v10706_v11 = vpop.f32.mrb[25].mxu0  ;;  %10746 = vmatprep.mubr.msk.f32.mxu1 %vm13479_vm2, %v17734_v32 }
 0x250   :  { %12648 = vmatpush3.bf16.msra.mxu1 %v12647_v3 }
 0x251   :  { %v12635_v12 = vpack.c.bf16 %v622_v9, %v617_v8  ;;  %12655 = vmatprep.subr.bf16.mxu1 %v13478_v24  ;;  %v14116_v8 = vld [vmem:[%s17724_s3 + $0x18] sm:$0xff] }
 0x252   :  { %v626_v13 = vpop.f32.mrb[26].mxu0  ;;  %10747 = vmatmul.mubr.msk.f32.gmra.mrb[22].mxu1 %vm650_vm3, %v371_v49 }
 0x253   :  { %v10709_v16 = vpop.f32.mrb[27].mxu0  ;;  %12636 = vmatpush3.bf16.msra.mxu0 %v12635_v12  ;;  %10749 = vmatprep.mubr.msk.f32.mxu1 %vm13479_vm2, %v17734_v32  ;;  %v627_v59 = vadd.f32 %v13917_v40, %v626_v13 }
 0x254   :  { %12637 = vmatprep.subr.bf16.mxu0 %v13478_v24  ;;  %v14126_v16 = vld [vmem:[%s17724_s3 + $0x20] sm:$0xff] }
 0x256   :  { %v631_v50 = vpop.f32.mrb[28].mxu0  ;;  %10750 = vmatmul.mubr.msk.f32.gmra.mrb[24].mxu1 %vm650_vm3, %v376_v43 }
 0x257   :  { %v632_v17 = vadd.f32 %v13917_v40, %v631_v50  ;;  %v10712_v18 = vpop.f32.mrb[29].mxu0  ;;  %10752 = vmatprep.mubr.msk.f32.mxu1 %vm13479_vm2, %v17734_v32 }
 0x259   :  { %v12638_v22 = vpack.c.bf16 %v632_v17, %v627_v59 }
 0x25a   :  { %v636_v23 = vpop.f32.mrb[30].mxu0  ;;  %10753 = vmatmul.mubr.msk.f32.gmra.mrb[26].mxu1 %vm650_vm3, %v381_v20  ;;  %v14136_v20 = vld [vmem:[%s17724_s3 + $0x28] sm:$0xff] }
 0x25b   :  { %v10715_v1 = vpop.f32.mrb[31].mxu0  ;;  %12639 = vmatpush3.bf16.msra.mxu0 %v12638_v22  ;;  %10755 = vmatprep.mubr.msk.f32.mxu1 %vm13479_vm2, %v17734_v32  ;;  %v637_v60 = vadd.f32 %v13917_v40, %v636_v23 }
 0x25c   :  { %12640 = vmatprep.subr.bf16.mxu0 %v13478_v24 }
 0x25e   :  { %v641_v27 = vpop.f32.mrb[32].mxu0  ;;  %10756 = vmatmul.mubr.msk.f32.gmra.mrb[28].mxu1 %vm650_vm3, %v386_v25 }
 0x25f   :  { %v642_v10 = vadd.f32 %v13917_v40, %v641_v27  ;;  %v10718_v29 = vpop.f32.mrb[33].mxu0  ;;  %10758 = vmatprep.mubr.msk.f32.mxu1 %vm13479_vm2, %v17734_v32 }
 0x261   :  { %v12641_v33 = vpack.c.bf16 %v642_v10, %v637_v60  ;;  %v14146_v60 = vld [vmem:[%s17724_s3 + $0x30] sm:$0xff] }
 0x262   :  { %v646_v61 = vpop.f32.mrb[34].mxu0  ;;  %10759 = vmatmul.mubr.msk.f32.gmra.mrb[30].mxu1 %vm650_vm3, %v391_v30 }
 0x263   :  { %v10721_v15 = vpop.f32.mrb[35].mxu0  ;;  %12642 = vmatpush3.bf16.msra.mxu0 %v12641_v33  ;;  %10761 = vmatprep.mubr.msk.f32.mxu1 %vm13479_vm2, %v17734_v32  ;;  %v647_v6 = vadd.f32 %v13917_v40, %v646_v61  ;;  %v12659_v40 = vpack.c.bf16 %v9249_v7, %v9248_v34 }
 0x264   :  { %10783 = vmatprep.subr.mxu0 %v17734_v32  ;;  %v14156_v15 = vld [vmem:[%s17724_s3 + $0x38] sm:$0xff] }
 0x266   :  { %10762 = vmatmul.mubr.msk.f32.gmra.mrb[32].mxu1 %vm650_vm3, %v396_v35 }
 0x267   :  { %10784 = vmatpush3.msra.mxu0 %v647_v6  ;;  %10764 = vmatprep.mubr.msk.f32.mxu1 %vm13479_vm2, %v17734_v32 }
 0x268   :  { %12649 = vmatprep.subr.bf16.mxu0 %v13478_v24 }
 0x26a   :  { %10765 = vmatmul.mubr.msk.f32.gmra.mrb[34].mxu1 %vm650_vm3, %v401_v21 }
 0x26b   :  { %10820 = vmatprep.mubr.msk.f32.mxu1 %vm13479_vm2, %v17734_v32 }
 0x26e   :  { %10821 = vmatmul.mubr.msk.f32.vlgmr.msra.gmra.mrb[36].mxu1 %vm57_vm1, %v13717_v5 }
 0x26f   :  { %10823 = vmatprep.mubr.msk.f32.mxu1 %vm13479_vm2, %v17734_v32  ;;  %12657 = vmatpush3.bf16.msra.mxu1 %v12656_v39  ;;  %v14166_v39 = vld [vmem:[%s17724_s3 + $0x40] sm:$0xff] }
 0x270   :  { %12658 = vmatprep.subr.bf16.mxu1 %v13478_v24 }
 0x272   :  { %10824 = vmatmul.mubr.msk.f32.gmra.mrb[38].mxu1 %vm57_vm1, %v13738_v19 }
 0x273   :  { %10826 = vmatprep.mubr.msk.f32.mxu1 %vm13479_vm2, %v17734_v32  ;;  %12660 = vmatpush3.bf16.msra.mxu1 %v12659_v40 }
 0x274   :  { %12677 = vmatprep.subr.bf16.mxu1 %v13478_v24 }
 0x276   :  { %10827 = vmatmul.mubr.msk.f32.gmra.mrb[40].mxu1 %vm57_vm1, %v13751_v51 }
 0x277   :  { %10829 = vmatprep.mubr.msk.f32.mxu1 %vm13479_vm2, %v17734_v32 }
 0x27a   :  { %10830 = vmatmul.mubr.msk.f32.gmra.mrb[42].mxu1 %vm57_vm1, %v13766_v28 }
 0x27b   :  { %10832 = vmatprep.mubr.msk.f32.mxu1 %vm13479_vm2, %v17734_v32 }
 0x27e   :  { %10833 = vmatmul.mubr.msk.f32.gmra.mrb[44].mxu1 %vm57_vm1, %v13778_v31 }
 0x27f   :  { %10835 = vmatprep.mubr.msk.f32.mxu1 %vm13479_vm2, %v17734_v32 }
 0x282   :  { %10836 = vmatmul.mubr.msk.f32.gmra.mrb[46].mxu1 %vm57_vm1, %v13792_v36 }
 0x283   :  { %10838 = vmatprep.mubr.msk.f32.mxu1 %vm13479_vm2, %v17734_v32 }
 0x286   :  { %10839 = vmatmul.mubr.msk.f32.gmra.mrb[48].mxu1 %vm57_vm1, %v13804_v38 }
 0x287   :  { %10841 = vmatprep.mubr.msk.f32.mxu1 %vm13479_vm2, %v17734_v32 }
 0x28a   :  { %10842 = vmatmul.mubr.msk.f32.gmra.mrb[50].mxu1 %vm57_vm1, %v13818_v41 }
 0x28b   :  { %10844 = vmatprep.mubr.msk.f32.mxu1 %vm13479_vm2, %v17734_v32 }
 0x28e   :  { %10845 = vmatmul.mubr.msk.f32.gmra.mrb[52].mxu1 %vm57_vm1, %v13829_v14 }
 0x28f   :  { %10890 = vmatprep.mubr.msk.f32.mxu1 %vm13479_vm2, %v17734_v32 }
 0x292   :  { %10891 = vmatmul.mubr.msk.f32.vlgmr.msra.gmra.mrb[54].mxu1 %vm57_vm1, %v13717_v5 }
 0x293   :  { %10893 = vmatprep.mubr.msk.f32.mxu1 %vm13479_vm2, %v17734_v32 }
 0x296   :  { %10894 = vmatmul.mubr.msk.f32.gmra.mrb[56].mxu1 %vm57_vm1, %v13738_v19 }
 0x297   :  { %10896 = vmatprep.mubr.msk.f32.mxu1 %vm13479_vm2, %v17734_v32 }
 0x29a   :  { %10897 = vmatmul.mubr.msk.f32.gmra.mrb[58].mxu1 %vm57_vm1, %v13751_v51 }
 0x29b   :  { %10899 = vmatprep.mubr.msk.f32.mxu1 %vm13479_vm2, %v17734_v32 }
 0x29e   :  { %10900 = vmatmul.mubr.msk.f32.gmra.mrb[60].mxu1 %vm57_vm1, %v13766_v28 }
 0x29f   :  { %10902 = vmatprep.mubr.msk.f32.mxu1 %vm13479_vm2, %v17734_v32 }
 0x2a2   :  { %10903 = vmatmul.mubr.msk.f32.gmra.mrb[62].mxu1 %vm57_vm1, %v13778_v31 }
 0x2a3   :  { %10905 = vmatprep.mubr.msk.f32.mxu1 %vm13479_vm2, %v17734_v32 }
 0x2a6   :  { %10906 = vmatmul.mubr.msk.f32.gmra.mrb[64].mxu1 %vm57_vm1, %v13792_v36 }
 0x2a7   :  { %10908 = vmatprep.mubr.msk.f32.mxu1 %vm13479_vm2, %v17734_v32 }
 0x2aa   :  { %10909 = vmatmul.mubr.msk.f32.gmra.mrb[66].mxu1 %vm57_vm1, %v13804_v38 }
 0x2ab   :  { %10911 = vmatprep.mubr.msk.f32.mxu1 %vm13479_vm2, %v17734_v32 }
 0x2ae   :  { %10912 = vmatmul.mubr.msk.f32.gmra.mrb[68].mxu1 %vm57_vm1, %v13818_v41 }
 0x2af   :  { %10914 = vmatprep.mubr.msk.f32.mxu1 %vm13479_vm2, %v17734_v32 }
 0x2b2   :  { %10915 = vmatmul.mubr.msk.f32.gmra.mrb[70].mxu1 %vm57_vm1, %v13829_v14 }
 0x2b3   :  { %10980 = vmatprep.mubr.msk.f32.mxu1 %vm13479_vm2, %v17734_v32 }
 0x31d   :  { %v771_v45 = vpop.f32.mrb[18].mxu1 }
 0x31e   :  { %v815_v47 = vmul.f32 0.35355338, %v771_v45  ;;  %v10742_v52 = vpop.f32.mrb[19].mxu1 }
 0x320   :  { %v14091_v53 = vadd.f32 %v815_v47, %v14088_v46 }
 0x321   :  { %v776_v54 = vpop.f32.mrb[20].mxu1 }
 0x322   :  { %v816_v56 = vmul.f32 0.35355338, %v776_v54  ;;  %v10745_v58 = vpop.f32.mrb[21].mxu1  ;;  %v834_v48 = vsel %vm833_vm5, %v14091_v53, -inf }
 0x323   :  { %835 = vmax.xlane.f32.xlu0 %v834_v48 }
 0x324   :  { %v14101_v62 = vadd.f32 %v816_v56, %v14096_v55 }
 0x325   :  { %v781_v63 = vpop.f32.mrb[22].mxu1 }
 0x326   :  { %v817_v2 = vmul.f32 0.35355338, %v781_v63  ;;  %v10748_v42 = vpop.f32.mrb[23].mxu1  ;;  %v837_v44 = vsel %vm833_vm5, %v14101_v62, -inf }
 0x327   :  { %838 = vmax.xlane.f32.xlu1 %v837_v44 }
 0x328   :  { %v14111_v3 = vadd.f32 %v817_v2, %v14106_v0 }
 0x329   :  { %v786_v4 = vpop.f32.mrb[24].mxu1 }
 0x32a   :  { %v818_v9 = vmul.f32 0.35355338, %v786_v4  ;;  %v10751_v11 = vpop.f32.mrb[25].mxu1  ;;  %v840_v49 = vsel %vm833_vm5, %v14111_v3, -inf }
 0x32b   :  { %841 = vmax.xlane.f32.xlu0 %v840_v49 }
 0x32c   :  { %v14121_v12 = vadd.f32 %v818_v9, %v14116_v8 }
 0x32d   :  { %v791_v13 = vpop.f32.mrb[26].mxu1 }
 0x32e   :  { %v819_v43 = vmul.f32 0.35355338, %v791_v13  ;;  %v10754_v50 = vpop.f32.mrb[27].mxu1  ;;  %v843_v59 = vsel %vm833_vm5, %v14121_v12, -inf }
 0x32f   :  { %844 = vmax.xlane.f32.xlu1 %v843_v59 }
 0x330   :  { %v14131_v17 = vadd.f32 %v819_v43, %v14126_v16 }
 0x331   :  { %v796_v18 = vpop.f32.mrb[28].mxu1 }
 0x332   :  { %v820_v22 = vmul.f32 0.35355338, %v796_v18  ;;  %v10757_v23 = vpop.f32.mrb[29].mxu1  ;;  %v846_v1 = vsel %vm833_vm5, %v14131_v17, -inf }
 0x333   :  { %847 = vmax.xlane.f32.xlu0 %v846_v1  ;;  %v9251_v1 = vld [vmem:[%s17723_s5 + $0x9] ss:$0 sm:$0xff] }
 0x334   :  { %v14141_v25 = vadd.f32 %v820_v22, %v14136_v20 }
 0x335   :  { %v801_v27 = vpop.f32.mrb[30].mxu1 }
 0x336   :  { %v821_v10 = vmul.f32 0.35355338, %v801_v27  ;;  %v10760_v29 = vpop.f32.mrb[31].mxu1  ;;  %v849_v30 = vsel %vm833_vm5, %v14141_v25, -inf }
 0x337   :  { %850 = vmax.xlane.f32.xlu1 %v849_v30 }
 0x338   :  { %v14151_v33 = vadd.f32 %v821_v10, %v14146_v60 }
 0x339   :  { %v806_v61 = vpop.f32.mrb[32].mxu1 }
 0x33a   :  { %v822_v35 = vmul.f32 0.35355338, %v806_v61  ;;  %v10763_v6 = vpop.f32.mrb[33].mxu1  ;;  %v852_v21 = vsel %vm833_vm5, %v14151_v33, -inf }
 0x33b   :  { %853 = vmax.xlane.f32.xlu0 %v852_v21 }
 0x33c   :  { %v14161_v37 = vadd.f32 %v822_v35, %v14156_v15 }
 0x33d   :  { %v811_v26 = vpop.f32.mrb[34].mxu1 }
 0x33e   :  { %v823_v34 = vmul.f32 0.35355338, %v811_v26  ;;  %v10766_v7 = vpop.f32.mrb[35].mxu1  ;;  %v855_v40 = vsel %vm833_vm5, %v14161_v37, -inf }
 0x33f   :  { %856 = vmax.xlane.f32.xlu1 %v855_v40 }
 0x340   :  { %v14171_v45 = vadd.f32 %v823_v34, %v14166_v39 }
 0x341   :  { %v14173_v47 = vpop.f32.mrb[36].mxu1 }
 0x342   :  { %v10822_v52 = vpop.f32.mrb[37].mxu1  ;;  %v858_v54 = vsel %vm833_vm5, %v14171_v45, -inf }
 0x343   :  { %859 = vmax.xlane.f32.xlu0 %v858_v54 }
 0x345   :  { %v14177_v56 = vpop.f32.mrb[38].mxu1 }
 0x346   :  { %v10825_v58 = vpop.f32.mrb[39].mxu1 }
 0x349   :  { %v14179_v48 = vpop.f32.mrb[40].mxu1 }
 0x34a   :  { %v10828_v63 = vpop.f32.mrb[41].mxu1 }
 0x34d   :  { %v14181_v2 = vpop.f32.mrb[42].mxu1 }
 0x34e   :  { %v10831_v42 = vpop.f32.mrb[43].mxu1 }
 0x351   :  { %v14183_v44 = vpop.f32.mrb[44].mxu1 }
 0x352   :  { %v10834_v4 = vpop.f32.mrb[45].mxu1 }
 0x355   :  { %v14185_v9 = vpop.f32.mrb[46].mxu1 }
 0x356   :  { %v10837_v11 = vpop.f32.mrb[47].mxu1 }
 0x359   :  { %v14187_v49 = vpop.f32.mrb[48].mxu1 }
 0x35a   :  { %v10840_v13 = vpop.f32.mrb[49].mxu1 }
 0x35d   :  { %v14189_v43 = vpop.f32.mrb[50].mxu1 }
 0x35e   :  { %v10843_v50 = vpop.f32.mrb[51].mxu1 }
 0x361   :  { %v14191_v59 = vpop.f32.mrb[52].mxu1 }
 0x362   :  { %v10846_v18 = vpop.f32.mrb[53].mxu1 }
 0x365   :  { %v1396_v22 = vpop.f32.mrb[54].mxu1 }
 0x366   :  { %v10892_v23 = vpop.f32.mrb[55].mxu1  ;;  %v1397_v10 = vadd.f32 %v9251_v1, %v1396_v22 }
 0x369   :  { %v1401_v27 = vpop.f32.mrb[56].mxu1 }
 0x36a   :  { %v1402_v29 = vadd.f32 %v9251_v1, %v1401_v27  ;;  %v10895_v30 = vpop.f32.mrb[57].mxu1 }
 0x36c   :  { %v12678_v61 = vpack.c.bf16 %v1402_v29, %v1397_v10 }
 0x36d   :  { %v1406_v35 = vpop.f32.mrb[58].mxu1 }
 0x36e   :  { %v10898_v6 = vpop.f32.mrb[59].mxu1  ;;  %12679 = vmatpush3.bf16.msra.mxu1 %v12678_v61  ;;  %v1407_v26 = vadd.f32 %v9251_v1, %v1406_v35 }
 0x36f   :  { %12680 = vmatprep.subr.bf16.mxu1 %v13478_v24 }
 0x371   :  { %v1411_v21 = vpop.f32.mrb[60].mxu1 }
 0x372   :  { %v1412_v34 = vadd.f32 %v9251_v1, %v1411_v21  ;;  %v10901_v7 = vpop.f32.mrb[61].mxu1 }
 0x374   :  { %v12681_v40 = vpack.c.bf16 %v1412_v34, %v1407_v26 }
 0x375   :  { %v1416_v52 = vpop.f32.mrb[62].mxu1 }
 0x376   :  { %v10904_v54 = vpop.f32.mrb[63].mxu1  ;;  %12682 = vmatpush3.bf16.msra.mxu1 %v12681_v40  ;;  %v1417_v63 = vadd.f32 %v9251_v1, %v1416_v52 }
 0x377   :  { %12683 = vmatprep.subr.bf16.mxu1 %v13478_v24 }
 0x379   :  { %v1421_v58 = vpop.f32.mrb[64].mxu1 }
 0x37a   :  { %v1422_v42 = vadd.f32 %v9251_v1, %v1421_v58  ;;  %v10907_v4 = vpop.f32.mrb[65].mxu1 }
 0x37c   :  { %v12684_v11 = vpack.c.bf16 %v1422_v42, %v1417_v63 }
 0x37d   :  { %v1426_v13 = vpop.f32.mrb[66].mxu1 }
 0x37e   :  { %v10910_v50 = vpop.f32.mrb[67].mxu1  ;;  %12685 = vmatpush3.bf16.msra.mxu1 %v12684_v11  ;;  %v1427_v22 = vadd.f32 %v9251_v1, %v1426_v13 }
 0x37f   :  { %12686 = vmatprep.subr.bf16.mxu1 %v13478_v24 }
 0x381   :  { %v1431_v18 = vpop.f32.mrb[68].mxu1 }
 0x382   :  { %v1432_v23 = vadd.f32 %v9251_v1, %v1431_v18  ;;  %v10913_v27 = vpop.f32.mrb[69].mxu1 }
 0x384   :  { %v12687_v10 = vpack.c.bf16 %v1432_v23, %v1427_v22 }
 0x385   :  { %v1436_v29 = vpop.f32.mrb[70].mxu1 }
 0x386   :  { %v10916_v30 = vpop.f32.mrb[71].mxu1  ;;  %12688 = vmatpush3.bf16.msra.mxu1 %v12687_v10  ;;  %v1437_v61 = vadd.f32 %v9251_v1, %v1436_v29 }
 0x387   :  { %10978 = vmatprep.subr.mxu1 %v17734_v32 }
 0x38a   :  { %10979 = vmatpush3.msra.mxu1 %v1437_v61 }
 0x38b   :  { %11036 = vmatprep.subr.mxu1 %v17734_v32 }
 0x3b0   :  { %v836_v35 = vpop.xlane.xlu0 %835 }
 0x3b1   :  { %v861_v6 = vsub.f32 %v14091_v53, %v836_v35 }
 0x3b3   :  { %v870_v21 = vmul.f32 1.442695, %v861_v6 }
 0x3b4   :  { %v839_v26 = vpop.xlane.xlu1 %838 }
 0x3b5   :  { %13046 = vpow2.f32 %v870_v21  ;;  %v862_v34 = vsub.f32 %v14101_v62, %v839_v26 }
 0x3b7   :  { %v872_v7 = vmul.f32 1.442695, %v862_v34 }
 0x3b8   :  { %v842_v40 = vpop.xlane.xlu0 %841 }
 0x3b9   :  { %13048 = vpow2.f32 %v872_v7  ;;  %v863_v52 = vsub.f32 %v14111_v3, %v842_v40 }
 0x3bb   :  { %v874_v54 = vmul.f32 1.442695, %v863_v52 }
 0x3bc   :  { %v845_v58 = vpop.xlane.xlu1 %844 }
 0x3bd   :  { %13050 = vpow2.f32 %v874_v54  ;;  %v864_v1 = vsub.f32 %v14121_v12, %v845_v58 }
 0x3bf   :  { %v13047_v63 = vpop.eup %13046  ;;  %v876_v42 = vmul.f32 1.442695, %v864_v1 }
 0x3c0   :  { %v848_v4 = vpop.xlane.xlu0 %847  ;;  %v888_v53 = vsel %vm833_vm5, %v13047_v63, 0.0 }
 0x3c1   :  { %13052 = vpow2.f32 %v876_v42  ;;  %v865_v11 = vsub.f32 %v14131_v17, %v848_v4  ;;  %889 = vadd.xlane.f32.xlu1 %v888_v53 }
 0x3c3   :  { %v14207_v62 = vpop.eup %13048  ;;  %v878_v13 = vmul.f32 1.442695, %v865_v11  ;;  %v9231_v11 = vld [vmem:[%s17721_s4 + $0xa0] sm:$0xff] }
 0x3c4   :  { %v851_v50 = vpop.xlane.xlu1 %850  ;;  %v891_v3 = vsel %vm833_vm5, %v14207_v62, 0.0 }
 0x3c5   :  { %13054 = vpow2.f32 %v878_v13  ;;  %v866_v18 = vsub.f32 %v14141_v25, %v851_v50  ;;  %892 = vadd.xlane.f32.xlu0 %v891_v3  ;;  %v9232_v13 = vld [vmem:[%s17721_s4 + $0xa8] sm:$0xff] }
 0x3c6   :  { %v12650_v3 = vpack.c.bf16 %v9232_v13, %v9231_v11 }
 0x3c7   :  { %v14212_v12 = vpop.eup %13050  ;;  %v880_v22 = vmul.f32 1.442695, %v866_v18 }
 0x3c8   :  { %v854_v23 = vpop.xlane.xlu0 %853  ;;  %v894_v27 = vsel %vm833_vm5, %v14212_v12, 0.0 }
 0x3c9   :  { %13056 = vpow2.f32 %v880_v22  ;;  %v867_v17 = vsub.f32 %v14151_v33, %v854_v23  ;;  %895 = vadd.xlane.f32.xlu1 %v894_v27  ;;  %v9233_v23 = vld [vmem:[%s17721_s4 + $0xb0] sm:$0xff]  ;;  %v9234_v27 = vld [vmem:[%s17721_s4 + $0xb8] sm:$0xff] }
 0x3cb   :  { %v14217_v10 = vpop.eup %13052  ;;  %v882_v29 = vmul.f32 1.442695, %v867_v17 }
 0x3cc   :  { %v857_v30 = vpop.xlane.xlu1 %856  ;;  %v897_v61 = vsel %vm833_vm5, %v14217_v10, 0.0 }
 0x3cd   :  { %13058 = vpow2.f32 %v882_v29  ;;  %v868_v25 = vsub.f32 %v14161_v37, %v857_v30  ;;  %898 = vadd.xlane.f32.xlu0 %v897_v61  ;;  %v12653_v29 = vpack.c.bf16 %v9234_v27, %v9233_v23 }
 0x3cf   :  { %v14222_v35 = vpop.eup %13054  ;;  %v884_v6 = vmul.f32 1.442695, %v868_v25 }
 0x3d0   :  { %v860_v21 = vpop.xlane.xlu0 %859  ;;  %v900_v26 = vsel %vm833_vm5, %v14222_v35, 0.0 }
 0x3d1   :  { %13060 = vpow2.f32 %v884_v6  ;;  %v869_v33 = vsub.f32 %v14171_v45, %v860_v21  ;;  %901 = vadd.xlane.f32.xlu1 %v900_v26 }
 0x3d3   :  { %v13057_v34 = vpop.eup %13056  ;;  %v886_v7 = vmul.f32 1.442695, %v869_v33 }
 0x3d4   :  { %v903_v40 = vsel %vm833_vm5, %v13057_v34, 0.0 }
 0x3d5   :  { %13062 = vpow2.f32 %v886_v7  ;;  %904 = vadd.xlane.f32.xlu0 %v903_v40 }
 0x3d7   :  { %v13059_v52 = vpop.eup %13058 }
 0x3d8   :  { %v906_v37 = vsel %vm833_vm5, %v13059_v52, 0.0 }
 0x3d9   :  { %907 = vadd.xlane.f32.xlu1 %v906_v37 }
 0x3db   :  { %v14229_v54 = vpop.eup %13060 }
 0x3dc   :  { %v909_v58 = vsel %vm833_vm5, %v14229_v54, 0.0 }
 0x3dd   :  { %910 = vadd.xlane.f32.xlu0 %v909_v58 }
 0x3df   :  { %v14233_v1 = vpop.eup %13062 }
 0x3e0   :  { %v912_v45 = vsel %vm833_vm5, %v14233_v1, 0.0 }
 0x3e1   :  { %913 = vadd.xlane.f32.xlu1 %v912_v45 }
 0x44e   :  { %v890_v42 = vpop.xlane.xlu1 %889 }
 0x44f   :  { %13064 = vrcp.f32 %v890_v42 }
 0x452   :  { %v893_v4 = vpop.xlane.xlu0 %892 }
 0x453   :  { %13066 = vrcp.f32 %v893_v4 }
 0x456   :  { %v896_v53 = vpop.xlane.xlu1 %895 }
 0x457   :  { %13068 = vrcp.f32 %v896_v53 }
 0x459   :  { %v13065_v50 = vpop.eup %13064 }
 0x45a   :  { %v924_v18 = vmul.f32 %v13065_v50, %v13047_v63  ;;  %v899_v22 = vpop.xlane.xlu0 %898 }
 0x45b   :  { %13070 = vrcp.f32 %v899_v22 }
 0x45c   :  { %10786 = vmatmul.mubr.msk.f32.vlgmr.msra.gmra.mrb[36].mxu0 %vm833_vm5, %v924_v18 }
 0x45d   :  { %v13067_v17 = vpop.eup %13066  ;;  %10788 = vmatprep.mubr.msk.f32.mxu0 %vm13479_vm2, %v17734_v32  ;;  %12651 = vmatpush3.bf16.msra.mxu0 %v12650_v3 }
 0x45e   :  { %v902_v30 = vpop.xlane.xlu1 %901  ;;  %v925_v63 = vmul.f32 %v13067_v17, %v14207_v62  ;;  %12652 = vmatprep.subr.bf16.mxu0 %v13478_v24 }
 0x45f   :  { %13072 = vrcp.f32 %v902_v30 }
 0x460   :  { %10789 = vmatmul.mubr.msk.f32.gmra.mrb[38].mxu0 %vm833_vm5, %v925_v63 }
 0x461   :  { %v13069_v61 = vpop.eup %13068  ;;  %10791 = vmatprep.mubr.msk.f32.mxu0 %vm13479_vm2, %v17734_v32  ;;  %12654 = vmatpush3.bf16.msra.mxu0 %v12653_v29 }
 0x462   :  { %v905_v25 = vpop.xlane.xlu0 %904  ;;  %v926_v6 = vmul.f32 %v13069_v61, %v14212_v12  ;;  %12661 = vmatprep.subr.bf16.mxu0 %v13478_v24 }
 0x463   :  { %13074 = vrcp.f32 %v905_v25 }
 0x464   :  { %10792 = vmatmul.mubr.msk.f32.gmra.mrb[40].mxu0 %vm833_vm5, %v926_v6 }
 0x465   :  { %v13071_v21 = vpop.eup %13070  ;;  %10794 = vmatprep.mubr.msk.f32.mxu0 %vm13479_vm2, %v17734_v32 }
 0x466   :  { %v908_v62 = vpop.xlane.xlu1 %907  ;;  %v927_v26 = vmul.f32 %v13071_v21, %v14217_v10 }
 0x467   :  { %13076 = vrcp.f32 %v908_v62  ;;  %v9236_v62 = vld [vmem:[%s17723_s5 + $0x5] ss:$0 sm:$0xff] }
 0x468   :  { %10795 = vmatmul.mubr.msk.f32.gmra.mrb[42].mxu0 %vm833_vm5, %v927_v26 }
 0x469   :  { %v13073_v33 = vpop.eup %13072  ;;  %10797 = vmatprep.mubr.msk.f32.mxu0 %vm13479_vm2, %v17734_v32 }
 0x46a   :  { %v911_v12 = vpop.xlane.xlu0 %910  ;;  %v928_v7 = vmul.f32 %v13073_v33, %v14222_v35 }
 0x46b   :  { %13078 = vrcp.f32 %v911_v12 }
 0x46c   :  { %10798 = vmatmul.mubr.msk.f32.gmra.mrb[44].mxu0 %vm833_vm5, %v928_v7 }
 0x46d   :  { %v13075_v40 = vpop.eup %13074  ;;  %10800 = vmatprep.mubr.msk.f32.mxu0 %vm13479_vm2, %v17734_v32 }
 0x46e   :  { %v914_v37 = vpop.xlane.xlu1 %913  ;;  %v929_v58 = vmul.f32 %v13075_v40, %v13057_v34 }
 0x46f   :  { %13080 = vrcp.f32 %v914_v37 }
 0x470   :  { %10801 = vmatmul.mubr.msk.f32.gmra.mrb[46].mxu0 %vm833_vm5, %v929_v58 }
 0x471   :  { %v13077_v10 = vpop.eup %13076  ;;  %10803 = vmatprep.mubr.msk.f32.mxu0 %vm13479_vm2, %v17734_v32 }
 0x472   :  { %v930_v45 = vmul.f32 %v13077_v10, %v13059_v52 }
 0x474   :  { %10804 = vmatmul.mubr.msk.f32.gmra.mrb[48].mxu0 %vm833_vm5, %v930_v45 }
 0x475   :  { %v13079_v35 = vpop.eup %13078  ;;  %10806 = vmatprep.mubr.msk.f32.mxu0 %vm13479_vm2, %v17734_v32 }
 0x476   :  { %v931_v42 = vmul.f32 %v13079_v35, %v14229_v54 }
 0x478   :  { %10807 = vmatmul.mubr.msk.f32.gmra.mrb[50].mxu0 %vm833_vm5, %v931_v42 }
 0x479   :  { %v13081_v4 = vpop.eup %13080  ;;  %10809 = vmatprep.mubr.msk.f32.mxu0 %vm13479_vm2, %v17734_v32 }
 0x47a   :  { %v932_v34 = vmul.f32 %v13081_v4, %v14233_v1 }
 0x47c   :  { %10810 = vmatmul.mubr.msk.f32.gmra.mrb[52].mxu0 %vm833_vm5, %v932_v34 }
 0x47d   :  { %10855 = vmatprep.mubr.msk.f32.mxu0 %vm13479_vm2, %v17734_v32 }
 0x480   :  { %10856 = vmatmul.mubr.msk.f32.vlgmr.msra.gmra.mrb[54].mxu0 %vm57_vm1, %v13717_v5 }
 0x481   :  { %10858 = vmatprep.mubr.msk.f32.mxu0 %vm13479_vm2, %v17734_v32 }
 0x484   :  { %10859 = vmatmul.mubr.msk.f32.gmra.mrb[56].mxu0 %vm57_vm1, %v13738_v19 }
 0x485   :  { %10861 = vmatprep.mubr.msk.f32.mxu0 %vm13479_vm2, %v17734_v32 }
 0x488   :  { %10862 = vmatmul.mubr.msk.f32.gmra.mrb[58].mxu0 %vm57_vm1, %v13751_v51 }
 0x489   :  { %10864 = vmatprep.mubr.msk.f32.mxu0 %vm13479_vm2, %v17734_v32 }
 0x48c   :  { %10865 = vmatmul.mubr.msk.f32.gmra.mrb[60].mxu0 %vm57_vm1, %v13766_v28 }
 0x48d   :  { %10867 = vmatprep.mubr.msk.f32.mxu0 %vm13479_vm2, %v17734_v32 }
 0x490   :  { %10868 = vmatmul.mubr.msk.f32.gmra.mrb[62].mxu0 %vm57_vm1, %v13778_v31 }
 0x491   :  { %10870 = vmatprep.mubr.msk.f32.mxu0 %vm13479_vm2, %v17734_v32 }
 0x494   :  { %10871 = vmatmul.mubr.msk.f32.gmra.mrb[64].mxu0 %vm57_vm1, %v13792_v36 }
 0x495   :  { %10873 = vmatprep.mubr.msk.f32.mxu0 %vm13479_vm2, %v17734_v32 }
 0x498   :  { %10874 = vmatmul.mubr.msk.f32.gmra.mrb[66].mxu0 %vm57_vm1, %v13804_v38 }
 0x499   :  { %10876 = vmatprep.mubr.msk.f32.mxu0 %vm13479_vm2, %v17734_v32 }
 0x49c   :  { %10877 = vmatmul.mubr.msk.f32.gmra.mrb[68].mxu0 %vm57_vm1, %v13818_v41 }
 0x49d   :  { %10879 = vmatprep.mubr.msk.f32.mxu0 %vm13479_vm2, %v17734_v32 }
 0x4a0   :  { %10880 = vmatmul.mubr.msk.f32.gmra.mrb[70].mxu0 %vm57_vm1, %v13829_v14 }
 0x4a1   :  { %10935 = vmatprep.mubr.msk.f32.mxu0 %vm13479_vm2, %v17734_v32 }
 0x52f   :  { %v14320_v52 = vpop.f32.mrb[36].mxu0 }
 0x530   :  { %v10787_v54 = vpop.f32.mrb[37].mxu0 }
 0x533   :  { %v14322_v1 = vpop.f32.mrb[38].mxu0 }
 0x534   :  { %v10790_v53 = vpop.f32.mrb[39].mxu0 }
 0x537   :  { %v14324_v11 = vpop.f32.mrb[40].mxu0 }
 0x538   :  { %v10793_v13 = vpop.f32.mrb[41].mxu0 }
 0x53b   :  { %v14326_v50 = vpop.f32.mrb[42].mxu0 }
 0x53c   :  { %v10796_v3 = vpop.f32.mrb[43].mxu0 }
 0x53f   :  { %v14328_v18 = vpop.f32.mrb[44].mxu0 }
 0x540   :  { %v10799_v22 = vpop.f32.mrb[45].mxu0 }
 0x543   :  { %v14330_v23 = vpop.f32.mrb[46].mxu0 }
 0x544   :  { %v10802_v27 = vpop.f32.mrb[47].mxu0 }
 0x547   :  { %v14332_v17 = vpop.f32.mrb[48].mxu0 }
 0x548   :  { %v10805_v29 = vpop.f32.mrb[49].mxu0 }
 0x54b   :  { %v14334_v30 = vpop.f32.mrb[50].mxu0 }
 0x54c   :  { %v10808_v63 = vpop.f32.mrb[51].mxu0 }
 0x54f   :  { %v14336_v61 = vpop.f32.mrb[52].mxu0 }
 0x550   :  { %v10811_v25 = vpop.f32.mrb[53].mxu0 }
 0x553   :  { %v1273_v6 = vpop.f32.mrb[54].mxu0 }
 0x554   :  { %v10857_v21 = vpop.f32.mrb[55].mxu0  ;;  %v1274_v33 = vadd.f32 %v9236_v62, %v1273_v6 }
 0x557   :  { %v1278_v26 = vpop.f32.mrb[56].mxu0 }
 0x558   :  { %v1279_v12 = vadd.f32 %v9236_v62, %v1278_v26  ;;  %v10860_v7 = vpop.f32.mrb[57].mxu0 }
 0x55a   :  { %v12662_v40 = vpack.c.bf16 %v1279_v12, %v1274_v33 }
 0x55b   :  { %v1283_v37 = vpop.f32.mrb[58].mxu0 }
 0x55c   :  { %v10863_v58 = vpop.f32.mrb[59].mxu0  ;;  %12664 = vmatpush3.bf16.xpose.msk.msra.mxu0 %vm13884_vm4, %v12662_v40  ;;  %v1284_v45 = vadd.f32 %v9236_v62, %v1283_v37  ;;  %v9221_v40 = vld [vmem:[%s17723_s5 + $0x1] ss:$0 sm:$0xff] }
 0x55d   :  { %12665 = vmatprep.subr.bf16.mxu0 %v13478_v24  ;;  %v1151_v58 = vadd.f32 %v9221_v40, %v14173_v47  ;;  %v1166_v47 = vadd.f32 %v9221_v40, %v14181_v2  ;;  %v1181_v2 = vadd.f32 %v9221_v40, %v14187_v49 }
 0x55f   :  { %v1288_v10 = vpop.f32.mrb[60].mxu0 }
 0x560   :  { %v1289_v35 = vadd.f32 %v9236_v62, %v1288_v10  ;;  %v10866_v42 = vpop.f32.mrb[61].mxu0  ;;  %v1156_v10 = vadd.f32 %v9221_v40, %v14177_v56  ;;  %v1171_v56 = vadd.f32 %v9221_v40, %v14183_v44  ;;  %v1186_v44 = vadd.f32 %v9221_v40, %v14189_v43 }
 0x562   :  { %v12666_v4 = vpack.c.bf16 %v1289_v35, %v1284_v45 }
 0x563   :  { %v1293_v34 = vpop.f32.mrb[62].mxu0 }
 0x564   :  { %v10869_v54 = vpop.f32.mrb[63].mxu0  ;;  %12668 = vmatpush3.bf16.xpose.msk.msra.mxu0 %vm13884_vm4, %v12666_v4  ;;  %v1294_v13 = vadd.f32 %v9236_v62, %v1293_v34 }
 0x565   :  { %12669 = vmatprep.subr.bf16.mxu0 %v13478_v24 }
 0x567   :  { %v1298_v53 = vpop.f32.mrb[64].mxu0 }
 0x568   :  { %v1299_v3 = vadd.f32 %v9236_v62, %v1298_v53  ;;  %v10872_v22 = vpop.f32.mrb[65].mxu0 }
 0x56a   :  { %v12670_v27 = vpack.c.bf16 %v1299_v3, %v1294_v13 }
 0x56b   :  { %v1303_v29 = vpop.f32.mrb[66].mxu0 }
 0x56c   :  { %v10875_v63 = vpop.f32.mrb[67].mxu0  ;;  %12672 = vmatpush3.bf16.xpose.msk.msra.mxu0 %vm13884_vm4, %v12670_v27  ;;  %v1304_v6 = vadd.f32 %v9236_v62, %v1303_v29 }
 0x56d   :  { %12673 = vmatprep.subr.bf16.mxu0 %v13478_v24 }
 0x56f   :  { %v1308_v25 = vpop.f32.mrb[68].mxu0 }
 0x570   :  { %v1309_v21 = vadd.f32 %v9236_v62, %v1308_v25  ;;  %v10878_v26 = vpop.f32.mrb[69].mxu0 }
 0x572   :  { %v12674_v33 = vpack.c.bf16 %v1309_v21, %v1304_v6 }
 0x573   :  { %v1313_v12 = vpop.f32.mrb[70].mxu0 }
 0x574   :  { %v10881_v7 = vpop.f32.mrb[71].mxu0  ;;  %12676 = vmatpush3.bf16.xpose.msk.msra.mxu0 %vm13884_vm4, %v12674_v33  ;;  %v1314_v37 = vadd.f32 %v9236_v62, %v1313_v12  ;;  %v1161_v62 = vadd.f32 %v9221_v40, %v14179_v48  ;;  %v1176_v48 = vadd.f32 %v9221_v40, %v14185_v9  ;;  %v1191_v9 = vadd.f32 %v9221_v40, %v14191_v59 }
 0x575   :  { %10933 = vmatprep.subr.mxu0 %v17734_v32 }
 0x57c   :  { %10934 = vmatpush3.xpose.msk.msra.mxu0 %vm650_vm3, %v1314_v37 }
 0x57d   :  { %11007 = vmatprep.subr.mxu0 %v17734_v32 }
 0x57f   :  { %10936 = vmatmul.mubr.msk.f32.vlgmr.msra.gmra.mrb[72].mxu0 %vm650_vm3, %v1151_v58 }
 0x580   :  { %10938 = vmatprep.mubr.msk.f32.mxu0 %vm13479_vm2, %v17734_v32 }
 0x583   :  { %10939 = vmatmul.mubr.msk.f32.gmra.mrb[74].mxu0 %vm650_vm3, %v1156_v10 }
 0x584   :  { %10941 = vmatprep.mubr.msk.f32.mxu0 %vm13479_vm2, %v17734_v32 }
 0x587   :  { %10942 = vmatmul.mubr.msk.f32.gmra.mrb[76].mxu0 %vm650_vm3, %v1161_v62 }
 0x588   :  { %10944 = vmatprep.mubr.msk.f32.mxu0 %vm13479_vm2, %v17734_v32 }
 0x58b   :  { %10945 = vmatmul.mubr.msk.f32.gmra.mrb[78].mxu0 %vm650_vm3, %v1166_v47 }
 0x58c   :  { %10947 = vmatprep.mubr.msk.f32.mxu0 %vm13479_vm2, %v17734_v32 }
 0x58f   :  { %10948 = vmatmul.mubr.msk.f32.gmra.mrb[80].mxu0 %vm650_vm3, %v1171_v56 }
 0x590   :  { %10950 = vmatprep.mubr.msk.f32.mxu0 %vm13479_vm2, %v17734_v32 }
 0x593   :  { %10951 = vmatmul.mubr.msk.f32.gmra.mrb[82].mxu0 %vm650_vm3, %v1176_v48 }
 0x594   :  { %10953 = vmatprep.mubr.msk.f32.mxu0 %vm13479_vm2, %v17734_v32 }
 0x597   :  { %10954 = vmatmul.mubr.msk.f32.gmra.mrb[84].mxu0 %vm650_vm3, %v1181_v2 }
 0x598   :  { %10956 = vmatprep.mubr.msk.f32.mxu0 %vm13479_vm2, %v17734_v32 }
 0x59b   :  { %10957 = vmatmul.mubr.msk.f32.gmra.mrb[86].mxu0 %vm650_vm3, %v1186_v44 }
 0x59c   :  { %10959 = vmatprep.mubr.msk.f32.mxu0 %vm13479_vm2, %v17734_v32 }
 0x59f   :  { %10960 = vmatmul.mubr.msk.f32.gmra.mrb[88].mxu0 %vm650_vm3, %v1191_v9 }
 0x5a0   :  { %11009 = vmatprep.mubr.msk.f32.mxu0 %vm13479_vm2, %v17734_v32 }
 0x652   :  { %v1560_v49 = vpop.f32.mrb[72].mxu0 }
 0x653   :  { %v1604_v45 = vmul.f32 0.35355338, %v1560_v49  ;;  %v10937_v35 = vpop.f32.mrb[73].mxu0 }
 0x655   :  { %v1613_v42 = vadd.f32 %v1604_v45, %v14088_v46 }
 0x656   :  { %v1565_v4 = vpop.f32.mrb[74].mxu0 }
 0x657   :  { %v1605_v34 = vmul.f32 0.35355338, %v1565_v4  ;;  %v10940_v43 = vpop.f32.mrb[75].mxu0  ;;  %v1622_v54 = vsel %vm833_vm5, %v1613_v42, -inf }
 0x658   :  { %1623 = vmax.xlane.f32.xlu0 %v1622_v54 }
 0x659   :  { %v1614_v53 = vadd.f32 %v1605_v34, %v14096_v55 }
 0x65a   :  { %v1570_v13 = vpop.f32.mrb[76].mxu0 }
 0x65b   :  { %v1606_v59 = vmul.f32 0.35355338, %v1570_v13  ;;  %v10943_v3 = vpop.f32.mrb[77].mxu0  ;;  %v1625_v22 = vsel %vm833_vm5, %v1614_v53, -inf }
 0x65c   :  { %1626 = vmax.xlane.f32.xlu1 %v1625_v22 }
 0x65d   :  { %v1615_v27 = vadd.f32 %v1606_v59, %v14106_v0 }
 0x65e   :  { %v1575_v29 = vpop.f32.mrb[78].mxu0 }
 0x65f   :  { %v1607_v63 = vmul.f32 0.35355338, %v1575_v29  ;;  %v10946_v25 = vpop.f32.mrb[79].mxu0  ;;  %v1628_v46 = vsel %vm833_vm5, %v1615_v27, -inf }
 0x660   :  { %1629 = vmax.xlane.f32.xlu0 %v1628_v46 }
 0x661   :  { %v1616_v6 = vadd.f32 %v1607_v63, %v14116_v8 }
 0x662   :  { %v1580_v21 = vpop.f32.mrb[80].mxu0 }
 0x663   :  { %v1608_v26 = vmul.f32 0.35355338, %v1580_v21  ;;  %v10949_v33 = vpop.f32.mrb[81].mxu0  ;;  %v1631_v55 = vsel %vm833_vm5, %v1616_v6, -inf }
 0x664   :  { %1632 = vmax.xlane.f32.xlu1 %v1631_v55 }
 0x665   :  { %v1617_v12 = vadd.f32 %v1608_v26, %v14126_v16 }
 0x666   :  { %v1585_v7 = vpop.f32.mrb[82].mxu0 }
 0x667   :  { %v1609_v40 = vmul.f32 0.35355338, %v1585_v7  ;;  %v10952_v37 = vpop.f32.mrb[83].mxu0  ;;  %v1634_v0 = vsel %vm833_vm5, %v1617_v12, -inf }
 0x668   :  { %1635 = vmax.xlane.f32.xlu0 %v1634_v0 }
 0x669   :  { %v1618_v58 = vadd.f32 %v1609_v40, %v14136_v20 }
 0x66a   :  { %v1590_v10 = vpop.f32.mrb[84].mxu0 }
 0x66b   :  { %v1610_v62 = vmul.f32 0.35355338, %v1590_v10  ;;  %v10955_v47 = vpop.f32.mrb[85].mxu0  ;;  %v1637_v8 = vsel %vm833_vm5, %v1618_v58, -inf }
 0x66c   :  { %1638 = vmax.xlane.f32.xlu1 %v1637_v8 }
 0x66d   :  { %v1619_v56 = vadd.f32 %v1610_v62, %v14146_v60 }
 0x66e   :  { %v1595_v48 = vpop.f32.mrb[86].mxu0 }
 0x66f   :  { %v1611_v2 = vmul.f32 0.35355338, %v1595_v48  ;;  %v10958_v44 = vpop.f32.mrb[87].mxu0  ;;  %v1640_v16 = vsel %vm833_vm5, %v1619_v56, -inf }
 0x670   :  { %1641 = vmax.xlane.f32.xlu0 %v1640_v16 }
 0x671   :  { %v1620_v9 = vadd.f32 %v1611_v2, %v14156_v15 }
 0x672   :  { %v1600_v49 = vpop.f32.mrb[88].mxu0 }
 0x673   :  { %v1612_v45 = vmul.f32 0.35355338, %v1600_v49  ;;  %v10961_v35 = vpop.f32.mrb[89].mxu0  ;;  %v1643_v20 = vsel %vm833_vm5, %v1620_v9, -inf }
 0x674   :  { %1644 = vmax.xlane.f32.xlu1 %v1643_v20 }
 0x675   :  { %v1621_v4 = vadd.f32 %v1612_v45, %v14166_v39 }
 0x677   :  { %v1646_v34 = vsel %vm833_vm5, %v1621_v4, -inf }
 0x678   :  { %1647 = vmax.xlane.f32.xlu0 %v1646_v34 }
 0x6e5   :  { %v1624_v60 = vpop.xlane.xlu0 %1623 }
 0x6e6   :  { %v1649_v43 = vsub.f32 %v1613_v42, %v1624_v60 }
 0x6e8   :  { %v1658_v54 = vmul.f32 1.442695, %v1649_v43 }
 0x6e9   :  { %v1627_v13 = vpop.xlane.xlu1 %1626 }
 0x6ea   :  { %13082 = vpow2.f32 %v1658_v54  ;;  %v1650_v59 = vsub.f32 %v1614_v53, %v1627_v13 }
 0x6ec   :  { %v1660_v3 = vmul.f32 1.442695, %v1650_v59 }
 0x6ed   :  { %v1630_v22 = vpop.xlane.xlu0 %1629 }
 0x6ee   :  { %13084 = vpow2.f32 %v1660_v3  ;;  %v1651_v15 = vsub.f32 %v1615_v27, %v1630_v22 }
 0x6f0   :  { %v1662_v29 = vmul.f32 1.442695, %v1651_v15 }
 0x6f1   :  { %v1633_v63 = vpop.xlane.xlu1 %1632 }
 0x6f2   :  { %13086 = vpow2.f32 %v1662_v29  ;;  %v1652_v25 = vsub.f32 %v1616_v6, %v1633_v63  ;;  %v1070_v63 = vld [vmem:[%s17725_s6] sm:$0xff] }
 0x6f4   :  { %v13083_v46 = vpop.eup %13082  ;;  %v1664_v21 = vmul.f32 1.442695, %v1652_v25 }
 0x6f5   :  { %v1636_v39 = vpop.xlane.xlu0 %1635  ;;  %v1676_v26 = vsel %vm833_vm5, %v13083_v46, 0.0 }
 0x6f6   :  { %13088 = vpow2.f32 %v1664_v21  ;;  %v1653_v33 = vsub.f32 %v1617_v12, %v1636_v39  ;;  %1677 = vadd.xlane.f32.xlu1 %v1676_v26 }
 0x6f8   :  { %v13085_v42 = vpop.eup %13084  ;;  %v1666_v55 = vmul.f32 1.442695, %v1653_v33 }
 0x6f9   :  { %v1639_v7 = vpop.xlane.xlu1 %1638  ;;  %v1679_v53 = vsel %vm833_vm5, %v13085_v42, 0.0 }
 0x6fa   :  { %13090 = vpow2.f32 %v1666_v55  ;;  %v1654_v40 = vsub.f32 %v1618_v58, %v1639_v7  ;;  %1680 = vadd.xlane.f32.xlu0 %v1679_v53 }
 0x6fc   :  { %v13087_v27 = vpop.eup %13086  ;;  %v1668_v37 = vmul.f32 1.442695, %v1654_v40 }
 0x6fd   :  { %v1642_v0 = vpop.xlane.xlu0 %1641  ;;  %v1682_v6 = vsel %vm833_vm5, %v13087_v27, 0.0 }
 0x6fe   :  { %13092 = vpow2.f32 %v1668_v37  ;;  %v1655_v10 = vsub.f32 %v1619_v56, %v1642_v0  ;;  %1683 = vadd.xlane.f32.xlu1 %v1682_v6 }
 0x700   :  { %v13089_v62 = vpop.eup %13088  ;;  %v1670_v47 = vmul.f32 1.442695, %v1655_v10 }
 0x701   :  { %v1645_v12 = vpop.xlane.xlu1 %1644  ;;  %v1685_v8 = vsel %vm833_vm5, %v13089_v62, 0.0 }
 0x702   :  { %13094 = vpow2.f32 %v1670_v47  ;;  %v1656_v48 = vsub.f32 %v1620_v9, %v1645_v12  ;;  %1686 = vadd.xlane.f32.xlu0 %v1685_v8 }
 0x704   :  { %v13091_v2 = vpop.eup %13090  ;;  %v1672_v44 = vmul.f32 1.442695, %v1656_v48 }
 0x705   :  { %v1648_v58 = vpop.xlane.xlu0 %1647  ;;  %v1688_v16 = vsel %vm833_vm5, %v13091_v2, 0.0 }
 0x706   :  { %13096 = vpow2.f32 %v1672_v44  ;;  %v1657_v49 = vsub.f32 %v1621_v4, %v1648_v58  ;;  %1689 = vadd.xlane.f32.xlu1 %v1688_v16  ;;  %v9288_v4 = vld [vmem:[%s17725_s6 + $0x8] sm:$0xff]  ;;  %v9324_v16 = vld [vmem:[%s17721_s4 + $0xd0] sm:$0xff] }
 0x707   :  { %11008 = vmatpush3.msra.mxu0 %v9288_v4  ;;  %v9323_v44 = vld [vmem:[%s17721_s4 + $0xc8] sm:$0xff] }
 0x708   :  { %v13093_v45 = vpop.eup %13092  ;;  %v1674_v35 = vmul.f32 1.442695, %v1657_v49  ;;  %12689 = vmatprep.subr.bf16.mxu0 %v13478_v24  ;;  %v9325_v49 = vld [vmem:[%s17721_s4 + $0xd8] sm:$0xff] }
 0x709   :  { %v1691_v56 = vsel %vm833_vm5, %v13093_v45, 0.0 }
 0x70a   :  { %13098 = vpow2.f32 %v1674_v35  ;;  %1692 = vadd.xlane.f32.xlu0 %v1691_v56 }
 0x70c   :  { %v13095_v20 = vpop.eup %13094 }
 0x70d   :  { %v1694_v34 = vsel %vm833_vm5, %v13095_v20, 0.0 }
 0x70e   :  { %1695 = vadd.xlane.f32.xlu1 %v1694_v34 }
 0x710   :  { %v13097_v9 = vpop.eup %13096 }
 0x711   :  { %v1697_v60 = vsel %vm833_vm5, %v13097_v9, 0.0 }
 0x712   :  { %1698 = vadd.xlane.f32.xlu0 %v1697_v60 }
 0x714   :  { %v13099_v43 = vpop.eup %13098 }
 0x715   :  { %v1700_v54 = vsel %vm833_vm5, %v13099_v43, 0.0 }
 0x716   :  { %1701 = vadd.xlane.f32.xlu1 %v1700_v54 }
 0x783   :  { %v1678_v13 = vpop.xlane.xlu1 %1677 }
 0x784   :  { %13100 = vrcp.f32 %v1678_v13 }
 0x787   :  { %v1681_v59 = vpop.xlane.xlu0 %1680 }
 0x788   :  { %13102 = vrcp.f32 %v1681_v59 }
 0x78b   :  { %v1684_v3 = vpop.xlane.xlu1 %1683 }
 0x78c   :  { %13104 = vrcp.f32 %v1684_v3 }
 0x78e   :  { %v13101_v22 = vpop.eup %13100 }
 0x78f   :  { %v1712_v15 = vmul.f32 %v13101_v22, %v13083_v46  ;;  %v1687_v29 = vpop.xlane.xlu0 %1686 }
 0x790   :  { %13106 = vrcp.f32 %v1687_v29  ;;  %v9338_v29 = vld [vmem:[%s17721_s4 + $0x148] sm:$0xff] }
 0x791   :  { %10981 = vmatmul.mubr.msk.f32.vlgmr.msra.gmra.mrb[72].mxu1 %vm833_vm5, %v1712_v15  ;;  %v9337_v15 = vld [vmem:[%s17721_s4 + $0x140] sm:$0xff] }
 0x792   :  { %v13103_v25 = vpop.eup %13102  ;;  %10983 = vmatprep.mubr.msk.f32.mxu1 %vm13479_vm2, %v17734_v32  ;;  %11037 = vmatpush3.msra.mxu1 %v1070_v63 }
 0x793   :  { %v1690_v21 = vpop.xlane.xlu1 %1689  ;;  %v1713_v39 = vmul.f32 %v13103_v25, %v13085_v42  ;;  %12695 = vmatprep.subr.bf16.mxu1 %v13478_v24 }
 0x794   :  { %13108 = vrcp.f32 %v1690_v21  ;;  %v12702_v21 = vpack.c.bf16 %v9338_v29, %v9337_v15 }
 0x795   :  { %10984 = vmatmul.mubr.msk.f32.gmra.mrb[74].mxu1 %vm833_vm5, %v1713_v39  ;;  %v9339_v39 = vld [vmem:[%s17721_s4 + $0x150] sm:$0xff] }
 0x796   :  { %v13105_v46 = vpop.eup %13104  ;;  %10986 = vmatprep.mubr.msk.f32.mxu1 %vm13479_vm2, %v17734_v32 }
 0x797   :  { %v1693_v26 = vpop.xlane.xlu0 %1692  ;;  %v1714_v33 = vmul.f32 %v13105_v46, %v13087_v27  ;;  %v9340_v46 = vld [vmem:[%s17721_s4 + $0x158] sm:$0xff] }
 0x798   :  { %13110 = vrcp.f32 %v1693_v26 }
 0x799   :  { %10987 = vmatmul.mubr.msk.f32.gmra.mrb[76].mxu1 %vm833_vm5, %v1714_v33 }
 0x79a   :  { %v13107_v55 = vpop.eup %13106  ;;  %10989 = vmatprep.mubr.msk.f32.mxu1 %vm13479_vm2, %v17734_v32 }
 0x79b   :  { %v1696_v7 = vpop.xlane.xlu1 %1695  ;;  %v1715_v42 = vmul.f32 %v13107_v55, %v13089_v62  ;;  %v12705_v55 = vpack.c.bf16 %v9340_v46, %v9339_v39 }
 0x79c   :  { %13112 = vrcp.f32 %v1696_v7 }
 0x79d   :  { %10990 = vmatmul.mubr.msk.f32.gmra.mrb[78].mxu1 %vm833_vm5, %v1715_v42 }
 0x79e   :  { %v13109_v53 = vpop.eup %13108  ;;  %10992 = vmatprep.mubr.msk.f32.mxu1 %vm13479_vm2, %v17734_v32 }
 0x79f   :  { %v1699_v40 = vpop.xlane.xlu0 %1698  ;;  %v1716_v37 = vmul.f32 %v13109_v53, %v13091_v2  ;;  %v9322_v2 = vld [vmem:[%s17721_s4 + $0xc0] sm:$0xff] }
 0x7a0   :  { %13114 = vrcp.f32 %v1699_v40  ;;  %v12696_v58 = vpack.c.bf16 %v9323_v44, %v9322_v2 }
 0x7a1   :  { %10993 = vmatmul.mubr.msk.f32.gmra.mrb[80].mxu1 %vm833_vm5, %v1716_v37 }
 0x7a2   :  { %v13111_v27 = vpop.eup %13110  ;;  %10995 = vmatprep.mubr.msk.f32.mxu1 %vm13479_vm2, %v17734_v32 }
 0x7a3   :  { %v1702_v0 = vpop.xlane.xlu1 %1701  ;;  %v1717_v6 = vmul.f32 %v13111_v27, %v13093_v45  ;;  %v12699_v45 = vpack.c.bf16 %v9325_v49, %v9324_v16  ;;  %v9327_v49 = vld [vmem:[%s17723_s5 + $0x6] ss:$0 sm:$0xff] }
 0x7a4   :  { %13116 = vrcp.f32 %v1702_v0 }
 0x7a5   :  { %10996 = vmatmul.mubr.msk.f32.gmra.mrb[82].mxu1 %vm833_vm5, %v1717_v6 }
 0x7a6   :  { %v13113_v10 = vpop.eup %13112  ;;  %10998 = vmatprep.mubr.msk.f32.mxu1 %vm13479_vm2, %v17734_v32 }
 0x7a7   :  { %v1718_v62 = vmul.f32 %v13113_v10, %v13095_v20 }
 0x7a9   :  { %10999 = vmatmul.mubr.msk.f32.gmra.mrb[84].mxu1 %vm833_vm5, %v1718_v62 }
 0x7aa   :  { %v13115_v47 = vpop.eup %13114  ;;  %11001 = vmatprep.mubr.msk.f32.mxu1 %vm13479_vm2, %v17734_v32 }
 0x7ab   :  { %v1719_v12 = vmul.f32 %v13115_v47, %v13097_v9 }
 0x7ad   :  { %11002 = vmatmul.mubr.msk.f32.gmra.mrb[86].mxu1 %vm833_vm5, %v1719_v12 }
 0x7ae   :  { %v13117_v8 = vpop.eup %13116  ;;  %11004 = vmatprep.mubr.msk.f32.mxu1 %vm13479_vm2, %v17734_v32 }
 0x7af   :  { %v1720_v48 = vmul.f32 %v13117_v8, %v13099_v43 }
 0x7b1   :  { %11005 = vmatmul.mubr.msk.f32.gmra.mrb[88].mxu1 %vm833_vm5, %v1720_v48 }
 0x7b2   :  { %11038 = vmatprep.mubr.msk.f32.mxu1 %vm13479_vm2, %v17734_v32 }
 0x7b5   :  { %11039 = vmatmul.mubr.msk.f32.vlgmr.msra.gmra.mrb[90].mxu1 %vm650_vm3, %v14320_v52  ;;  %v9307_v52 = vld [vmem:[%s17721_s4 + $0x40] sm:$0xff] }
 0x7b6   :  { %11041 = vmatprep.mubr.msk.f32.mxu1 %vm13479_vm2, %v17734_v32  ;;  %12697 = vmatpush3.bf16.msra.mxu1 %v12696_v58 }
 0x7b7   :  { %12698 = vmatprep.subr.bf16.mxu1 %v13478_v24 }
 0x7b9   :  { %11042 = vmatmul.mubr.msk.f32.gmra.mrb[92].mxu1 %vm650_vm3, %v14322_v1  ;;  %v9308_v1 = vld [vmem:[%s17721_s4 + $0x48] sm:$0xff] }
 0x7ba   :  { %11044 = vmatprep.mubr.msk.f32.mxu1 %vm13479_vm2, %v17734_v32  ;;  %12700 = vmatpush3.bf16.msra.mxu1 %v12699_v45 }
 0x7bb   :  { %12707 = vmatprep.subr.bf16.mxu1 %v13478_v24 }
 0x7bd   :  { %11045 = vmatmul.mubr.msk.f32.gmra.mrb[94].mxu1 %vm650_vm3, %v14324_v11  ;;  %v12690_v11 = vpack.c.bf16 %v9308_v1, %v9307_v52 }
 0x7be   :  { %11047 = vmatprep.mubr.msk.f32.mxu1 %vm13479_vm2, %v17734_v32 }
 0x7c1   :  { %11048 = vmatmul.mubr.msk.f32.gmra.mrb[96].mxu1 %vm650_vm3, %v14326_v50  ;;  %v9309_v50 = vld [vmem:[%s17721_s4 + $0x50] sm:$0xff] }
 0x7c2   :  { %11050 = vmatprep.mubr.msk.f32.mxu1 %vm13479_vm2, %v17734_v32 }
 0x7c5   :  { %11051 = vmatmul.mubr.msk.f32.gmra.mrb[98].mxu1 %vm650_vm3, %v14328_v18  ;;  %v9310_v18 = vld [vmem:[%s17721_s4 + $0x58] sm:$0xff] }
 0x7c6   :  { %11053 = vmatprep.mubr.msk.f32.mxu1 %vm13479_vm2, %v17734_v32 }
 0x7c9   :  { %11054 = vmatmul.mubr.msk.f32.gmra.mrb[100].mxu1 %vm650_vm3, %v14330_v23 }
 0x7ca   :  { %11056 = vmatprep.mubr.msk.f32.mxu1 %vm13479_vm2, %v17734_v32 }
 0x7cd   :  { %11057 = vmatmul.mubr.msk.f32.gmra.mrb[102].mxu1 %vm650_vm3, %v14332_v17 }
 0x7ce   :  { %11059 = vmatprep.mubr.msk.f32.mxu1 %vm13479_vm2, %v17734_v32 }
 0x7d1   :  { %11060 = vmatmul.mubr.msk.f32.gmra.mrb[104].mxu1 %vm650_vm3, %v14334_v30  ;;  %v12693_v30 = vpack.c.bf16 %v9310_v18, %v9309_v50 }
 0x7d2   :  { %11062 = vmatprep.mubr.msk.f32.mxu1 %vm13479_vm2, %v17734_v32 }
 0x7d5   :  { %11063 = vmatmul.mubr.msk.f32.gmra.mrb[106].mxu1 %vm650_vm3, %v14336_v61 }
 0x7d6   :  { %11108 = vmatprep.mubr.msk.f32.mxu1 %vm13479_vm2, %v17734_v32 }
 0x7d9   :  { %11109 = vmatmul.mubr.msk.f32.vlgmr.msra.gmra.mrb[108].mxu1 %vm57_vm1, %v13717_v5 }
 0x7da   :  { %11111 = vmatprep.mubr.msk.f32.mxu1 %vm13479_vm2, %v17734_v32 }
 0x7dd   :  { %11112 = vmatmul.mubr.msk.f32.gmra.mrb[110].mxu1 %vm57_vm1, %v13738_v19 }
 0x7de   :  { %11114 = vmatprep.mubr.msk.f32.mxu1 %vm13479_vm2, %v17734_v32 }
 0x7e1   :  { %11115 = vmatmul.mubr.msk.f32.gmra.mrb[112].mxu1 %vm57_vm1, %v13751_v51 }
 0x7e2   :  { %11117 = vmatprep.mubr.msk.f32.mxu1 %vm13479_vm2, %v17734_v32 }
 0x7e5   :  { %11118 = vmatmul.mubr.msk.f32.gmra.mrb[114].mxu1 %vm57_vm1, %v13766_v28 }
 0x7e6   :  { %11120 = vmatprep.mubr.msk.f32.mxu1 %vm13479_vm2, %v17734_v32 }
 0x7e9   :  { %11121 = vmatmul.mubr.msk.f32.gmra.mrb[116].mxu1 %vm57_vm1, %v13778_v31 }
 0x7ea   :  { %11123 = vmatprep.mubr.msk.f32.mxu1 %vm13479_vm2, %v17734_v32 }
 0x7ed   :  { %11124 = vmatmul.mubr.msk.f32.gmra.mrb[118].mxu1 %vm57_vm1, %v13792_v36 }
 0x7ee   :  { %11126 = vmatprep.mubr.msk.f32.mxu1 %vm13479_vm2, %v17734_v32 }
 0x7f1   :  { %11127 = vmatmul.mubr.msk.f32.gmra.mrb[120].mxu1 %vm57_vm1, %v13804_v38 }
 0x7f2   :  { %11129 = vmatprep.mubr.msk.f32.mxu1 %vm13479_vm2, %v17734_v32 }
 0x7f5   :  { %11130 = vmatmul.mubr.msk.f32.gmra.mrb[122].mxu1 %vm57_vm1, %v13818_v41 }
 0x7f6   :  { %11132 = vmatprep.mubr.msk.f32.mxu1 %vm13479_vm2, %v17734_v32 }
 0x7f9   :  { %11133 = vmatmul.mubr.msk.f32.gmra.mrb[124].mxu1 %vm57_vm1, %v13829_v14 }
 0x7fa   :  { %11188 = vmatprep.mubr.msk.f32.mxu1 %vm13479_vm2, %v17734_v32 }
 0x864   :  { %v1814_v23 = vpop.f32.mrb[72].mxu1 }
 0x865   :  { %v10982_v17 = vpop.f32.mrb[73].mxu1  ;;  %11010 = vmatmul.mubr.msk.f32.vlgmr.msra.gmra.mrb[90].mxu0 %vm650_vm3, %v1814_v23 }
 0x866   :  { %11012 = vmatprep.mubr.msk.f32.mxu0 %vm13479_vm2, %v17734_v32  ;;  %12691 = vmatpush3.bf16.msra.mxu0 %v12690_v11 }
 0x867   :  { %12692 = vmatprep.subr.bf16.mxu0 %v13478_v24 }
 0x868   :  { %v1819_v61 = vpop.f32.mrb[74].mxu1 }
 0x869   :  { %v10985_v35 = vpop.f32.mrb[75].mxu1  ;;  %11013 = vmatmul.mubr.msk.f32.gmra.mrb[92].mxu0 %vm650_vm3, %v1819_v61 }
 0x86a   :  { %11015 = vmatprep.mubr.msk.f32.mxu0 %vm13479_vm2, %v17734_v32  ;;  %12694 = vmatpush3.bf16.msra.mxu0 %v12693_v30 }
 0x86b   :  { %12701 = vmatprep.subr.bf16.mxu0 %v13478_v24 }
 0x86c   :  { %v1824_v56 = vpop.f32.mrb[76].mxu1 }
 0x86d   :  { %v10988_v20 = vpop.f32.mrb[77].mxu1  ;;  %11016 = vmatmul.mubr.msk.f32.gmra.mrb[94].mxu0 %vm650_vm3, %v1824_v56 }
 0x86e   :  { %11018 = vmatprep.mubr.msk.f32.mxu0 %vm13479_vm2, %v17734_v32 }
 0x870   :  { %v1829_v34 = vpop.f32.mrb[78].mxu1 }
 0x871   :  { %v10991_v9 = vpop.f32.mrb[79].mxu1  ;;  %11019 = vmatmul.mubr.msk.f32.gmra.mrb[96].mxu0 %vm650_vm3, %v1829_v34 }
 0x872   :  { %11021 = vmatprep.mubr.msk.f32.mxu0 %vm13479_vm2, %v17734_v32 }
 0x874   :  { %v1834_v60 = vpop.f32.mrb[80].mxu1 }
 0x875   :  { %v10994_v43 = vpop.f32.mrb[81].mxu1  ;;  %11022 = vmatmul.mubr.msk.f32.gmra.mrb[98].mxu0 %vm650_vm3, %v1834_v60 }
 0x876   :  { %11024 = vmatprep.mubr.msk.f32.mxu0 %vm13479_vm2, %v17734_v32 }
 0x878   :  { %v1839_v54 = vpop.f32.mrb[82].mxu1 }
 0x879   :  { %v10997_v4 = vpop.f32.mrb[83].mxu1  ;;  %11025 = vmatmul.mubr.msk.f32.gmra.mrb[100].mxu0 %vm650_vm3, %v1839_v54 }
 0x87a   :  { %11027 = vmatprep.mubr.msk.f32.mxu0 %vm13479_vm2, %v17734_v32 }
 0x87c   :  { %v1844_v13 = vpop.f32.mrb[84].mxu1 }
 0x87d   :  { %v11000_v59 = vpop.f32.mrb[85].mxu1  ;;  %11028 = vmatmul.mubr.msk.f32.gmra.mrb[102].mxu0 %vm650_vm3, %v1844_v13 }
 0x87e   :  { %11030 = vmatprep.mubr.msk.f32.mxu0 %vm13479_vm2, %v17734_v32 }
 0x880   :  { %v1849_v3 = vpop.f32.mrb[86].mxu1 }
 0x881   :  { %v11003_v22 = vpop.f32.mrb[87].mxu1  ;;  %11031 = vmatmul.mubr.msk.f32.gmra.mrb[104].mxu0 %vm650_vm3, %v1849_v3 }
 0x882   :  { %11033 = vmatprep.mubr.msk.f32.mxu0 %vm13479_vm2, %v17734_v32 }
 0x884   :  { %v1854_v63 = vpop.f32.mrb[88].mxu1 }
 0x885   :  { %v11006_v25 = vpop.f32.mrb[89].mxu1  ;;  %11034 = vmatmul.mubr.msk.f32.gmra.mrb[106].mxu0 %vm650_vm3, %v1854_v63 }
 0x886   :  { %11073 = vmatprep.mubr.msk.f32.mxu0 %vm13479_vm2, %v17734_v32 }
 0x888   :  { %v14595_v26 = vpop.f32.mrb[90].mxu1 }
 0x889   :  { %v11040_v33 = vpop.f32.mrb[91].mxu1  ;;  %11074 = vmatmul.mubr.msk.f32.vlgmr.msra.gmra.mrb[108].mxu0 %vm57_vm1, %v13717_v5 }
 0x88a   :  { %11076 = vmatprep.mubr.msk.f32.mxu0 %vm13479_vm2, %v17734_v32  ;;  %12703 = vmatpush3.bf16.msra.mxu0 %v12702_v21 }
 0x88b   :  { %12704 = vmatprep.subr.bf16.mxu0 %v13478_v24 }
 0x88c   :  { %v14602_v7 = vpop.f32.mrb[92].mxu1 }
 0x88d   :  { %v11043_v42 = vpop.f32.mrb[93].mxu1  ;;  %11077 = vmatmul.mubr.msk.f32.gmra.mrb[110].mxu0 %vm57_vm1, %v13738_v19 }
 0x88e   :  { %11079 = vmatprep.mubr.msk.f32.mxu0 %vm13479_vm2, %v17734_v32  ;;  %12706 = vmatpush3.bf16.msra.mxu0 %v12705_v55 }
 0x88f   :  { %12723 = vmatprep.subr.bf16.mxu0 %v13478_v24 }
 0x890   :  { %v14609_v53 = vpop.f32.mrb[94].mxu1 }
 0x891   :  { %v11046_v40 = vpop.f32.mrb[95].mxu1  ;;  %11080 = vmatmul.mubr.msk.f32.gmra.mrb[112].mxu0 %vm57_vm1, %v13751_v51 }
 0x892   :  { %11082 = vmatprep.mubr.msk.f32.mxu0 %vm13479_vm2, %v17734_v32 }
 0x894   :  { %v14615_v37 = vpop.f32.mrb[96].mxu1 }
 0x895   :  { %v11049_v27 = vpop.f32.mrb[97].mxu1  ;;  %11083 = vmatmul.mubr.msk.f32.gmra.mrb[114].mxu0 %vm57_vm1, %v13766_v28 }
 0x896   :  { %11085 = vmatprep.mubr.msk.f32.mxu0 %vm13479_vm2, %v17734_v32 }
 0x898   :  { %v14621_v0 = vpop.f32.mrb[98].mxu1 }
 0x899   :  { %v11052_v6 = vpop.f32.mrb[99].mxu1  ;;  %11086 = vmatmul.mubr.msk.f32.gmra.mrb[116].mxu0 %vm57_vm1, %v13778_v31 }
 0x89a   :  { %11088 = vmatprep.mubr.msk.f32.mxu0 %vm13479_vm2, %v17734_v32 }
 0x89c   :  { %v14627_v10 = vpop.f32.mrb[100].mxu1 }
 0x89d   :  { %v11055_v62 = vpop.f32.mrb[101].mxu1  ;;  %11089 = vmatmul.mubr.msk.f32.gmra.mrb[118].mxu0 %vm57_vm1, %v13792_v36 }
 0x89e   :  { %11091 = vmatprep.mubr.msk.f32.mxu0 %vm13479_vm2, %v17734_v32 }
 0x8a0   :  { %v14633_v47 = vpop.f32.mrb[102].mxu1 }
 0x8a1   :  { %v11058_v12 = vpop.f32.mrb[103].mxu1  ;;  %11092 = vmatmul.mubr.msk.f32.gmra.mrb[120].mxu0 %vm57_vm1, %v13804_v38 }
 0x8a2   :  { %11094 = vmatprep.mubr.msk.f32.mxu0 %vm13479_vm2, %v17734_v32 }
 0x8a4   :  { %v14639_v8 = vpop.f32.mrb[104].mxu1 }
 0x8a5   :  { %v11061_v48 = vpop.f32.mrb[105].mxu1  ;;  %11095 = vmatmul.mubr.msk.f32.gmra.mrb[122].mxu0 %vm57_vm1, %v13818_v41 }
 0x8a6   :  { %11097 = vmatprep.mubr.msk.f32.mxu0 %vm13479_vm2, %v17734_v32 }
 0x8a8   :  { %v14645_v2 = vpop.f32.mrb[106].mxu1 }
 0x8a9   :  { %v11064_v44 = vpop.f32.mrb[107].mxu1  ;;  %11098 = vmatmul.mubr.msk.f32.gmra.mrb[124].mxu0 %vm57_vm1, %v13829_v14 }
 0x8aa   :  { %11143 = vmatprep.mubr.msk.f32.mxu0 %vm13479_vm2, %v17734_v32 }
 0x8ac   :  { %v2336_v58 = vpop.f32.mrb[108].mxu1 }
 0x8ad   :  { %v11110_v16 = vpop.f32.mrb[109].mxu1  ;;  %11144 = vmatmul.mubr.msk.f32.vlgmr.msra.gmra.mrb[126].mxu0 %vm57_vm1, %v13717_v5  ;;  %v2337_v52 = vadd.f32 %v9327_v49, %v2336_v58 }
 0x8ae   :  { %11146 = vmatprep.mubr.msk.f32.mxu0 %vm13479_vm2, %v17734_v32 }
 0x8b0   :  { %v2341_v45 = vpop.f32.mrb[110].mxu1 }
 0x8b1   :  { %v2342_v1 = vadd.f32 %v9327_v49, %v2341_v45  ;;  %v11113_v11 = vpop.f32.mrb[111].mxu1  ;;  %11147 = vmatmul.mubr.msk.f32.gmra.mrb[128].mxu0 %vm57_vm1, %v13738_v19 }
 0x8b2   :  { %11149 = vmatprep.mubr.msk.f32.mxu0 %vm13479_vm2, %v17734_v32 }
 0x8b3   :  { %v12708_v50 = vpack.c.bf16 %v2342_v1, %v2337_v52 }
 0x8b4   :  { %v2346_v18 = vpop.f32.mrb[112].mxu1 }
 0x8b5   :  { %v11116_v23 = vpop.f32.mrb[113].mxu1  ;;  %11150 = vmatmul.mubr.msk.f32.gmra.mrb[130].mxu0 %vm57_vm1, %v13751_v51  ;;  %12710 = vmatpush3.bf16.xpose.msk.msra.mxu1 %vm13884_vm4, %v12708_v50  ;;  %v2347_v30 = vadd.f32 %v9327_v49, %v2346_v18 }
 0x8b6   :  { %11152 = vmatprep.mubr.msk.f32.mxu0 %vm13479_vm2, %v17734_v32  ;;  %12711 = vmatprep.subr.bf16.mxu1 %v13478_v24 }
 0x8b8   :  { %v2351_v17 = vpop.f32.mrb[114].mxu1 }
 0x8b9   :  { %v2352_v61 = vadd.f32 %v9327_v49, %v2351_v17  ;;  %v11119_v35 = vpop.f32.mrb[115].mxu1  ;;  %11153 = vmatmul.mubr.msk.f32.gmra.mrb[132].mxu0 %vm57_vm1, %v13766_v28 }
 0x8ba   :  { %11155 = vmatprep.mubr.msk.f32.mxu0 %vm13479_vm2, %v17734_v32 }
 0x8bb   :  { %v12712_v56 = vpack.c.bf16 %v2352_v61, %v2347_v30 }
 0x8bc   :  { %v2356_v20 = vpop.f32.mrb[116].mxu1 }
 0x8bd   :  { %v11122_v34 = vpop.f32.mrb[117].mxu1  ;;  %11156 = vmatmul.mubr.msk.f32.gmra.mrb[134].mxu0 %vm57_vm1, %v13778_v31  ;;  %12714 = vmatpush3.bf16.xpose.msk.msra.mxu1 %vm13884_vm4, %v12712_v56  ;;  %v2357_v60 = vadd.f32 %v9327_v49, %v2356_v20 }
 0x8be   :  { %11158 = vmatprep.mubr.msk.f32.mxu0 %vm13479_vm2, %v17734_v32  ;;  %12715 = vmatprep.subr.bf16.mxu1 %v13478_v24 }
 0x8c0   :  { %v2361_v9 = vpop.f32.mrb[118].mxu1 }
 0x8c1   :  { %v2362_v43 = vadd.f32 %v9327_v49, %v2361_v9  ;;  %v11125_v54 = vpop.f32.mrb[119].mxu1  ;;  %11159 = vmatmul.mubr.msk.f32.gmra.mrb[136].mxu0 %vm57_vm1, %v13792_v36 }
 0x8c2   :  { %11161 = vmatprep.mubr.msk.f32.mxu0 %vm13479_vm2, %v17734_v32 }
 0x8c3   :  { %v12716_v4 = vpack.c.bf16 %v2362_v43, %v2357_v60 }
 0x8c4   :  { %v2366_v13 = vpop.f32.mrb[120].mxu1 }
 0x8c5   :  { %v11128_v59 = vpop.f32.mrb[121].mxu1  ;;  %11162 = vmatmul.mubr.msk.f32.gmra.mrb[138].mxu0 %vm57_vm1, %v13804_v38  ;;  %12718 = vmatpush3.bf16.xpose.msk.msra.mxu1 %vm13884_vm4, %v12716_v4  ;;  %v2367_v22 = vadd.f32 %v9327_v49, %v2366_v13 }
 0x8c6   :  { %11164 = vmatprep.mubr.msk.f32.mxu0 %vm13479_vm2, %v17734_v32  ;;  %12719 = vmatprep.subr.bf16.mxu1 %v13478_v24 }
 0x8c8   :  { %v2371_v3 = vpop.f32.mrb[122].mxu1 }
 0x8c9   :  { %v2372_v15 = vadd.f32 %v9327_v49, %v2371_v3  ;;  %v11131_v29 = vpop.f32.mrb[123].mxu1  ;;  %11165 = vmatmul.mubr.msk.f32.gmra.mrb[140].mxu0 %vm57_vm1, %v13818_v41 }
 0x8ca   :  { %11167 = vmatprep.mubr.msk.f32.mxu0 %vm13479_vm2, %v17734_v32 }
 0x8cb   :  { %v12720_v63 = vpack.c.bf16 %v2372_v15, %v2367_v22 }
 0x8cc   :  { %v2376_v25 = vpop.f32.mrb[124].mxu1 }
 0x8cd   :  { %v11134_v21 = vpop.f32.mrb[125].mxu1  ;;  %11168 = vmatmul.mubr.msk.f32.gmra.mrb[142].mxu0 %vm57_vm1, %v13829_v14  ;;  %12722 = vmatpush3.bf16.xpose.msk.msra.mxu1 %vm13884_vm4, %v12720_v63  ;;  %v2377_v39 = vadd.f32 %v9327_v49, %v2376_v25 }
 0x8ce   :  { %11186 = vmatprep.subr.mxu1 %v17734_v32  ;;  %11233 = vmatprep.mubr.msk.f32.mxu0 %vm13479_vm2, %v17734_v32 }
 0x8d5   :  { %11187 = vmatpush3.xpose.msk.msra.mxu1 %vm650_vm3, %v2377_v39 }
 0x8d6   :  { %11260 = vmatprep.subr.mxu1 %v17734_v32 }
 0x938   :  { %v1953_v46 = vpop.f32.mrb[90].mxu0 }
 0x939   :  { %v14705_v33 = vadd.f32 %v14595_v26, %v1953_v46  ;;  %v11011_v55 = vpop.f32.mrb[91].mxu0 }
 0x93c   :  { %v1958_v42 = vpop.f32.mrb[92].mxu0 }
 0x93d   :  { %v14708_v40 = vadd.f32 %v14602_v7, %v1958_v42  ;;  %v11014_v27 = vpop.f32.mrb[93].mxu0 }
 0x940   :  { %v1963_v6 = vpop.f32.mrb[94].mxu0 }
 0x941   :  { %v14711_v62 = vadd.f32 %v14609_v53, %v1963_v6  ;;  %v11017_v12 = vpop.f32.mrb[95].mxu0 }
 0x942   :  { %v9342_v12 = vld [vmem:[%s17723_s5 + $0xa] ss:$0 sm:$0xff] }
 0x944   :  { %v1968_v48 = vpop.f32.mrb[96].mxu0 }
 0x945   :  { %v14714_v44 = vadd.f32 %v14615_v37, %v1968_v48  ;;  %v11020_v58 = vpop.f32.mrb[97].mxu0 }
 0x948   :  { %v1973_v16 = vpop.f32.mrb[98].mxu0 }
 0x949   :  { %v14717_v26 = vadd.f32 %v14621_v0, %v1973_v16  ;;  %v11023_v49 = vpop.f32.mrb[99].mxu0 }
 0x94c   :  { %v1978_v45 = vpop.f32.mrb[100].mxu0 }
 0x94d   :  { %v14720_v7 = vadd.f32 %v14627_v10, %v1978_v45  ;;  %v11026_v52 = vpop.f32.mrb[101].mxu0  ;;  %v9312_v10 = vld [vmem:[%s17723_s5 + $0x2] ss:$0 sm:$0xff] }
 0x950   :  { %v1983_v1 = vpop.f32.mrb[102].mxu0 }
 0x951   :  { %v14723_v53 = vadd.f32 %v14633_v47, %v1983_v1  ;;  %v11029_v11 = vpop.f32.mrb[103].mxu0 }
 0x954   :  { %v1988_v50 = vpop.f32.mrb[104].mxu0 }
 0x955   :  { %v14726_v37 = vadd.f32 %v14639_v8, %v1988_v50  ;;  %v11032_v18 = vpop.f32.mrb[105].mxu0 }
 0x958   :  { %v1993_v23 = vpop.f32.mrb[106].mxu0 }
 0x959   :  { %v14729_v0 = vadd.f32 %v14645_v2, %v1993_v23  ;;  %v11035_v17 = vpop.f32.mrb[107].mxu0 }
 0x95c   :  { %v2213_v30 = vpop.f32.mrb[108].mxu0 }
 0x95d   :  { %v2214_v61 = vadd.f32 %v9312_v10, %v2213_v30  ;;  %v11075_v35 = vpop.f32.mrb[109].mxu0 }
 0x95f   :  { %11189 = vmatmul.mubr.msk.f32.vlgmr.msra.gmra.mrb[126].mxu1 %vm650_vm3, %v2214_v61 }
 0x960   :  { %v2218_v47 = vpop.f32.mrb[110].mxu0  ;;  %11191 = vmatprep.mubr.msk.f32.mxu1 %vm13479_vm2, %v17734_v32 }
 0x961   :  { %v2219_v8 = vadd.f32 %v9312_v10, %v2218_v47  ;;  %v11078_v56 = vpop.f32.mrb[111].mxu0 }
 0x963   :  { %11192 = vmatmul.mubr.msk.f32.gmra.mrb[128].mxu1 %vm650_vm3, %v2219_v8 }
 0x964   :  { %v2223_v2 = vpop.f32.mrb[112].mxu0  ;;  %11194 = vmatprep.mubr.msk.f32.mxu1 %vm13479_vm2, %v17734_v32 }
 0x965   :  { %v2224_v20 = vadd.f32 %v9312_v10, %v2223_v2  ;;  %v11081_v34 = vpop.f32.mrb[113].mxu0 }
 0x967   :  { %11195 = vmatmul.mubr.msk.f32.gmra.mrb[130].mxu1 %vm650_vm3, %v2224_v20 }
 0x968   :  { %v2228_v9 = vpop.f32.mrb[114].mxu0  ;;  %11197 = vmatprep.mubr.msk.f32.mxu1 %vm13479_vm2, %v17734_v32 }
 0x969   :  { %v2229_v60 = vadd.f32 %v9312_v10, %v2228_v9  ;;  %v11084_v43 = vpop.f32.mrb[115].mxu0 }
 0x96b   :  { %11198 = vmatmul.mubr.msk.f32.gmra.mrb[132].mxu1 %vm650_vm3, %v2229_v60 }
 0x96c   :  { %v2233_v54 = vpop.f32.mrb[116].mxu0  ;;  %11200 = vmatprep.mubr.msk.f32.mxu1 %vm13479_vm2, %v17734_v32 }
 0x96d   :  { %v2234_v4 = vadd.f32 %v9312_v10, %v2233_v54  ;;  %v11087_v13 = vpop.f32.mrb[117].mxu0 }
 0x96f   :  { %11201 = vmatmul.mubr.msk.f32.gmra.mrb[134].mxu1 %vm650_vm3, %v2234_v4 }
 0x970   :  { %v2238_v59 = vpop.f32.mrb[118].mxu0  ;;  %11203 = vmatprep.mubr.msk.f32.mxu1 %vm13479_vm2, %v17734_v32 }
 0x971   :  { %v2239_v3 = vadd.f32 %v9312_v10, %v2238_v59  ;;  %v11090_v22 = vpop.f32.mrb[119].mxu0 }
 0x973   :  { %11204 = vmatmul.mubr.msk.f32.gmra.mrb[136].mxu1 %vm650_vm3, %v2239_v3 }
 0x974   :  { %v2243_v15 = vpop.f32.mrb[120].mxu0  ;;  %11206 = vmatprep.mubr.msk.f32.mxu1 %vm13479_vm2, %v17734_v32 }
 0x975   :  { %v2244_v29 = vadd.f32 %v9312_v10, %v2243_v15  ;;  %v11093_v63 = vpop.f32.mrb[121].mxu0 }
 0x977   :  { %11207 = vmatmul.mubr.msk.f32.gmra.mrb[138].mxu1 %vm650_vm3, %v2244_v29  ;;  %v14772_v29 = vld [vmem:[%s17724_s3] sm:$0xff] }
 0x978   :  { %v2248_v25 = vpop.f32.mrb[122].mxu0  ;;  %11209 = vmatprep.mubr.msk.f32.mxu1 %vm13479_vm2, %v17734_v32 }
 0x979   :  { %v2249_v21 = vadd.f32 %v9312_v10, %v2248_v25  ;;  %v11096_v39 = vpop.f32.mrb[123].mxu0 }
 0x97b   :  { %11210 = vmatmul.mubr.msk.f32.gmra.mrb[140].mxu1 %vm650_vm3, %v2249_v21 }
 0x97c   :  { %v2253_v46 = vpop.f32.mrb[124].mxu0  ;;  %11212 = vmatprep.mubr.msk.f32.mxu1 %vm13479_vm2, %v17734_v32 }
 0x97d   :  { %v2254_v55 = vadd.f32 %v9312_v10, %v2253_v46  ;;  %v11099_v42 = vpop.f32.mrb[125].mxu0 }
 0x97f   :  { %11213 = vmatmul.mubr.msk.f32.gmra.mrb[142].mxu1 %vm650_vm3, %v2254_v55  ;;  %v14779_v55 = vld [vmem:[%s17724_s3 + $0x8] sm:$0xff] }
 0x980   :  { %v2459_v27 = vpop.f32.mrb[126].mxu0  ;;  %11262 = vmatprep.mubr.msk.f32.mxu1 %vm13479_vm2, %v17734_v32 }
 0x981   :  { %v11145_v6 = vpop.f32.mrb[127].mxu0  ;;  %v2460_v58 = vadd.f32 %v9342_v12, %v2459_v27 }
 0x984   :  { %v2464_v48 = vpop.f32.mrb[128].mxu0 }
 0x985   :  { %v2465_v16 = vadd.f32 %v9342_v12, %v2464_v48  ;;  %v11148_v49 = vpop.f32.mrb[129].mxu0 }
 0x987   :  { %v12724_v45 = vpack.c.bf16 %v2465_v16, %v2460_v58  ;;  %v14786_v58 = vld [vmem:[%s17724_s3 + $0x10] sm:$0xff] }
 0x988   :  { %v2469_v52 = vpop.f32.mrb[130].mxu0 }
 0x989   :  { %v11151_v1 = vpop.f32.mrb[131].mxu0  ;;  %12725 = vmatpush3.bf16.msra.mxu0 %v12724_v45  ;;  %v2470_v50 = vadd.f32 %v9342_v12, %v2469_v52 }
 0x98a   :  { %12726 = vmatprep.subr.bf16.mxu0 %v13478_v24 }
 0x98c   :  { %v2474_v11 = vpop.f32.mrb[132].mxu0 }
 0x98d   :  { %v2475_v18 = vadd.f32 %v9342_v12, %v2474_v11  ;;  %v11154_v23 = vpop.f32.mrb[133].mxu0  ;;  %v14793_v11 = vld [vmem:[%s17724_s3 + $0x18] sm:$0xff] }
 0x98f   :  { %v12727_v17 = vpack.c.bf16 %v2475_v18, %v2470_v50 }
 0x990   :  { %v2479_v10 = vpop.f32.mrb[134].mxu0 }
 0x991   :  { %v11157_v30 = vpop.f32.mrb[135].mxu0  ;;  %12728 = vmatpush3.bf16.msra.mxu0 %v12727_v17  ;;  %v2480_v35 = vadd.f32 %v9342_v12, %v2479_v10 }
 0x992   :  { %12729 = vmatprep.subr.bf16.mxu0 %v13478_v24  ;;  %v14800_v30 = vld [vmem:[%s17724_s3 + $0x20] sm:$0xff] }
 0x994   :  { %v2484_v61 = vpop.f32.mrb[136].mxu0 }
 0x995   :  { %v2485_v47 = vadd.f32 %v9342_v12, %v2484_v61  ;;  %v11160_v8 = vpop.f32.mrb[137].mxu0 }
 0x997   :  { %v12730_v56 = vpack.c.bf16 %v2485_v47, %v2480_v35 }
 0x998   :  { %v2489_v2 = vpop.f32.mrb[138].mxu0 }
 0x999   :  { %v11163_v20 = vpop.f32.mrb[139].mxu0  ;;  %12731 = vmatpush3.bf16.msra.mxu0 %v12730_v56  ;;  %v2490_v9 = vadd.f32 %v9342_v12, %v2489_v2  ;;  %v14807_v2 = vld [vmem:[%s17724_s3 + $0x28] sm:$0xff] }
 0x99a   :  { %12732 = vmatprep.subr.bf16.mxu0 %v13478_v24 }
 0x99c   :  { %v2494_v34 = vpop.f32.mrb[140].mxu0 }
 0x99d   :  { %v2495_v60 = vadd.f32 %v9342_v12, %v2494_v34  ;;  %v11166_v43 = vpop.f32.mrb[141].mxu0 }
 0x99f   :  { %v12733_v54 = vpack.c.bf16 %v2495_v60, %v2490_v9 }
 0x9a0   :  { %v2499_v4 = vpop.f32.mrb[142].mxu0 }
 0x9a1   :  { %v11169_v13 = vpop.f32.mrb[143].mxu0  ;;  %12734 = vmatpush3.bf16.msra.mxu0 %v12733_v54  ;;  %v2500_v59 = vadd.f32 %v9342_v12, %v2499_v4  ;;  %v14814_v54 = vld [vmem:[%s17724_s3 + $0x30] sm:$0xff] }
 0x9a2   :  { %11231 = vmatprep.subr.mxu0 %v17734_v32 }
 0x9a5   :  { %11232 = vmatpush3.msra.mxu0 %v2500_v59 }
 0x9a6   :  { %12735 = vmatprep.subr.bf16.mxu0 %v13478_v24 }
 0xa32   :  { %v2623_v3 = vpop.f32.mrb[126].mxu1 }
 0xa33   :  { %v2667_v22 = vmul.f32 0.35355338, %v2623_v3  ;;  %v11190_v15 = vpop.f32.mrb[127].mxu1 }
 0xa34   :  { %v14821_v15 = vld [vmem:[%s17724_s3 + $0x38] sm:$0xff] }
 0xa35   :  { %v2676_v63 = vadd.f32 %v14772_v29, %v2667_v22 }
 0xa36   :  { %v2628_v25 = vpop.f32.mrb[128].mxu1 }
 0xa37   :  { %v2668_v21 = vmul.f32 0.35355338, %v2628_v25  ;;  %v11193_v39 = vpop.f32.mrb[129].mxu1  ;;  %v2685_v46 = vsel %vm833_vm5, %v2676_v63, -inf }
 0xa38   :  { %2686 = vmax.xlane.f32.xlu0 %v2685_v46 }
 0xa39   :  { %v2677_v42 = vadd.f32 %v14779_v55, %v2668_v21 }
 0xa3a   :  { %v2633_v27 = vpop.f32.mrb[130].mxu1 }
 0xa3b   :  { %v2669_v6 = vmul.f32 0.35355338, %v2633_v27  ;;  %v11196_v12 = vpop.f32.mrb[131].mxu1  ;;  %v2688_v48 = vsel %vm833_vm5, %v2677_v42, -inf }
 0xa3c   :  { %2689 = vmax.xlane.f32.xlu1 %v2688_v48 }
 0xa3d   :  { %v2678_v16 = vadd.f32 %v14786_v58, %v2669_v6  ;;  %v14828_v6 = vld [vmem:[%s17724_s3 + $0x40] sm:$0xff] }
 0xa3e   :  { %v2638_v49 = vpop.f32.mrb[132].mxu1 }
 0xa3f   :  { %v2670_v45 = vmul.f32 0.35355338, %v2638_v49  ;;  %v11199_v52 = vpop.f32.mrb[133].mxu1  ;;  %v2691_v1 = vsel %vm833_vm5, %v2678_v16, -inf }
 0xa40   :  { %2692 = vmax.xlane.f32.xlu0 %v2691_v1 }
 0xa41   :  { %v2679_v50 = vadd.f32 %v14793_v11, %v2670_v45 }
 0xa42   :  { %v2643_v18 = vpop.f32.mrb[134].mxu1 }
 0xa43   :  { %v2671_v23 = vmul.f32 0.35355338, %v2643_v18  ;;  %v11202_v17 = vpop.f32.mrb[135].mxu1  ;;  %v2694_v10 = vsel %vm833_vm5, %v2679_v50, -inf }
 0xa44   :  { %2695 = vmax.xlane.f32.xlu1 %v2694_v10 }
 0xa45   :  { %v2680_v61 = vadd.f32 %v14800_v30, %v2671_v23 }
 0xa46   :  { %v2648_v35 = vpop.f32.mrb[136].mxu1 }
 0xa47   :  { %v2672_v47 = vmul.f32 0.35355338, %v2648_v35  ;;  %v11205_v8 = vpop.f32.mrb[137].mxu1  ;;  %v2697_v56 = vsel %vm833_vm5, %v2680_v61, -inf }
 0xa48   :  { %2698 = vmax.xlane.f32.xlu0 %v2697_v56 }
 0xa49   :  { %v2681_v20 = vadd.f32 %v14807_v2, %v2672_v47 }
 0xa4a   :  { %v2653_v34 = vpop.f32.mrb[138].mxu1 }
 0xa4b   :  { %v2673_v9 = vmul.f32 0.35355338, %v2653_v34  ;;  %v11208_v60 = vpop.f32.mrb[139].mxu1  ;;  %v2700_v43 = vsel %vm833_vm5, %v2681_v20, -inf }
 0xa4c   :  { %2701 = vmax.xlane.f32.xlu1 %v2700_v43 }
 0xa4d   :  { %v2682_v4 = vadd.f32 %v14814_v54, %v2673_v9 }
 0xa4e   :  { %v2658_v13 = vpop.f32.mrb[140].mxu1 }
 0xa4f   :  { %v2674_v59 = vmul.f32 0.35355338, %v2658_v13  ;;  %v11211_v3 = vpop.f32.mrb[141].mxu1  ;;  %v2703_v22 = vsel %vm833_vm5, %v2682_v4, -inf }
 0xa50   :  { %2704 = vmax.xlane.f32.xlu0 %v2703_v22 }
 0xa51   :  { %v2683_v25 = vadd.f32 %v14821_v15, %v2674_v59 }
 0xa52   :  { %v2663_v21 = vpop.f32.mrb[142].mxu1 }
 0xa53   :  { %v2675_v39 = vmul.f32 0.35355338, %v2663_v21  ;;  %v11214_v46 = vpop.f32.mrb[143].mxu1  ;;  %v2706_v27 = vsel %vm833_vm5, %v2683_v25, -inf }
 0xa54   :  { %2707 = vmax.xlane.f32.xlu1 %v2706_v27 }
 0xa55   :  { %v2684_v12 = vadd.f32 %v14828_v6, %v2675_v39 }
 0xa57   :  { %v2709_v48 = vsel %vm833_vm5, %v2684_v12, -inf }
 0xa58   :  { %2710 = vmax.xlane.f32.xlu0 %v2709_v48 }
 0xac5   :  { %v2687_v49 = vpop.xlane.xlu0 %2686 }
 0xac6   :  { %v2712_v45 = vsub.f32 %v2676_v63, %v2687_v49 }
 0xac8   :  { %v2721_v52 = vmul.f32 1.442695, %v2712_v45 }
 0xac9   :  { %v2690_v1 = vpop.xlane.xlu1 %2689 }
 0xaca   :  { %13118 = vpow2.f32 %v2721_v52  ;;  %v2713_v18 = vsub.f32 %v2677_v42, %v2690_v1 }
 0xacc   :  { %v2723_v23 = vmul.f32 1.442695, %v2713_v18 }
 0xacd   :  { %v2693_v17 = vpop.xlane.xlu0 %2692 }
 0xace   :  { %13120 = vpow2.f32 %v2723_v23  ;;  %v2714_v10 = vsub.f32 %v2678_v16, %v2693_v17 }
 0xad0   :  { %v2725_v35 = vmul.f32 1.442695, %v2714_v10 }
 0xad1   :  { %v2696_v47 = vpop.xlane.xlu1 %2695 }
 0xad2   :  { %13122 = vpow2.f32 %v2725_v35  ;;  %v2715_v8 = vsub.f32 %v2679_v50, %v2696_v47 }
 0xad4   :  { %v13119_v56 = vpop.eup %13118  ;;  %v2727_v34 = vmul.f32 1.442695, %v2715_v8 }
 0xad5   :  { %v2699_v9 = vpop.xlane.xlu0 %2698  ;;  %v2739_v60 = vsel %vm833_vm5, %v13119_v56, 0.0 }
 0xad6   :  { %13124 = vpow2.f32 %v2727_v34  ;;  %v2716_v43 = vsub.f32 %v2680_v61, %v2699_v9  ;;  %2740 = vadd.xlane.f32.xlu1 %v2739_v60  ;;  %v9379_v34 = vld [vmem:[%s17725_s6 + $0x10] sm:$0xff] }
 0xad7   :  { %11261 = vmatpush3.msra.mxu1 %v9379_v34 }
 0xad8   :  { %v14833_v63 = vpop.eup %13120  ;;  %v2729_v13 = vmul.f32 1.442695, %v2716_v43  ;;  %12741 = vmatprep.subr.bf16.mxu1 %v13478_v24 }
 0xad9   :  { %v2702_v42 = vpop.xlane.xlu1 %2701  ;;  %v2742_v59 = vsel %vm833_vm5, %v14833_v63, 0.0 }
 0xada   :  { %13126 = vpow2.f32 %v2729_v13  ;;  %v2717_v16 = vsub.f32 %v2681_v20, %v2702_v42  ;;  %2743 = vadd.xlane.f32.xlu0 %v2742_v59  ;;  %v9389_v13 = vld [vmem:[%s17721_s4 + $0x60] sm:$0xff]  ;;  %v9390_v42 = vld [vmem:[%s17721_s4 + $0x68] sm:$0xff] }
 0xadc   :  { %v14837_v3 = vpop.eup %13122  ;;  %v2731_v50 = vmul.f32 1.442695, %v2717_v16  ;;  %v12736_v16 = vpack.c.bf16 %v9390_v42, %v9389_v13  ;;  %v9421_v13 = vld [vmem:[%s17721_s4 + $0x170] sm:$0xff] }
 0xadd   :  { %v2705_v22 = vpop.xlane.xlu0 %2704  ;;  %v2745_v21 = vsel %vm833_vm5, %v14837_v3, 0.0 }
 0xade   :  { %13128 = vpow2.f32 %v2731_v50  ;;  %v2718_v61 = vsub.f32 %v2682_v4, %v2705_v22  ;;  %2746 = vadd.xlane.f32.xlu1 %v2745_v21  ;;  %v9391_v21 = vld [vmem:[%s17721_s4 + $0x70] sm:$0xff] }
 0xae0   :  { %v14841_v39 = vpop.eup %13124  ;;  %v2733_v46 = vmul.f32 1.442695, %v2718_v61  ;;  %v9392_v61 = vld [vmem:[%s17721_s4 + $0x78] sm:$0xff] }
 0xae1   :  { %v2708_v27 = vpop.xlane.xlu1 %2707  ;;  %v2748_v48 = vsel %vm833_vm5, %v14841_v39, 0.0 }
 0xae2   :  { %13130 = vpow2.f32 %v2733_v46  ;;  %v2719_v20 = vsub.f32 %v2683_v25, %v2708_v27  ;;  %2749 = vadd.xlane.f32.xlu0 %v2748_v48  ;;  %v12739_v27 = vpack.c.bf16 %v9392_v61, %v9391_v21  ;;  %v9407_v21 = vld [vmem:[%s17721_s4 + $0xf8] sm:$0xff] }
 0xae4   :  { %v14845_v49 = vpop.eup %13126  ;;  %v2735_v45 = vmul.f32 1.442695, %v2719_v20 }
 0xae5   :  { %v2711_v52 = vpop.xlane.xlu0 %2710  ;;  %v2751_v1 = vsel %vm833_vm5, %v14845_v49, 0.0 }
 0xae6   :  { %13132 = vpow2.f32 %v2735_v45  ;;  %v2720_v4 = vsub.f32 %v2684_v12, %v2711_v52  ;;  %2752 = vadd.xlane.f32.xlu1 %v2751_v1 }
 0xae8   :  { %v14849_v18 = vpop.eup %13128  ;;  %v2737_v23 = vmul.f32 1.442695, %v2720_v4 }
 0xae9   :  { %v2754_v17 = vsel %vm833_vm5, %v14849_v18, 0.0 }
 0xaea   :  { %13134 = vpow2.f32 %v2737_v23  ;;  %2755 = vadd.xlane.f32.xlu0 %v2754_v17 }
 0xaec   :  { %v14853_v25 = vpop.eup %13130 }
 0xaed   :  { %v2757_v10 = vsel %vm833_vm5, %v14853_v25, 0.0 }
 0xaee   :  { %2758 = vadd.xlane.f32.xlu1 %v2757_v10 }
 0xaf0   :  { %v14857_v35 = vpop.eup %13132 }
 0xaf1   :  { %v2760_v12 = vsel %vm833_vm5, %v14857_v35, 0.0 }
 0xaf2   :  { %2761 = vadd.xlane.f32.xlu0 %v2760_v12 }
 0xaf4   :  { %v14861_v47 = vpop.eup %13134 }
 0xaf5   :  { %v2763_v8 = vsel %vm833_vm5, %v14861_v47, 0.0 }
 0xaf6   :  { %2764 = vadd.xlane.f32.xlu1 %v2763_v8 }
 0xb63   :  { %v2741_v9 = vpop.xlane.xlu1 %2740 }
 0xb64   :  { %13136 = vrcp.f32 %v2741_v9 }
 0xb67   :  { %v2744_v60 = vpop.xlane.xlu0 %2743 }
 0xb68   :  { %13138 = vrcp.f32 %v2744_v60 }
 0xb6b   :  { %v2747_v43 = vpop.xlane.xlu1 %2746 }
 0xb6c   :  { %13140 = vrcp.f32 %v2747_v43  ;;  %v9420_v43 = vld [vmem:[%s17721_s4 + $0x168] sm:$0xff] }
 0xb6e   :  { %v13137_v59 = vpop.eup %13136 }
 0xb6f   :  { %v2775_v50 = vmul.f32 %v13137_v59, %v13119_v56  ;;  %v2750_v22 = vpop.xlane.xlu0 %2749  ;;  %v9404_v59 = vld [vmem:[%s17721_s4 + $0xe0] sm:$0xff] }
 0xb70   :  { %13142 = vrcp.f32 %v2750_v22  ;;  %v9406_v22 = vld [vmem:[%s17721_s4 + $0xf0] sm:$0xff] }
 0xb71   :  { %11234 = vmatmul.mubr.msk.f32.vlgmr.msra.gmra.mrb[144].mxu0 %vm833_vm5, %v2775_v50 }
 0xb72   :  { %v13139_v46 = vpop.eup %13138  ;;  %11236 = vmatprep.mubr.msk.f32.mxu0 %vm13479_vm2, %v17734_v32  ;;  %12737 = vmatpush3.bf16.msra.mxu0 %v12736_v16  ;;  %v9405_v16 = vld [vmem:[%s17721_s4 + $0xe8] sm:$0xff] }
 0xb73   :  { %v2753_v48 = vpop.xlane.xlu1 %2752  ;;  %v2776_v56 = vmul.f32 %v13139_v46, %v14833_v63  ;;  %12738 = vmatprep.subr.bf16.mxu0 %v13478_v24  ;;  %v12742_v50 = vpack.c.bf16 %v9405_v16, %v9404_v59 }
 0xb74   :  { %13144 = vrcp.f32 %v2753_v48 }
 0xb75   :  { %11237 = vmatmul.mubr.msk.f32.gmra.mrb[146].mxu0 %vm833_vm5, %v2776_v56 }
 0xb76   :  { %v13141_v20 = vpop.eup %13140  ;;  %11239 = vmatprep.mubr.msk.f32.mxu0 %vm13479_vm2, %v17734_v32  ;;  %12740 = vmatpush3.bf16.msra.mxu0 %v12739_v27  ;;  %v12745_v27 = vpack.c.bf16 %v9407_v21, %v9406_v22  ;;  %v9424_v22 = vld [vmem:[%s17723_s5 + $0xb] ss:$0 sm:$0xff] }
 0xb77   :  { %v2756_v45 = vpop.xlane.xlu0 %2755  ;;  %v2777_v52 = vmul.f32 %v13141_v20, %v14837_v3  ;;  %12747 = vmatprep.subr.bf16.mxu0 %v13478_v24 }
 0xb78   :  { %13146 = vrcp.f32 %v2756_v45 }
 0xb79   :  { %11240 = vmatmul.mubr.msk.f32.gmra.mrb[148].mxu0 %vm833_vm5, %v2777_v52 }
 0xb7a   :  { %v13143_v1 = vpop.eup %13142  ;;  %11242 = vmatprep.mubr.msk.f32.mxu0 %vm13479_vm2, %v17734_v32 }
 0xb7b   :  { %v2759_v63 = vpop.xlane.xlu1 %2758  ;;  %v2778_v4 = vmul.f32 %v13143_v1, %v14841_v39 }
 0xb7c   :  { %13148 = vrcp.f32 %v2759_v63 }
 0xb7d   :  { %11243 = vmatmul.mubr.msk.f32.gmra.mrb[150].mxu0 %vm833_vm5, %v2778_v4 }
 0xb7e   :  { %v13145_v23 = vpop.eup %13144  ;;  %11245 = vmatprep.mubr.msk.f32.mxu0 %vm13479_vm2, %v17734_v32 }
 0xb7f   :  { %v2762_v3 = vpop.xlane.xlu0 %2761  ;;  %v2779_v17 = vmul.f32 %v13145_v23, %v14845_v49 }
 0xb80   :  { %13150 = vrcp.f32 %v2762_v3 }
 0xb81   :  { %11246 = vmatmul.mubr.msk.f32.gmra.mrb[152].mxu0 %vm833_vm5, %v2779_v17 }
 0xb82   :  { %v13147_v10 = vpop.eup %13146  ;;  %11248 = vmatprep.mubr.msk.f32.mxu0 %vm13479_vm2, %v17734_v32 }
 0xb83   :  { %v2765_v12 = vpop.xlane.xlu1 %2764  ;;  %v2780_v39 = vmul.f32 %v13147_v10, %v14849_v18 }
 0xb84   :  { %13152 = vrcp.f32 %v2765_v12 }
 0xb85   :  { %11249 = vmatmul.mubr.msk.f32.gmra.mrb[154].mxu0 %vm833_vm5, %v2780_v39 }
 0xb86   :  { %v13149_v8 = vpop.eup %13148  ;;  %11251 = vmatprep.mubr.msk.f32.mxu0 %vm13479_vm2, %v17734_v32 }
 0xb87   :  { %v2781_v34 = vmul.f32 %v13149_v8, %v14853_v25  ;;  %v9419_v25 = vld [vmem:[%s17721_s4 + $0x160] sm:$0xff] }
 0xb89   :  { %11252 = vmatmul.mubr.msk.f32.gmra.mrb[156].mxu0 %vm833_vm5, %v2781_v34 }
 0xb8a   :  { %v13151_v49 = vpop.eup %13150  ;;  %11254 = vmatprep.mubr.msk.f32.mxu0 %vm13479_vm2, %v17734_v32 }
 0xb8b   :  { %v2782_v9 = vmul.f32 %v13151_v49, %v14857_v35  ;;  %v12748_v35 = vpack.c.bf16 %v9420_v43, %v9419_v25 }
 0xb8d   :  { %11255 = vmatmul.mubr.msk.f32.gmra.mrb[158].mxu0 %vm833_vm5, %v2782_v9 }
 0xb8e   :  { %v13153_v18 = vpop.eup %13152  ;;  %11257 = vmatprep.mubr.msk.f32.mxu0 %vm13479_vm2, %v17734_v32 }
 0xb8f   :  { %v2783_v60 = vmul.f32 %v13153_v18, %v14861_v47  ;;  %v9422_v47 = vld [vmem:[%s17721_s4 + $0x178] sm:$0xff] }
 0xb90   :  { %v12751_v42 = vpack.c.bf16 %v9422_v47, %v9421_v13 }
 0xb91   :  { %11258 = vmatmul.mubr.msk.f32.gmra.mrb[160].mxu0 %vm833_vm5, %v2783_v60 }
 0xb92   :  { %11297 = vmatprep.mubr.msk.f32.mxu0 %vm13479_vm2, %v17734_v32 }
 0xb95   :  { %11298 = vmatmul.mubr.msk.f32.vlgmr.msra.gmra.mrb[162].mxu0 %vm57_vm1, %v13717_v5 }
 0xb96   :  { %11300 = vmatprep.mubr.msk.f32.mxu0 %vm13479_vm2, %v17734_v32  ;;  %12749 = vmatpush3.bf16.msra.mxu0 %v12748_v35 }
 0xb97   :  { %12750 = vmatprep.subr.bf16.mxu0 %v13478_v24 }
 0xb99   :  { %11301 = vmatmul.mubr.msk.f32.gmra.mrb[164].mxu0 %vm57_vm1, %v13738_v19 }
 0xb9a   :  { %11303 = vmatprep.mubr.msk.f32.mxu0 %vm13479_vm2, %v17734_v32  ;;  %12752 = vmatpush3.bf16.msra.mxu0 %v12751_v42 }
 0xb9b   :  { %12769 = vmatprep.subr.bf16.mxu0 %v13478_v24 }
 0xb9d   :  { %11304 = vmatmul.mubr.msk.f32.gmra.mrb[166].mxu0 %vm57_vm1, %v13751_v51 }
 0xb9e   :  { %11306 = vmatprep.mubr.msk.f32.mxu0 %vm13479_vm2, %v17734_v32 }
 0xba1   :  { %11307 = vmatmul.mubr.msk.f32.gmra.mrb[168].mxu0 %vm57_vm1, %v13766_v28 }
 0xba2   :  { %11309 = vmatprep.mubr.msk.f32.mxu0 %vm13479_vm2, %v17734_v32 }
 0xba5   :  { %11310 = vmatmul.mubr.msk.f32.gmra.mrb[170].mxu0 %vm57_vm1, %v13778_v31 }
 0xba6   :  { %11312 = vmatprep.mubr.msk.f32.mxu0 %vm13479_vm2, %v17734_v32 }
 0xba9   :  { %11313 = vmatmul.mubr.msk.f32.gmra.mrb[172].mxu0 %vm57_vm1, %v13792_v36 }
 0xbaa   :  { %11315 = vmatprep.mubr.msk.f32.mxu0 %vm13479_vm2, %v17734_v32 }
 0xbad   :  { %11316 = vmatmul.mubr.msk.f32.gmra.mrb[174].mxu0 %vm57_vm1, %v13804_v38 }
 0xbae   :  { %11318 = vmatprep.mubr.msk.f32.mxu0 %vm13479_vm2, %v17734_v32 }
 0xbb1   :  { %11319 = vmatmul.mubr.msk.f32.gmra.mrb[176].mxu0 %vm57_vm1, %v13818_v41 }
 0xbb2   :  { %11321 = vmatprep.mubr.msk.f32.mxu0 %vm13479_vm2, %v17734_v32 }
 0xbb5   :  { %11322 = vmatmul.mubr.msk.f32.gmra.mrb[178].mxu0 %vm57_vm1, %v13829_v14 }
 0xbb6   :  { %11367 = vmatprep.mubr.msk.f32.mxu0 %vm13479_vm2, %v17734_v32 }
 0xbb9   :  { %11368 = vmatmul.mubr.msk.f32.vlgmr.msra.gmra.mrb[180].mxu0 %vm57_vm1, %v13717_v5 }
 0xbba   :  { %11370 = vmatprep.mubr.msk.f32.mxu0 %vm13479_vm2, %v17734_v32 }
 0xbbd   :  { %11371 = vmatmul.mubr.msk.f32.gmra.mrb[182].mxu0 %vm57_vm1, %v13738_v19 }
 0xbbe   :  { %11373 = vmatprep.mubr.msk.f32.mxu0 %vm13479_vm2, %v17734_v32 }
 0xbc1   :  { %11374 = vmatmul.mubr.msk.f32.gmra.mrb[184].mxu0 %vm57_vm1, %v13751_v51 }
 0xbc2   :  { %11376 = vmatprep.mubr.msk.f32.mxu0 %vm13479_vm2, %v17734_v32 }
 0xbc5   :  { %11377 = vmatmul.mubr.msk.f32.gmra.mrb[186].mxu0 %vm57_vm1, %v13766_v28 }
 0xbc6   :  { %11379 = vmatprep.mubr.msk.f32.mxu0 %vm13479_vm2, %v17734_v32 }
 0xbc9   :  { %11380 = vmatmul.mubr.msk.f32.gmra.mrb[188].mxu0 %vm57_vm1, %v13778_v31 }
 0xbca   :  { %11382 = vmatprep.mubr.msk.f32.mxu0 %vm13479_vm2, %v17734_v32 }
 0xbcd   :  { %11383 = vmatmul.mubr.msk.f32.gmra.mrb[190].mxu0 %vm57_vm1, %v13792_v36 }
 0xbce   :  { %11385 = vmatprep.mubr.msk.f32.mxu0 %vm13479_vm2, %v17734_v32 }
 0xbd1   :  { %11386 = vmatmul.mubr.msk.f32.gmra.mrb[192].mxu0 %vm57_vm1, %v13804_v38 }
 0xbd2   :  { %11388 = vmatprep.mubr.msk.f32.mxu0 %vm13479_vm2, %v17734_v32 }
 0xbd5   :  { %11389 = vmatmul.mubr.msk.f32.gmra.mrb[194].mxu0 %vm57_vm1, %v13818_v41 }
 0xbd6   :  { %11391 = vmatprep.mubr.msk.f32.mxu0 %vm13479_vm2, %v17734_v32 }
 0xbd9   :  { %11392 = vmatmul.mubr.msk.f32.gmra.mrb[196].mxu0 %vm57_vm1, %v13829_v14 }
 0xbda   :  { %11457 = vmatprep.mubr.msk.f32.mxu0 %vm13479_vm2, %v17734_v32 }
 0xc44   :  { %v2877_v61 = vpop.f32.mrb[144].mxu0 }
 0xc45   :  { %v11235_v46 = vpop.f32.mrb[145].mxu0  ;;  %11263 = vmatmul.mubr.msk.f32.vlgmr.msra.gmra.mrb[144].mxu1 %vm650_vm3, %v2877_v61 }
 0xc46   :  { %11265 = vmatprep.mubr.msk.f32.mxu1 %vm13479_vm2, %v17734_v32  ;;  %12743 = vmatpush3.bf16.msra.mxu1 %v12742_v50 }
 0xc47   :  { %12744 = vmatprep.subr.bf16.mxu1 %v13478_v24 }
 0xc48   :  { %v2882_v48 = vpop.f32.mrb[146].mxu0 }
 0xc49   :  { %v11238_v56 = vpop.f32.mrb[147].mxu0  ;;  %11266 = vmatmul.mubr.msk.f32.gmra.mrb[146].mxu1 %vm650_vm3, %v2882_v48 }
 0xc4a   :  { %11268 = vmatprep.mubr.msk.f32.mxu1 %vm13479_vm2, %v17734_v32  ;;  %12746 = vmatpush3.bf16.msra.mxu1 %v12745_v27 }
 0xc4b   :  { %12753 = vmatprep.subr.bf16.mxu1 %v13478_v24 }
 0xc4c   :  { %v2887_v20 = vpop.f32.mrb[148].mxu0 }
 0xc4d   :  { %v11241_v45 = vpop.f32.mrb[149].mxu0  ;;  %11269 = vmatmul.mubr.msk.f32.gmra.mrb[148].mxu1 %vm650_vm3, %v2887_v20 }
 0xc4e   :  { %11271 = vmatprep.mubr.msk.f32.mxu1 %vm13479_vm2, %v17734_v32 }
 0xc50   :  { %v2892_v52 = vpop.f32.mrb[150].mxu0 }
 0xc51   :  { %v11244_v1 = vpop.f32.mrb[151].mxu0  ;;  %11272 = vmatmul.mubr.msk.f32.gmra.mrb[150].mxu1 %vm650_vm3, %v2892_v52 }
 0xc52   :  { %11274 = vmatprep.mubr.msk.f32.mxu1 %vm13479_vm2, %v17734_v32 }
 0xc54   :  { %v2897_v63 = vpop.f32.mrb[152].mxu0 }
 0xc55   :  { %v11247_v4 = vpop.f32.mrb[153].mxu0  ;;  %11275 = vmatmul.mubr.msk.f32.gmra.mrb[152].mxu1 %vm650_vm3, %v2897_v63 }
 0xc56   :  { %11277 = vmatprep.mubr.msk.f32.mxu1 %vm13479_vm2, %v17734_v32 }
 0xc58   :  { %v2902_v23 = vpop.f32.mrb[154].mxu0 }
 0xc59   :  { %v11250_v3 = vpop.f32.mrb[155].mxu0  ;;  %11278 = vmatmul.mubr.msk.f32.gmra.mrb[154].mxu1 %vm650_vm3, %v2902_v23 }
 0xc5a   :  { %11280 = vmatprep.mubr.msk.f32.mxu1 %vm13479_vm2, %v17734_v32 }
 0xc5c   :  { %v2907_v17 = vpop.f32.mrb[156].mxu0 }
 0xc5d   :  { %v11253_v10 = vpop.f32.mrb[157].mxu0  ;;  %11281 = vmatmul.mubr.msk.f32.gmra.mrb[156].mxu1 %vm650_vm3, %v2907_v17 }
 0xc5e   :  { %11283 = vmatprep.mubr.msk.f32.mxu1 %vm13479_vm2, %v17734_v32 }
 0xc60   :  { %v2912_v12 = vpop.f32.mrb[158].mxu0 }
 0xc61   :  { %v11256_v39 = vpop.f32.mrb[159].mxu0  ;;  %11284 = vmatmul.mubr.msk.f32.gmra.mrb[158].mxu1 %vm650_vm3, %v2912_v12 }
 0xc62   :  { %11286 = vmatprep.mubr.msk.f32.mxu1 %vm13479_vm2, %v17734_v32 }
 0xc64   :  { %v2917_v8 = vpop.f32.mrb[160].mxu0 }
 0xc65   :  { %v11259_v34 = vpop.f32.mrb[161].mxu0  ;;  %11287 = vmatmul.mubr.msk.f32.gmra.mrb[160].mxu1 %vm650_vm3, %v2917_v8 }
 0xc66   :  { %11332 = vmatprep.mubr.msk.f32.mxu1 %vm13479_vm2, %v17734_v32 }
 0xc68   :  { %v15045_v49 = vpop.f32.mrb[162].mxu0 }
 0xc69   :  { %v11299_v9 = vpop.f32.mrb[163].mxu0  ;;  %11333 = vmatmul.mubr.msk.f32.vlgmr.msra.gmra.mrb[162].mxu1 %vm57_vm1, %v13717_v5 }
 0xc6a   :  { %11335 = vmatprep.mubr.msk.f32.mxu1 %vm13479_vm2, %v17734_v32 }
 0xc6c   :  { %v15051_v18 = vpop.f32.mrb[164].mxu0 }
 0xc6d   :  { %v11302_v60 = vpop.f32.mrb[165].mxu0  ;;  %11336 = vmatmul.mubr.msk.f32.gmra.mrb[164].mxu1 %vm57_vm1, %v13738_v19 }
 0xc6e   :  { %11338 = vmatprep.mubr.msk.f32.mxu1 %vm13479_vm2, %v17734_v32 }
 0xc70   :  { %v15057_v25 = vpop.f32.mrb[166].mxu0 }
 0xc71   :  { %v11305_v43 = vpop.f32.mrb[167].mxu0  ;;  %11339 = vmatmul.mubr.msk.f32.gmra.mrb[166].mxu1 %vm57_vm1, %v13751_v51 }
 0xc72   :  { %11341 = vmatprep.mubr.msk.f32.mxu1 %vm13479_vm2, %v17734_v32 }
 0xc74   :  { %v15063_v5 = vpop.f32.mrb[168].mxu0 }
 0xc75   :  { %v11308_v35 = vpop.f32.mrb[169].mxu0  ;;  %11342 = vmatmul.mubr.msk.f32.gmra.mrb[168].mxu1 %vm57_vm1, %v13766_v28 }
 0xc76   :  { %11344 = vmatprep.mubr.msk.f32.mxu1 %vm13479_vm2, %v17734_v32 }
 0xc78   :  { %v15069_v19 = vpop.f32.mrb[170].mxu0 }
 0xc79   :  { %v11311_v13 = vpop.f32.mrb[171].mxu0  ;;  %11345 = vmatmul.mubr.msk.f32.gmra.mrb[170].mxu1 %vm57_vm1, %v13778_v31 }
 0xc7a   :  { %11347 = vmatprep.mubr.msk.f32.mxu1 %vm13479_vm2, %v17734_v32 }
 0xc7c   :  { %v15075_v51 = vpop.f32.mrb[172].mxu0 }
 0xc7d   :  { %v11314_v47 = vpop.f32.mrb[173].mxu0  ;;  %11348 = vmatmul.mubr.msk.f32.gmra.mrb[172].mxu1 %vm57_vm1, %v13792_v36 }
 0xc7e   :  { %11350 = vmatprep.mubr.msk.f32.mxu1 %vm13479_vm2, %v17734_v32 }
 0xc80   :  { %v15081_v28 = vpop.f32.mrb[174].mxu0 }
 0xc81   :  { %v11317_v42 = vpop.f32.mrb[175].mxu0  ;;  %11351 = vmatmul.mubr.msk.f32.gmra.mrb[174].mxu1 %vm57_vm1, %v13804_v38 }
 0xc82   :  { %11353 = vmatprep.mubr.msk.f32.mxu1 %vm13479_vm2, %v17734_v32 }
 0xc84   :  { %v15087_v31 = vpop.f32.mrb[176].mxu0 }
 0xc85   :  { %v11320_v59 = vpop.f32.mrb[177].mxu0  ;;  %11354 = vmatmul.mubr.msk.f32.gmra.mrb[176].mxu1 %vm57_vm1, %v13818_v41 }
 0xc86   :  { %11356 = vmatprep.mubr.msk.f32.mxu1 %vm13479_vm2, %v17734_v32 }
 0xc88   :  { %v15093_v36 = vpop.f32.mrb[178].mxu0 }
 0xc89   :  { %v11323_v16 = vpop.f32.mrb[179].mxu0  ;;  %11357 = vmatmul.mubr.msk.f32.gmra.mrb[178].mxu1 %vm57_vm1, %v13829_v14 }
 0xc8a   :  { %11412 = vmatprep.mubr.msk.f32.mxu1 %vm13479_vm2, %v17734_v32 }
 0xc8c   :  { %v3394_v38 = vpop.f32.mrb[180].mxu0 }
 0xc8d   :  { %v11369_v50 = vpop.f32.mrb[181].mxu0  ;;  %v3395_v41 = vadd.f32 %v9424_v22, %v3394_v38 }
 0xc90   :  { %v3399_v21 = vpop.f32.mrb[182].mxu0 }
 0xc91   :  { %v3400_v61 = vadd.f32 %v9424_v22, %v3399_v21  ;;  %v11372_v46 = vpop.f32.mrb[183].mxu0 }
 0xc93   :  { %v12770_v27 = vpack.c.bf16 %v3400_v61, %v3395_v41 }
 0xc94   :  { %v3404_v48 = vpop.f32.mrb[184].mxu0 }
 0xc95   :  { %v11375_v56 = vpop.f32.mrb[185].mxu0  ;;  %12771 = vmatpush3.bf16.msra.mxu0 %v12770_v27  ;;  %v3405_v20 = vadd.f32 %v9424_v22, %v3404_v48 }
 0xc96   :  { %12772 = vmatprep.subr.bf16.mxu0 %v13478_v24 }
 0xc98   :  { %v3409_v14 = vpop.f32.mrb[186].mxu0 }
 0xc99   :  { %v3410_v45 = vadd.f32 %v9424_v22, %v3409_v14  ;;  %v11378_v52 = vpop.f32.mrb[187].mxu0 }
 0xc9b   :  { %v12773_v1 = vpack.c.bf16 %v3410_v45, %v3405_v20 }
 0xc9c   :  { %v3414_v63 = vpop.f32.mrb[188].mxu0 }
 0xc9d   :  { %v11381_v4 = vpop.f32.mrb[189].mxu0  ;;  %12774 = vmatpush3.bf16.msra.mxu0 %v12773_v1  ;;  %v3415_v3 = vadd.f32 %v9424_v22, %v3414_v63 }
 0xc9e   :  { %12775 = vmatprep.subr.bf16.mxu0 %v13478_v24 }
 0xca0   :  { %v3419_v23 = vpop.f32.mrb[190].mxu0 }
 0xca1   :  { %v3420_v17 = vadd.f32 %v9424_v22, %v3419_v23  ;;  %v11384_v10 = vpop.f32.mrb[191].mxu0 }
 0xca3   :  { %v12776_v12 = vpack.c.bf16 %v3420_v17, %v3415_v3 }
 0xca4   :  { %v3424_v39 = vpop.f32.mrb[192].mxu0 }
 0xca5   :  { %v11387_v8 = vpop.f32.mrb[193].mxu0  ;;  %12777 = vmatpush3.bf16.msra.mxu0 %v12776_v12  ;;  %v3425_v9 = vadd.f32 %v9424_v22, %v3424_v39 }
 0xca6   :  { %12778 = vmatprep.subr.bf16.mxu0 %v13478_v24 }
 0xca8   :  { %v3429_v34 = vpop.f32.mrb[194].mxu0 }
 0xca9   :  { %v3430_v60 = vadd.f32 %v9424_v22, %v3429_v34  ;;  %v11390_v43 = vpop.f32.mrb[195].mxu0 }
 0xcab   :  { %v12779_v35 = vpack.c.bf16 %v3430_v60, %v3425_v9 }
 0xcac   :  { %v3434_v13 = vpop.f32.mrb[196].mxu0 }
 0xcad   :  { %v11393_v47 = vpop.f32.mrb[197].mxu0  ;;  %12780 = vmatpush3.bf16.msra.mxu0 %v12779_v35  ;;  %v3435_v42 = vadd.f32 %v9424_v22, %v3434_v13 }
 0xcae   :  { %11455 = vmatprep.subr.mxu0 %v17734_v32 }
 0xcb1   :  { %11456 = vmatpush3.msra.mxu0 %v3435_v42 }
 0xcb2   :  { %12781 = vmatprep.subr.bf16.mxu0 %v13478_v24 }
 0xd18   :  { %v3016_v59 = vpop.f32.mrb[144].mxu1 }
 0xd19   :  { %v15108_v16 = vadd.f32 %v3016_v59, %v14705_v33  ;;  %v11264_v38 = vpop.f32.mrb[145].mxu1 }
 0xd1c   :  { %v3021_v50 = vpop.f32.mrb[146].mxu1 }
 0xd1d   :  { %v15111_v21 = vadd.f32 %v3021_v50, %v14708_v40  ;;  %v11267_v41 = vpop.f32.mrb[147].mxu1 }
 0xd20   :  { %v3026_v61 = vpop.f32.mrb[148].mxu1 }
 0xd21   :  { %v15114_v46 = vadd.f32 %v3026_v61, %v14711_v62  ;;  %v11270_v27 = vpop.f32.mrb[149].mxu1 }
 0xd24   :  { %v3031_v48 = vpop.f32.mrb[150].mxu1 }
 0xd25   :  { %v15117_v22 = vadd.f32 %v3031_v48, %v14714_v44  ;;  %v11273_v56 = vpop.f32.mrb[151].mxu1 }
 0xd28   :  { %v3036_v14 = vpop.f32.mrb[152].mxu1 }
 0xd29   :  { %v15120_v33 = vadd.f32 %v3036_v14, %v14717_v26  ;;  %v11276_v20 = vpop.f32.mrb[153].mxu1 }
 0xd2c   :  { %v3041_v45 = vpop.f32.mrb[154].mxu1 }
 0xd2d   :  { %v15123_v40 = vadd.f32 %v3041_v45, %v14720_v7  ;;  %v11279_v52 = vpop.f32.mrb[155].mxu1  ;;  %v9409_v7 = vld [vmem:[%s17723_s5 + $0x7] ss:$0 sm:$0xff] }
 0xd30   :  { %v3046_v1 = vpop.f32.mrb[156].mxu1 }
 0xd31   :  { %v15126_v62 = vadd.f32 %v3046_v1, %v14723_v53  ;;  %v11282_v63 = vpop.f32.mrb[157].mxu1 }
 0xd34   :  { %v3051_v4 = vpop.f32.mrb[158].mxu1 }
 0xd35   :  { %v11285_v23 = vpop.f32.mrb[159].mxu1  ;;  %v15129_v44 = vadd.f32 %v3051_v4, %v14726_v37 }
 0xd36   :  { %v9394_v23 = vld [vmem:[%s17723_s5 + $0x3] ss:$0 sm:$0xff] }
 0xd38   :  { %v3056_v3 = vpop.f32.mrb[160].mxu1 }
 0xd39   :  { %v11288_v17 = vpop.f32.mrb[161].mxu1  ;;  %v15132_v26 = vadd.f32 %v3056_v3, %v14729_v0 }
 0xd3a   :  { %v3149_v17 = vadd.f32 %v9394_v23, %v15045_v49  ;;  %v3164_v49 = vadd.f32 %v9394_v23, %v15063_v5  ;;  %v3179_v5 = vadd.f32 %v9394_v23, %v15081_v28 }
 0xd3c   :  { %v3271_v10 = vpop.f32.mrb[162].mxu1 }
 0xd3d   :  { %v11334_v12 = vpop.f32.mrb[163].mxu1  ;;  %v3272_v53 = vadd.f32 %v9409_v7, %v3271_v10  ;;  %v3154_v10 = vadd.f32 %v9394_v23, %v15051_v18  ;;  %v3169_v18 = vadd.f32 %v9394_v23, %v15069_v19  ;;  %v3184_v19 = vadd.f32 %v9394_v23, %v15087_v31 }
 0xd3e   :  { %v3159_v12 = vadd.f32 %v9394_v23, %v15057_v25  ;;  %v3174_v25 = vadd.f32 %v9394_v23, %v15075_v51  ;;  %v3189_v51 = vadd.f32 %v9394_v23, %v15093_v36 }
 0xd40   :  { %v3276_v39 = vpop.f32.mrb[164].mxu1 }
 0xd41   :  { %v3277_v8 = vadd.f32 %v9409_v7, %v3276_v39  ;;  %v11337_v34 = vpop.f32.mrb[165].mxu1 }
 0xd43   :  { %v12754_v9 = vpack.c.bf16 %v3277_v8, %v3272_v53 }
 0xd44   :  { %v3281_v60 = vpop.f32.mrb[166].mxu1 }
 0xd45   :  { %v11340_v43 = vpop.f32.mrb[167].mxu1  ;;  %12756 = vmatpush3.bf16.xpose.msk.msra.mxu1 %vm13884_vm4, %v12754_v9  ;;  %v3282_v0 = vadd.f32 %v9409_v7, %v3281_v60 }
 0xd46   :  { %12757 = vmatprep.subr.bf16.mxu1 %v13478_v24 }
 0xd48   :  { %v3286_v37 = vpop.f32.mrb[168].mxu1 }
 0xd49   :  { %v3287_v35 = vadd.f32 %v9409_v7, %v3286_v37  ;;  %v11343_v13 = vpop.f32.mrb[169].mxu1 }
 0xd4b   :  { %v12758_v47 = vpack.c.bf16 %v3287_v35, %v3282_v0 }
 0xd4c   :  { %v3291_v42 = vpop.f32.mrb[170].mxu1 }
 0xd4d   :  { %v11346_v59 = vpop.f32.mrb[171].mxu1  ;;  %12760 = vmatpush3.bf16.xpose.msk.msra.mxu1 %vm13884_vm4, %v12758_v47  ;;  %v3292_v50 = vadd.f32 %v9409_v7, %v3291_v42 }
 0xd4e   :  { %12761 = vmatprep.subr.bf16.mxu1 %v13478_v24 }
 0xd50   :  { %v3296_v38 = vpop.f32.mrb[172].mxu1 }
 0xd51   :  { %v3297_v41 = vadd.f32 %v9409_v7, %v3296_v38  ;;  %v11349_v61 = vpop.f32.mrb[173].mxu1 }
 0xd53   :  { %v12762_v27 = vpack.c.bf16 %v3297_v41, %v3292_v50 }
 0xd54   :  { %v3301_v48 = vpop.f32.mrb[174].mxu1 }
 0xd55   :  { %v11352_v56 = vpop.f32.mrb[175].mxu1  ;;  %12764 = vmatpush3.bf16.xpose.msk.msra.mxu1 %vm13884_vm4, %v12762_v27  ;;  %v3302_v20 = vadd.f32 %v9409_v7, %v3301_v48 }
 0xd56   :  { %12765 = vmatprep.subr.bf16.mxu1 %v13478_v24 }
 0xd58   :  { %v3306_v14 = vpop.f32.mrb[176].mxu1 }
 0xd59   :  { %v3307_v45 = vadd.f32 %v9409_v7, %v3306_v14  ;;  %v11355_v52 = vpop.f32.mrb[177].mxu1 }
 0xd5b   :  { %v12766_v1 = vpack.c.bf16 %v3307_v45, %v3302_v20 }
 0xd5c   :  { %v3311_v63 = vpop.f32.mrb[178].mxu1 }
 0xd5d   :  { %v11358_v4 = vpop.f32.mrb[179].mxu1  ;;  %12768 = vmatpush3.bf16.xpose.msk.msra.mxu1 %vm13884_vm4, %v12766_v1  ;;  %v3312_v3 = vadd.f32 %v9409_v7, %v3311_v63 }
 0xd5e   :  { %11410 = vmatprep.subr.mxu1 %v17734_v32 }
 0xd65   :  { %11411 = vmatpush3.xpose.msk.msra.mxu1 %vm650_vm3, %v3312_v3 }
 0xd66   :  { %11484 = vmatprep.subr.mxu1 %v17734_v32 }
 0xd68   :  { %11413 = vmatmul.mubr.msk.f32.vlgmr.msra.gmra.mrb[180].mxu1 %vm650_vm3, %v3149_v17 }
 0xd69   :  { %11415 = vmatprep.mubr.msk.f32.mxu1 %vm13479_vm2, %v17734_v32 }
 0xd6c   :  { %11416 = vmatmul.mubr.msk.f32.gmra.mrb[182].mxu1 %vm650_vm3, %v3154_v10 }
 0xd6d   :  { %11418 = vmatprep.mubr.msk.f32.mxu1 %vm13479_vm2, %v17734_v32 }
 0xd70   :  { %11419 = vmatmul.mubr.msk.f32.gmra.mrb[184].mxu1 %vm650_vm3, %v3159_v12 }
 0xd71   :  { %11421 = vmatprep.mubr.msk.f32.mxu1 %vm13479_vm2, %v17734_v32 }
 0xd74   :  { %11422 = vmatmul.mubr.msk.f32.gmra.mrb[186].mxu1 %vm650_vm3, %v3164_v49 }
 0xd75   :  { %11424 = vmatprep.mubr.msk.f32.mxu1 %vm13479_vm2, %v17734_v32 }
 0xd78   :  { %11425 = vmatmul.mubr.msk.f32.gmra.mrb[188].mxu1 %vm650_vm3, %v3169_v18 }
 0xd79   :  { %11427 = vmatprep.mubr.msk.f32.mxu1 %vm13479_vm2, %v17734_v32 }
 0xd7c   :  { %11428 = vmatmul.mubr.msk.f32.gmra.mrb[190].mxu1 %vm650_vm3, %v3174_v25 }
 0xd7d   :  { %11430 = vmatprep.mubr.msk.f32.mxu1 %vm13479_vm2, %v17734_v32 }
 0xd80   :  { %11431 = vmatmul.mubr.msk.f32.gmra.mrb[192].mxu1 %vm650_vm3, %v3179_v5 }
 0xd81   :  { %11433 = vmatprep.mubr.msk.f32.mxu1 %vm13479_vm2, %v17734_v32 }
 0xd84   :  { %11434 = vmatmul.mubr.msk.f32.gmra.mrb[194].mxu1 %vm650_vm3, %v3184_v19 }
 0xd85   :  { %11436 = vmatprep.mubr.msk.f32.mxu1 %vm13479_vm2, %v17734_v32 }
 0xd88   :  { %11437 = vmatmul.mubr.msk.f32.gmra.mrb[196].mxu1 %vm650_vm3, %v3189_v51 }
 0xd89   :  { %11486 = vmatprep.mubr.msk.f32.mxu1 %vm13479_vm2, %v17734_v32 }
 0xe3b   :  { %v3558_v28 = vpop.f32.mrb[180].mxu1 }
 0xe3c   :  { %v3602_v7 = vmul.f32 0.35355338, %v3558_v28  ;;  %v11414_v39 = vpop.f32.mrb[181].mxu1 }
 0xe3e   :  { %v3611_v53 = vadd.f32 %v14772_v29, %v3602_v7 }
 0xe3f   :  { %v3563_v8 = vpop.f32.mrb[182].mxu1 }
 0xe40   :  { %v3603_v34 = vmul.f32 0.35355338, %v3563_v8  ;;  %v11417_v31 = vpop.f32.mrb[183].mxu1  ;;  %v3620_v9 = vsel %vm833_vm5, %v3611_v53, -inf }
 0xe41   :  { %3621 = vmax.xlane.f32.xlu0 %v3620_v9 }
 0xe42   :  { %v3612_v60 = vadd.f32 %v14779_v55, %v3603_v34 }
 0xe43   :  { %v3568_v43 = vpop.f32.mrb[184].mxu1 }
 0xe44   :  { %v3604_v36 = vmul.f32 0.35355338, %v3568_v43  ;;  %v11420_v37 = vpop.f32.mrb[185].mxu1  ;;  %v3623_v0 = vsel %vm833_vm5, %v3612_v60, -inf }
 0xe45   :  { %3624 = vmax.xlane.f32.xlu1 %v3623_v0 }
 0xe46   :  { %v3613_v35 = vadd.f32 %v14786_v58, %v3604_v36 }
 0xe47   :  { %v3573_v13 = vpop.f32.mrb[186].mxu1 }
 0xe48   :  { %v3605_v47 = vmul.f32 0.35355338, %v3573_v13  ;;  %v11423_v42 = vpop.f32.mrb[187].mxu1  ;;  %v3626_v29 = vsel %vm833_vm5, %v3613_v35, -inf }
 0xe49   :  { %3627 = vmax.xlane.f32.xlu0 %v3626_v29 }
 0xe4a   :  { %v3614_v59 = vadd.f32 %v14793_v11, %v3605_v47 }
 0xe4b   :  { %v3578_v38 = vpop.f32.mrb[188].mxu1 }
 0xe4c   :  { %v3606_v50 = vmul.f32 0.35355338, %v3578_v38  ;;  %v11426_v41 = vpop.f32.mrb[189].mxu1  ;;  %v3629_v55 = vsel %vm833_vm5, %v3614_v59, -inf }
 0xe4d   :  { %3630 = vmax.xlane.f32.xlu1 %v3629_v55 }
 0xe4e   :  { %v3615_v61 = vadd.f32 %v14800_v30, %v3606_v50 }
 0xe4f   :  { %v3583_v27 = vpop.f32.mrb[190].mxu1 }
 0xe50   :  { %v3607_v48 = vmul.f32 0.35355338, %v3583_v27  ;;  %v11429_v56 = vpop.f32.mrb[191].mxu1  ;;  %v3632_v58 = vsel %vm833_vm5, %v3615_v61, -inf }
 0xe51   :  { %3633 = vmax.xlane.f32.xlu0 %v3632_v58 }
 0xe52   :  { %v3616_v14 = vadd.f32 %v14807_v2, %v3607_v48 }
 0xe53   :  { %v3588_v20 = vpop.f32.mrb[192].mxu1 }
 0xe54   :  { %v3608_v45 = vmul.f32 0.35355338, %v3588_v20  ;;  %v11432_v52 = vpop.f32.mrb[193].mxu1  ;;  %v3635_v11 = vsel %vm833_vm5, %v3616_v14, -inf }
 0xe55   :  { %3636 = vmax.xlane.f32.xlu1 %v3635_v11 }
 0xe56   :  { %v3617_v1 = vadd.f32 %v14814_v54, %v3608_v45 }
 0xe57   :  { %v3593_v63 = vpop.f32.mrb[194].mxu1 }
 0xe58   :  { %v3609_v4 = vmul.f32 0.35355338, %v3593_v63  ;;  %v11435_v23 = vpop.f32.mrb[195].mxu1  ;;  %v3638_v30 = vsel %vm833_vm5, %v3617_v1, -inf }
 0xe59   :  { %3639 = vmax.xlane.f32.xlu0 %v3638_v30 }
 0xe5a   :  { %v3618_v3 = vadd.f32 %v14821_v15, %v3609_v4 }
 0xe5b   :  { %v3598_v17 = vpop.f32.mrb[196].mxu1 }
 0xe5c   :  { %v3610_v10 = vmul.f32 0.35355338, %v3598_v17  ;;  %v11438_v12 = vpop.f32.mrb[197].mxu1  ;;  %v3641_v2 = vsel %vm833_vm5, %v3618_v3, -inf }
 0xe5d   :  { %3642 = vmax.xlane.f32.xlu1 %v3641_v2 }
 0xe5e   :  { %v3619_v49 = vadd.f32 %v14828_v6, %v3610_v10 }
 0xe60   :  { %v3644_v18 = vsel %vm833_vm5, %v3619_v49, -inf }
 0xe61   :  { %3645 = vmax.xlane.f32.xlu0 %v3644_v18 }
 0xece   :  { %v3622_v54 = vpop.xlane.xlu0 %3621 }
 0xecf   :  { %v3647_v25 = vsub.f32 %v3611_v53, %v3622_v54 }
 0xed1   :  { %v3656_v5 = vmul.f32 1.442695, %v3647_v25 }
 0xed2   :  { %v3625_v19 = vpop.xlane.xlu1 %3624 }
 0xed3   :  { %13154 = vpow2.f32 %v3656_v5  ;;  %v3648_v51 = vsub.f32 %v3612_v60, %v3625_v19 }
 0xed5   :  { %v3658_v28 = vmul.f32 1.442695, %v3648_v51 }
 0xed6   :  { %v3628_v7 = vpop.xlane.xlu0 %3627 }
 0xed7   :  { %13156 = vpow2.f32 %v3658_v28  ;;  %v3649_v15 = vsub.f32 %v3613_v35, %v3628_v7 }
 0xed9   :  { %v3660_v39 = vmul.f32 1.442695, %v3649_v15 }
 0xeda   :  { %v3631_v8 = vpop.xlane.xlu1 %3630 }
 0xedb   :  { %13158 = vpow2.f32 %v3660_v39  ;;  %v3650_v34 = vsub.f32 %v3614_v59, %v3631_v8 }
 0xedd   :  { %v13155_v31 = vpop.eup %13154  ;;  %v3662_v9 = vmul.f32 1.442695, %v3650_v34 }
 0xede   :  { %v3634_v6 = vpop.xlane.xlu0 %3633  ;;  %v3674_v43 = vsel %vm833_vm5, %v13155_v31, 0.0 }
 0xedf   :  { %13160 = vpow2.f32 %v3662_v9  ;;  %v3651_v36 = vsub.f32 %v3615_v61, %v3634_v6  ;;  %3675 = vadd.xlane.f32.xlu1 %v3674_v43 }
 0xee1   :  { %v13157_v53 = vpop.eup %13156  ;;  %v3664_v37 = vmul.f32 1.442695, %v3651_v36 }
 0xee2   :  { %v3637_v0 = vpop.xlane.xlu1 %3636  ;;  %v3677_v60 = vsel %vm833_vm5, %v13157_v53, 0.0 }
 0xee3   :  { %13162 = vpow2.f32 %v3664_v37  ;;  %v3652_v13 = vsub.f32 %v3616_v14, %v3637_v0  ;;  %3678 = vadd.xlane.f32.xlu0 %v3677_v60 }
 0xee5   :  { %v13159_v35 = vpop.eup %13158  ;;  %v3666_v47 = vmul.f32 1.442695, %v3652_v13 }
 0xee6   :  { %v3640_v42 = vpop.xlane.xlu0 %3639  ;;  %v3680_v29 = vsel %vm833_vm5, %v13159_v35, 0.0 }
 0xee7   :  { %13164 = vpow2.f32 %v3666_v47  ;;  %v3653_v59 = vsub.f32 %v3617_v1, %v3640_v42  ;;  %3681 = vadd.xlane.f32.xlu1 %v3680_v29 }
 0xee9   :  { %v13161_v38 = vpop.eup %13160  ;;  %v3668_v50 = vmul.f32 1.442695, %v3653_v59 }
 0xeea   :  { %v3643_v41 = vpop.xlane.xlu1 %3642  ;;  %v3683_v55 = vsel %vm833_vm5, %v13161_v38, 0.0 }
 0xeeb   :  { %13166 = vpow2.f32 %v3668_v50  ;;  %v3654_v61 = vsub.f32 %v3618_v3, %v3643_v41  ;;  %3684 = vadd.xlane.f32.xlu0 %v3683_v55  ;;  %v9461_v3 = vld [vmem:[%s17725_s6 + $0x18] sm:$0xff] }
 0xeec   :  { %11485 = vmatpush3.msra.mxu1 %v9461_v3 }
 0xeed   :  { %v13163_v27 = vpop.eup %13162  ;;  %v3670_v48 = vmul.f32 1.442695, %v3654_v61  ;;  %12787 = vmatprep.subr.bf16.mxu1 %v13478_v24 }
 0xeee   :  { %v3646_v56 = vpop.xlane.xlu0 %3645  ;;  %v3686_v58 = vsel %vm833_vm5, %v13163_v27, 0.0 }
 0xeef   :  { %13168 = vpow2.f32 %v3670_v48  ;;  %v3655_v14 = vsub.f32 %v3619_v49, %v3646_v56  ;;  %3687 = vadd.xlane.f32.xlu1 %v3686_v58 }
 0xef1   :  { %v13165_v20 = vpop.eup %13164  ;;  %v3672_v45 = vmul.f32 1.442695, %v3655_v14 }
 0xef2   :  { %v3689_v52 = vsel %vm833_vm5, %v13165_v20, 0.0 }
 0xef3   :  { %13170 = vpow2.f32 %v3672_v45  ;;  %3690 = vadd.xlane.f32.xlu0 %v3689_v52 }
 0xef5   :  { %v13167_v11 = vpop.eup %13166 }
 0xef6   :  { %v3692_v1 = vsel %vm833_vm5, %v13167_v11, 0.0 }
 0xef7   :  { %3693 = vadd.xlane.f32.xlu1 %v3692_v1 }
 0xef9   :  { %v13169_v63 = vpop.eup %13168 }
 0xefa   :  { %v3695_v4 = vsel %vm833_vm5, %v13169_v63, 0.0 }
 0xefb   :  { %3696 = vadd.xlane.f32.xlu0 %v3695_v4  ;;  %v15279_v4 = vld [vmem:[%s17726_s7] ss:$0 sm:$0xff] }
 0xefd   :  { %v13171_v23 = vpop.eup %13170 }
 0xefe   :  { %v3698_v30 = vsel %vm833_vm5, %v13171_v23, 0.0 }
 0xeff   :  { %3699 = vadd.xlane.f32.xlu1 %v3698_v30 }
 0xf6c   :  { %v3676_v17 = vpop.xlane.xlu1 %3675 }
 0xf6d   :  { %13172 = vrcp.f32 %v3676_v17 }
 0xf70   :  { %v3679_v10 = vpop.xlane.xlu0 %3678 }
 0xf71   :  { %13174 = vrcp.f32 %v3679_v10 }
 0xf74   :  { %v3682_v12 = vpop.xlane.xlu1 %3681 }
 0xf75   :  { %13176 = vrcp.f32 %v3682_v12 }
 0xf77   :  { %v13173_v2 = vpop.eup %13172 }
 0xf78   :  { %v3710_v49 = vmul.f32 %v13173_v2, %v13155_v31  ;;  %v3685_v18 = vpop.xlane.xlu0 %3684  ;;  %v13452_v2 = vld [vmem:[#allocation2 + $0x8] sm:$0xff] }
 0xf79   :  { %13178 = vrcp.f32 %v3685_v18 }
 0xf7a   :  { %11458 = vmatmul.mubr.msk.f32.vlgmr.msra.gmra.mrb[198].mxu0 %vm833_vm5, %v3710_v49 }
 0xf7b   :  { %v13175_v54 = vpop.eup %13174  ;;  %11460 = vmatprep.mubr.msk.f32.mxu0 %vm13479_vm2, %v17734_v32 }
 0xf7c   :  { %v3688_v25 = vpop.xlane.xlu1 %3687  ;;  %v3711_v5 = vmul.f32 %v13175_v54, %v13157_v53 }
 0xf7d   :  { %13180 = vrcp.f32 %v3688_v25 }
 0xf7e   :  { %11461 = vmatmul.mubr.msk.f32.gmra.mrb[200].mxu0 %vm833_vm5, %v3711_v5 }
 0xf7f   :  { %v13177_v19 = vpop.eup %13176  ;;  %11463 = vmatprep.mubr.msk.f32.mxu0 %vm13479_vm2, %v17734_v32 }
 0xf80   :  { %v3691_v51 = vpop.xlane.xlu0 %3690  ;;  %v3712_v28 = vmul.f32 %v13177_v19, %v13159_v35  ;;  %v13453_v19 = vld [vmem:[#allocation2 + $0x10] sm:$0xff] }
 0xf81   :  { %13182 = vrcp.f32 %v3691_v51 }
 0xf82   :  { %11464 = vmatmul.mubr.msk.f32.gmra.mrb[202].mxu0 %vm833_vm5, %v3712_v28 }
 0xf83   :  { %v13179_v7 = vpop.eup %13178  ;;  %11466 = vmatprep.mubr.msk.f32.mxu0 %vm13479_vm2, %v17734_v32 }
 0xf84   :  { %v3694_v15 = vpop.xlane.xlu1 %3693  ;;  %v3713_v39 = vmul.f32 %v13179_v7, %v13161_v38 }
 0xf85   :  { %13184 = vrcp.f32 %v3694_v15 }
 0xf86   :  { %11467 = vmatmul.mubr.msk.f32.gmra.mrb[204].mxu0 %vm833_vm5, %v3713_v39 }
 0xf87   :  { %v13181_v8 = vpop.eup %13180  ;;  %11469 = vmatprep.mubr.msk.f32.mxu0 %vm13479_vm2, %v17734_v32 }
 0xf88   :  { %v3697_v34 = vpop.xlane.xlu0 %3696  ;;  %v3714_v31 = vmul.f32 %v13181_v8, %v13163_v27  ;;  %v13454_v8 = vld [vmem:[#allocation2 + $0x18] sm:$0xff] }
 0xf89   :  { %13186 = vrcp.f32 %v3697_v34 }
 0xf8a   :  { %11470 = vmatmul.mubr.msk.f32.gmra.mrb[206].mxu0 %vm833_vm5, %v3714_v31 }
 0xf8b   :  { %v13183_v9 = vpop.eup %13182  ;;  %11472 = vmatprep.mubr.msk.f32.mxu0 %vm13479_vm2, %v17734_v32 }
 0xf8c   :  { %v3700_v6 = vpop.xlane.xlu1 %3699  ;;  %v3715_v43 = vmul.f32 %v13183_v9, %v13165_v20 }
 0xf8d   :  { %13188 = vrcp.f32 %v3700_v6 }
 0xf8e   :  { %11473 = vmatmul.mubr.msk.f32.gmra.mrb[208].mxu0 %vm833_vm5, %v3715_v43 }
 0xf8f   :  { %v13185_v36 = vpop.eup %13184  ;;  %11475 = vmatprep.mubr.msk.f32.mxu0 %vm13479_vm2, %v17734_v32 }
 0xf90   :  { %v3716_v53 = vmul.f32 %v13185_v36, %v13167_v11  ;;  %v13455_v36 = vld [vmem:[#allocation2 + $0x20] sm:$0xff] }
 0xf92   :  { %11476 = vmatmul.mubr.msk.f32.gmra.mrb[210].mxu0 %vm833_vm5, %v3716_v53 }
 0xf93   :  { %v13187_v37 = vpop.eup %13186  ;;  %11478 = vmatprep.mubr.msk.f32.mxu0 %vm13479_vm2, %v17734_v32 }
 0xf94   :  { %v3717_v0 = vmul.f32 %v13187_v37, %v13169_v63 }
 0xf96   :  { %11479 = vmatmul.mubr.msk.f32.gmra.mrb[212].mxu0 %vm833_vm5, %v3717_v0 }
 0xf97   :  { %v13189_v60 = vpop.eup %13188  ;;  %11481 = vmatprep.mubr.msk.f32.mxu0 %vm13479_vm2, %v17734_v32 }
 0xf98   :  { %v3718_v13 = vmul.f32 %v13189_v60, %v13171_v23  ;;  %v13451_v23 = vld [vmem:[#allocation2] sm:$0xff] }
 0xf9a   :  { %11482 = vmatmul.mubr.msk.f32.gmra.mrb[214].mxu0 %vm833_vm5, %v3718_v13 }
 0xf9b   :  { %11521 = vmatprep.mubr.msk.f32.mxu0 %vm13479_vm2, %v17734_v32 }
0x104d   :  { %v3812_v35 = vpop.f32.mrb[198].mxu0 }
0x104e   :  { %v11459_v47 = vpop.f32.mrb[199].mxu0  ;;  %11487 = vmatmul.mubr.msk.f32.vlgmr.msra.gmra.mrb[198].mxu1 %vm650_vm3, %v3812_v35  ;;  %v13456_v35 = vld [vmem:[#allocation2 + $0x28] sm:$0xff] }
0x104f   :  { %11489 = vmatprep.mubr.msk.f32.mxu1 %vm13479_vm2, %v17734_v32 }
0x1051   :  { %v3817_v42 = vpop.f32.mrb[200].mxu0 }
0x1052   :  { %v11462_v29 = vpop.f32.mrb[201].mxu0  ;;  %11490 = vmatmul.mubr.msk.f32.gmra.mrb[200].mxu1 %vm650_vm3, %v3817_v42 }
0x1053   :  { %11492 = vmatprep.mubr.msk.f32.mxu1 %vm13479_vm2, %v17734_v32 }
0x1055   :  { %v3822_v59 = vpop.f32.mrb[202].mxu0 }
0x1056   :  { %v11465_v38 = vpop.f32.mrb[203].mxu0  ;;  %11493 = vmatmul.mubr.msk.f32.gmra.mrb[202].mxu1 %vm650_vm3, %v3822_v59 }
0x1057   :  { %11495 = vmatprep.mubr.msk.f32.mxu1 %vm13479_vm2, %v17734_v32 }
0x1059   :  { %v3827_v50 = vpop.f32.mrb[204].mxu0 }
0x105a   :  { %v11468_v41 = vpop.f32.mrb[205].mxu0  ;;  %11496 = vmatmul.mubr.msk.f32.gmra.mrb[204].mxu1 %vm650_vm3, %v3827_v50  ;;  %v13457_v50 = vld [vmem:[#allocation2 + $0x30] sm:$0xff] }
0x105b   :  { %11498 = vmatprep.mubr.msk.f32.mxu1 %vm13479_vm2, %v17734_v32 }
0x105d   :  { %v3832_v55 = vpop.f32.mrb[206].mxu0 }
0x105e   :  { %v11471_v61 = vpop.f32.mrb[207].mxu0  ;;  %11499 = vmatmul.mubr.msk.f32.gmra.mrb[206].mxu1 %vm650_vm3, %v3832_v55 }
0x105f   :  { %11501 = vmatprep.mubr.msk.f32.mxu1 %vm13479_vm2, %v17734_v32 }
0x1061   :  { %v3837_v27 = vpop.f32.mrb[208].mxu0 }
0x1062   :  { %v11474_v48 = vpop.f32.mrb[209].mxu0  ;;  %11502 = vmatmul.mubr.msk.f32.gmra.mrb[208].mxu1 %vm650_vm3, %v3837_v27 }
0x1063   :  { %11504 = vmatprep.mubr.msk.f32.mxu1 %vm13479_vm2, %v17734_v32 }
0x1065   :  { %v3842_v56 = vpop.f32.mrb[210].mxu0 }
0x1066   :  { %v11477_v58 = vpop.f32.mrb[211].mxu0  ;;  %11505 = vmatmul.mubr.msk.f32.gmra.mrb[210].mxu1 %vm650_vm3, %v3842_v56  ;;  %v13458_v56 = vld [vmem:[#allocation2 + $0x38] sm:$0xff] }
0x1067   :  { %11507 = vmatprep.mubr.msk.f32.mxu1 %vm13479_vm2, %v17734_v32 }
0x1069   :  { %v3847_v14 = vpop.f32.mrb[212].mxu0 }
0x106a   :  { %v11480_v20 = vpop.f32.mrb[213].mxu0  ;;  %11508 = vmatmul.mubr.msk.f32.gmra.mrb[212].mxu1 %vm650_vm3, %v3847_v14 }
0x106b   :  { %11510 = vmatprep.mubr.msk.f32.mxu1 %vm13479_vm2, %v17734_v32 }
0x106d   :  { %v3852_v45 = vpop.f32.mrb[214].mxu0 }
0x106e   :  { %v11483_v52 = vpop.f32.mrb[215].mxu0  ;;  %11511 = vmatmul.mubr.msk.f32.gmra.mrb[214].mxu1 %vm650_vm3, %v3852_v45 }
0x106f   :  { %11580 = vmatprep.mubr.msk.f32.mxu1 %vm13479_vm2, %v17734_v32 }
0x1121   :  { %v3951_v11 = vpop.f32.mrb[198].mxu1 }
0x1122   :  { %v3995_v1 = vadd.f32 %v3951_v11, %v15108_v16  ;;  %v11488_v63 = vpop.f32.mrb[199].mxu1  ;;  %v13459_v11 = vld [vmem:[#allocation2 + $0x40] sm:$0xff] }
0x1124   :  { %v4004_v30 = vadd.f32 %v13451_v23, %v3995_v1 }
0x1125   :  { %v3956_v3 = vpop.f32.mrb[200].mxu1 }
0x1126   :  { %v3996_v17 = vadd.f32 %v3956_v3, %v15111_v21  ;;  %v11491_v10 = vpop.f32.mrb[201].mxu1  ;;  %v15283_v12 = vadd.f32 %v15279_v4, %v4004_v30  ;;  %v4180_v30 = vld [vmem:[%s17727_s9] sm:$0xff] }
0x1128   :  { %v4005_v49 = vadd.f32 %v13452_v2, %v3996_v17  ;;  %v4033_v16 = vsel %vm57_vm1, %v15283_v12, 0.0 }
0x1129   :  { %4034 = vadd.xlane.f32.xlu0 %v4033_v16  ;;  %v3961_v18 = vpop.f32.mrb[202].mxu1 }
0x112a   :  { %v3997_v54 = vadd.f32 %v3961_v18, %v15114_v46  ;;  %v11494_v25 = vpop.f32.mrb[203].mxu1  ;;  %v15289_v5 = vadd.f32 %v15279_v4, %v4005_v49 }
0x112c   :  { %v4006_v51 = vadd.f32 %v13453_v19, %v3997_v54  ;;  %v4036_v21 = vsel %vm57_vm1, %v15289_v5, 0.0 }
0x112d   :  { %4037 = vadd.xlane.f32.xlu1 %v4036_v21  ;;  %v3966_v28 = vpop.f32.mrb[204].mxu1 }
0x112e   :  { %v3998_v7 = vadd.f32 %v3966_v28, %v15117_v22  ;;  %v11497_v15 = vpop.f32.mrb[205].mxu1  ;;  %v15295_v39 = vadd.f32 %v15279_v4, %v4006_v51 }
0x1130   :  { %v4007_v34 = vadd.f32 %v13454_v8, %v3998_v7  ;;  %v4039_v46 = vsel %vm57_vm1, %v15295_v39, 0.0 }
0x1131   :  { %4040 = vadd.xlane.f32.xlu0 %v4039_v46  ;;  %v3971_v31 = vpop.f32.mrb[206].mxu1 }
0x1132   :  { %v3999_v9 = vadd.f32 %v3971_v31, %v15120_v33  ;;  %v11500_v6 = vpop.f32.mrb[207].mxu1  ;;  %v15301_v43 = vadd.f32 %v15279_v4, %v4007_v34 }
0x1134   :  { %v4008_v53 = vadd.f32 %v13455_v36, %v3999_v9  ;;  %v4042_v22 = vsel %vm57_vm1, %v15301_v43, 0.0 }
0x1135   :  { %4043 = vadd.xlane.f32.xlu1 %v4042_v22  ;;  %v3976_v37 = vpop.f32.mrb[208].mxu1 }
0x1136   :  { %v4000_v0 = vadd.f32 %v3976_v37, %v15123_v40  ;;  %v11503_v60 = vpop.f32.mrb[209].mxu1  ;;  %v15307_v13 = vadd.f32 %v15279_v4, %v4008_v53 }
0x1138   :  { %v4009_v47 = vadd.f32 %v13456_v35, %v4000_v0  ;;  %v4045_v33 = vsel %vm57_vm1, %v15307_v13, 0.0 }
0x1139   :  { %4046 = vadd.xlane.f32.xlu0 %v4045_v33  ;;  %v3981_v42 = vpop.f32.mrb[210].mxu1 }
0x113a   :  { %v4001_v29 = vadd.f32 %v3981_v42, %v15126_v62  ;;  %v11506_v59 = vpop.f32.mrb[211].mxu1  ;;  %v15313_v38 = vadd.f32 %v15279_v4, %v4009_v47 }
0x113c   :  { %v4010_v41 = vadd.f32 %v13457_v50, %v4001_v29  ;;  %v4048_v40 = vsel %vm57_vm1, %v15313_v38, 0.0 }
0x113d   :  { %4049 = vadd.xlane.f32.xlu1 %v4048_v40  ;;  %v3986_v55 = vpop.f32.mrb[212].mxu1 }
0x113e   :  { %v4002_v61 = vadd.f32 %v3986_v55, %v15129_v44  ;;  %v11509_v27 = vpop.f32.mrb[213].mxu1  ;;  %v15319_v48 = vadd.f32 %v15279_v4, %v4010_v41 }
0x1140   :  { %v4011_v58 = vadd.f32 %v13458_v56, %v4002_v61  ;;  %v4051_v62 = vsel %vm57_vm1, %v15319_v48, 0.0 }
0x1141   :  { %4052 = vadd.xlane.f32.xlu0 %v4051_v62  ;;  %v3991_v14 = vpop.f32.mrb[214].mxu1 }
0x1142   :  { %v15324_v20 = vadd.f32 %v15279_v4, %v4011_v58  ;;  %v4003_v45 = vadd.f32 %v3991_v14, %v15132_v26  ;;  %v11512_v52 = vpop.f32.mrb[215].mxu1  ;;  %v4181_v26 = vld [vmem:[%s17727_s9 + $0x8] sm:$0xff] }
0x1143   :  { %v12782_v3 = vpack.c.bf16 %v4181_v26, %v4180_v30  ;;  %v4182_v52 = vld [vmem:[%s17727_s9 + $0x10] sm:$0xff]  ;;  %v4374_v30 = vld [vmem:[%s17728_s11 + $0x8] sm:$0xff] }
0x1144   :  { %v4012_v1 = vadd.f32 %v13459_v11, %v4003_v45  ;;  %v4054_v44 = vsel %vm57_vm1, %v15324_v20, 0.0  ;;  %v4183_v11 = vld [vmem:[%s17727_s9 + $0x18] sm:$0xff]  ;;  %v4375_v26 = vld [vmem:[%s17728_s11 + $0x10] sm:$0xff] }
0x1145   :  { %4055 = vadd.xlane.f32.xlu1 %v4054_v44  ;;  %12783 = vmatpush3.bf16.msra.mxu0 %v12782_v3 }
0x1146   :  { %v15330_v63 = vadd.f32 %v15279_v4, %v4012_v1  ;;  %12784 = vmatprep.subr.bf16.mxu0 %v13478_v24  ;;  %v12785_v1 = vpack.c.bf16 %v4183_v11, %v4182_v52 }
0x1148   :  { %v4057_v23 = vsel %vm57_vm1, %v15330_v63, 0.0 }
0x1149   :  { %4058 = vadd.xlane.f32.xlu0 %v4057_v23  ;;  %12786 = vmatpush3.bf16.msra.mxu0 %v12785_v1  ;;  %v4373_v23 = vld [vmem:[%s17728_s11] sm:$0xff] }
0x114a   :  { %12811 = vmatprep.subr.bf16.mxu0 %v13478_v24  ;;  %v12788_v3 = vpack.c.bf16 %v4374_v30, %v4373_v23 }
0x114c   :  { %12789 = vmatpush3.bf16.msra.mxu1 %v12788_v3 }
0x114d   :  { %12790 = vmatprep.subr.bf16.mxu1 %v13478_v24 }
0x11b6   :  { %v4035_v17 = vpop.xlane.xlu0 %4034 }
0x11b7   :  { %v4060_v10 = vmul.f32 0.03125, %v4035_v17  ;;  %v4376_v17 = vld [vmem:[%s17728_s11 + $0x18] sm:$0xff] }
0x11b9   :  { %v15342_v4 = vsub.f32 %v15283_v12, %v4060_v10  ;;  %v12791_v10 = vpack.c.bf16 %v4376_v17, %v4375_v26 }
0x11ba   :  { %v4038_v2 = vpop.xlane.xlu1 %4037 }
0x11bb   :  { %v4061_v49 = vmul.f32 0.03125, %v4038_v2  ;;  %v4078_v16 = vmul.f32 %v15342_v4, %v15342_v4  ;;  %v4377_v2 = vld [vmem:[%s17728_s11 + $0x20] sm:$0xff]  ;;  %12792 = vmatpush3.bf16.msra.mxu1 %v12791_v10 }
0x11bc   :  { %12793 = vmatprep.subr.bf16.mxu1 %v13478_v24 }
0x11bd   :  { %v15347_v18 = vsub.f32 %v15289_v5, %v4061_v49  ;;  %v4087_v54 = vsel %vm57_vm1, %v4078_v16, 0.0  ;;  %v4378_v49 = vld [vmem:[%s17728_s11 + $0x28] sm:$0xff] }
0x11be   :  { %v4041_v25 = vpop.xlane.xlu0 %4040  ;;  %4088 = vadd.xlane.f32.xlu1 %v4087_v54  ;;  %v12794_v16 = vpack.c.bf16 %v4378_v49, %v4377_v2 }
0x11bf   :  { %v4062_v19 = vmul.f32 0.03125, %v4041_v25  ;;  %v4079_v51 = vmul.f32 %v15347_v18, %v15347_v18 }
0x11c0   :  { %12795 = vmatpush3.bf16.msra.mxu1 %v12794_v16 }
0x11c1   :  { %v15353_v21 = vsub.f32 %v15295_v39, %v4062_v19  ;;  %v4090_v28 = vsel %vm57_vm1, %v4079_v51, 0.0  ;;  %12796 = vmatprep.subr.bf16.mxu1 %v13478_v24 }
0x11c2   :  { %v4044_v7 = vpop.xlane.xlu1 %4043  ;;  %4091 = vadd.xlane.f32.xlu0 %v4090_v28 }
0x11c3   :  { %v4063_v15 = vmul.f32 0.03125, %v4044_v7  ;;  %v4080_v8 = vmul.f32 %v15353_v21, %v15353_v21 }
0x11c5   :  { %v15359_v34 = vsub.f32 %v15301_v43, %v4063_v15  ;;  %v4093_v46 = vsel %vm57_vm1, %v4080_v8, 0.0 }
0x11c6   :  { %v4047_v31 = vpop.xlane.xlu0 %4046  ;;  %4094 = vadd.xlane.f32.xlu1 %v4093_v46 }
0x11c7   :  { %v4064_v9 = vmul.f32 0.03125, %v4047_v31  ;;  %v4081_v6 = vmul.f32 %v15359_v34, %v15359_v34 }
0x11c9   :  { %v15365_v36 = vsub.f32 %v15307_v13, %v4064_v9  ;;  %v4096_v53 = vsel %vm57_vm1, %v4081_v6, 0.0 }
0x11ca   :  { %v4050_v22 = vpop.xlane.xlu1 %4049  ;;  %4097 = vadd.xlane.f32.xlu0 %v4096_v53  ;;  %v15426_v53 = vld [vmem:[%s17722_s8 + $0x2] ss:$0 sm:$0xff] }
0x11cb   :  { %v4065_v37 = vmul.f32 0.03125, %v4050_v22  ;;  %v4082_v0 = vmul.f32 %v15365_v36, %v15365_v36 }
0x11cd   :  { %v15371_v60 = vsub.f32 %v15313_v38, %v4065_v37  ;;  %v4099_v35 = vsel %vm57_vm1, %v4082_v0, 0.0 }
0x11ce   :  { %v4053_v47 = vpop.xlane.xlu0 %4052  ;;  %4100 = vadd.xlane.f32.xlu1 %v4099_v35 }
0x11cf   :  { %v4066_v33 = vmul.f32 0.03125, %v4053_v47  ;;  %v4083_v42 = vmul.f32 %v15371_v60, %v15371_v60  ;;  %v15432_v47 = vld [vmem:[%s17722_s8 + $0x3] ss:$0 sm:$0xff] }
0x11d1   :  { %v15377_v29 = vsub.f32 %v15319_v48, %v4066_v33  ;;  %v4102_v59 = vsel %vm57_vm1, %v4083_v42, 0.0 }
0x11d2   :  { %v4056_v50 = vpop.xlane.xlu1 %4055  ;;  %4103 = vadd.xlane.f32.xlu0 %v4102_v59 }
0x11d3   :  { %v4067_v41 = vmul.f32 0.03125, %v4056_v50  ;;  %v4084_v40 = vmul.f32 %v15377_v29, %v15377_v29 }
0x11d5   :  { %v15383_v55 = vsub.f32 %v15324_v20, %v4067_v41  ;;  %v4105_v61 = vsel %vm57_vm1, %v4084_v40, 0.0 }
0x11d6   :  { %4106 = vadd.xlane.f32.xlu1 %v4105_v61  ;;  %v4059_v27 = vpop.xlane.xlu0 %4058 }
0x11d7   :  { %v4068_v56 = vmul.f32 0.03125, %v4059_v27  ;;  %v4085_v58 = vmul.f32 %v15383_v55, %v15383_v55 }
0x11d9   :  { %v15389_v62 = vsub.f32 %v15330_v63, %v4068_v56  ;;  %v4108_v14 = vsel %vm57_vm1, %v4085_v58, 0.0 }
0x11da   :  { %4109 = vadd.xlane.f32.xlu0 %v4108_v14 }
0x11db   :  { %v4086_v45 = vmul.f32 %v15389_v62, %v15389_v62 }
0x11dd   :  { %v4111_v44 = vsel %vm57_vm1, %v4086_v45, 0.0 }
0x11de   :  { %4112 = vadd.xlane.f32.xlu1 %v4111_v44 }
0x124b   :  { %v4089_v54 = vpop.xlane.xlu1 %4088 }
0x124c   :  { %v4114_v25 = vmul.f32 0.03125, %v4089_v54 }
0x124e   :  { %v4123_v19 = vadd.f32 1e-05, %v4114_v25 }
0x124f   :  { %v4092_v51 = vpop.xlane.xlu0 %4091 }
0x1250   :  { %13190 = vrsqrt.f32 %v4123_v19  ;;  %v4115_v28 = vmul.f32 0.03125, %v4092_v51 }
0x1252   :  { %v4124_v7 = vadd.f32 1e-05, %v4115_v28 }
0x1253   :  { %v4095_v15 = vpop.xlane.xlu1 %4094 }
0x1254   :  { %13192 = vrsqrt.f32 %v4124_v7  ;;  %v4116_v8 = vmul.f32 0.03125, %v4095_v15 }
0x1256   :  { %v4125_v46 = vadd.f32 1e-05, %v4116_v8 }
0x1257   :  { %v4098_v31 = vpop.xlane.xlu0 %4097 }
0x1258   :  { %13194 = vrsqrt.f32 %v4125_v46  ;;  %v4117_v9 = vmul.f32 0.03125, %v4098_v31 }
0x125a   :  { %v13191_v6 = vpop.eup %13190  ;;  %v4126_v22 = vadd.f32 1e-05, %v4117_v9 }
0x125b   :  { %v4141_v37 = vmul.f32 %v13191_v6, %v15342_v4  ;;  %v4101_v0 = vpop.xlane.xlu1 %4100 }
0x125c   :  { %13196 = vrsqrt.f32 %v4126_v22  ;;  %v4118_v35 = vmul.f32 0.03125, %v4101_v0  ;;  %v4379_v0 = vld [vmem:[%s17728_s11 + $0x30] sm:$0xff] }
0x125d   :  { %v4156_v33 = vmul.f32 %v15426_v53, %v4141_v37 }
0x125e   :  { %v13193_v42 = vpop.eup %13192  ;;  %v4127_v59 = vadd.f32 1e-05, %v4118_v35 }
0x125f   :  { %v4104_v50 = vpop.xlane.xlu0 %4103  ;;  %v4171_v41 = vadd.f32 %v15432_v47, %v4156_v33  ;;  %v4142_v40 = vmul.f32 %v13193_v42, %v15347_v18  ;;  %v4383_v42 = vld [vmem:[%s17728_s11 + $0x50] sm:$0xff] }
0x1260   :  { %13198 = vrsqrt.f32 %v4127_v59  ;;  %v4119_v61 = vmul.f32 0.03125, %v4104_v50  ;;  %v4384_v59 = vld [vmem:[%s17728_s11 + $0x58] sm:$0xff] }
0x1261   :  { %11522 = vmatmul.mubr.msk.f32.vlgmr.msra.gmra.mrb[216].mxu0 %vm57_vm1, %v4171_v41  ;;  %v4157_v4 = vmul.f32 %v15426_v53, %v4142_v40  ;;  %v12803_v50 = vpack.c.bf16 %v4384_v59, %v4383_v42  ;;  %v4385_v41 = vld [vmem:[%s17728_s11 + $0x60] sm:$0xff]  ;;  %v4386_v40 = vld [vmem:[%s17728_s11 + $0x68] sm:$0xff] }
0x1262   :  { %v13195_v27 = vpop.eup %13194  ;;  %v4128_v56 = vadd.f32 1e-05, %v4119_v61  ;;  %11524 = vmatprep.mubr.msk.f32.mxu0 %vm13479_vm2, %v17734_v32  ;;  %v12806_v61 = vpack.c.bf16 %v4386_v40, %v4385_v41 }
0x1263   :  { %v4107_v58 = vpop.xlane.xlu1 %4106  ;;  %v4172_v14 = vadd.f32 %v15432_v47, %v4157_v4  ;;  %v4143_v45 = vmul.f32 %v13195_v27, %v15353_v21  ;;  %v4387_v4 = vld [vmem:[%s17728_s11 + $0x70] sm:$0xff]  ;;  %v4388_v27 = vld [vmem:[%s17728_s11 + $0x78] sm:$0xff] }
0x1264   :  { %13200 = vrsqrt.f32 %v4128_v56  ;;  %v4120_v52 = vmul.f32 0.03125, %v4107_v58  ;;  %v12809_v56 = vpack.c.bf16 %v4388_v27, %v4387_v4  ;;  %v15525_v58 = vld [vmem:[%s17729_s10] ss:$0 sm:$0xff] }
0x1265   :  { %11525 = vmatmul.mubr.msk.f32.gmra.mrb[218].mxu0 %vm57_vm1, %v4172_v14  ;;  %v4158_v18 = vmul.f32 %v15426_v53, %v4143_v45 }
0x1266   :  { %v13197_v11 = vpop.eup %13196  ;;  %v4129_v1 = vadd.f32 1e-05, %v4120_v52  ;;  %11527 = vmatprep.mubr.msk.f32.mxu0 %vm13479_vm2, %v17734_v32 }
0x1267   :  { %v4110_v44 = vpop.xlane.xlu0 %4109  ;;  %v4173_v23 = vadd.f32 %v15432_v47, %v4158_v18  ;;  %v4144_v30 = vmul.f32 %v13197_v11, %v15359_v34 }
0x1268   :  { %13202 = vrsqrt.f32 %v4129_v1  ;;  %v4121_v26 = vmul.f32 0.03125, %v4110_v44 }
0x1269   :  { %11528 = vmatmul.mubr.msk.f32.gmra.mrb[220].mxu0 %vm57_vm1, %v4173_v23  ;;  %v4159_v21 = vmul.f32 %v15426_v53, %v4144_v30 }
0x126a   :  { %v13199_v3 = vpop.eup %13198  ;;  %v4130_v17 = vadd.f32 1e-05, %v4121_v26  ;;  %11530 = vmatprep.mubr.msk.f32.mxu0 %vm13479_vm2, %v17734_v32 }
0x126b   :  { %v4113_v10 = vpop.xlane.xlu1 %4112  ;;  %v4174_v2 = vadd.f32 %v15432_v47, %v4159_v21  ;;  %v4145_v49 = vmul.f32 %v13199_v3, %v15365_v36 }
0x126c   :  { %13204 = vrsqrt.f32 %v4130_v17  ;;  %v4122_v16 = vmul.f32 0.03125, %v4113_v10 }
0x126d   :  { %11531 = vmatmul.mubr.msk.f32.gmra.mrb[222].mxu0 %vm57_vm1, %v4174_v2  ;;  %v4160_v34 = vmul.f32 %v15426_v53, %v4145_v49 }
0x126e   :  { %v13201_v54 = vpop.eup %13200  ;;  %v4131_v25 = vadd.f32 1e-05, %v4122_v16  ;;  %11533 = vmatprep.mubr.msk.f32.mxu0 %vm13479_vm2, %v17734_v32 }
0x126f   :  { %v4175_v19 = vadd.f32 %v15432_v47, %v4160_v34  ;;  %v4146_v51 = vmul.f32 %v13201_v54, %v15371_v60 }
0x1270   :  { %13206 = vrsqrt.f32 %v4131_v25 }
0x1271   :  { %11534 = vmatmul.mubr.msk.f32.gmra.mrb[224].mxu0 %vm57_vm1, %v4175_v19  ;;  %v4161_v36 = vmul.f32 %v15426_v53, %v4146_v51 }
0x1272   :  { %v13203_v28 = vpop.eup %13202  ;;  %11536 = vmatprep.mubr.msk.f32.mxu0 %vm13479_vm2, %v17734_v32 }
0x1273   :  { %v4176_v7 = vadd.f32 %v15432_v47, %v4161_v36  ;;  %v4147_v15 = vmul.f32 %v13203_v28, %v15377_v29 }
0x1275   :  { %11537 = vmatmul.mubr.msk.f32.gmra.mrb[226].mxu0 %vm57_vm1, %v4176_v7  ;;  %v4162_v8 = vmul.f32 %v15426_v53, %v4147_v15 }
0x1276   :  { %v13205_v46 = vpop.eup %13204  ;;  %11539 = vmatprep.mubr.msk.f32.mxu0 %vm13479_vm2, %v17734_v32 }
0x1277   :  { %v4177_v60 = vadd.f32 %v15432_v47, %v4162_v8  ;;  %v4148_v31 = vmul.f32 %v13205_v46, %v15383_v55 }
0x1279   :  { %11540 = vmatmul.mubr.msk.f32.gmra.mrb[228].mxu0 %vm57_vm1, %v4177_v60  ;;  %v4163_v9 = vmul.f32 %v15426_v53, %v4148_v31 }
0x127a   :  { %v13207_v6 = vpop.eup %13206  ;;  %11542 = vmatprep.mubr.msk.f32.mxu0 %vm13479_vm2, %v17734_v32 }
0x127b   :  { %v4178_v29 = vadd.f32 %v15432_v47, %v4163_v9  ;;  %v4149_v22 = vmul.f32 %v13207_v6, %v15389_v62  ;;  %v4380_v62 = vld [vmem:[%s17728_s11 + $0x38] sm:$0xff] }
0x127c   :  { %v12797_v35 = vpack.c.bf16 %v4380_v62, %v4379_v0 }
0x127d   :  { %11543 = vmatmul.mubr.msk.f32.gmra.mrb[230].mxu0 %vm57_vm1, %v4178_v29  ;;  %v4164_v37 = vmul.f32 %v15426_v53, %v4149_v22  ;;  %v4381_v53 = vld [vmem:[%s17728_s11 + $0x40] sm:$0xff] }
0x127e   :  { %11545 = vmatprep.mubr.msk.f32.mxu0 %vm13479_vm2, %v17734_v32  ;;  %12798 = vmatpush3.bf16.msra.mxu1 %v12797_v35 }
0x127f   :  { %v4179_v55 = vadd.f32 %v15432_v47, %v4164_v37  ;;  %12799 = vmatprep.subr.bf16.mxu1 %v13478_v24  ;;  %v4382_v47 = vld [vmem:[%s17728_s11 + $0x48] sm:$0xff] }
0x1280   :  { %v12800_v33 = vpack.c.bf16 %v4382_v47, %v4381_v53 }
0x1281   :  { %11546 = vmatmul.mubr.msk.f32.gmra.mrb[232].mxu0 %vm57_vm1, %v4179_v55 }
0x1282   :  { %11615 = vmatprep.mubr.msk.f32.mxu0 %vm13479_vm2, %v17734_v32  ;;  %12801 = vmatpush3.bf16.msra.mxu1 %v12800_v33 }
0x1283   :  { %12802 = vmatprep.subr.bf16.mxu1 %v13478_v24 }
0x1286   :  { %12804 = vmatpush3.bf16.msra.mxu1 %v12803_v50 }
0x1287   :  { %12805 = vmatprep.subr.bf16.mxu1 %v13478_v24 }
0x128a   :  { %12807 = vmatpush3.bf16.msra.mxu1 %v12806_v61 }
0x128b   :  { %12808 = vmatprep.subr.bf16.mxu1 %v13478_v24 }
0x128e   :  { %12810 = vmatpush3.bf16.msra.mxu1 %v12809_v56 }
0x128f   :  { %12817 = vmatprep.subr.bf16.mxu1 %v13478_v24 }
0x1334   :  { %v4284_v14 = vpop.f32.mrb[216].mxu0 }
0x1335   :  { %v4285_v45 = vadd.f32 %v15525_v58, %v4284_v14  ;;  %v11523_v52 = vpop.f32.mrb[217].mxu0 }
0x1337   :  { %v4337_v18 = vmul.f32 0.70710677, %v4285_v45  ;;  %v4328_v34 = vmul.f32 0.5, %v4285_v45 }
0x1338   :  { %v4289_v11 = vpop.f32.mrb[218].mxu0 }
0x1339   :  { %13208 = verf.f32 %v4337_v18  ;;  %v4290_v1 = vadd.f32 %v15525_v58, %v4289_v11  ;;  %v11526_v44 = vpop.f32.mrb[219].mxu0 }
0x133b   :  { %v4338_v23 = vmul.f32 0.70710677, %v4290_v1  ;;  %v4329_v15 = vmul.f32 0.5, %v4290_v1 }
0x133c   :  { %v4294_v30 = vpop.f32.mrb[220].mxu0 }
0x133d   :  { %13210 = verf.f32 %v4338_v23  ;;  %v4295_v26 = vadd.f32 %v15525_v58, %v4294_v30  ;;  %v11529_v21 = vpop.f32.mrb[221].mxu0 }
0x133f   :  { %v4339_v3 = vmul.f32 0.70710677, %v4295_v26  ;;  %v4330_v22 = vmul.f32 0.5, %v4295_v26 }
0x1340   :  { %v4299_v17 = vpop.f32.mrb[222].mxu0 }
0x1341   :  { %13212 = verf.f32 %v4339_v3  ;;  %v4300_v10 = vadd.f32 %v15525_v58, %v4299_v17  ;;  %v11532_v2 = vpop.f32.mrb[223].mxu0 }
0x1343   :  { %v13209_v49 = vpop.eup %13208  ;;  %v4340_v16 = vmul.f32 0.70710677, %v4300_v10  ;;  %v4331_v33 = vmul.f32 0.5, %v4300_v10 }
0x1344   :  { %v4355_v54 = vadd.f32 1.0, %v13209_v49  ;;  %v4304_v25 = vpop.f32.mrb[224].mxu0 }
0x1345   :  { %13214 = verf.f32 %v4340_v16  ;;  %v4305_v19 = vadd.f32 %v15525_v58, %v4304_v25  ;;  %v11535_v51 = vpop.f32.mrb[225].mxu0 }
0x1346   :  { %v4364_v36 = vmul.f32 %v4355_v54, %v4328_v34 }
0x1347   :  { %v13211_v28 = vpop.eup %13210  ;;  %v4341_v7 = vmul.f32 0.70710677, %v4305_v19  ;;  %v4332_v27 = vmul.f32 0.5, %v4305_v19  ;;  %v9486_v19 = vld [vmem:[%s17730_s12] ss:$0 sm:$0xff] }
0x1348   :  { %v4356_v8 = vadd.f32 1.0, %v13211_v28  ;;  %v4309_v46 = vpop.f32.mrb[226].mxu0  ;;  %11581 = vmatmul.mubr.f32.vlgmr.msra.gmra.mrb[216].mxu1 %v4364_v36 }
0x1349   :  { %13216 = verf.f32 %v4341_v7  ;;  %v4310_v60 = vadd.f32 %v15525_v58, %v4309_v46  ;;  %v11538_v31 = vpop.f32.mrb[227].mxu0  ;;  %11583 = vmatprep.mubr.msk.f32.mxu1 %vm13479_vm2, %v17734_v32 }
0x134a   :  { %v4365_v9 = vmul.f32 %v4356_v8, %v4329_v15 }
0x134b   :  { %v13213_v6 = vpop.eup %13212  ;;  %v4342_v29 = vmul.f32 0.70710677, %v4310_v60  ;;  %v4333_v44 = vmul.f32 0.5, %v4310_v60 }
0x134c   :  { %v4357_v37 = vadd.f32 1.0, %v13213_v6  ;;  %v4314_v55 = vpop.f32.mrb[228].mxu0  ;;  %11584 = vmatmul.mubr.f32.gmra.mrb[218].mxu1 %v4365_v9 }
0x134d   :  { %13218 = verf.f32 %v4342_v29  ;;  %v4315_v0 = vadd.f32 %v15525_v58, %v4314_v55  ;;  %v11541_v62 = vpop.f32.mrb[229].mxu0  ;;  %11586 = vmatprep.mubr.msk.f32.mxu1 %vm13479_vm2, %v17734_v32 }
0x134e   :  { %v4366_v35 = vmul.f32 %v4357_v37, %v4330_v22 }
0x134f   :  { %v13215_v53 = vpop.eup %13214  ;;  %v4343_v47 = vmul.f32 0.70710677, %v4315_v0  ;;  %v4334_v21 = vmul.f32 0.5, %v4315_v0 }
0x1350   :  { %v4358_v42 = vadd.f32 1.0, %v13215_v53  ;;  %v4319_v59 = vpop.f32.mrb[230].mxu0  ;;  %11587 = vmatmul.mubr.f32.gmra.mrb[220].mxu1 %v4366_v35 }
0x1351   :  { %13220 = verf.f32 %v4343_v47  ;;  %v4320_v50 = vadd.f32 %v15525_v58, %v4319_v59  ;;  %v11544_v41 = vpop.f32.mrb[231].mxu0  ;;  %11589 = vmatprep.mubr.msk.f32.mxu1 %vm13479_vm2, %v17734_v32 }
0x1352   :  { %v4367_v40 = vmul.f32 %v4358_v42, %v4331_v33 }
0x1353   :  { %v13217_v61 = vpop.eup %13216  ;;  %v4344_v4 = vmul.f32 0.70710677, %v4320_v50  ;;  %v4335_v10 = vmul.f32 0.5, %v4320_v50 }
0x1354   :  { %v4359_v56 = vadd.f32 1.0, %v13217_v61  ;;  %v4324_v14 = vpop.f32.mrb[232].mxu0  ;;  %11590 = vmatmul.mubr.f32.gmra.mrb[222].mxu1 %v4367_v40 }
0x1355   :  { %13222 = verf.f32 %v4344_v4  ;;  %v4325_v45 = vadd.f32 %v15525_v58, %v4324_v14  ;;  %v11547_v52 = vpop.f32.mrb[233].mxu0  ;;  %11592 = vmatprep.mubr.msk.f32.mxu1 %vm13479_vm2, %v17734_v32 }
0x1356   :  { %v4368_v18 = vmul.f32 %v4359_v56, %v4332_v27 }
0x1357   :  { %v13219_v11 = vpop.eup %13218  ;;  %v4345_v1 = vmul.f32 0.70710677, %v4325_v45  ;;  %v4336_v34 = vmul.f32 0.5, %v4325_v45 }
0x1358   :  { %v4360_v23 = vadd.f32 1.0, %v13219_v11  ;;  %11593 = vmatmul.mubr.f32.gmra.mrb[224].mxu1 %v4368_v18 }
0x1359   :  { %13224 = verf.f32 %v4345_v1  ;;  %11595 = vmatprep.mubr.msk.f32.mxu1 %vm13479_vm2, %v17734_v32 }
0x135a   :  { %v4369_v30 = vmul.f32 %v4360_v23, %v4333_v44 }
0x135b   :  { %v13221_v26 = vpop.eup %13220 }
0x135c   :  { %v4361_v3 = vadd.f32 1.0, %v13221_v26  ;;  %11596 = vmatmul.mubr.f32.gmra.mrb[226].mxu1 %v4369_v30  ;;  %v9506_v30 = vld [vmem:[%s17721_s4 + $0x200] sm:$0xff] }
0x135d   :  { %11598 = vmatprep.mubr.msk.f32.mxu1 %vm13479_vm2, %v17734_v32 }
0x135e   :  { %v4370_v58 = vmul.f32 %v4361_v3, %v4334_v21 }
0x135f   :  { %v13223_v17 = vpop.eup %13222 }
0x1360   :  { %v4362_v2 = vadd.f32 1.0, %v13223_v17  ;;  %11599 = vmatmul.mubr.f32.gmra.mrb[228].mxu1 %v4370_v58 }
0x1361   :  { %11601 = vmatprep.mubr.msk.f32.mxu1 %vm13479_vm2, %v17734_v32 }
0x1362   :  { %v4371_v49 = vmul.f32 %v4362_v2, %v4335_v10 }
0x1363   :  { %v13225_v16 = vpop.eup %13224 }
0x1364   :  { %v4363_v54 = vadd.f32 1.0, %v13225_v16  ;;  %11602 = vmatmul.mubr.f32.gmra.mrb[230].mxu1 %v4371_v49 }
0x1365   :  { %11604 = vmatprep.mubr.msk.f32.mxu1 %vm13479_vm2, %v17734_v32 }
0x1366   :  { %v4372_v25 = vmul.f32 %v4363_v54, %v4336_v34 }
0x1368   :  { %11605 = vmatmul.mubr.f32.gmra.mrb[232].mxu1 %v4372_v25 }
0x1369   :  { %11650 = vmatprep.mubr.msk.f32.mxu1 %vm13479_vm2, %v17734_v32 }
0x141b   :  { %v4462_v51 = vpop.f32.mrb[216].mxu1 }
0x141c   :  { %v4463_v36 = vadd.f32 %v9486_v19, %v4462_v51  ;;  %v11582_v28 = vpop.f32.mrb[217].mxu1 }
0x141e   :  { %v15558_v7 = vadd.f32 %v4463_v36, %v15283_v12 }
0x141f   :  { %v4467_v15 = vpop.f32.mrb[218].mxu1 }
0x1420   :  { %v4468_v8 = vadd.f32 %v9486_v19, %v4467_v15  ;;  %v11585_v46 = vpop.f32.mrb[219].mxu1  ;;  %v4519_v60 = vsel %vm57_vm1, %v15558_v7, 0.0 }
0x1421   :  { %4520 = vadd.xlane.f32.xlu0 %v4519_v60 }
0x1422   :  { %v15563_v31 = vadd.f32 %v4468_v8, %v15289_v5 }
0x1423   :  { %v4472_v9 = vpop.f32.mrb[220].mxu1 }
0x1424   :  { %v4473_v6 = vadd.f32 %v9486_v19, %v4472_v9  ;;  %v11588_v29 = vpop.f32.mrb[221].mxu1  ;;  %v4522_v22 = vsel %vm57_vm1, %v15563_v31, 0.0 }
0x1425   :  { %4523 = vadd.xlane.f32.xlu1 %v4522_v22 }
0x1426   :  { %v15568_v12 = vadd.f32 %v4473_v6, %v15295_v39 }
0x1427   :  { %v4477_v37 = vpop.f32.mrb[222].mxu1 }
0x1428   :  { %v4478_v55 = vadd.f32 %v9486_v19, %v4477_v37  ;;  %v11591_v0 = vpop.f32.mrb[223].mxu1  ;;  %v4525_v62 = vsel %vm57_vm1, %v15568_v12, 0.0 }
0x1429   :  { %4526 = vadd.xlane.f32.xlu0 %v4525_v62 }
0x142a   :  { %v15573_v5 = vadd.f32 %v4478_v55, %v15301_v43 }
0x142b   :  { %v4482_v35 = vpop.f32.mrb[224].mxu1 }
0x142c   :  { %v4483_v53 = vadd.f32 %v9486_v19, %v4482_v35  ;;  %v11594_v47 = vpop.f32.mrb[225].mxu1  ;;  %v4528_v33 = vsel %vm57_vm1, %v15573_v5, 0.0 }
0x142d   :  { %4529 = vadd.xlane.f32.xlu1 %v4528_v33 }
0x142e   :  { %v15578_v39 = vadd.f32 %v4483_v53, %v15307_v13 }
0x142f   :  { %v4487_v42 = vpop.f32.mrb[226].mxu1 }
0x1430   :  { %v4488_v59 = vadd.f32 %v9486_v19, %v4487_v42  ;;  %v11597_v50 = vpop.f32.mrb[227].mxu1  ;;  %v4531_v41 = vsel %vm57_vm1, %v15578_v39, 0.0 }
0x1431   :  { %4532 = vadd.xlane.f32.xlu0 %v4531_v41 }
0x1432   :  { %v15583_v43 = vadd.f32 %v4488_v59, %v15313_v38 }
0x1433   :  { %v4492_v40 = vpop.f32.mrb[228].mxu1 }
0x1434   :  { %v4493_v61 = vadd.f32 %v9486_v19, %v4492_v40  ;;  %v11600_v4 = vpop.f32.mrb[229].mxu1  ;;  %v4534_v27 = vsel %vm57_vm1, %v15583_v43, 0.0 }
0x1435   :  { %4535 = vadd.xlane.f32.xlu1 %v4534_v27 }
0x1436   :  { %v15588_v13 = vadd.f32 %v4493_v61, %v15319_v48 }
0x1437   :  { %v4497_v56 = vpop.f32.mrb[230].mxu1 }
0x1438   :  { %v4498_v14 = vadd.f32 %v9486_v19, %v4497_v56  ;;  %v11603_v45 = vpop.f32.mrb[231].mxu1  ;;  %v4537_v52 = vsel %vm57_vm1, %v15588_v13, 0.0 }
0x1439   :  { %4538 = vadd.xlane.f32.xlu0 %v4537_v52  ;;  %v9492_v45 = vld [vmem:[%s17721_s4 + $0x188] sm:$0xff] }
0x143a   :  { %v15593_v38 = vadd.f32 %v4498_v14, %v15324_v20  ;;  %v9507_v20 = vld [vmem:[%s17721_s4 + $0x208] sm:$0xff]  ;;  %v9491_v14 = vld [vmem:[%s17721_s4 + $0x180] sm:$0xff] }
0x143b   :  { %v4502_v18 = vpop.f32.mrb[232].mxu1  ;;  %v12818_v26 = vpack.c.bf16 %v9507_v20, %v9506_v30  ;;  %v12812_v52 = vpack.c.bf16 %v9492_v45, %v9491_v14  ;;  %v9493_v30 = vld [vmem:[%s17721_s4 + $0x190] sm:$0xff] }
0x143c   :  { %v4503_v11 = vadd.f32 %v9486_v19, %v4502_v18  ;;  %v11606_v1 = vpop.f32.mrb[233].mxu1  ;;  %v4540_v44 = vsel %vm57_vm1, %v15593_v38, 0.0 }
0x143d   :  { %4541 = vadd.xlane.f32.xlu1 %v4540_v44  ;;  %12819 = vmatpush3.bf16.msra.mxu1 %v12818_v26  ;;  %v9508_v44 = vld [vmem:[%s17721_s4 + $0x210] sm:$0xff]  ;;  %v9494_v26 = vld [vmem:[%s17721_s4 + $0x198] sm:$0xff] }
0x143e   :  { %v15598_v48 = vadd.f32 %v4503_v11, %v15330_v63  ;;  %12820 = vmatprep.subr.bf16.mxu1 %v13478_v24  ;;  %12813 = vmatpush3.bf16.msra.mxu0 %v12812_v52 }
0x143f   :  { %12814 = vmatprep.subr.bf16.mxu0 %v13478_v24 }
0x1440   :  { %17739 = vst [vmem:[#allocation3_spill] sm:$0xff] %v15598_v48  ;;  %v4543_v23 = vsel %vm57_vm1, %v15598_v48, 0.0 }
0x1441   :  { %4544 = vadd.xlane.f32.xlu0 %v4543_v23  ;;  %v9509_v23 = vld [vmem:[%s17721_s4 + $0x218] sm:$0xff] }
0x1442   :  { %v12821_v20 = vpack.c.bf16 %v9509_v23, %v9508_v44 }
0x1444   :  { %12822 = vmatpush3.bf16.msra.mxu1 %v12821_v20 }
0x1445   :  { %12829 = vmatprep.subr.bf16.mxu1 %v13478_v24 }
0x14ae   :  { %v4521_v21 = vpop.xlane.xlu0 %4520 }
0x14af   :  { %v4546_v3 = vmul.f32 0.03125, %v4521_v21 }
0x14b1   :  { %v15610_v63 = vsub.f32 %v15558_v7, %v4546_v3  ;;  %v12815_v3 = vpack.c.bf16 %v9494_v26, %v9493_v30 }
0x14b2   :  { %v4524_v58 = vpop.xlane.xlu1 %4523 }
0x14b3   :  { %v4547_v17 = vmul.f32 0.03125, %v4524_v58  ;;  %v4564_v10 = vmul.f32 %v15610_v63, %v15610_v63  ;;  %12816 = vmatpush3.bf16.msra.mxu0 %v12815_v3 }
0x14b4   :  { %12823 = vmatprep.subr.bf16.mxu0 %v13478_v24 }
0x14b5   :  { %v15615_v2 = vsub.f32 %v15563_v31, %v4547_v17  ;;  %v4573_v49 = vsel %vm57_vm1, %v4564_v10, 0.0 }
0x14b6   :  { %v4527_v16 = vpop.xlane.xlu0 %4526  ;;  %4574 = vadd.xlane.f32.xlu1 %v4573_v49 }
0x14b7   :  { %v4548_v34 = vmul.f32 0.03125, %v4527_v16  ;;  %v4565_v54 = vmul.f32 %v15615_v2, %v15615_v2 }
0x14b9   :  { %v15621_v25 = vsub.f32 %v15568_v12, %v4548_v34  ;;  %v4576_v19 = vsel %vm57_vm1, %v4565_v54, 0.0 }
0x14ba   :  { %v4530_v51 = vpop.xlane.xlu1 %4529  ;;  %4577 = vadd.xlane.f32.xlu0 %v4576_v19 }
0x14bb   :  { %v4549_v36 = vmul.f32 0.03125, %v4530_v51  ;;  %v4566_v28 = vmul.f32 %v15621_v25, %v15621_v25 }
0x14bd   :  { %v15627_v15 = vsub.f32 %v15573_v5, %v4549_v36  ;;  %v4579_v8 = vsel %vm57_vm1, %v4566_v28, 0.0 }
0x14be   :  { %v4533_v46 = vpop.xlane.xlu0 %4532  ;;  %4580 = vadd.xlane.f32.xlu1 %v4579_v8 }
0x14bf   :  { %v4550_v60 = vmul.f32 0.03125, %v4533_v46  ;;  %v4567_v9 = vmul.f32 %v15627_v15, %v15627_v15  ;;  %v15687_v46 = vld [vmem:[%s17722_s8 + $0x4] ss:$0 sm:$0xff] }
0x14c1   :  { %v15633_v6 = vsub.f32 %v15578_v39, %v4550_v60  ;;  %v4582_v29 = vsel %vm57_vm1, %v4567_v9, 0.0 }
0x14c2   :  { %v4536_v22 = vpop.xlane.xlu1 %4535  ;;  %4583 = vadd.xlane.f32.xlu0 %v4582_v29 }
0x14c3   :  { %v4551_v37 = vmul.f32 0.03125, %v4536_v22  ;;  %v4568_v55 = vmul.f32 %v15633_v6, %v15633_v6  ;;  %v15693_v22 = vld [vmem:[%s17722_s8 + $0x5] ss:$0 sm:$0xff] }
0x14c5   :  { %v15639_v0 = vsub.f32 %v15583_v43, %v4551_v37  ;;  %v4585_v62 = vsel %vm57_vm1, %v4568_v55, 0.0  ;;  %v9521_v55 = vld [vmem:[%s17721_s4 + $0x280] sm:$0xff] }
0x14c6   :  { %v4539_v35 = vpop.xlane.xlu0 %4538  ;;  %4586 = vadd.xlane.f32.xlu1 %v4585_v62  ;;  %v9522_v62 = vld [vmem:[%s17721_s4 + $0x288] sm:$0xff] }
0x14c7   :  { %v4552_v53 = vmul.f32 0.03125, %v4539_v35  ;;  %v4569_v47 = vmul.f32 %v15639_v0, %v15639_v0 }
0x14c9   :  { %v15645_v33 = vsub.f32 %v15588_v13, %v4552_v53  ;;  %v4588_v42 = vsel %vm57_vm1, %v4569_v47, 0.0 }
0x14ca   :  { %v4542_v59 = vpop.xlane.xlu1 %4541  ;;  %4589 = vadd.xlane.f32.xlu0 %v4588_v42 }
0x14cb   :  { %v4553_v50 = vmul.f32 0.03125, %v4542_v59  ;;  %v4570_v41 = vmul.f32 %v15645_v33, %v15645_v33 }
0x14cd   :  { %v15651_v40 = vsub.f32 %v15593_v38, %v4553_v50  ;;  %v4591_v61 = vsel %vm57_vm1, %v4570_v41, 0.0  ;;  %v12824_v50 = vpack.c.bf16 %v9522_v62, %v9521_v55 }
0x14ce   :  { %4592 = vadd.xlane.f32.xlu1 %v4591_v61  ;;  %v4545_v4 = vpop.xlane.xlu0 %4544  ;;  %v9523_v61 = vld [vmem:[%s17721_s4 + $0x290] sm:$0xff] }
0x14cf   :  { %v4554_v27 = vmul.f32 0.03125, %v4545_v4  ;;  %v4571_v56 = vmul.f32 %v15651_v40, %v15651_v40  ;;  %v9524_v4 = vld [vmem:[%s17721_s4 + $0x298] sm:$0xff] }
0x14d1   :  { %v15663_v18 = vsub.f32 %v15598_v48, %v4554_v27  ;;  %v4594_v11 = vsel %vm57_vm1, %v4571_v56, 0.0 }
0x14d2   :  { %4595 = vadd.xlane.f32.xlu0 %v4594_v11  ;;  %v12827_v11 = vpack.c.bf16 %v9524_v4, %v9523_v61 }
0x14d3   :  { %v4572_v1 = vmul.f32 %v15663_v18, %v15663_v18 }
0x14d5   :  { %v4597_v21 = vsel %vm57_vm1, %v4572_v1, 0.0 }
0x14d6   :  { %4598 = vadd.xlane.f32.xlu1 %v4597_v21 }
0x1543   :  { %v4575_v58 = vpop.xlane.xlu1 %4574 }
0x1544   :  { %v4600_v17 = vmul.f32 0.03125, %v4575_v58 }
0x1546   :  { %v4609_v10 = vadd.f32 1e-05, %v4600_v17 }
0x1547   :  { %v4578_v49 = vpop.xlane.xlu0 %4577 }
0x1548   :  { %13226 = vrsqrt.f32 %v4609_v10  ;;  %v4601_v16 = vmul.f32 0.03125, %v4578_v49 }
0x154a   :  { %v4610_v34 = vadd.f32 1e-05, %v4601_v16 }
0x154b   :  { %v4581_v54 = vpop.xlane.xlu1 %4580 }
0x154c   :  { %13228 = vrsqrt.f32 %v4610_v34  ;;  %v4602_v19 = vmul.f32 0.03125, %v4581_v54 }
0x154e   :  { %v4611_v51 = vadd.f32 1e-05, %v4602_v19 }
0x154f   :  { %v4584_v36 = vpop.xlane.xlu0 %4583 }
0x1550   :  { %13230 = vrsqrt.f32 %v4611_v51  ;;  %v4603_v28 = vmul.f32 0.03125, %v4584_v36 }
0x1552   :  { %v13227_v8 = vpop.eup %13226  ;;  %v4612_v60 = vadd.f32 1e-05, %v4603_v28 }
0x1553   :  { %v4627_v9 = vmul.f32 %v13227_v8, %v15610_v63  ;;  %v4587_v29 = vpop.xlane.xlu1 %4586 }
0x1554   :  { %13232 = vrsqrt.f32 %v4612_v60  ;;  %v4604_v37 = vmul.f32 0.03125, %v4587_v29 }
0x1555   :  { %v4642_v35 = vmul.f32 %v15687_v46, %v4627_v9 }
0x1556   :  { %v13229_v53 = vpop.eup %13228  ;;  %v4613_v63 = vadd.f32 1e-05, %v4604_v37 }
0x1557   :  { %v15703_v47 = vadd.f32 %v15693_v22, %v4642_v35  ;;  %v4628_v42 = vmul.f32 %v13229_v53, %v15615_v2  ;;  %v4590_v59 = vpop.xlane.xlu0 %4589 }
0x1558   :  { %13234 = vrsqrt.f32 %v4613_v63  ;;  %v4605_v41 = vmul.f32 0.03125, %v4590_v59 }
0x1559   :  { %v4643_v27 = vmul.f32 %v15687_v46, %v4628_v42  ;;  %11616 = vmatmul.mubr.msk.f32.vlgmr.msra.gmra.mrb[234].mxu0 %vm57_vm1, %v15703_v47  ;;  %11651 = vmatmul.mubr.msk.f32.vlgmr.msra.gmra.mrb[234].mxu1 %vm57_vm1, %v15703_v47  ;;  %v9511_v42 = vld [vmem:[%s17723_s5 + $0x10] ss:$0 sm:$0xff] }
0x155a   :  { %v13231_v2 = vpop.eup %13230  ;;  %v4614_v56 = vadd.f32 1e-05, %v4605_v41  ;;  %11618 = vmatprep.mubr.msk.f32.mxu0 %vm13479_vm2, %v17734_v32  ;;  %11653 = vmatprep.mubr.msk.f32.mxu1 %vm13479_vm2, %v17734_v32 }
0x155b   :  { %v15722_v14 = vadd.f32 %v15693_v22, %v4643_v27  ;;  %v4629_v45 = vmul.f32 %v13231_v2, %v15621_v25  ;;  %v4593_v52 = vpop.xlane.xlu1 %4592  ;;  %12825 = vmatpush3.bf16.msra.mxu0 %v12824_v50 }
0x155c   :  { %13236 = vrsqrt.f32 %v4614_v56  ;;  %v4606_v1 = vmul.f32 0.03125, %v4593_v52  ;;  %12826 = vmatprep.subr.bf16.mxu0 %v13478_v24 }
0x155d   :  { %v4644_v44 = vmul.f32 %v15687_v46, %v4629_v45  ;;  %11619 = vmatmul.mubr.msk.f32.gmra.mrb[236].mxu0 %vm57_vm1, %v15722_v14  ;;  %11654 = vmatmul.mubr.msk.f32.gmra.mrb[236].mxu1 %vm57_vm1, %v15722_v14 }
0x155e   :  { %v13233_v23 = vpop.eup %13232  ;;  %v4615_v30 = vadd.f32 1e-05, %v4606_v1  ;;  %11621 = vmatprep.mubr.msk.f32.mxu0 %vm13479_vm2, %v17734_v32  ;;  %11656 = vmatprep.mubr.msk.f32.mxu1 %vm13479_vm2, %v17734_v32 }
0x155f   :  { %v15736_v25 = vadd.f32 %v15693_v22, %v4644_v44  ;;  %v4630_v20 = vmul.f32 %v13233_v23, %v15627_v15  ;;  %v4596_v26 = vpop.xlane.xlu0 %4595  ;;  %12828 = vmatpush3.bf16.msra.mxu0 %v12827_v11 }
0x1560   :  { %13238 = vrsqrt.f32 %v4615_v30  ;;  %v4607_v21 = vmul.f32 0.03125, %v4596_v26  ;;  %12845 = vmatprep.subr.bf16.mxu0 %v13478_v24 }
0x1561   :  { %v4645_v3 = vmul.f32 %v15687_v46, %v4630_v20  ;;  %11622 = vmatmul.mubr.msk.f32.gmra.mrb[238].mxu0 %vm57_vm1, %v15736_v25  ;;  %11657 = vmatmul.mubr.msk.f32.gmra.mrb[238].mxu1 %vm57_vm1, %v15736_v25 }
0x1562   :  { %v13235_v58 = vpop.eup %13234  ;;  %v4616_v17 = vadd.f32 1e-05, %v4607_v21  ;;  %11624 = vmatprep.mubr.msk.f32.mxu0 %vm13479_vm2, %v17734_v32  ;;  %11659 = vmatprep.mubr.msk.f32.mxu1 %vm13479_vm2, %v17734_v32 }
0x1563   :  { %v15750_v15 = vadd.f32 %v15693_v22, %v4645_v3  ;;  %v4631_v10 = vmul.f32 %v13235_v58, %v15633_v6  ;;  %v4599_v49 = vpop.xlane.xlu1 %4598 }
0x1564   :  { %13240 = vrsqrt.f32 %v4616_v17  ;;  %v4608_v16 = vmul.f32 0.03125, %v4599_v49 }
0x1565   :  { %v4646_v34 = vmul.f32 %v15687_v46, %v4631_v10  ;;  %11625 = vmatmul.mubr.msk.f32.gmra.mrb[240].mxu0 %vm57_vm1, %v15750_v15  ;;  %11660 = vmatmul.mubr.msk.f32.gmra.mrb[240].mxu1 %vm57_vm1, %v15750_v15 }
0x1566   :  { %v13237_v54 = vpop.eup %13236  ;;  %v4617_v19 = vadd.f32 1e-05, %v4608_v16  ;;  %11627 = vmatprep.mubr.msk.f32.mxu0 %vm13479_vm2, %v17734_v32  ;;  %11662 = vmatprep.mubr.msk.f32.mxu1 %vm13479_vm2, %v17734_v32 }
0x1567   :  { %v15763_v6 = vadd.f32 %v15693_v22, %v4646_v34  ;;  %v4632_v51 = vmul.f32 %v13237_v54, %v15639_v0 }
0x1568   :  { %13242 = vrsqrt.f32 %v4617_v19 }
0x1569   :  { %v4647_v36 = vmul.f32 %v15687_v46, %v4632_v51  ;;  %11628 = vmatmul.mubr.msk.f32.gmra.mrb[242].mxu0 %vm57_vm1, %v15763_v6  ;;  %11663 = vmatmul.mubr.msk.f32.gmra.mrb[242].mxu1 %vm57_vm1, %v15763_v6 }
0x156a   :  { %v13239_v28 = vpop.eup %13238  ;;  %11630 = vmatprep.mubr.msk.f32.mxu0 %vm13479_vm2, %v17734_v32  ;;  %11665 = vmatprep.mubr.msk.f32.mxu1 %vm13479_vm2, %v17734_v32 }
0x156b   :  { %v15776_v8 = vadd.f32 %v15693_v22, %v4647_v36  ;;  %v4633_v0 = vmul.f32 %v13239_v28, %v15645_v33 }
0x156d   :  { %v4648_v60 = vmul.f32 %v15687_v46, %v4633_v0  ;;  %11631 = vmatmul.mubr.msk.f32.gmra.mrb[244].mxu0 %vm57_vm1, %v15776_v8  ;;  %11666 = vmatmul.mubr.msk.f32.gmra.mrb[244].mxu1 %vm57_vm1, %v15776_v8 }
0x156e   :  { %v13241_v9 = vpop.eup %13240  ;;  %11633 = vmatprep.mubr.msk.f32.mxu0 %vm13479_vm2, %v17734_v32  ;;  %11668 = vmatprep.mubr.msk.f32.mxu1 %vm13479_vm2, %v17734_v32 }
0x156f   :  { %v15789_v29 = vadd.f32 %v15693_v22, %v4648_v60  ;;  %v4634_v33 = vmul.f32 %v13241_v9, %v15651_v40 }
0x1571   :  { %v4649_v37 = vmul.f32 %v15687_v46, %v4634_v33  ;;  %11634 = vmatmul.mubr.msk.f32.gmra.mrb[246].mxu0 %vm57_vm1, %v15789_v29  ;;  %11669 = vmatmul.mubr.msk.f32.gmra.mrb[246].mxu1 %vm57_vm1, %v15789_v29 }
0x1572   :  { %v13243_v55 = vpop.eup %13242  ;;  %11636 = vmatprep.mubr.msk.f32.mxu0 %vm13479_vm2, %v17734_v32  ;;  %11671 = vmatprep.mubr.msk.f32.mxu1 %vm13479_vm2, %v17734_v32 }
0x1573   :  { %v15802_v62 = vadd.f32 %v15693_v22, %v4649_v37  ;;  %v4635_v40 = vmul.f32 %v13243_v55, %v15663_v18 }
0x1575   :  { %v4650_v35 = vmul.f32 %v15687_v46, %v4635_v40  ;;  %11637 = vmatmul.mubr.msk.f32.gmra.mrb[248].mxu0 %vm57_vm1, %v15802_v62  ;;  %11672 = vmatmul.mubr.msk.f32.gmra.mrb[248].mxu1 %vm57_vm1, %v15802_v62 }
0x1576   :  { %11639 = vmatprep.mubr.msk.f32.mxu0 %vm13479_vm2, %v17734_v32  ;;  %11674 = vmatprep.mubr.msk.f32.mxu1 %vm13479_vm2, %v17734_v32 }
0x1577   :  { %v15815_v53 = vadd.f32 %v15693_v22, %v4650_v35 }
0x1579   :  { %11640 = vmatmul.mubr.msk.f32.gmra.mrb[250].mxu0 %vm57_vm1, %v15815_v53  ;;  %11675 = vmatmul.mubr.msk.f32.gmra.mrb[250].mxu1 %vm57_vm1, %v15815_v53 }
0x157a   :  { %11685 = vmatprep.mubr.msk.f32.mxu0 %vm13479_vm2, %v17734_v32  ;;  %11730 = vmatprep.mubr.msk.f32.mxu1 %vm13479_vm2, %v17734_v32 }
0x157d   :  { %11686 = vmatmul.mubr.msk.f32.vlgmr.msra.gmra.mrb[252].mxu0 %vm57_vm1, %v15703_v47 }
0x157e   :  { %11688 = vmatprep.mubr.msk.f32.mxu0 %vm13479_vm2, %v17734_v32 }
0x1581   :  { %11689 = vmatmul.mubr.msk.f32.gmra.mrb[254].mxu0 %vm57_vm1, %v15722_v14 }
0x1582   :  { %11691 = vmatprep.mubr.msk.f32.mxu0 %vm13479_vm2, %v17734_v32 }
0x1585   :  { %11692 = vmatmul.mubr.msk.f32.gmra.mrb[0].mxu0 %vm57_vm1, %v15736_v25 }
0x1586   :  { %11694 = vmatprep.mubr.msk.f32.mxu0 %vm13479_vm2, %v17734_v32 }
0x1589   :  { %11695 = vmatmul.mubr.msk.f32.gmra.mrb[2].mxu0 %vm57_vm1, %v15750_v15 }
0x158a   :  { %11697 = vmatprep.mubr.msk.f32.mxu0 %vm13479_vm2, %v17734_v32 }
0x158d   :  { %11698 = vmatmul.mubr.msk.f32.gmra.mrb[4].mxu0 %vm57_vm1, %v15763_v6 }
0x158e   :  { %11700 = vmatprep.mubr.msk.f32.mxu0 %vm13479_vm2, %v17734_v32 }
0x1591   :  { %11701 = vmatmul.mubr.msk.f32.gmra.mrb[6].mxu0 %vm57_vm1, %v15776_v8 }
0x1592   :  { %11703 = vmatprep.mubr.msk.f32.mxu0 %vm13479_vm2, %v17734_v32 }
0x1595   :  { %11704 = vmatmul.mubr.msk.f32.gmra.mrb[8].mxu0 %vm57_vm1, %v15789_v29 }
0x1596   :  { %11706 = vmatprep.mubr.msk.f32.mxu0 %vm13479_vm2, %v17734_v32 }
0x1599   :  { %11707 = vmatmul.mubr.msk.f32.gmra.mrb[10].mxu0 %vm57_vm1, %v15802_v62 }
0x159a   :  { %11709 = vmatprep.mubr.msk.f32.mxu0 %vm13479_vm2, %v17734_v32 }
0x159d   :  { %11710 = vmatmul.mubr.msk.f32.gmra.mrb[12].mxu0 %vm57_vm1, %v15815_v53 }
0x159e   :  { %11775 = vmatprep.mubr.msk.f32.mxu0 %vm13479_vm2, %v17734_v32 }
0x162c   :  { %v15861_v18 = vpop.f32.mrb[234].mxu0  ;;  %v4895_v46 = vpop.f32.mrb[234].mxu1 }
0x162d   :  { %v11617_v22 = vpop.f32.mrb[235].mxu0  ;;  %v11652_v63 = vpop.f32.mrb[235].mxu1  ;;  %v4896_v41 = vadd.f32 %v9511_v42, %v4895_v46 }
0x1630   :  { %v15866_v59 = vpop.f32.mrb[236].mxu0  ;;  %v4900_v50 = vpop.f32.mrb[236].mxu1 }
0x1631   :  { %v4901_v61 = vadd.f32 %v9511_v42, %v4900_v50  ;;  %v11620_v4 = vpop.f32.mrb[237].mxu0  ;;  %v11655_v27 = vpop.f32.mrb[237].mxu1 }
0x1633   :  { %v12830_v2 = vpack.c.bf16 %v4901_v61, %v4896_v41 }
0x1634   :  { %v15868_v56 = vpop.f32.mrb[238].mxu0  ;;  %v4905_v45 = vpop.f32.mrb[238].mxu1 }
0x1635   :  { %v11623_v52 = vpop.f32.mrb[239].mxu0  ;;  %v11658_v11 = vpop.f32.mrb[239].mxu1  ;;  %12832 = vmatpush3.bf16.xpose.msk.msra.mxu1 %vm13884_vm4, %v12830_v2  ;;  %v4906_v23 = vadd.f32 %v9511_v42, %v4905_v45  ;;  %v15897_v2 = vld [vmem:[%s17723_s5 + $0x14] ss:$0 sm:$0xff]  ;;  %v15902_v45 = vld [vmem:[%s17723_s5 + $0xc] ss:$0 sm:$0xff] }
0x1636   :  { %12833 = vmatprep.subr.bf16.mxu1 %v13478_v24  ;;  %v9564_v11 = vld [vmem:[%s17721_s4 + $0x1a0] sm:$0xff] }
0x1638   :  { %v15873_v1 = vpop.f32.mrb[240].mxu0  ;;  %v4910_v44 = vpop.f32.mrb[240].mxu1 }
0x1639   :  { %v4911_v30 = vadd.f32 %v9511_v42, %v4910_v44  ;;  %v11626_v20 = vpop.f32.mrb[241].mxu0  ;;  %v11661_v26 = vpop.f32.mrb[241].mxu1  ;;  %v9565_v44 = vld [vmem:[%s17721_s4 + $0x1a8] sm:$0xff] }
0x163b   :  { %v12834_v21 = vpack.c.bf16 %v4911_v30, %v4906_v23 }
0x163c   :  { %v15875_v3 = vpop.f32.mrb[242].mxu0  ;;  %v4915_v58 = vpop.f32.mrb[242].mxu1 }
0x163d   :  { %v11629_v17 = vpop.f32.mrb[243].mxu0  ;;  %v11664_v10 = vpop.f32.mrb[243].mxu1  ;;  %12836 = vmatpush3.bf16.xpose.msk.msra.mxu1 %vm13884_vm4, %v12834_v21  ;;  %v4916_v34 = vadd.f32 %v9511_v42, %v4915_v58  ;;  %v4773_v21 = vadd.f32 %v15902_v45, %v15861_v18  ;;  %v4778_v18 = vadd.f32 %v15902_v45, %v15866_v59  ;;  %v4783_v59 = vadd.f32 %v15902_v45, %v15868_v56 }
0x163e   :  { %12837 = vmatprep.subr.bf16.mxu1 %v13478_v24  ;;  %v9566_v17 = vld [vmem:[%s17721_s4 + $0x1b0] sm:$0xff]  ;;  %v9567_v10 = vld [vmem:[%s17721_s4 + $0x1b8] sm:$0xff] }
0x1640   :  { %v15880_v49 = vpop.f32.mrb[244].mxu0  ;;  %v4920_v16 = vpop.f32.mrb[244].mxu1 }
0x1641   :  { %v4921_v54 = vadd.f32 %v9511_v42, %v4920_v16  ;;  %v11632_v19 = vpop.f32.mrb[245].mxu0  ;;  %v11667_v51 = vpop.f32.mrb[245].mxu1 }
0x1643   :  { %v12838_v36 = vpack.c.bf16 %v4921_v54, %v4916_v34  ;;  %v12861_v54 = vpack.c.bf16 %v9567_v10, %v9566_v17  ;;  %v16068_v10 = vld [vmem:[%s17724_s3] sm:$0xff] }
0x1644   :  { %v15882_v28 = vpop.f32.mrb[246].mxu0  ;;  %v4925_v0 = vpop.f32.mrb[246].mxu1 }
0x1645   :  { %v11635_v60 = vpop.f32.mrb[247].mxu0  ;;  %v11670_v9 = vpop.f32.mrb[247].mxu1  ;;  %12840 = vmatpush3.bf16.xpose.msk.msra.mxu1 %vm13884_vm4, %v12838_v36  ;;  %v4926_v55 = vadd.f32 %v9511_v42, %v4925_v0 }
0x1646   :  { %12841 = vmatprep.subr.bf16.mxu1 %v13478_v24 }
0x1648   :  { %v15887_v33 = vpop.f32.mrb[248].mxu0  ;;  %v4930_v37 = vpop.f32.mrb[248].mxu1 }
0x1649   :  { %v4931_v40 = vadd.f32 %v9511_v42, %v4930_v37  ;;  %v11638_v35 = vpop.f32.mrb[249].mxu0  ;;  %v11673_v46 = vpop.f32.mrb[249].mxu1 }
0x164b   :  { %v12842_v22 = vpack.c.bf16 %v4931_v40, %v4926_v55  ;;  %v4788_v55 = vadd.f32 %v15902_v45, %v15873_v1 }
0x164c   :  { %v15889_v63 = vpop.f32.mrb[250].mxu0  ;;  %v4935_v50 = vpop.f32.mrb[250].mxu1 }
0x164d   :  { %v11641_v41 = vpop.f32.mrb[251].mxu0  ;;  %v11676_v61 = vpop.f32.mrb[251].mxu1  ;;  %12844 = vmatpush3.bf16.xpose.msk.msra.mxu1 %vm13884_vm4, %v12842_v22  ;;  %v4936_v52 = vadd.f32 %v9511_v42, %v4935_v50  ;;  %v12858_v42 = vpack.c.bf16 %v9565_v44, %v9564_v11  ;;  %v4793_v22 = vadd.f32 %v15902_v45, %v15875_v3  ;;  %v4803_v11 = vadd.f32 %v15902_v45, %v15882_v28 }
0x164e   :  { %11728 = vmatprep.subr.mxu1 %v17734_v32  ;;  %v4798_v61 = vadd.f32 %v15902_v45, %v15880_v49  ;;  %v4813_v28 = vadd.f32 %v15902_v45, %v15889_v63  ;;  %v9596_v63 = vld [vmem:[%s17721_s4 + $0x2b0] sm:$0xff] }
0x1650   :  { %v5018_v4 = vpop.f32.mrb[252].mxu0 }
0x1651   :  { %v11687_v27 = vpop.f32.mrb[253].mxu0  ;;  %v5019_v30 = vadd.f32 %v15897_v2, %v5018_v4 }
0x1654   :  { %v5023_v23 = vpop.f32.mrb[254].mxu0 }
0x1655   :  { %v5024_v20 = vadd.f32 %v15897_v2, %v5023_v23  ;;  %v11690_v26 = vpop.f32.mrb[255].mxu0  ;;  %11729 = vmatpush3.xpose.msk.msra.mxu1 %vm650_vm3, %v4936_v52 }
0x1656   :  { %12857 = vmatprep.subr.bf16.mxu1 %v13478_v24  ;;  %v9594_v26 = vld [vmem:[%s17721_s4 + $0x2a0] sm:$0xff] }
0x1657   :  { %v12846_v58 = vpack.c.bf16 %v5024_v20, %v5019_v30  ;;  %v4808_v30 = vadd.f32 %v15902_v45, %v15887_v33  ;;  %v9595_v33 = vld [vmem:[%s17721_s4 + $0x2a8] sm:$0xff]  ;;  %v9597_v45 = vld [vmem:[%s17721_s4 + $0x2b8] sm:$0xff] }
0x1658   :  { %v5028_v16 = vpop.f32.mrb[0].mxu0  ;;  %11731 = vmatmul.mubr.msk.f32.vlgmr.msra.gmra.mrb[252].mxu1 %vm650_vm3, %v4773_v21  ;;  %v12873_v21 = vpack.c.bf16 %v9597_v45, %v9596_v63 }
0x1659   :  { %v11693_v34 = vpop.f32.mrb[1].mxu0  ;;  %12847 = vmatpush3.bf16.msra.mxu0 %v12846_v58  ;;  %11733 = vmatprep.mubr.msk.f32.mxu1 %vm13479_vm2, %v17734_v32  ;;  %v5029_v51 = vadd.f32 %v15897_v2, %v5028_v16 }
0x165a   :  { %12848 = vmatprep.subr.bf16.mxu0 %v13478_v24  ;;  %12859 = vmatpush3.bf16.msra.mxu1 %v12858_v42 }
0x165b   :  { %12860 = vmatprep.subr.bf16.mxu1 %v13478_v24 }
0x165c   :  { %v5033_v19 = vpop.f32.mrb[2].mxu0  ;;  %11734 = vmatmul.mubr.msk.f32.gmra.mrb[254].mxu1 %vm650_vm3, %v4778_v18 }
0x165d   :  { %v5034_v36 = vadd.f32 %v15897_v2, %v5033_v19  ;;  %v11696_v0 = vpop.f32.mrb[3].mxu0  ;;  %11736 = vmatprep.mubr.msk.f32.mxu1 %vm13479_vm2, %v17734_v32 }
0x165e   :  { %12862 = vmatpush3.bf16.msra.mxu1 %v12861_v54 }
0x165f   :  { %v12849_v60 = vpack.c.bf16 %v5034_v36, %v5029_v51  ;;  %12869 = vmatprep.subr.bf16.mxu1 %v13478_v24  ;;  %v16078_v51 = vld [vmem:[%s17724_s3 + $0x8] sm:$0xff] }
0x1660   :  { %v5038_v9 = vpop.f32.mrb[4].mxu0  ;;  %11737 = vmatmul.mubr.msk.f32.gmra.mrb[0].mxu1 %vm650_vm3, %v4783_v59 }
0x1661   :  { %v11699_v37 = vpop.f32.mrb[5].mxu0  ;;  %12850 = vmatpush3.bf16.msra.mxu0 %v12849_v60  ;;  %11739 = vmatprep.mubr.msk.f32.mxu1 %vm13479_vm2, %v17734_v32  ;;  %v5039_v56 = vadd.f32 %v15897_v2, %v5038_v9 }
0x1662   :  { %12851 = vmatprep.subr.bf16.mxu0 %v13478_v24  ;;  %v16088_v37 = vld [vmem:[%s17724_s3 + $0x10] sm:$0xff] }
0x1664   :  { %v5043_v40 = vpop.f32.mrb[6].mxu0  ;;  %11740 = vmatmul.mubr.msk.f32.gmra.mrb[2].mxu1 %vm650_vm3, %v4788_v55 }
0x1665   :  { %v5044_v35 = vadd.f32 %v15897_v2, %v5043_v40  ;;  %v11702_v46 = vpop.f32.mrb[7].mxu0  ;;  %11742 = vmatprep.mubr.msk.f32.mxu1 %vm13479_vm2, %v17734_v32 }
0x1667   :  { %v12852_v50 = vpack.c.bf16 %v5044_v35, %v5039_v56 }
0x1668   :  { %v5048_v41 = vpop.f32.mrb[8].mxu0  ;;  %11743 = vmatmul.mubr.msk.f32.gmra.mrb[4].mxu1 %vm650_vm3, %v4793_v22  ;;  %v16098_v22 = vld [vmem:[%s17724_s3 + $0x18] sm:$0xff] }
0x1669   :  { %v11705_v1 = vpop.f32.mrb[9].mxu0  ;;  %12853 = vmatpush3.bf16.msra.mxu0 %v12852_v50  ;;  %11745 = vmatprep.mubr.msk.f32.mxu1 %vm13479_vm2, %v17734_v32  ;;  %v5049_v27 = vadd.f32 %v15897_v2, %v5048_v41 }
0x166a   :  { %12854 = vmatprep.subr.bf16.mxu0 %v13478_v24 }
0x166c   :  { %v5053_v4 = vpop.f32.mrb[10].mxu0  ;;  %11746 = vmatmul.mubr.msk.f32.gmra.mrb[6].mxu1 %vm650_vm3, %v4798_v61 }
0x166d   :  { %v5054_v3 = vadd.f32 %v15897_v2, %v5053_v4  ;;  %v11708_v52 = vpop.f32.mrb[11].mxu0  ;;  %11748 = vmatprep.mubr.msk.f32.mxu1 %vm13479_vm2, %v17734_v32 }
0x166f   :  { %v12855_v44 = vpack.c.bf16 %v5054_v3, %v5049_v27  ;;  %v16108_v27 = vld [vmem:[%s17724_s3 + $0x20] sm:$0xff] }
0x1670   :  { %v5058_v23 = vpop.f32.mrb[12].mxu0  ;;  %11749 = vmatmul.mubr.msk.f32.gmra.mrb[8].mxu1 %vm650_vm3, %v4803_v11 }
0x1671   :  { %v11711_v49 = vpop.f32.mrb[13].mxu0  ;;  %12856 = vmatpush3.bf16.msra.mxu0 %v12855_v44  ;;  %11751 = vmatprep.mubr.msk.f32.mxu1 %vm13479_vm2, %v17734_v32  ;;  %v5059_v20 = vadd.f32 %v15897_v2, %v5058_v23  ;;  %v12870_v2 = vpack.c.bf16 %v9595_v33, %v9594_v26 }
0x1672   :  { %11773 = vmatprep.subr.mxu0 %v17734_v32  ;;  %v16118_v49 = vld [vmem:[%s17724_s3 + $0x28] sm:$0xff] }
0x1674   :  { %11752 = vmatmul.mubr.msk.f32.gmra.mrb[10].mxu1 %vm650_vm3, %v4808_v30 }
0x1675   :  { %11774 = vmatpush3.msra.mxu0 %v5059_v20  ;;  %11754 = vmatprep.mubr.msk.f32.mxu1 %vm13479_vm2, %v17734_v32 }
0x1676   :  { %12863 = vmatprep.subr.bf16.mxu0 %v13478_v24 }
0x1678   :  { %11755 = vmatmul.mubr.msk.f32.gmra.mrb[12].mxu1 %vm650_vm3, %v4813_v28 }
0x1679   :  { %11810 = vmatprep.mubr.msk.f32.mxu1 %vm13479_vm2, %v17734_v32 }
0x167c   :  { %11811 = vmatmul.mubr.msk.f32.vlgmr.msra.gmra.mrb[14].mxu1 %vm57_vm1, %v15703_v47 }
0x167d   :  { %11813 = vmatprep.mubr.msk.f32.mxu1 %vm13479_vm2, %v17734_v32  ;;  %12871 = vmatpush3.bf16.msra.mxu1 %v12870_v2  ;;  %v16128_v2 = vld [vmem:[%s17724_s3 + $0x30] sm:$0xff] }
0x167e   :  { %12872 = vmatprep.subr.bf16.mxu1 %v13478_v24 }
0x1680   :  { %11814 = vmatmul.mubr.msk.f32.gmra.mrb[16].mxu1 %vm57_vm1, %v15722_v14 }
0x1681   :  { %11816 = vmatprep.mubr.msk.f32.mxu1 %vm13479_vm2, %v17734_v32  ;;  %12874 = vmatpush3.bf16.msra.mxu1 %v12873_v21 }
0x1682   :  { %12891 = vmatprep.subr.bf16.mxu1 %v13478_v24 }
0x1684   :  { %11817 = vmatmul.mubr.msk.f32.gmra.mrb[18].mxu1 %vm57_vm1, %v15736_v25 }
0x1685   :  { %11819 = vmatprep.mubr.msk.f32.mxu1 %vm13479_vm2, %v17734_v32 }
0x1688   :  { %11820 = vmatmul.mubr.msk.f32.gmra.mrb[20].mxu1 %vm57_vm1, %v15750_v15 }
0x1689   :  { %11822 = vmatprep.mubr.msk.f32.mxu1 %vm13479_vm2, %v17734_v32 }
0x168c   :  { %11823 = vmatmul.mubr.msk.f32.gmra.mrb[22].mxu1 %vm57_vm1, %v15763_v6 }
0x168d   :  { %11825 = vmatprep.mubr.msk.f32.mxu1 %vm13479_vm2, %v17734_v32 }
0x1690   :  { %11826 = vmatmul.mubr.msk.f32.gmra.mrb[24].mxu1 %vm57_vm1, %v15776_v8 }
0x1691   :  { %11828 = vmatprep.mubr.msk.f32.mxu1 %vm13479_vm2, %v17734_v32 }
0x1694   :  { %11829 = vmatmul.mubr.msk.f32.gmra.mrb[26].mxu1 %vm57_vm1, %v15789_v29 }
0x1695   :  { %11831 = vmatprep.mubr.msk.f32.mxu1 %vm13479_vm2, %v17734_v32 }
0x1698   :  { %11832 = vmatmul.mubr.msk.f32.gmra.mrb[28].mxu1 %vm57_vm1, %v15802_v62 }
0x1699   :  { %11834 = vmatprep.mubr.msk.f32.mxu1 %vm13479_vm2, %v17734_v32 }
0x169c   :  { %11835 = vmatmul.mubr.msk.f32.gmra.mrb[30].mxu1 %vm57_vm1, %v15815_v53 }
0x169d   :  { %11880 = vmatprep.mubr.msk.f32.mxu1 %vm13479_vm2, %v17734_v32 }
0x16a0   :  { %11881 = vmatmul.mubr.msk.f32.vlgmr.msra.gmra.mrb[32].mxu1 %vm57_vm1, %v15703_v47 }
0x16a1   :  { %11883 = vmatprep.mubr.msk.f32.mxu1 %vm13479_vm2, %v17734_v32 }
0x16a4   :  { %11884 = vmatmul.mubr.msk.f32.gmra.mrb[34].mxu1 %vm57_vm1, %v15722_v14 }
0x16a5   :  { %11886 = vmatprep.mubr.msk.f32.mxu1 %vm13479_vm2, %v17734_v32 }
0x16a8   :  { %11887 = vmatmul.mubr.msk.f32.gmra.mrb[36].mxu1 %vm57_vm1, %v15736_v25 }
0x16a9   :  { %11889 = vmatprep.mubr.msk.f32.mxu1 %vm13479_vm2, %v17734_v32 }
0x16ac   :  { %11890 = vmatmul.mubr.msk.f32.gmra.mrb[38].mxu1 %vm57_vm1, %v15750_v15 }
0x16ad   :  { %11892 = vmatprep.mubr.msk.f32.mxu1 %vm13479_vm2, %v17734_v32 }
0x16b0   :  { %11893 = vmatmul.mubr.msk.f32.gmra.mrb[40].mxu1 %vm57_vm1, %v15763_v6 }
0x16b1   :  { %11895 = vmatprep.mubr.msk.f32.mxu1 %vm13479_vm2, %v17734_v32 }
0x16b4   :  { %11896 = vmatmul.mubr.msk.f32.gmra.mrb[42].mxu1 %vm57_vm1, %v15776_v8 }
0x16b5   :  { %11898 = vmatprep.mubr.msk.f32.mxu1 %vm13479_vm2, %v17734_v32 }
0x16b8   :  { %11899 = vmatmul.mubr.msk.f32.gmra.mrb[44].mxu1 %vm57_vm1, %v15789_v29 }
0x16b9   :  { %11901 = vmatprep.mubr.msk.f32.mxu1 %vm13479_vm2, %v17734_v32 }
0x16bc   :  { %11902 = vmatmul.mubr.msk.f32.gmra.mrb[46].mxu1 %vm57_vm1, %v15802_v62 }
0x16bd   :  { %11904 = vmatprep.mubr.msk.f32.mxu1 %vm13479_vm2, %v17734_v32 }
0x16c0   :  { %11905 = vmatmul.mubr.msk.f32.gmra.mrb[48].mxu1 %vm57_vm1, %v15815_v53 }
0x16c1   :  { %11970 = vmatprep.mubr.msk.f32.mxu1 %vm13479_vm2, %v17734_v32 }
0x172b   :  { %v5182_v42 = vpop.f32.mrb[252].mxu1 }
0x172c   :  { %v5226_v58 = vmul.f32 0.35355338, %v5182_v42  ;;  %v11732_v17 = vpop.f32.mrb[253].mxu1 }
0x172d   :  { %v16138_v17 = vld [vmem:[%s17724_s3 + $0x38] sm:$0xff] }
0x172e   :  { %v16071_v16 = vadd.f32 %v16068_v10, %v5226_v58 }
0x172f   :  { %v5187_v34 = vpop.f32.mrb[254].mxu1 }
0x1730   :  { %v5227_v18 = vmul.f32 0.35355338, %v5187_v34  ;;  %v11735_v54 = vpop.f32.mrb[255].mxu1  ;;  %v5244_v19 = vsel %vm833_vm5, %v16071_v16, -inf }
0x1731   :  { %5245 = vmax.xlane.f32.xlu0 %v5244_v19 }
0x1732   :  { %v16081_v36 = vadd.f32 %v16078_v51, %v5227_v18 }
0x1733   :  { %v5192_v0 = vpop.f32.mrb[0].mxu1 }
0x1734   :  { %v5228_v59 = vmul.f32 0.35355338, %v5192_v0  ;;  %v11738_v60 = vpop.f32.mrb[1].mxu1  ;;  %v5247_v9 = vsel %vm833_vm5, %v16081_v36, -inf }
0x1735   :  { %5248 = vmax.xlane.f32.xlu1 %v5247_v9 }
0x1736   :  { %v16091_v55 = vadd.f32 %v16088_v37, %v5228_v59  ;;  %v16148_v59 = vld [vmem:[%s17724_s3 + $0x40] sm:$0xff] }
0x1737   :  { %v5197_v40 = vpop.f32.mrb[2].mxu1 }
0x1738   :  { %v5229_v56 = vmul.f32 0.35355338, %v5197_v40  ;;  %v11741_v35 = vpop.f32.mrb[3].mxu1  ;;  %v5250_v46 = vsel %vm833_vm5, %v16091_v55, -inf }
0x1739   :  { %5251 = vmax.xlane.f32.xlu0 %v5250_v46 }
0x173a   :  { %v16101_v50 = vadd.f32 %v16098_v22, %v5229_v56 }
0x173b   :  { %v5202_v41 = vpop.f32.mrb[4].mxu1 }
0x173c   :  { %v5230_v1 = vmul.f32 0.35355338, %v5202_v41  ;;  %v11744_v61 = vpop.f32.mrb[5].mxu1  ;;  %v5253_v4 = vsel %vm833_vm5, %v16101_v50, -inf }
0x173d   :  { %5254 = vmax.xlane.f32.xlu1 %v5253_v4 }
0x173e   :  { %v16111_v3 = vadd.f32 %v16108_v27, %v5230_v1 }
0x173f   :  { %v5207_v52 = vpop.f32.mrb[6].mxu1 }
0x1740   :  { %v5231_v11 = vmul.f32 0.35355338, %v5207_v52  ;;  %v11747_v44 = vpop.f32.mrb[7].mxu1  ;;  %v5256_v23 = vsel %vm833_vm5, %v16111_v3, -inf }
0x1741   :  { %5257 = vmax.xlane.f32.xlu0 %v5256_v23 }
0x1742   :  { %v16121_v30 = vadd.f32 %v16118_v49, %v5231_v11 }
0x1743   :  { %v5212_v20 = vpop.f32.mrb[8].mxu1 }
0x1744   :  { %v5232_v28 = vmul.f32 0.35355338, %v5212_v20  ;;  %v11750_v26 = vpop.f32.mrb[9].mxu1  ;;  %v5259_v33 = vsel %vm833_vm5, %v16121_v30, -inf }
0x1745   :  { %5260 = vmax.xlane.f32.xlu1 %v5259_v33 }
0x1746   :  { %v16131_v63 = vadd.f32 %v16128_v2, %v5232_v28 }
0x1747   :  { %v5217_v45 = vpop.f32.mrb[10].mxu1 }
0x1748   :  { %v5233_v21 = vmul.f32 0.35355338, %v5217_v45  ;;  %v11753_v42 = vpop.f32.mrb[11].mxu1  ;;  %v5262_v58 = vsel %vm833_vm5, %v16131_v63, -inf }
0x1749   :  { %5263 = vmax.xlane.f32.xlu0 %v5262_v58 }
0x174a   :  { %v16141_v34 = vadd.f32 %v16138_v17, %v5233_v21 }
0x174b   :  { %v5222_v18 = vpop.f32.mrb[12].mxu1 }
0x174c   :  { %v5234_v54 = vmul.f32 0.35355338, %v5222_v18  ;;  %v11756_v19 = vpop.f32.mrb[13].mxu1  ;;  %v5265_v0 = vsel %vm833_vm5, %v16141_v34, -inf  ;;  %v9599_v18 = vld [vmem:[%s17723_s5 + $0x15] ss:$0 sm:$0xff] }
0x174d   :  { %5266 = vmax.xlane.f32.xlu1 %v5265_v0 }
0x174e   :  { %v16151_v60 = vadd.f32 %v16148_v59, %v5234_v54 }
0x174f   :  { %v16153_v9 = vpop.f32.mrb[14].mxu1 }
0x1750   :  { %v11812_v40 = vpop.f32.mrb[15].mxu1  ;;  %v5268_v56 = vsel %vm833_vm5, %v16151_v60, -inf }
0x1751   :  { %5269 = vmax.xlane.f32.xlu0 %v5268_v56 }
0x1753   :  { %v16157_v35 = vpop.f32.mrb[16].mxu1 }
0x1754   :  { %v11815_v46 = vpop.f32.mrb[17].mxu1 }
0x1757   :  { %v16159_v41 = vpop.f32.mrb[18].mxu1 }
0x1758   :  { %v11818_v1 = vpop.f32.mrb[19].mxu1 }
0x175b   :  { %v16161_v61 = vpop.f32.mrb[20].mxu1 }
0x175c   :  { %v11821_v4 = vpop.f32.mrb[21].mxu1 }
0x175f   :  { %v16163_v52 = vpop.f32.mrb[22].mxu1 }
0x1760   :  { %v11824_v11 = vpop.f32.mrb[23].mxu1 }
0x1763   :  { %v16165_v44 = vpop.f32.mrb[24].mxu1 }
0x1764   :  { %v11827_v23 = vpop.f32.mrb[25].mxu1 }
0x1767   :  { %v16167_v20 = vpop.f32.mrb[26].mxu1 }
0x1768   :  { %v11830_v28 = vpop.f32.mrb[27].mxu1 }
0x176b   :  { %v16169_v26 = vpop.f32.mrb[28].mxu1 }
0x176c   :  { %v11833_v33 = vpop.f32.mrb[29].mxu1 }
0x176f   :  { %v16171_v45 = vpop.f32.mrb[30].mxu1 }
0x1770   :  { %v11836_v21 = vpop.f32.mrb[31].mxu1 }
0x1773   :  { %v5807_v42 = vpop.f32.mrb[32].mxu1 }
0x1774   :  { %v11882_v58 = vpop.f32.mrb[33].mxu1  ;;  %v5808_v19 = vadd.f32 %v9599_v18, %v5807_v42 }
0x1777   :  { %v5812_v54 = vpop.f32.mrb[34].mxu1 }
0x1778   :  { %v5813_v0 = vadd.f32 %v9599_v18, %v5812_v54  ;;  %v11885_v40 = vpop.f32.mrb[35].mxu1 }
0x177a   :  { %v12892_v56 = vpack.c.bf16 %v5813_v0, %v5808_v19 }
0x177b   :  { %v5817_v46 = vpop.f32.mrb[36].mxu1 }
0x177c   :  { %v11888_v1 = vpop.f32.mrb[37].mxu1  ;;  %12893 = vmatpush3.bf16.msra.mxu1 %v12892_v56  ;;  %v5818_v11 = vadd.f32 %v9599_v18, %v5817_v46 }
0x177d   :  { %12894 = vmatprep.subr.bf16.mxu1 %v13478_v24 }
0x177f   :  { %v5822_v4 = vpop.f32.mrb[38].mxu1 }
0x1780   :  { %v5823_v23 = vadd.f32 %v9599_v18, %v5822_v4  ;;  %v11891_v28 = vpop.f32.mrb[39].mxu1 }
0x1782   :  { %v12895_v33 = vpack.c.bf16 %v5823_v23, %v5818_v11 }
0x1783   :  { %v5827_v21 = vpop.f32.mrb[40].mxu1 }
0x1784   :  { %v11894_v58 = vpop.f32.mrb[41].mxu1  ;;  %12896 = vmatpush3.bf16.msra.mxu1 %v12895_v33  ;;  %v5828_v42 = vadd.f32 %v9599_v18, %v5827_v21  ;;  %v17740_v33 = vmov 0.0  }
0x1785   :  { %12897 = vmatprep.subr.bf16.mxu1 %v13478_v24 }
0x1787   :  { %v5832_v32 = vpop.f32.mrb[42].mxu1 }
0x1788   :  { %v5833_v54 = vadd.f32 %v9599_v18, %v5832_v32  ;;  %v11897_v40 = vpop.f32.mrb[43].mxu1 }
0x178a   :  { %v12898_v19 = vpack.c.bf16 %v5833_v54, %v5828_v42 }
0x178b   :  { %v5837_v0 = vpop.f32.mrb[44].mxu1 }
0x178c   :  { %v11900_v1 = vpop.f32.mrb[45].mxu1  ;;  %12899 = vmatpush3.bf16.msra.mxu1 %v12898_v19  ;;  %v5838_v46 = vadd.f32 %v9599_v18, %v5837_v0 }
0x178d   :  { %12900 = vmatprep.subr.bf16.mxu1 %v13478_v24 }
0x178f   :  { %v5842_v56 = vpop.f32.mrb[46].mxu1 }
0x1790   :  { %v5843_v4 = vadd.f32 %v9599_v18, %v5842_v56  ;;  %v11903_v28 = vpop.f32.mrb[47].mxu1 }
0x1792   :  { %v12901_v11 = vpack.c.bf16 %v5843_v4, %v5838_v46 }
0x1793   :  { %v5847_v23 = vpop.f32.mrb[48].mxu1 }
0x1794   :  { %v11906_v58 = vpop.f32.mrb[49].mxu1  ;;  %12902 = vmatpush3.bf16.msra.mxu1 %v12901_v11  ;;  %v5848_v48 = vadd.f32 %v9599_v18, %v5847_v23 }
0x1795   :  { %11968 = vmatprep.subr.mxu1 %v17740_v33 }
0x1798   :  { %11969 = vmatpush3.msra.mxu1 %v5848_v48 }
0x1799   :  { %12026 = vmatprep.subr.mxu1 %v17740_v33 }
0x17be   :  { %v5246_v32 = vpop.xlane.xlu0 %5245 }
0x17bf   :  { %v5271_v21 = vsub.f32 %v16071_v16, %v5246_v32 }
0x17c1   :  { %v5280_v42 = vmul.f32 1.442695, %v5271_v21 }
0x17c2   :  { %v5249_v54 = vpop.xlane.xlu1 %5248 }
0x17c3   :  { %13244 = vpow2.f32 %v5280_v42  ;;  %v5272_v40 = vsub.f32 %v16081_v36, %v5249_v54 }
0x17c5   :  { %v5282_v19 = vmul.f32 1.442695, %v5272_v40 }
0x17c6   :  { %v5252_v0 = vpop.xlane.xlu0 %5251 }
0x17c7   :  { %13246 = vpow2.f32 %v5282_v19  ;;  %v5273_v1 = vsub.f32 %v16091_v55, %v5252_v0 }
0x17c9   :  { %v5284_v56 = vmul.f32 1.442695, %v5273_v1 }
0x17ca   :  { %v5255_v46 = vpop.xlane.xlu1 %5254 }
0x17cb   :  { %13248 = vpow2.f32 %v5284_v56  ;;  %v5274_v48 = vsub.f32 %v16101_v50, %v5255_v46 }
0x17cd   :  { %v13245_v18 = vpop.eup %13244  ;;  %v5286_v4 = vmul.f32 1.442695, %v5274_v48 }
0x17ce   :  { %v5258_v28 = vpop.xlane.xlu0 %5257  ;;  %v5298_v16 = vsel %vm833_vm5, %v13245_v18, 0.0 }
0x17cf   :  { %13250 = vpow2.f32 %v5286_v4  ;;  %v5275_v11 = vsub.f32 %v16111_v3, %v5258_v28  ;;  %5299 = vadd.xlane.f32.xlu1 %v5298_v16 }
0x17d1   :  { %v13247_v36 = vpop.eup %13246  ;;  %v5288_v23 = vmul.f32 1.442695, %v5275_v11 }
0x17d2   :  { %v5261_v58 = vpop.xlane.xlu1 %5260  ;;  %v5301_v32 = vsel %vm833_vm5, %v13247_v36, 0.0 }
0x17d3   :  { %13252 = vpow2.f32 %v5288_v23  ;;  %v5276_v55 = vsub.f32 %v16121_v30, %v5261_v58  ;;  %5302 = vadd.xlane.f32.xlu0 %v5301_v32 }
0x17d5   :  { %v16189_v21 = vpop.eup %13248  ;;  %v5290_v50 = vmul.f32 1.442695, %v5276_v55 }
0x17d6   :  { %v5264_v42 = vpop.xlane.xlu0 %5263  ;;  %v5304_v54 = vsel %vm833_vm5, %v16189_v21, 0.0 }
0x17d7   :  { %13254 = vpow2.f32 %v5290_v50  ;;  %v5277_v3 = vsub.f32 %v16131_v63, %v5264_v42  ;;  %5305 = vadd.xlane.f32.xlu1 %v5304_v54 }
0x17d9   :  { %v16194_v40 = vpop.eup %13250  ;;  %v5292_v19 = vmul.f32 1.442695, %v5277_v3  ;;  %v9579_v3 = vld [vmem:[%s17721_s4 + $0x220] sm:$0xff] }
0x17da   :  { %v5267_v0 = vpop.xlane.xlu1 %5266  ;;  %v5307_v1 = vsel %vm833_vm5, %v16194_v40, 0.0 }
0x17db   :  { %13256 = vpow2.f32 %v5292_v19  ;;  %v5278_v30 = vsub.f32 %v16141_v34, %v5267_v0  ;;  %5308 = vadd.xlane.f32.xlu0 %v5307_v1  ;;  %v9580_v19 = vld [vmem:[%s17721_s4 + $0x228] sm:$0xff] }
0x17dc   :  { %v12864_v1 = vpack.c.bf16 %v9580_v19, %v9579_v3 }
0x17dd   :  { %v13253_v56 = vpop.eup %13252  ;;  %v5294_v46 = vmul.f32 1.442695, %v5278_v30 }
0x17de   :  { %v5270_v48 = vpop.xlane.xlu0 %5269  ;;  %v5310_v4 = vsel %vm833_vm5, %v13253_v56, 0.0 }
0x17df   :  { %13258 = vpow2.f32 %v5294_v46  ;;  %v5279_v63 = vsub.f32 %v16151_v60, %v5270_v48  ;;  %5311 = vadd.xlane.f32.xlu1 %v5310_v4  ;;  %v9581_v48 = vld [vmem:[%s17721_s4 + $0x230] sm:$0xff]  ;;  %v9582_v4 = vld [vmem:[%s17721_s4 + $0x238] sm:$0xff] }
0x17e1   :  { %v13255_v28 = vpop.eup %13254  ;;  %v5296_v16 = vmul.f32 1.442695, %v5279_v63 }
0x17e2   :  { %v5313_v11 = vsel %vm833_vm5, %v13255_v28, 0.0 }
0x17e3   :  { %13260 = vpow2.f32 %v5296_v16  ;;  %5314 = vadd.xlane.f32.xlu0 %v5313_v11  ;;  %v12867_v16 = vpack.c.bf16 %v9582_v4, %v9581_v48 }
0x17e5   :  { %v13257_v23 = vpop.eup %13256 }
0x17e6   :  { %v5316_v58 = vsel %vm833_vm5, %v13257_v23, 0.0 }
0x17e7   :  { %5317 = vadd.xlane.f32.xlu1 %v5316_v58 }
0x17e9   :  { %v16203_v34 = vpop.eup %13258 }
0x17ea   :  { %v5319_v32 = vsel %vm833_vm5, %v16203_v34, 0.0 }
0x17eb   :  { %5320 = vadd.xlane.f32.xlu0 %v5319_v32 }
0x17ed   :  { %v16207_v55 = vpop.eup %13260 }
0x17ee   :  { %v5322_v60 = vsel %vm833_vm5, %v16207_v55, 0.0 }
0x17ef   :  { %5323 = vadd.xlane.f32.xlu1 %v5322_v60 }
0x185c   :  { %v5300_v50 = vpop.xlane.xlu1 %5299 }
0x185d   :  { %13262 = vrcp.f32 %v5300_v50 }
0x1860   :  { %v5303_v42 = vpop.xlane.xlu0 %5302 }
0x1861   :  { %13264 = vrcp.f32 %v5303_v42 }
0x1864   :  { %v5306_v54 = vpop.xlane.xlu1 %5305 }
0x1865   :  { %13266 = vrcp.f32 %v5306_v54 }
0x1867   :  { %v13263_v0 = vpop.eup %13262 }
0x1868   :  { %v5334_v30 = vmul.f32 %v13263_v0, %v13245_v18  ;;  %v5309_v46 = vpop.xlane.xlu0 %5308 }
0x1869   :  { %13268 = vrcp.f32 %v5309_v46 }
0x186a   :  { %11776 = vmatmul.mubr.msk.f32.vlgmr.msra.gmra.mrb[14].mxu0 %vm833_vm5, %v5334_v30 }
0x186b   :  { %v13265_v63 = vpop.eup %13264  ;;  %11778 = vmatprep.mubr.msk.f32.mxu0 %vm13479_vm2, %v17740_v33  ;;  %12865 = vmatpush3.bf16.msra.mxu0 %v12864_v1 }
0x186c   :  { %v5335_v11 = vmul.f32 %v13265_v63, %v13247_v36  ;;  %v5312_v18 = vpop.xlane.xlu1 %5311  ;;  %12866 = vmatprep.subr.bf16.mxu0 %v13478_v24 }
0x186d   :  { %13270 = vrcp.f32 %v5312_v18 }
0x186e   :  { %11779 = vmatmul.mubr.msk.f32.gmra.mrb[16].mxu0 %vm833_vm5, %v5335_v11 }
0x186f   :  { %v13267_v58 = vpop.eup %13266  ;;  %11781 = vmatprep.mubr.msk.f32.mxu0 %vm13479_vm2, %v17740_v33  ;;  %12868 = vmatpush3.bf16.msra.mxu0 %v12867_v16 }
0x1870   :  { %v5336_v32 = vmul.f32 %v13267_v58, %v16189_v21  ;;  %v5315_v60 = vpop.xlane.xlu0 %5314  ;;  %12875 = vmatprep.subr.bf16.mxu0 %v13478_v24 }
0x1871   :  { %13272 = vrcp.f32 %v5315_v60 }
0x1872   :  { %11782 = vmatmul.mubr.msk.f32.gmra.mrb[18].mxu0 %vm833_vm5, %v5336_v32 }
0x1873   :  { %v13269_v36 = vpop.eup %13268  ;;  %11784 = vmatprep.mubr.msk.f32.mxu0 %vm13479_vm2, %v17740_v33 }
0x1874   :  { %v5337_v50 = vmul.f32 %v13269_v36, %v16194_v40  ;;  %v5318_v42 = vpop.xlane.xlu1 %5317 }
0x1875   :  { %13274 = vrcp.f32 %v5318_v42 }
0x1876   :  { %11785 = vmatmul.mubr.msk.f32.gmra.mrb[20].mxu0 %vm833_vm5, %v5337_v50 }
0x1877   :  { %v13271_v54 = vpop.eup %13270  ;;  %11787 = vmatprep.mubr.msk.f32.mxu0 %vm13479_vm2, %v17740_v33 }
0x1878   :  { %v5338_v21 = vmul.f32 %v13271_v54, %v13253_v56  ;;  %v5321_v3 = vpop.xlane.xlu0 %5320 }
0x1879   :  { %13276 = vrcp.f32 %v5321_v3 }
0x187a   :  { %11788 = vmatmul.mubr.msk.f32.gmra.mrb[22].mxu0 %vm833_vm5, %v5338_v21 }
0x187b   :  { %v13273_v19 = vpop.eup %13272  ;;  %11790 = vmatprep.mubr.msk.f32.mxu0 %vm13479_vm2, %v17740_v33 }
0x187c   :  { %v5339_v0 = vmul.f32 %v13273_v19, %v13255_v28  ;;  %v5324_v1 = vpop.xlane.xlu1 %5323 }
0x187d   :  { %13278 = vrcp.f32 %v5324_v1 }
0x187e   :  { %11791 = vmatmul.mubr.msk.f32.gmra.mrb[24].mxu0 %vm833_vm5, %v5339_v0 }
0x187f   :  { %v13275_v40 = vpop.eup %13274  ;;  %11793 = vmatprep.mubr.msk.f32.mxu0 %vm13479_vm2, %v17740_v33 }
0x1880   :  { %v5340_v30 = vmul.f32 %v13275_v40, %v13257_v23  ;;  %v9584_v40 = vld [vmem:[%s17723_s5 + $0x11] ss:$0 sm:$0xff] }
0x1882   :  { %11794 = vmatmul.mubr.msk.f32.gmra.mrb[26].mxu0 %vm833_vm5, %v5340_v30 }
0x1883   :  { %v13277_v56 = vpop.eup %13276  ;;  %11796 = vmatprep.mubr.msk.f32.mxu0 %vm13479_vm2, %v17740_v33 }
0x1884   :  { %v5341_v46 = vmul.f32 %v13277_v56, %v16203_v34 }
0x1886   :  { %11797 = vmatmul.mubr.msk.f32.gmra.mrb[28].mxu0 %vm833_vm5, %v5341_v46 }
0x1887   :  { %v13279_v28 = vpop.eup %13278  ;;  %11799 = vmatprep.mubr.msk.f32.mxu0 %vm13479_vm2, %v17740_v33 }
0x1888   :  { %v5342_v48 = vmul.f32 %v13279_v28, %v16207_v55 }
0x188a   :  { %11800 = vmatmul.mubr.msk.f32.gmra.mrb[30].mxu0 %vm833_vm5, %v5342_v48 }
0x188b   :  { %11845 = vmatprep.mubr.msk.f32.mxu0 %vm13479_vm2, %v17740_v33 }
0x188e   :  { %11846 = vmatmul.mubr.msk.f32.vlgmr.msra.gmra.mrb[32].mxu0 %vm57_vm1, %v15703_v47 }
0x188f   :  { %11848 = vmatprep.mubr.msk.f32.mxu0 %vm13479_vm2, %v17740_v33 }
0x1892   :  { %11849 = vmatmul.mubr.msk.f32.gmra.mrb[34].mxu0 %vm57_vm1, %v15722_v14 }
0x1893   :  { %11851 = vmatprep.mubr.msk.f32.mxu0 %vm13479_vm2, %v17740_v33 }
0x1896   :  { %11852 = vmatmul.mubr.msk.f32.gmra.mrb[36].mxu0 %vm57_vm1, %v15736_v25 }
0x1897   :  { %11854 = vmatprep.mubr.msk.f32.mxu0 %vm13479_vm2, %v17740_v33 }
0x189a   :  { %11855 = vmatmul.mubr.msk.f32.gmra.mrb[38].mxu0 %vm57_vm1, %v15750_v15 }
0x189b   :  { %11857 = vmatprep.mubr.msk.f32.mxu0 %vm13479_vm2, %v17740_v33 }
0x189e   :  { %11858 = vmatmul.mubr.msk.f32.gmra.mrb[40].mxu0 %vm57_vm1, %v15763_v6 }
0x189f   :  { %11860 = vmatprep.mubr.msk.f32.mxu0 %vm13479_vm2, %v17740_v33 }
0x18a2   :  { %11861 = vmatmul.mubr.msk.f32.gmra.mrb[42].mxu0 %vm57_vm1, %v15776_v8 }
0x18a3   :  { %11863 = vmatprep.mubr.msk.f32.mxu0 %vm13479_vm2, %v17740_v33 }
0x18a6   :  { %11864 = vmatmul.mubr.msk.f32.gmra.mrb[44].mxu0 %vm57_vm1, %v15789_v29 }
0x18a7   :  { %11866 = vmatprep.mubr.msk.f32.mxu0 %vm13479_vm2, %v17740_v33 }
0x18aa   :  { %11867 = vmatmul.mubr.msk.f32.gmra.mrb[46].mxu0 %vm57_vm1, %v15802_v62 }
0x18ab   :  { %11869 = vmatprep.mubr.msk.f32.mxu0 %vm13479_vm2, %v17740_v33 }
0x18ae   :  { %11870 = vmatmul.mubr.msk.f32.gmra.mrb[48].mxu0 %vm57_vm1, %v15815_v53 }
0x18af   :  { %11925 = vmatprep.mubr.msk.f32.mxu0 %vm13479_vm2, %v17740_v33 }
0x193d   :  { %v16292_v23 = vpop.f32.mrb[14].mxu0 }
0x193e   :  { %v11777_v34 = vpop.f32.mrb[15].mxu0 }
0x1941   :  { %v16294_v55 = vpop.f32.mrb[16].mxu0 }
0x1942   :  { %v11780_v4 = vpop.f32.mrb[17].mxu0 }
0x1945   :  { %v16296_v63 = vpop.f32.mrb[18].mxu0 }
0x1946   :  { %v11783_v16 = vpop.f32.mrb[19].mxu0 }
0x1949   :  { %v16298_v11 = vpop.f32.mrb[20].mxu0 }
0x194a   :  { %v11786_v18 = vpop.f32.mrb[21].mxu0 }
0x194d   :  { %v16300_v58 = vpop.f32.mrb[22].mxu0 }
0x194e   :  { %v11789_v32 = vpop.f32.mrb[23].mxu0 }
0x1951   :  { %v16302_v60 = vpop.f32.mrb[24].mxu0 }
0x1952   :  { %v11792_v36 = vpop.f32.mrb[25].mxu0 }
0x1955   :  { %v16304_v50 = vpop.f32.mrb[26].mxu0 }
0x1956   :  { %v11795_v42 = vpop.f32.mrb[27].mxu0 }
0x1959   :  { %v16306_v54 = vpop.f32.mrb[28].mxu0 }
0x195a   :  { %v11798_v21 = vpop.f32.mrb[29].mxu0 }
0x195d   :  { %v16308_v3 = vpop.f32.mrb[30].mxu0 }
0x195e   :  { %v11801_v19 = vpop.f32.mrb[31].mxu0 }
0x1961   :  { %v5684_v0 = vpop.f32.mrb[32].mxu0 }
0x1962   :  { %v11847_v1 = vpop.f32.mrb[33].mxu0  ;;  %v5685_v56 = vadd.f32 %v9584_v40, %v5684_v0 }
0x1965   :  { %v5689_v30 = vpop.f32.mrb[34].mxu0 }
0x1966   :  { %v5690_v46 = vadd.f32 %v9584_v40, %v5689_v30  ;;  %v11850_v28 = vpop.f32.mrb[35].mxu0 }
0x1968   :  { %v12876_v48 = vpack.c.bf16 %v5690_v46, %v5685_v56 }
0x1969   :  { %v5694_v34 = vpop.f32.mrb[36].mxu0 }
0x196a   :  { %v11853_v4 = vpop.f32.mrb[37].mxu0  ;;  %12878 = vmatpush3.bf16.xpose.msk.msra.mxu0 %vm13884_vm4, %v12876_v48  ;;  %v5695_v18 = vadd.f32 %v9584_v40, %v5694_v34 }
0x196b   :  { %12879 = vmatprep.subr.bf16.mxu0 %v13478_v24 }
0x196d   :  { %v5699_v16 = vpop.f32.mrb[38].mxu0 }
0x196e   :  { %v5700_v32 = vadd.f32 %v9584_v40, %v5699_v16  ;;  %v11856_v36 = vpop.f32.mrb[39].mxu0 }
0x1970   :  { %v12880_v42 = vpack.c.bf16 %v5700_v32, %v5695_v18 }
0x1971   :  { %v5704_v21 = vpop.f32.mrb[40].mxu0 }
0x1972   :  { %v11859_v19 = vpop.f32.mrb[41].mxu0  ;;  %12882 = vmatpush3.bf16.xpose.msk.msra.mxu0 %vm13884_vm4, %v12880_v42  ;;  %v5705_v1 = vadd.f32 %v9584_v40, %v5704_v21  ;;  %v9569_v21 = vld [vmem:[%s17723_s5 + $0xd] ss:$0 sm:$0xff] }
0x1973   :  { %12883 = vmatprep.subr.bf16.mxu0 %v13478_v24 }
0x1975   :  { %v5709_v0 = vpop.f32.mrb[42].mxu0 }
0x1976   :  { %v5710_v30 = vadd.f32 %v9584_v40, %v5709_v0  ;;  %v11862_v56 = vpop.f32.mrb[43].mxu0  ;;  %v5562_v0 = vadd.f32 %v9569_v21, %v16153_v9  ;;  %v5577_v9 = vadd.f32 %v9569_v21, %v16161_v61  ;;  %v5592_v61 = vadd.f32 %v9569_v21, %v16167_v20 }
0x1978   :  { %v12884_v46 = vpack.c.bf16 %v5710_v30, %v5705_v1  ;;  %v5567_v1 = vadd.f32 %v9569_v21, %v16157_v35  ;;  %v5582_v35 = vadd.f32 %v9569_v21, %v16163_v52  ;;  %v5597_v52 = vadd.f32 %v9569_v21, %v16169_v26 }
0x1979   :  { %v5714_v28 = vpop.f32.mrb[44].mxu0 }
0x197a   :  { %v11865_v48 = vpop.f32.mrb[45].mxu0  ;;  %12886 = vmatpush3.bf16.xpose.msk.msra.mxu0 %vm13884_vm4, %v12884_v46  ;;  %v5715_v4 = vadd.f32 %v9584_v40, %v5714_v28 }
0x197b   :  { %12887 = vmatprep.subr.bf16.mxu0 %v13478_v24 }
0x197d   :  { %v5719_v34 = vpop.f32.mrb[46].mxu0 }
0x197e   :  { %v5720_v16 = vadd.f32 %v9584_v40, %v5719_v34  ;;  %v11868_v18 = vpop.f32.mrb[47].mxu0 }
0x1980   :  { %v12888_v32 = vpack.c.bf16 %v5720_v16, %v5715_v4 }
0x1981   :  { %v5724_v36 = vpop.f32.mrb[48].mxu0 }
0x1982   :  { %v11871_v42 = vpop.f32.mrb[49].mxu0  ;;  %12890 = vmatpush3.bf16.xpose.msk.msra.mxu0 %vm13884_vm4, %v12888_v32  ;;  %v5725_v19 = vadd.f32 %v9584_v40, %v5724_v36  ;;  %v5572_v40 = vadd.f32 %v9569_v21, %v16159_v41  ;;  %v5587_v41 = vadd.f32 %v9569_v21, %v16165_v44  ;;  %v5602_v44 = vadd.f32 %v9569_v21, %v16171_v45 }
0x1983   :  { %11923 = vmatprep.subr.mxu0 %v17740_v33 }
0x198a   :  { %11924 = vmatpush3.xpose.msk.msra.mxu0 %vm650_vm3, %v5725_v19 }
0x198b   :  { %11997 = vmatprep.subr.mxu0 %v17740_v33 }
0x198d   :  { %11926 = vmatmul.mubr.msk.f32.vlgmr.msra.gmra.mrb[50].mxu0 %vm650_vm3, %v5562_v0 }
0x198e   :  { %11928 = vmatprep.mubr.msk.f32.mxu0 %vm13479_vm2, %v17740_v33 }
0x1991   :  { %11929 = vmatmul.mubr.msk.f32.gmra.mrb[52].mxu0 %vm650_vm3, %v5567_v1 }
0x1992   :  { %11931 = vmatprep.mubr.msk.f32.mxu0 %vm13479_vm2, %v17740_v33 }
0x1995   :  { %11932 = vmatmul.mubr.msk.f32.gmra.mrb[54].mxu0 %vm650_vm3, %v5572_v40 }
0x1996   :  { %11934 = vmatprep.mubr.msk.f32.mxu0 %vm13479_vm2, %v17740_v33 }
0x1999   :  { %11935 = vmatmul.mubr.msk.f32.gmra.mrb[56].mxu0 %vm650_vm3, %v5577_v9 }
0x199a   :  { %11937 = vmatprep.mubr.msk.f32.mxu0 %vm13479_vm2, %v17740_v33 }
0x199d   :  { %11938 = vmatmul.mubr.msk.f32.gmra.mrb[58].mxu0 %vm650_vm3, %v5582_v35 }
0x199e   :  { %11940 = vmatprep.mubr.msk.f32.mxu0 %vm13479_vm2, %v17740_v33 }
0x19a1   :  { %11941 = vmatmul.mubr.msk.f32.gmra.mrb[60].mxu0 %vm650_vm3, %v5587_v41 }
0x19a2   :  { %11943 = vmatprep.mubr.msk.f32.mxu0 %vm13479_vm2, %v17740_v33 }
0x19a5   :  { %11944 = vmatmul.mubr.msk.f32.gmra.mrb[62].mxu0 %vm650_vm3, %v5592_v61 }
0x19a6   :  { %11946 = vmatprep.mubr.msk.f32.mxu0 %vm13479_vm2, %v17740_v33 }
0x19a9   :  { %11947 = vmatmul.mubr.msk.f32.gmra.mrb[64].mxu0 %vm650_vm3, %v5597_v52 }
0x19aa   :  { %11949 = vmatprep.mubr.msk.f32.mxu0 %vm13479_vm2, %v17740_v33 }
0x19ad   :  { %11950 = vmatmul.mubr.msk.f32.gmra.mrb[66].mxu0 %vm650_vm3, %v5602_v44 }
0x19ae   :  { %11999 = vmatprep.mubr.msk.f32.mxu0 %vm13479_vm2, %v17740_v33 }
0x1a60   :  { %v5971_v20 = vpop.f32.mrb[50].mxu0 }
0x1a61   :  { %v6015_v30 = vmul.f32 0.35355338, %v5971_v20  ;;  %v11927_v56 = vpop.f32.mrb[51].mxu0 }
0x1a63   :  { %v6024_v46 = vadd.f32 %v16068_v10, %v6015_v30 }
0x1a64   :  { %v5976_v28 = vpop.f32.mrb[52].mxu0 }
0x1a65   :  { %v6016_v48 = vmul.f32 0.35355338, %v5976_v28  ;;  %v11930_v26 = vpop.f32.mrb[53].mxu0  ;;  %v6033_v34 = vsel %vm833_vm5, %v6024_v46, -inf }
0x1a66   :  { %6034 = vmax.xlane.f32.xlu0 %v6033_v34 }
0x1a67   :  { %v6025_v4 = vadd.f32 %v16078_v51, %v6016_v48 }
0x1a68   :  { %v5981_v16 = vpop.f32.mrb[54].mxu0 }
0x1a69   :  { %v6017_v45 = vmul.f32 0.35355338, %v5981_v16  ;;  %v11933_v18 = vpop.f32.mrb[55].mxu0  ;;  %v6036_v32 = vsel %vm833_vm5, %v6025_v4, -inf }
0x1a6a   :  { %6037 = vmax.xlane.f32.xlu1 %v6036_v32 }
0x1a6b   :  { %v6026_v36 = vadd.f32 %v16088_v37, %v6017_v45 }
0x1a6c   :  { %v5986_v42 = vpop.f32.mrb[56].mxu0 }
0x1a6d   :  { %v6018_v21 = vmul.f32 0.35355338, %v5986_v42  ;;  %v11936_v19 = vpop.f32.mrb[57].mxu0  ;;  %v6039_v10 = vsel %vm833_vm5, %v6026_v36, -inf }
0x1a6e   :  { %6040 = vmax.xlane.f32.xlu0 %v6039_v10 }
0x1a6f   :  { %v6027_v0 = vadd.f32 %v16098_v22, %v6018_v21 }
0x1a70   :  { %v5991_v1 = vpop.f32.mrb[58].mxu0 }
0x1a71   :  { %v6019_v40 = vmul.f32 0.35355338, %v5991_v1  ;;  %v11939_v9 = vpop.f32.mrb[59].mxu0  ;;  %v6042_v51 = vsel %vm833_vm5, %v6027_v0, -inf }
0x1a72   :  { %6043 = vmax.xlane.f32.xlu1 %v6042_v51 }
0x1a73   :  { %v6028_v35 = vadd.f32 %v16108_v27, %v6019_v40 }
0x1a74   :  { %v5996_v41 = vpop.f32.mrb[60].mxu0 }
0x1a75   :  { %v6020_v61 = vmul.f32 0.35355338, %v5996_v41  ;;  %v11942_v52 = vpop.f32.mrb[61].mxu0  ;;  %v6045_v37 = vsel %vm833_vm5, %v6028_v35, -inf }
0x1a76   :  { %6046 = vmax.xlane.f32.xlu0 %v6045_v37 }
0x1a77   :  { %v6029_v44 = vadd.f32 %v16118_v49, %v6020_v61 }
0x1a78   :  { %v6001_v20 = vpop.f32.mrb[62].mxu0 }
0x1a79   :  { %v6021_v30 = vmul.f32 0.35355338, %v6001_v20  ;;  %v11945_v56 = vpop.f32.mrb[63].mxu0  ;;  %v6048_v22 = vsel %vm833_vm5, %v6029_v44, -inf }
0x1a7a   :  { %6049 = vmax.xlane.f32.xlu1 %v6048_v22 }
0x1a7b   :  { %v6030_v28 = vadd.f32 %v16128_v2, %v6021_v30 }
0x1a7c   :  { %v6006_v48 = vpop.f32.mrb[64].mxu0 }
0x1a7d   :  { %v6022_v26 = vmul.f32 0.35355338, %v6006_v48  ;;  %v11948_v34 = vpop.f32.mrb[65].mxu0  ;;  %v6051_v27 = vsel %vm833_vm5, %v6030_v28, -inf }
0x1a7e   :  { %6052 = vmax.xlane.f32.xlu0 %v6051_v27 }
0x1a7f   :  { %v6031_v16 = vadd.f32 %v16138_v17, %v6022_v26 }
0x1a80   :  { %v6011_v45 = vpop.f32.mrb[66].mxu0 }
0x1a81   :  { %v6023_v18 = vmul.f32 0.35355338, %v6011_v45  ;;  %v11951_v32 = vpop.f32.mrb[67].mxu0  ;;  %v6054_v49 = vsel %vm833_vm5, %v6031_v16, -inf }
0x1a82   :  { %6055 = vmax.xlane.f32.xlu1 %v6054_v49 }
0x1a83   :  { %v6032_v42 = vadd.f32 %v16148_v59, %v6023_v18 }
0x1a85   :  { %v6057_v21 = vsel %vm833_vm5, %v6032_v42, -inf }
0x1a86   :  { %6058 = vmax.xlane.f32.xlu0 %v6057_v21 }
0x1af3   :  { %v6035_v2 = vpop.xlane.xlu0 %6034 }
0x1af4   :  { %v6060_v19 = vsub.f32 %v6024_v46, %v6035_v2 }
0x1af6   :  { %v6069_v10 = vmul.f32 1.442695, %v6060_v19 }
0x1af7   :  { %v6038_v1 = vpop.xlane.xlu1 %6037 }
0x1af8   :  { %13280 = vpow2.f32 %v6069_v10  ;;  %v6061_v40 = vsub.f32 %v6025_v4, %v6038_v1 }
0x1afa   :  { %v6071_v9 = vmul.f32 1.442695, %v6061_v40 }
0x1afb   :  { %v6041_v51 = vpop.xlane.xlu0 %6040 }
0x1afc   :  { %13282 = vpow2.f32 %v6071_v9  ;;  %v6062_v17 = vsub.f32 %v6026_v36, %v6041_v51 }
0x1afe   :  { %v6073_v41 = vmul.f32 1.442695, %v6062_v17 }
0x1aff   :  { %v6044_v61 = vpop.xlane.xlu1 %6043 }
0x1b00   :  { %13284 = vpow2.f32 %v6073_v41  ;;  %v6063_v52 = vsub.f32 %v6027_v0, %v6044_v61 }
0x1b02   :  { %v13281_v37 = vpop.eup %13280  ;;  %v6075_v20 = vmul.f32 1.442695, %v6063_v52 }
0x1b03   :  { %v6047_v59 = vpop.xlane.xlu0 %6046  ;;  %v6087_v30 = vsel %vm833_vm5, %v13281_v37, 0.0 }
0x1b04   :  { %13286 = vpow2.f32 %v6075_v20  ;;  %v6064_v56 = vsub.f32 %v6028_v35, %v6047_v59  ;;  %6088 = vadd.xlane.f32.xlu1 %v6087_v30 }
0x1b06   :  { %v13283_v46 = vpop.eup %13282  ;;  %v6077_v22 = vmul.f32 1.442695, %v6064_v56 }
0x1b07   :  { %v6050_v48 = vpop.xlane.xlu1 %6049  ;;  %v6090_v4 = vsel %vm833_vm5, %v13283_v46, 0.0 }
0x1b08   :  { %13288 = vpow2.f32 %v6077_v22  ;;  %v6065_v26 = vsub.f32 %v6029_v44, %v6050_v48  ;;  %6091 = vadd.xlane.f32.xlu0 %v6090_v4  ;;  %v9563_v4 = vld [vmem:[%s17725_s6 + $0x20] sm:$0xff] }
0x1b0a   :  { %v13285_v36 = vpop.eup %13284  ;;  %v6079_v34 = vmul.f32 1.442695, %v6065_v26 }
0x1b0b   :  { %v6053_v27 = vpop.xlane.xlu0 %6052  ;;  %v6093_v0 = vsel %vm833_vm5, %v13285_v36, 0.0 }
0x1b0c   :  { %13290 = vpow2.f32 %v6079_v34  ;;  %v6066_v45 = vsub.f32 %v6030_v28, %v6053_v27  ;;  %6094 = vadd.xlane.f32.xlu1 %v6093_v0 }
0x1b0e   :  { %v13287_v18 = vpop.eup %13286  ;;  %v6081_v32 = vmul.f32 1.442695, %v6066_v45 }
0x1b0f   :  { %v6056_v35 = vpop.xlane.xlu1 %6055  ;;  %v6096_v49 = vsel %vm833_vm5, %v13287_v18, 0.0 }
0x1b10   :  { %13292 = vpow2.f32 %v6081_v32  ;;  %v6067_v21 = vsub.f32 %v6031_v16, %v6056_v35  ;;  %6097 = vadd.xlane.f32.xlu0 %v6096_v49 }
0x1b12   :  { %v13289_v2 = vpop.eup %13288  ;;  %v6083_v19 = vmul.f32 1.442695, %v6067_v21 }
0x1b13   :  { %v6059_v44 = vpop.xlane.xlu0 %6058  ;;  %v6099_v10 = vsel %vm833_vm5, %v13289_v2, 0.0 }
0x1b14   :  { %13294 = vpow2.f32 %v6083_v19  ;;  %v6068_v1 = vsub.f32 %v6032_v42, %v6059_v44  ;;  %6100 = vadd.xlane.f32.xlu1 %v6099_v10  ;;  %v9636_v42 = vld [vmem:[%s17725_s6 + $0x28] sm:$0xff] }
0x1b15   :  { %11998 = vmatpush3.msra.mxu0 %v9636_v42 }
0x1b16   :  { %v13291_v40 = vpop.eup %13290  ;;  %v6085_v9 = vmul.f32 1.442695, %v6068_v1  ;;  %12903 = vmatprep.subr.bf16.mxu0 %v13478_v24 }
0x1b17   :  { %v6102_v28 = vsel %vm833_vm5, %v13291_v40, 0.0 }
0x1b18   :  { %13296 = vpow2.f32 %v6085_v9  ;;  %6103 = vadd.xlane.f32.xlu0 %v6102_v28 }
0x1b1a   :  { %v13293_v51 = vpop.eup %13292 }
0x1b1b   :  { %v6105_v17 = vsel %vm833_vm5, %v13293_v51, 0.0 }
0x1b1c   :  { %6106 = vadd.xlane.f32.xlu1 %v6105_v17  ;;  %v9670_v17 = vld [vmem:[%s17721_s4 + $0x240] sm:$0xff] }
0x1b1e   :  { %v13295_v16 = vpop.eup %13294 }
0x1b1f   :  { %v6108_v41 = vsel %vm833_vm5, %v13295_v16, 0.0 }
0x1b20   :  { %6109 = vadd.xlane.f32.xlu0 %v6108_v41  ;;  %v9672_v41 = vld [vmem:[%s17721_s4 + $0x250] sm:$0xff] }
0x1b22   :  { %v13297_v61 = vpop.eup %13296 }
0x1b23   :  { %v6111_v52 = vsel %vm833_vm5, %v13297_v61, 0.0 }
0x1b24   :  { %6112 = vadd.xlane.f32.xlu1 %v6111_v52 }
0x1b91   :  { %v6089_v20 = vpop.xlane.xlu1 %6088 }
0x1b92   :  { %13298 = vrcp.f32 %v6089_v20 }
0x1b95   :  { %v6092_v59 = vpop.xlane.xlu0 %6091 }
0x1b96   :  { %13300 = vrcp.f32 %v6092_v59 }
0x1b99   :  { %v6095_v30 = vpop.xlane.xlu1 %6094 }
0x1b9a   :  { %13302 = vrcp.f32 %v6095_v30 }
0x1b9c   :  { %v13299_v56 = vpop.eup %13298 }
0x1b9d   :  { %v6123_v22 = vmul.f32 %v13299_v56, %v13281_v37  ;;  %v6098_v48 = vpop.xlane.xlu0 %6097 }
0x1b9e   :  { %13304 = vrcp.f32 %v6098_v48 }
0x1b9f   :  { %11971 = vmatmul.mubr.msk.f32.vlgmr.msra.gmra.mrb[50].mxu1 %vm833_vm5, %v6123_v22 }
0x1ba0   :  { %v13301_v26 = vpop.eup %13300  ;;  %11973 = vmatprep.mubr.msk.f32.mxu1 %vm13479_vm2, %v17740_v33  ;;  %12027 = vmatpush3.msra.mxu1 %v9563_v4 }
0x1ba1   :  { %v6124_v34 = vmul.f32 %v13301_v26, %v13283_v46  ;;  %v6101_v27 = vpop.xlane.xlu1 %6100  ;;  %12909 = vmatprep.subr.bf16.mxu1 %v13478_v24 }
0x1ba2   :  { %13306 = vrcp.f32 %v6101_v27 }
0x1ba3   :  { %11974 = vmatmul.mubr.msk.f32.gmra.mrb[52].mxu1 %vm833_vm5, %v6124_v34 }
0x1ba4   :  { %v13303_v37 = vpop.eup %13302  ;;  %11976 = vmatprep.mubr.msk.f32.mxu1 %vm13479_vm2, %v17740_v33 }
0x1ba5   :  { %v6125_v0 = vmul.f32 %v13303_v37, %v13285_v36  ;;  %v6104_v45 = vpop.xlane.xlu0 %6103 }
0x1ba6   :  { %13308 = vrcp.f32 %v6104_v45  ;;  %v9685_v45 = vld [vmem:[%s17721_s4 + $0x2c0] sm:$0xff] }
0x1ba7   :  { %11977 = vmatmul.mubr.msk.f32.gmra.mrb[54].mxu1 %vm833_vm5, %v6125_v0 }
0x1ba8   :  { %v13305_v32 = vpop.eup %13304  ;;  %11979 = vmatprep.mubr.msk.f32.mxu1 %vm13479_vm2, %v17740_v33 }
0x1ba9   :  { %v6126_v46 = vmul.f32 %v13305_v32, %v13287_v18  ;;  %v6107_v35 = vpop.xlane.xlu1 %6106  ;;  %v9686_v32 = vld [vmem:[%s17721_s4 + $0x2c8] sm:$0xff] }
0x1baa   :  { %13310 = vrcp.f32 %v6107_v35 }
0x1bab   :  { %11980 = vmatmul.mubr.msk.f32.gmra.mrb[56].mxu1 %vm833_vm5, %v6126_v46 }
0x1bac   :  { %v13307_v49 = vpop.eup %13306  ;;  %11982 = vmatprep.mubr.msk.f32.mxu1 %vm13479_vm2, %v17740_v33 }
0x1bad   :  { %v6127_v21 = vmul.f32 %v13307_v49, %v13289_v2  ;;  %v6110_v19 = vpop.xlane.xlu0 %6109  ;;  %v12916_v49 = vpack.c.bf16 %v9686_v32, %v9685_v45 }
0x1bae   :  { %13312 = vrcp.f32 %v6110_v19  ;;  %v9688_v19 = vld [vmem:[%s17721_s4 + $0x2d8] sm:$0xff] }
0x1baf   :  { %11983 = vmatmul.mubr.msk.f32.gmra.mrb[58].mxu1 %vm833_vm5, %v6127_v21  ;;  %v9687_v21 = vld [vmem:[%s17721_s4 + $0x2d0] sm:$0xff] }
0x1bb0   :  { %v13309_v36 = vpop.eup %13308  ;;  %11985 = vmatprep.mubr.msk.f32.mxu1 %vm13479_vm2, %v17740_v33 }
0x1bb1   :  { %v6128_v44 = vmul.f32 %v13309_v36, %v13291_v40  ;;  %v6113_v10 = vpop.xlane.xlu1 %6112 }
0x1bb2   :  { %13314 = vrcp.f32 %v6113_v10  ;;  %v12919_v10 = vpack.c.bf16 %v9688_v19, %v9687_v21 }
0x1bb3   :  { %11986 = vmatmul.mubr.msk.f32.gmra.mrb[60].mxu1 %vm833_vm5, %v6128_v44 }
0x1bb4   :  { %v13311_v18 = vpop.eup %13310  ;;  %11988 = vmatprep.mubr.msk.f32.mxu1 %vm13479_vm2, %v17740_v33 }
0x1bb5   :  { %v6129_v1 = vmul.f32 %v13311_v18, %v13293_v51  ;;  %v9671_v51 = vld [vmem:[%s17721_s4 + $0x248] sm:$0xff] }
0x1bb7   :  { %11989 = vmatmul.mubr.msk.f32.gmra.mrb[62].mxu1 %vm833_vm5, %v6129_v1 }
0x1bb8   :  { %v13313_v2 = vpop.eup %13312  ;;  %11991 = vmatprep.mubr.msk.f32.mxu1 %vm13479_vm2, %v17740_v33 }
0x1bb9   :  { %v6130_v9 = vmul.f32 %v13313_v2, %v13295_v16  ;;  %v12910_v16 = vpack.c.bf16 %v9671_v51, %v9670_v17 }
0x1bbb   :  { %11992 = vmatmul.mubr.msk.f32.gmra.mrb[64].mxu1 %vm833_vm5, %v6130_v9 }
0x1bbc   :  { %v13315_v28 = vpop.eup %13314  ;;  %11994 = vmatprep.mubr.msk.f32.mxu1 %vm13479_vm2, %v17740_v33 }
0x1bbd   :  { %v6131_v40 = vmul.f32 %v13315_v28, %v13297_v61  ;;  %v9673_v61 = vld [vmem:[%s17721_s4 + $0x258] sm:$0xff] }
0x1bbe   :  { %v12913_v52 = vpack.c.bf16 %v9673_v61, %v9672_v41 }
0x1bbf   :  { %11995 = vmatmul.mubr.msk.f32.gmra.mrb[66].mxu1 %vm833_vm5, %v6131_v40 }
0x1bc0   :  { %12028 = vmatprep.mubr.msk.f32.mxu1 %vm13479_vm2, %v17740_v33 }
0x1bc3   :  { %12029 = vmatmul.mubr.msk.f32.vlgmr.msra.gmra.mrb[68].mxu1 %vm650_vm3, %v16292_v23  ;;  %v9655_v23 = vld [vmem:[%s17721_s4 + $0x1c0] sm:$0xff] }
0x1bc4   :  { %12031 = vmatprep.mubr.msk.f32.mxu1 %vm13479_vm2, %v17740_v33  ;;  %12911 = vmatpush3.bf16.msra.mxu1 %v12910_v16 }
0x1bc5   :  { %12912 = vmatprep.subr.bf16.mxu1 %v13478_v24 }
0x1bc7   :  { %12032 = vmatmul.mubr.msk.f32.gmra.mrb[70].mxu1 %vm650_vm3, %v16294_v55  ;;  %v9656_v55 = vld [vmem:[%s17721_s4 + $0x1c8] sm:$0xff] }
0x1bc8   :  { %12034 = vmatprep.mubr.msk.f32.mxu1 %vm13479_vm2, %v17740_v33  ;;  %12914 = vmatpush3.bf16.msra.mxu1 %v12913_v52 }
0x1bc9   :  { %12921 = vmatprep.subr.bf16.mxu1 %v13478_v24 }
0x1bcb   :  { %12035 = vmatmul.mubr.msk.f32.gmra.mrb[72].mxu1 %vm650_vm3, %v16296_v63  ;;  %v12904_v63 = vpack.c.bf16 %v9656_v55, %v9655_v23 }
0x1bcc   :  { %12037 = vmatprep.mubr.msk.f32.mxu1 %vm13479_vm2, %v17740_v33 }
0x1bcf   :  { %12038 = vmatmul.mubr.msk.f32.gmra.mrb[74].mxu1 %vm650_vm3, %v16298_v11  ;;  %v9657_v11 = vld [vmem:[%s17721_s4 + $0x1d0] sm:$0xff] }
0x1bd0   :  { %12040 = vmatprep.mubr.msk.f32.mxu1 %vm13479_vm2, %v17740_v33 }
0x1bd3   :  { %12041 = vmatmul.mubr.msk.f32.gmra.mrb[76].mxu1 %vm650_vm3, %v16300_v58  ;;  %v9658_v58 = vld [vmem:[%s17721_s4 + $0x1d8] sm:$0xff] }
0x1bd4   :  { %12043 = vmatprep.mubr.msk.f32.mxu1 %vm13479_vm2, %v17740_v33 }
0x1bd7   :  { %12044 = vmatmul.mubr.msk.f32.gmra.mrb[78].mxu1 %vm650_vm3, %v16302_v60 }
0x1bd8   :  { %12046 = vmatprep.mubr.msk.f32.mxu1 %vm13479_vm2, %v17740_v33 }
0x1bdb   :  { %12047 = vmatmul.mubr.msk.f32.gmra.mrb[80].mxu1 %vm650_vm3, %v16304_v50 }
0x1bdc   :  { %12049 = vmatprep.mubr.msk.f32.mxu1 %vm13479_vm2, %v17740_v33 }
0x1bdf   :  { %12050 = vmatmul.mubr.msk.f32.gmra.mrb[82].mxu1 %vm650_vm3, %v16306_v54  ;;  %v12907_v54 = vpack.c.bf16 %v9658_v58, %v9657_v11 }
0x1be0   :  { %12052 = vmatprep.mubr.msk.f32.mxu1 %vm13479_vm2, %v17740_v33 }
0x1be3   :  { %12053 = vmatmul.mubr.msk.f32.gmra.mrb[84].mxu1 %vm650_vm3, %v16308_v3 }
0x1be4   :  { %12098 = vmatprep.mubr.msk.f32.mxu1 %vm13479_vm2, %v17740_v33 }
0x1be7   :  { %12099 = vmatmul.mubr.msk.f32.vlgmr.msra.gmra.mrb[86].mxu1 %vm57_vm1, %v15703_v47 }
0x1be8   :  { %12101 = vmatprep.mubr.msk.f32.mxu1 %vm13479_vm2, %v17740_v33 }
0x1beb   :  { %12102 = vmatmul.mubr.msk.f32.gmra.mrb[88].mxu1 %vm57_vm1, %v15722_v14 }
0x1bec   :  { %12104 = vmatprep.mubr.msk.f32.mxu1 %vm13479_vm2, %v17740_v33 }
0x1bef   :  { %12105 = vmatmul.mubr.msk.f32.gmra.mrb[90].mxu1 %vm57_vm1, %v15736_v25 }
0x1bf0   :  { %12107 = vmatprep.mubr.msk.f32.mxu1 %vm13479_vm2, %v17740_v33 }
0x1bf3   :  { %12108 = vmatmul.mubr.msk.f32.gmra.mrb[92].mxu1 %vm57_vm1, %v15750_v15 }
0x1bf4   :  { %12110 = vmatprep.mubr.msk.f32.mxu1 %vm13479_vm2, %v17740_v33 }
0x1bf7   :  { %12111 = vmatmul.mubr.msk.f32.gmra.mrb[94].mxu1 %vm57_vm1, %v15763_v6 }
0x1bf8   :  { %12113 = vmatprep.mubr.msk.f32.mxu1 %vm13479_vm2, %v17740_v33 }
0x1bfb   :  { %12114 = vmatmul.mubr.msk.f32.gmra.mrb[96].mxu1 %vm57_vm1, %v15776_v8 }
0x1bfc   :  { %12116 = vmatprep.mubr.msk.f32.mxu1 %vm13479_vm2, %v17740_v33 }
0x1bff   :  { %12117 = vmatmul.mubr.msk.f32.gmra.mrb[98].mxu1 %vm57_vm1, %v15789_v29 }
0x1c00   :  { %12119 = vmatprep.mubr.msk.f32.mxu1 %vm13479_vm2, %v17740_v33 }
0x1c03   :  { %12120 = vmatmul.mubr.msk.f32.gmra.mrb[100].mxu1 %vm57_vm1, %v15802_v62 }
0x1c04   :  { %12122 = vmatprep.mubr.msk.f32.mxu1 %vm13479_vm2, %v17740_v33 }
0x1c07   :  { %12123 = vmatmul.mubr.msk.f32.gmra.mrb[102].mxu1 %vm57_vm1, %v15815_v53 }
0x1c08   :  { %12178 = vmatprep.mubr.msk.f32.mxu1 %vm13479_vm2, %v17740_v33 }
0x1c72   :  { %v6225_v60 = vpop.f32.mrb[50].mxu1 }
0x1c73   :  { %v11972_v50 = vpop.f32.mrb[51].mxu1  ;;  %12000 = vmatmul.mubr.msk.f32.vlgmr.msra.gmra.mrb[68].mxu0 %vm650_vm3, %v6225_v60 }
0x1c74   :  { %12002 = vmatprep.mubr.msk.f32.mxu0 %vm13479_vm2, %v17740_v33  ;;  %12905 = vmatpush3.bf16.msra.mxu0 %v12904_v63  ;;  %v9675_v50 = vld [vmem:[%s17723_s5 + $0x12] ss:$0 sm:$0xff] }
0x1c75   :  { %12906 = vmatprep.subr.bf16.mxu0 %v13478_v24 }
0x1c76   :  { %v6230_v3 = vpop.f32.mrb[52].mxu1 }
0x1c77   :  { %v11975_v42 = vpop.f32.mrb[53].mxu1  ;;  %12003 = vmatmul.mubr.msk.f32.gmra.mrb[70].mxu0 %vm650_vm3, %v6230_v3 }
0x1c78   :  { %12005 = vmatprep.mubr.msk.f32.mxu0 %vm13479_vm2, %v17740_v33  ;;  %12908 = vmatpush3.bf16.msra.mxu0 %v12907_v54 }
0x1c79   :  { %12915 = vmatprep.subr.bf16.mxu0 %v13478_v24 }
0x1c7a   :  { %v6235_v20 = vpop.f32.mrb[54].mxu1 }
0x1c7b   :  { %v11978_v59 = vpop.f32.mrb[55].mxu1  ;;  %12006 = vmatmul.mubr.msk.f32.gmra.mrb[72].mxu0 %vm650_vm3, %v6235_v20 }
0x1c7c   :  { %12008 = vmatprep.mubr.msk.f32.mxu0 %vm13479_vm2, %v17740_v33 }
0x1c7e   :  { %v6240_v30 = vpop.f32.mrb[56].mxu1 }
0x1c7f   :  { %v11981_v56 = vpop.f32.mrb[57].mxu1  ;;  %12009 = vmatmul.mubr.msk.f32.gmra.mrb[74].mxu0 %vm650_vm3, %v6240_v30 }
0x1c80   :  { %12011 = vmatprep.mubr.msk.f32.mxu0 %vm13479_vm2, %v17740_v33 }
0x1c82   :  { %v6245_v22 = vpop.f32.mrb[58].mxu1 }
0x1c83   :  { %v11984_v48 = vpop.f32.mrb[59].mxu1  ;;  %12012 = vmatmul.mubr.msk.f32.gmra.mrb[76].mxu0 %vm650_vm3, %v6245_v22 }
0x1c84   :  { %12014 = vmatprep.mubr.msk.f32.mxu0 %vm13479_vm2, %v17740_v33 }
0x1c86   :  { %v6250_v4 = vpop.f32.mrb[60].mxu1 }
0x1c87   :  { %v11987_v26 = vpop.f32.mrb[61].mxu1  ;;  %12015 = vmatmul.mubr.msk.f32.gmra.mrb[78].mxu0 %vm650_vm3, %v6250_v4 }
0x1c88   :  { %12017 = vmatprep.mubr.msk.f32.mxu0 %vm13479_vm2, %v17740_v33 }
0x1c8a   :  { %v6255_v34 = vpop.f32.mrb[62].mxu1 }
0x1c8b   :  { %v11990_v27 = vpop.f32.mrb[63].mxu1  ;;  %12018 = vmatmul.mubr.msk.f32.gmra.mrb[80].mxu0 %vm650_vm3, %v6255_v34 }
0x1c8c   :  { %12020 = vmatprep.mubr.msk.f32.mxu0 %vm13479_vm2, %v17740_v33 }
0x1c8e   :  { %v6260_v37 = vpop.f32.mrb[64].mxu1 }
0x1c8f   :  { %v11993_v0 = vpop.f32.mrb[65].mxu1  ;;  %12021 = vmatmul.mubr.msk.f32.gmra.mrb[82].mxu0 %vm650_vm3, %v6260_v37 }
0x1c90   :  { %12023 = vmatprep.mubr.msk.f32.mxu0 %vm13479_vm2, %v17740_v33 }
0x1c92   :  { %v6265_v46 = vpop.f32.mrb[66].mxu1 }
0x1c93   :  { %v11996_v35 = vpop.f32.mrb[67].mxu1  ;;  %12024 = vmatmul.mubr.msk.f32.gmra.mrb[84].mxu0 %vm650_vm3, %v6265_v46 }
0x1c94   :  { %12063 = vmatprep.mubr.msk.f32.mxu0 %vm13479_vm2, %v17740_v33 }
0x1c96   :  { %v16567_v36 = vpop.f32.mrb[68].mxu1 }
0x1c97   :  { %v12030_v44 = vpop.f32.mrb[69].mxu1  ;;  %12064 = vmatmul.mubr.msk.f32.vlgmr.msra.gmra.mrb[86].mxu0 %vm57_vm1, %v15703_v47 }
0x1c98   :  { %12066 = vmatprep.mubr.msk.f32.mxu0 %vm13479_vm2, %v17740_v33  ;;  %12917 = vmatpush3.bf16.msra.mxu0 %v12916_v49 }
0x1c99   :  { %12918 = vmatprep.subr.bf16.mxu0 %v13478_v24 }
0x1c9a   :  { %v16574_v18 = vpop.f32.mrb[70].mxu1 }
0x1c9b   :  { %v12033_v1 = vpop.f32.mrb[71].mxu1  ;;  %12067 = vmatmul.mubr.msk.f32.gmra.mrb[88].mxu0 %vm57_vm1, %v15722_v14 }
0x1c9c   :  { %12069 = vmatprep.mubr.msk.f32.mxu0 %vm13479_vm2, %v17740_v33  ;;  %12920 = vmatpush3.bf16.msra.mxu0 %v12919_v10 }
0x1c9d   :  { %12937 = vmatprep.subr.bf16.mxu0 %v13478_v24 }
0x1c9e   :  { %v16581_v2 = vpop.f32.mrb[72].mxu1 }
0x1c9f   :  { %v12036_v9 = vpop.f32.mrb[73].mxu1  ;;  %12070 = vmatmul.mubr.msk.f32.gmra.mrb[90].mxu0 %vm57_vm1, %v15736_v25 }
0x1ca0   :  { %12072 = vmatprep.mubr.msk.f32.mxu0 %vm13479_vm2, %v17740_v33 }
0x1ca2   :  { %v16587_v28 = vpop.f32.mrb[74].mxu1 }
0x1ca3   :  { %v12039_v40 = vpop.f32.mrb[75].mxu1  ;;  %12073 = vmatmul.mubr.msk.f32.gmra.mrb[92].mxu0 %vm57_vm1, %v15750_v15 }
0x1ca4   :  { %12075 = vmatprep.mubr.msk.f32.mxu0 %vm13479_vm2, %v17740_v33 }
0x1ca6   :  { %v16593_v17 = vpop.f32.mrb[76].mxu1 }
0x1ca7   :  { %v12042_v51 = vpop.f32.mrb[77].mxu1  ;;  %12076 = vmatmul.mubr.msk.f32.gmra.mrb[94].mxu0 %vm57_vm1, %v15763_v6 }
0x1ca8   :  { %12078 = vmatprep.mubr.msk.f32.mxu0 %vm13479_vm2, %v17740_v33 }
0x1caa   :  { %v16599_v16 = vpop.f32.mrb[78].mxu1 }
0x1cab   :  { %v12045_v41 = vpop.f32.mrb[79].mxu1  ;;  %12079 = vmatmul.mubr.msk.f32.gmra.mrb[96].mxu0 %vm57_vm1, %v15776_v8 }
0x1cac   :  { %12081 = vmatprep.mubr.msk.f32.mxu0 %vm13479_vm2, %v17740_v33 }
0x1cae   :  { %v16605_v61 = vpop.f32.mrb[80].mxu1 }
0x1caf   :  { %v12048_v52 = vpop.f32.mrb[81].mxu1  ;;  %12082 = vmatmul.mubr.msk.f32.gmra.mrb[98].mxu0 %vm57_vm1, %v15789_v29 }
0x1cb0   :  { %12084 = vmatprep.mubr.msk.f32.mxu0 %vm13479_vm2, %v17740_v33 }
0x1cb2   :  { %v16611_v23 = vpop.f32.mrb[82].mxu1 }
0x1cb3   :  { %v12051_v55 = vpop.f32.mrb[83].mxu1  ;;  %12085 = vmatmul.mubr.msk.f32.gmra.mrb[100].mxu0 %vm57_vm1, %v15802_v62 }
0x1cb4   :  { %12087 = vmatprep.mubr.msk.f32.mxu0 %vm13479_vm2, %v17740_v33 }
0x1cb6   :  { %v16617_v63 = vpop.f32.mrb[84].mxu1 }
0x1cb7   :  { %v12054_v11 = vpop.f32.mrb[85].mxu1  ;;  %12088 = vmatmul.mubr.msk.f32.gmra.mrb[102].mxu0 %vm57_vm1, %v15815_v53 }
0x1cb8   :  { %12133 = vmatprep.mubr.msk.f32.mxu0 %vm13479_vm2, %v17740_v33 }
0x1cba   :  { %v6747_v58 = vpop.f32.mrb[86].mxu1 }
0x1cbb   :  { %v12100_v60 = vpop.f32.mrb[87].mxu1  ;;  %12134 = vmatmul.mubr.msk.f32.vlgmr.msra.gmra.mrb[104].mxu0 %vm57_vm1, %v15703_v47  ;;  %v6748_v3 = vadd.f32 %v9675_v50, %v6747_v58 }
0x1cbc   :  { %12136 = vmatprep.mubr.msk.f32.mxu0 %vm13479_vm2, %v17740_v33 }
0x1cbe   :  { %v6752_v54 = vpop.f32.mrb[88].mxu1 }
0x1cbf   :  { %v6753_v42 = vadd.f32 %v9675_v50, %v6752_v54  ;;  %v12103_v20 = vpop.f32.mrb[89].mxu1  ;;  %12137 = vmatmul.mubr.msk.f32.gmra.mrb[106].mxu0 %vm57_vm1, %v15722_v14 }
0x1cc0   :  { %12139 = vmatprep.mubr.msk.f32.mxu0 %vm13479_vm2, %v17740_v33 }
0x1cc1   :  { %v12922_v59 = vpack.c.bf16 %v6753_v42, %v6748_v3 }
0x1cc2   :  { %v6757_v30 = vpop.f32.mrb[90].mxu1 }
0x1cc3   :  { %v12106_v56 = vpop.f32.mrb[91].mxu1  ;;  %12140 = vmatmul.mubr.msk.f32.gmra.mrb[108].mxu0 %vm57_vm1, %v15736_v25  ;;  %12924 = vmatpush3.bf16.xpose.msk.msra.mxu1 %vm13884_vm4, %v12922_v59  ;;  %v6758_v48 = vadd.f32 %v9675_v50, %v6757_v30 }
0x1cc4   :  { %12142 = vmatprep.mubr.msk.f32.mxu0 %vm13479_vm2, %v17740_v33  ;;  %12925 = vmatprep.subr.bf16.mxu1 %v13478_v24 }
0x1cc6   :  { %v6762_v22 = vpop.f32.mrb[92].mxu1 }
0x1cc7   :  { %v6763_v4 = vadd.f32 %v9675_v50, %v6762_v22  ;;  %v12109_v26 = vpop.f32.mrb[93].mxu1  ;;  %12143 = vmatmul.mubr.msk.f32.gmra.mrb[110].mxu0 %vm57_vm1, %v15750_v15 }
0x1cc8   :  { %12145 = vmatprep.mubr.msk.f32.mxu0 %vm13479_vm2, %v17740_v33 }
0x1cc9   :  { %v12926_v34 = vpack.c.bf16 %v6763_v4, %v6758_v48 }
0x1cca   :  { %v6767_v27 = vpop.f32.mrb[94].mxu1 }
0x1ccb   :  { %v12112_v37 = vpop.f32.mrb[95].mxu1  ;;  %12146 = vmatmul.mubr.msk.f32.gmra.mrb[112].mxu0 %vm57_vm1, %v15763_v6  ;;  %12928 = vmatpush3.bf16.xpose.msk.msra.mxu1 %vm13884_vm4, %v12926_v34  ;;  %v6768_v45 = vadd.f32 %v9675_v50, %v6767_v27 }
0x1ccc   :  { %12148 = vmatprep.mubr.msk.f32.mxu0 %vm13479_vm2, %v17740_v33  ;;  %12929 = vmatprep.subr.bf16.mxu1 %v13478_v24 }
0x1cce   :  { %v6772_v0 = vpop.f32.mrb[96].mxu1 }
0x1ccf   :  { %v6773_v32 = vadd.f32 %v9675_v50, %v6772_v0  ;;  %v12115_v46 = vpop.f32.mrb[97].mxu1  ;;  %12149 = vmatmul.mubr.msk.f32.gmra.mrb[114].mxu0 %vm57_vm1, %v15776_v8 }
0x1cd0   :  { %12151 = vmatprep.mubr.msk.f32.mxu0 %vm13479_vm2, %v17740_v33 }
0x1cd1   :  { %v12930_v35 = vpack.c.bf16 %v6773_v32, %v6768_v45 }
0x1cd2   :  { %v6777_v49 = vpop.f32.mrb[98].mxu1 }
0x1cd3   :  { %v12118_v21 = vpop.f32.mrb[99].mxu1  ;;  %12152 = vmatmul.mubr.msk.f32.gmra.mrb[116].mxu0 %vm57_vm1, %v15789_v29  ;;  %12932 = vmatpush3.bf16.xpose.msk.msra.mxu1 %vm13884_vm4, %v12930_v35  ;;  %v6778_v44 = vadd.f32 %v9675_v50, %v6777_v49 }
0x1cd4   :  { %12154 = vmatprep.mubr.msk.f32.mxu0 %vm13479_vm2, %v17740_v33  ;;  %12933 = vmatprep.subr.bf16.mxu1 %v13478_v24 }
0x1cd6   :  { %v6782_v19 = vpop.f32.mrb[100].mxu1 }
0x1cd7   :  { %v6783_v10 = vadd.f32 %v9675_v50, %v6782_v19  ;;  %v12121_v1 = vpop.f32.mrb[101].mxu1  ;;  %12155 = vmatmul.mubr.msk.f32.gmra.mrb[118].mxu0 %vm57_vm1, %v15802_v62 }
0x1cd8   :  { %12157 = vmatprep.mubr.msk.f32.mxu0 %vm13479_vm2, %v17740_v33 }
0x1cd9   :  { %v12934_v9 = vpack.c.bf16 %v6783_v10, %v6778_v44 }
0x1cda   :  { %v6787_v40 = vpop.f32.mrb[102].mxu1 }
0x1cdb   :  { %v12124_v51 = vpop.f32.mrb[103].mxu1  ;;  %12158 = vmatmul.mubr.msk.f32.gmra.mrb[120].mxu0 %vm57_vm1, %v15815_v53  ;;  %12936 = vmatpush3.bf16.xpose.msk.msra.mxu1 %vm13884_vm4, %v12934_v9  ;;  %v6788_v41 = vadd.f32 %v9675_v50, %v6787_v40 }
0x1cdc   :  { %12176 = vmatprep.subr.mxu1 %v17740_v33  ;;  %12223 = vmatprep.mubr.msk.f32.mxu0 %vm13479_vm2, %v17740_v33 }
0x1ce3   :  { %12177 = vmatpush3.xpose.msk.msra.mxu1 %vm650_vm3, %v6788_v41 }
0x1ce4   :  { %12250 = vmatprep.subr.mxu1 %v17740_v33 }
0x1d46   :  { %v6364_v52 = vpop.f32.mrb[68].mxu0 }
0x1d47   :  { %v16677_v55 = vadd.f32 %v16567_v36, %v6364_v52  ;;  %v12001_v11 = vpop.f32.mrb[69].mxu0 }
0x1d4a   :  { %v6369_v58 = vpop.f32.mrb[70].mxu0 }
0x1d4b   :  { %v16680_v60 = vadd.f32 %v16574_v18, %v6369_v58  ;;  %v12004_v54 = vpop.f32.mrb[71].mxu0 }
0x1d4e   :  { %v6374_v3 = vpop.f32.mrb[72].mxu0 }
0x1d4f   :  { %v16683_v42 = vadd.f32 %v16581_v2, %v6374_v3  ;;  %v12007_v20 = vpop.f32.mrb[73].mxu0 }
0x1d52   :  { %v6379_v50 = vpop.f32.mrb[74].mxu0 }
0x1d53   :  { %v16686_v59 = vadd.f32 %v16587_v28, %v6379_v50  ;;  %v12010_v30 = vpop.f32.mrb[75].mxu0 }
0x1d56   :  { %v6384_v56 = vpop.f32.mrb[76].mxu0 }
0x1d57   :  { %v16689_v36 = vadd.f32 %v16593_v17, %v6384_v56  ;;  %v12013_v22 = vpop.f32.mrb[77].mxu0 }
0x1d5a   :  { %v6389_v48 = vpop.f32.mrb[78].mxu0 }
0x1d5b   :  { %v16692_v18 = vadd.f32 %v16599_v16, %v6389_v48  ;;  %v12016_v4 = vpop.f32.mrb[79].mxu0  ;;  %v9660_v16 = vld [vmem:[%s17723_s5 + $0xe] ss:$0 sm:$0xff] }
0x1d5e   :  { %v6394_v26 = vpop.f32.mrb[80].mxu0 }
0x1d5f   :  { %v16695_v2 = vadd.f32 %v16605_v61, %v6394_v26  ;;  %v12019_v34 = vpop.f32.mrb[81].mxu0 }
0x1d60   :  { %v9690_v34 = vld [vmem:[%s17723_s5 + $0x16] ss:$0 sm:$0xff] }
0x1d62   :  { %v6399_v27 = vpop.f32.mrb[82].mxu0 }
0x1d63   :  { %v16698_v28 = vadd.f32 %v16611_v23, %v6399_v27  ;;  %v12022_v37 = vpop.f32.mrb[83].mxu0 }
0x1d66   :  { %v6404_v0 = vpop.f32.mrb[84].mxu0 }
0x1d67   :  { %v16701_v17 = vadd.f32 %v16617_v63, %v6404_v0  ;;  %v12025_v45 = vpop.f32.mrb[85].mxu0 }
0x1d6a   :  { %v6624_v32 = vpop.f32.mrb[86].mxu0 }
0x1d6b   :  { %v6625_v46 = vadd.f32 %v9660_v16, %v6624_v32  ;;  %v12065_v35 = vpop.f32.mrb[87].mxu0 }
0x1d6d   :  { %12179 = vmatmul.mubr.msk.f32.vlgmr.msra.gmra.mrb[104].mxu1 %vm650_vm3, %v6625_v46 }
0x1d6e   :  { %v6629_v61 = vpop.f32.mrb[88].mxu0  ;;  %12181 = vmatprep.mubr.msk.f32.mxu1 %vm13479_vm2, %v17740_v33 }
0x1d6f   :  { %v6630_v23 = vadd.f32 %v9660_v16, %v6629_v61  ;;  %v12068_v49 = vpop.f32.mrb[89].mxu0 }
0x1d71   :  { %12182 = vmatmul.mubr.msk.f32.gmra.mrb[106].mxu1 %vm650_vm3, %v6630_v23 }
0x1d72   :  { %v6634_v63 = vpop.f32.mrb[90].mxu0  ;;  %12184 = vmatprep.mubr.msk.f32.mxu1 %vm13479_vm2, %v17740_v33 }
0x1d73   :  { %v6635_v21 = vadd.f32 %v9660_v16, %v6634_v63  ;;  %v12071_v19 = vpop.f32.mrb[91].mxu0 }
0x1d75   :  { %12185 = vmatmul.mubr.msk.f32.gmra.mrb[108].mxu1 %vm650_vm3, %v6635_v21 }
0x1d76   :  { %v6639_v44 = vpop.f32.mrb[92].mxu0  ;;  %12187 = vmatprep.mubr.msk.f32.mxu1 %vm13479_vm2, %v17740_v33 }
0x1d77   :  { %v6640_v10 = vadd.f32 %v9660_v16, %v6639_v44  ;;  %v12074_v1 = vpop.f32.mrb[93].mxu0 }
0x1d79   :  { %12188 = vmatmul.mubr.msk.f32.gmra.mrb[110].mxu1 %vm650_vm3, %v6640_v10 }
0x1d7a   :  { %v6644_v9 = vpop.f32.mrb[94].mxu0  ;;  %12190 = vmatprep.mubr.msk.f32.mxu1 %vm13479_vm2, %v17740_v33 }
0x1d7b   :  { %v6645_v40 = vadd.f32 %v9660_v16, %v6644_v9  ;;  %v12077_v51 = vpop.f32.mrb[95].mxu0 }
0x1d7d   :  { %12191 = vmatmul.mubr.msk.f32.gmra.mrb[112].mxu1 %vm650_vm3, %v6645_v40 }
0x1d7e   :  { %v6649_v41 = vpop.f32.mrb[96].mxu0  ;;  %12193 = vmatprep.mubr.msk.f32.mxu1 %vm13479_vm2, %v17740_v33 }
0x1d7f   :  { %v6650_v52 = vadd.f32 %v9660_v16, %v6649_v41  ;;  %v12080_v11 = vpop.f32.mrb[97].mxu0 }
0x1d81   :  { %12194 = vmatmul.mubr.msk.f32.gmra.mrb[114].mxu1 %vm650_vm3, %v6650_v52 }
0x1d82   :  { %v6654_v58 = vpop.f32.mrb[98].mxu0  ;;  %12196 = vmatprep.mubr.msk.f32.mxu1 %vm13479_vm2, %v17740_v33 }
0x1d83   :  { %v6655_v54 = vadd.f32 %v9660_v16, %v6654_v58  ;;  %v12083_v3 = vpop.f32.mrb[99].mxu0 }
0x1d85   :  { %12197 = vmatmul.mubr.msk.f32.gmra.mrb[116].mxu1 %vm650_vm3, %v6655_v54 }
0x1d86   :  { %v6659_v20 = vpop.f32.mrb[100].mxu0  ;;  %12199 = vmatprep.mubr.msk.f32.mxu1 %vm13479_vm2, %v17740_v33 }
0x1d87   :  { %v6660_v50 = vadd.f32 %v9660_v16, %v6659_v20  ;;  %v12086_v30 = vpop.f32.mrb[101].mxu0 }
0x1d89   :  { %12200 = vmatmul.mubr.msk.f32.gmra.mrb[118].mxu1 %vm650_vm3, %v6660_v50 }
0x1d8a   :  { %v6664_v56 = vpop.f32.mrb[102].mxu0  ;;  %12202 = vmatprep.mubr.msk.f32.mxu1 %vm13479_vm2, %v17740_v33 }
0x1d8b   :  { %v6665_v22 = vadd.f32 %v9660_v16, %v6664_v56  ;;  %v12089_v48 = vpop.f32.mrb[103].mxu0 }
0x1d8d   :  { %12203 = vmatmul.mubr.msk.f32.gmra.mrb[120].mxu1 %vm650_vm3, %v6665_v22 }
0x1d8e   :  { %v6870_v4 = vpop.f32.mrb[104].mxu0  ;;  %12252 = vmatprep.mubr.msk.f32.mxu1 %vm13479_vm2, %v17740_v33 }
0x1d8f   :  { %v12135_v26 = vpop.f32.mrb[105].mxu0  ;;  %v6871_v37 = vadd.f32 %v9690_v34, %v6870_v4  ;;  %v16744_v4 = vld [vmem:[%s17724_s3] sm:$0xff] }
0x1d92   :  { %v6875_v27 = vpop.f32.mrb[106].mxu0 }
0x1d93   :  { %v6876_v0 = vadd.f32 %v9690_v34, %v6875_v27  ;;  %v12138_v45 = vpop.f32.mrb[107].mxu0 }
0x1d95   :  { %v12938_v32 = vpack.c.bf16 %v6876_v0, %v6871_v37 }
0x1d96   :  { %v6880_v46 = vpop.f32.mrb[108].mxu0 }
0x1d97   :  { %v12141_v35 = vpop.f32.mrb[109].mxu0  ;;  %12939 = vmatpush3.bf16.msra.mxu0 %v12938_v32  ;;  %v6881_v61 = vadd.f32 %v9690_v34, %v6880_v46 }
0x1d98   :  { %12940 = vmatprep.subr.bf16.mxu0 %v13478_v24 }
0x1d9a   :  { %v6885_v16 = vpop.f32.mrb[110].mxu0 }
0x1d9b   :  { %v6886_v23 = vadd.f32 %v9690_v34, %v6885_v16  ;;  %v12144_v49 = vpop.f32.mrb[111].mxu0 }
0x1d9d   :  { %v12941_v63 = vpack.c.bf16 %v6886_v23, %v6881_v61  ;;  %v16758_v23 = vld [vmem:[%s17724_s3 + $0x10] sm:$0xff] }
0x1d9e   :  { %v6890_v21 = vpop.f32.mrb[112].mxu0 }
0x1d9f   :  { %v12147_v19 = vpop.f32.mrb[113].mxu0  ;;  %12942 = vmatpush3.bf16.msra.mxu0 %v12941_v63  ;;  %v6891_v10 = vadd.f32 %v9690_v34, %v6890_v21 }
0x1da0   :  { %12943 = vmatprep.subr.bf16.mxu0 %v13478_v24 }
0x1da2   :  { %v6895_v44 = vpop.f32.mrb[114].mxu0 }
0x1da3   :  { %v6896_v1 = vadd.f32 %v9690_v34, %v6895_v44  ;;  %v12150_v9 = vpop.f32.mrb[115].mxu0 }
0x1da5   :  { %v12944_v40 = vpack.c.bf16 %v6896_v1, %v6891_v10  ;;  %v16765_v10 = vld [vmem:[%s17724_s3 + $0x18] sm:$0xff] }
0x1da6   :  { %v6900_v51 = vpop.f32.mrb[116].mxu0 }
0x1da7   :  { %v12153_v41 = vpop.f32.mrb[117].mxu0  ;;  %12945 = vmatpush3.bf16.msra.mxu0 %v12944_v40  ;;  %v6901_v11 = vadd.f32 %v9690_v34, %v6900_v51 }
0x1da8   :  { %12946 = vmatprep.subr.bf16.mxu0 %v13478_v24 }
0x1daa   :  { %v6905_v52 = vpop.f32.mrb[118].mxu0 }
0x1dab   :  { %v6906_v58 = vadd.f32 %v9690_v34, %v6905_v52  ;;  %v12156_v54 = vpop.f32.mrb[119].mxu0  ;;  %v16772_v52 = vld [vmem:[%s17724_s3 + $0x20] sm:$0xff] }
0x1dad   :  { %v12947_v3 = vpack.c.bf16 %v6906_v58, %v6901_v11 }
0x1dae   :  { %v6910_v20 = vpop.f32.mrb[120].mxu0 }
0x1daf   :  { %v12159_v50 = vpop.f32.mrb[121].mxu0  ;;  %12948 = vmatpush3.bf16.msra.mxu0 %v12947_v3  ;;  %v6911_v30 = vadd.f32 %v9690_v34, %v6910_v20  ;;  %v16751_v34 = vld [vmem:[%s17724_s3 + $0x8] sm:$0xff] }
0x1db0   :  { %12221 = vmatprep.subr.mxu0 %v17740_v33  ;;  %v16779_v50 = vld [vmem:[%s17724_s3 + $0x28] sm:$0xff] }
0x1db3   :  { %12222 = vmatpush3.msra.mxu0 %v6911_v30 }
0x1db4   :  { %12949 = vmatprep.subr.bf16.mxu0 %v13478_v24 }
0x1e40   :  { %v7034_v56 = vpop.f32.mrb[104].mxu1 }
0x1e41   :  { %v7078_v22 = vmul.f32 0.35355338, %v7034_v56  ;;  %v12180_v48 = vpop.f32.mrb[105].mxu1 }
0x1e43   :  { %v7087_v26 = vadd.f32 %v16744_v4, %v7078_v22 }
0x1e44   :  { %v7039_v27 = vpop.f32.mrb[106].mxu1 }
0x1e45   :  { %v7079_v37 = vmul.f32 0.35355338, %v7039_v27  ;;  %v12183_v0 = vpop.f32.mrb[107].mxu1  ;;  %v7096_v45 = vsel %vm833_vm5, %v7087_v26, -inf }
0x1e46   :  { %7097 = vmax.xlane.f32.xlu0 %v7096_v45 }
0x1e47   :  { %v7088_v32 = vadd.f32 %v16751_v34, %v7079_v37  ;;  %v16786_v37 = vld [vmem:[%s17724_s3 + $0x30] sm:$0xff] }
0x1e48   :  { %v7044_v46 = vpop.f32.mrb[108].mxu1 }
0x1e49   :  { %v7080_v35 = vmul.f32 0.35355338, %v7044_v46  ;;  %v12186_v16 = vpop.f32.mrb[109].mxu1  ;;  %v7099_v61 = vsel %vm833_vm5, %v7088_v32, -inf }
0x1e4a   :  { %7100 = vmax.xlane.f32.xlu1 %v7099_v61  ;;  %v16793_v61 = vld [vmem:[%s17724_s3 + $0x38] sm:$0xff] }
0x1e4b   :  { %v7089_v49 = vadd.f32 %v16758_v23, %v7080_v35 }
0x1e4c   :  { %v7049_v63 = vpop.f32.mrb[110].mxu1 }
0x1e4d   :  { %v7081_v21 = vmul.f32 0.35355338, %v7049_v63  ;;  %v12189_v19 = vpop.f32.mrb[111].mxu1  ;;  %v7102_v44 = vsel %vm833_vm5, %v7089_v49, -inf }
0x1e4e   :  { %7103 = vmax.xlane.f32.xlu0 %v7102_v44 }
0x1e4f   :  { %v7090_v1 = vadd.f32 %v16765_v10, %v7081_v21 }
0x1e50   :  { %v7054_v9 = vpop.f32.mrb[112].mxu1 }
0x1e51   :  { %v7082_v40 = vmul.f32 0.35355338, %v7054_v9  ;;  %v12192_v51 = vpop.f32.mrb[113].mxu1  ;;  %v7105_v41 = vsel %vm833_vm5, %v7090_v1, -inf }
0x1e52   :  { %7106 = vmax.xlane.f32.xlu1 %v7105_v41 }
0x1e53   :  { %v7091_v11 = vadd.f32 %v16772_v52, %v7082_v40  ;;  %v16800_v40 = vld [vmem:[%s17724_s3 + $0x40] sm:$0xff] }
0x1e54   :  { %v7059_v58 = vpop.f32.mrb[114].mxu1 }
0x1e55   :  { %v7083_v54 = vmul.f32 0.35355338, %v7059_v58  ;;  %v12195_v3 = vpop.f32.mrb[115].mxu1  ;;  %v7108_v20 = vsel %vm833_vm5, %v7091_v11, -inf }
0x1e56   :  { %7109 = vmax.xlane.f32.xlu0 %v7108_v20 }
0x1e57   :  { %v7092_v30 = vadd.f32 %v16779_v50, %v7083_v54 }
0x1e58   :  { %v7064_v56 = vpop.f32.mrb[116].mxu1 }
0x1e59   :  { %v7084_v22 = vmul.f32 0.35355338, %v7064_v56  ;;  %v12198_v48 = vpop.f32.mrb[117].mxu1  ;;  %v7111_v27 = vsel %vm833_vm5, %v7092_v30, -inf }
0x1e5a   :  { %7112 = vmax.xlane.f32.xlu1 %v7111_v27 }
0x1e5b   :  { %v7093_v0 = vadd.f32 %v16786_v37, %v7084_v22 }
0x1e5c   :  { %v7069_v45 = vpop.f32.mrb[118].mxu1 }
0x1e5d   :  { %v7085_v46 = vmul.f32 0.35355338, %v7069_v45  ;;  %v12201_v35 = vpop.f32.mrb[119].mxu1  ;;  %v7114_v16 = vsel %vm833_vm5, %v7093_v0, -inf }
0x1e5e   :  { %7115 = vmax.xlane.f32.xlu0 %v7114_v16 }
0x1e5f   :  { %v7094_v63 = vadd.f32 %v16793_v61, %v7085_v46 }
0x1e60   :  { %v7074_v21 = vpop.f32.mrb[120].mxu1 }
0x1e61   :  { %v7086_v19 = vmul.f32 0.35355338, %v7074_v21  ;;  %v12204_v44 = vpop.f32.mrb[121].mxu1  ;;  %v7117_v9 = vsel %vm833_vm5, %v7094_v63, -inf }
0x1e62   :  { %7118 = vmax.xlane.f32.xlu1 %v7117_v9 }
0x1e63   :  { %v7095_v51 = vadd.f32 %v16800_v40, %v7086_v19 }
0x1e65   :  { %v7120_v41 = vsel %vm833_vm5, %v7095_v51, -inf }
0x1e66   :  { %7121 = vmax.xlane.f32.xlu0 %v7120_v41 }
0x1ed3   :  { %v7098_v58 = vpop.xlane.xlu0 %7097 }
0x1ed4   :  { %v7123_v54 = vsub.f32 %v7087_v26, %v7098_v58 }
0x1ed6   :  { %v7132_v3 = vmul.f32 1.442695, %v7123_v54 }
0x1ed7   :  { %v7101_v20 = vpop.xlane.xlu1 %7100 }
0x1ed8   :  { %13316 = vpow2.f32 %v7132_v3  ;;  %v7124_v56 = vsub.f32 %v7088_v32, %v7101_v20 }
0x1eda   :  { %v7134_v22 = vmul.f32 1.442695, %v7124_v56 }
0x1edb   :  { %v7104_v48 = vpop.xlane.xlu0 %7103 }
0x1edc   :  { %13318 = vpow2.f32 %v7134_v22  ;;  %v7125_v27 = vsub.f32 %v7089_v49, %v7104_v48 }
0x1ede   :  { %v7136_v45 = vmul.f32 1.442695, %v7125_v27 }
0x1edf   :  { %v7107_v46 = vpop.xlane.xlu1 %7106 }
0x1ee0   :  { %13320 = vpow2.f32 %v7136_v45  ;;  %v7126_v35 = vsub.f32 %v7090_v1, %v7107_v46 }
0x1ee2   :  { %v13317_v16 = vpop.eup %13316  ;;  %v7138_v21 = vmul.f32 1.442695, %v7126_v35 }
0x1ee3   :  { %v7110_v19 = vpop.xlane.xlu0 %7109  ;;  %v7150_v44 = vsel %vm833_vm5, %v13317_v16, 0.0 }
0x1ee4   :  { %13322 = vpow2.f32 %v7138_v21  ;;  %v7127_v9 = vsub.f32 %v7091_v11, %v7110_v19  ;;  %7151 = vadd.xlane.f32.xlu1 %v7150_v44 }
0x1ee6   :  { %v16805_v26 = vpop.eup %13318  ;;  %v7140_v41 = vmul.f32 1.442695, %v7127_v9 }
0x1ee7   :  { %v7113_v32 = vpop.xlane.xlu1 %7112  ;;  %v7153_v58 = vsel %vm833_vm5, %v16805_v26, 0.0 }
0x1ee8   :  { %13324 = vpow2.f32 %v7140_v41  ;;  %v7128_v49 = vsub.f32 %v7092_v30, %v7113_v32  ;;  %7154 = vadd.xlane.f32.xlu0 %v7153_v58 }
0x1eea   :  { %v16809_v54 = vpop.eup %13320  ;;  %v7142_v1 = vmul.f32 1.442695, %v7128_v49 }
0x1eeb   :  { %v7116_v3 = vpop.xlane.xlu0 %7115  ;;  %v7156_v20 = vsel %vm833_vm5, %v16809_v54, 0.0 }
0x1eec   :  { %13326 = vpow2.f32 %v7142_v1  ;;  %v7129_v11 = vsub.f32 %v7093_v0, %v7116_v3  ;;  %7157 = vadd.xlane.f32.xlu1 %v7156_v20  ;;  %v9727_v1 = vld [vmem:[%s17725_s6 + $0x30] sm:$0xff] }
0x1eed   :  { %12251 = vmatpush3.msra.mxu1 %v9727_v1 }
0x1eee   :  { %v16813_v56 = vpop.eup %13322  ;;  %v7144_v22 = vmul.f32 1.442695, %v7129_v11  ;;  %12955 = vmatprep.subr.bf16.mxu1 %v13478_v24 }
0x1eef   :  { %v7119_v48 = vpop.xlane.xlu1 %7118  ;;  %v7159_v27 = vsel %vm833_vm5, %v16813_v56, 0.0 }
0x1ef0   :  { %13328 = vpow2.f32 %v7144_v22  ;;  %v7130_v30 = vsub.f32 %v7094_v63, %v7119_v48  ;;  %7160 = vadd.xlane.f32.xlu0 %v7159_v27  ;;  %v9737_v22 = vld [vmem:[%s17721_s4 + $0x1e0] sm:$0xff]  ;;  %v9738_v48 = vld [vmem:[%s17721_s4 + $0x1e8] sm:$0xff] }
0x1ef2   :  { %v16817_v45 = vpop.eup %13324  ;;  %v7146_v46 = vmul.f32 1.442695, %v7130_v30  ;;  %v12950_v30 = vpack.c.bf16 %v9738_v48, %v9737_v22 }
0x1ef3   :  { %v7122_v35 = vpop.xlane.xlu0 %7121  ;;  %v7162_v21 = vsel %vm833_vm5, %v16817_v45, 0.0 }
0x1ef4   :  { %13330 = vpow2.f32 %v7146_v46  ;;  %v7131_v0 = vsub.f32 %v7095_v51, %v7122_v35  ;;  %7163 = vadd.xlane.f32.xlu1 %v7162_v21  ;;  %v9739_v21 = vld [vmem:[%s17721_s4 + $0x1f0] sm:$0xff] }
0x1ef6   :  { %v16821_v19 = vpop.eup %13326  ;;  %v7148_v44 = vmul.f32 1.442695, %v7131_v0  ;;  %v9740_v0 = vld [vmem:[%s17721_s4 + $0x1f8] sm:$0xff] }
0x1ef7   :  { %v7165_v9 = vsel %vm833_vm5, %v16821_v19, 0.0 }
0x1ef8   :  { %13332 = vpow2.f32 %v7148_v44  ;;  %7166 = vadd.xlane.f32.xlu0 %v7165_v9  ;;  %v12953_v9 = vpack.c.bf16 %v9740_v0, %v9739_v21  ;;  %v9768_v0 = vld [vmem:[%s17721_s4 + $0x2e8] sm:$0xff] }
0x1efa   :  { %v16825_v63 = vpop.eup %13328 }
0x1efb   :  { %v7168_v41 = vsel %vm833_vm5, %v16825_v63, 0.0 }
0x1efc   :  { %7169 = vadd.xlane.f32.xlu1 %v7168_v41 }
0x1efe   :  { %v16829_v32 = vpop.eup %13330 }
0x1eff   :  { %v7171_v51 = vsel %vm833_vm5, %v16829_v32, 0.0 }
0x1f00   :  { %7172 = vadd.xlane.f32.xlu0 %v7171_v51 }
0x1f02   :  { %v16833_v58 = vpop.eup %13332 }
0x1f03   :  { %v7174_v49 = vsel %vm833_vm5, %v16833_v58, 0.0 }
0x1f04   :  { %7175 = vadd.xlane.f32.xlu1 %v7174_v49 }
0x1f71   :  { %v7152_v3 = vpop.xlane.xlu1 %7151 }
0x1f72   :  { %13334 = vrcp.f32 %v7152_v3 }
0x1f75   :  { %v7155_v20 = vpop.xlane.xlu0 %7154 }
0x1f76   :  { %13336 = vrcp.f32 %v7155_v20 }
0x1f79   :  { %v7158_v11 = vpop.xlane.xlu1 %7157 }
0x1f7a   :  { %13338 = vrcp.f32 %v7158_v11 }
0x1f7c   :  { %v13335_v27 = vpop.eup %13334 }
0x1f7d   :  { %v7186_v46 = vmul.f32 %v13335_v27, %v13317_v16  ;;  %v7161_v35 = vpop.xlane.xlu0 %7160 }
0x1f7e   :  { %13340 = vrcp.f32 %v7161_v35 }
0x1f7f   :  { %12224 = vmatmul.mubr.msk.f32.vlgmr.msra.gmra.mrb[122].mxu0 %vm833_vm5, %v7186_v46 }
0x1f80   :  { %v13337_v44 = vpop.eup %13336  ;;  %12226 = vmatprep.mubr.msk.f32.mxu0 %vm13479_vm2, %v17740_v33  ;;  %12951 = vmatpush3.bf16.msra.mxu0 %v12950_v30 }
0x1f81   :  { %v7187_v16 = vmul.f32 %v13337_v44, %v16805_v26  ;;  %v7164_v41 = vpop.xlane.xlu1 %7163  ;;  %12952 = vmatprep.subr.bf16.mxu0 %v13478_v24  ;;  %v9769_v44 = vld [vmem:[%s17721_s4 + $0x2f0] sm:$0xff] }
0x1f82   :  { %13342 = vrcp.f32 %v7164_v41  ;;  %v9753_v41 = vld [vmem:[%s17721_s4 + $0x268] sm:$0xff] }
0x1f83   :  { %12227 = vmatmul.mubr.msk.f32.gmra.mrb[124].mxu0 %vm833_vm5, %v7187_v16  ;;  %v9752_v16 = vld [vmem:[%s17721_s4 + $0x260] sm:$0xff] }
0x1f84   :  { %v13339_v51 = vpop.eup %13338  ;;  %12229 = vmatprep.mubr.msk.f32.mxu0 %vm13479_vm2, %v17740_v33  ;;  %12954 = vmatpush3.bf16.msra.mxu0 %v12953_v9 }
0x1f85   :  { %v7188_v49 = vmul.f32 %v13339_v51, %v16809_v54  ;;  %v7167_v1 = vpop.xlane.xlu0 %7166  ;;  %12961 = vmatprep.subr.bf16.mxu0 %v13478_v24  ;;  %v12956_v51 = vpack.c.bf16 %v9753_v41, %v9752_v16 }
0x1f86   :  { %13344 = vrcp.f32 %v7167_v1  ;;  %v9755_v1 = vld [vmem:[%s17721_s4 + $0x278] sm:$0xff] }
0x1f87   :  { %12230 = vmatmul.mubr.msk.f32.gmra.mrb[126].mxu0 %vm833_vm5, %v7188_v49  ;;  %v9754_v49 = vld [vmem:[%s17721_s4 + $0x270] sm:$0xff] }
0x1f88   :  { %v13341_v26 = vpop.eup %13340  ;;  %12232 = vmatprep.mubr.msk.f32.mxu0 %vm13479_vm2, %v17740_v33 }
0x1f89   :  { %v7189_v3 = vmul.f32 %v13341_v26, %v16813_v56  ;;  %v7170_v20 = vpop.xlane.xlu1 %7169 }
0x1f8a   :  { %13346 = vrcp.f32 %v7170_v20  ;;  %v12959_v20 = vpack.c.bf16 %v9755_v1, %v9754_v49 }
0x1f8b   :  { %12233 = vmatmul.mubr.msk.f32.gmra.mrb[128].mxu0 %vm833_vm5, %v7189_v3 }
0x1f8c   :  { %v13343_v11 = vpop.eup %13342  ;;  %12235 = vmatprep.mubr.msk.f32.mxu0 %vm13479_vm2, %v17740_v33 }
0x1f8d   :  { %v7190_v54 = vmul.f32 %v13343_v11, %v16817_v45  ;;  %v7173_v22 = vpop.xlane.xlu0 %7172 }
0x1f8e   :  { %13348 = vrcp.f32 %v7173_v22 }
0x1f8f   :  { %12236 = vmatmul.mubr.msk.f32.gmra.mrb[130].mxu0 %vm833_vm5, %v7190_v54 }
0x1f90   :  { %v13345_v48 = vpop.eup %13344  ;;  %12238 = vmatprep.mubr.msk.f32.mxu0 %vm13479_vm2, %v17740_v33 }
0x1f91   :  { %v7191_v56 = vmul.f32 %v13345_v48, %v16821_v19  ;;  %v7176_v27 = vpop.xlane.xlu1 %7175 }
0x1f92   :  { %13350 = vrcp.f32 %v7176_v27 }
0x1f93   :  { %12239 = vmatmul.mubr.msk.f32.gmra.mrb[132].mxu0 %vm833_vm5, %v7191_v56 }
0x1f94   :  { %v13347_v30 = vpop.eup %13346  ;;  %12241 = vmatprep.mubr.msk.f32.mxu0 %vm13479_vm2, %v17740_v33 }
0x1f95   :  { %v7192_v45 = vmul.f32 %v13347_v30, %v16825_v63  ;;  %v9767_v63 = vld [vmem:[%s17721_s4 + $0x2e0] sm:$0xff] }
0x1f97   :  { %12242 = vmatmul.mubr.msk.f32.gmra.mrb[134].mxu0 %vm833_vm5, %v7192_v45 }
0x1f98   :  { %v13349_v46 = vpop.eup %13348  ;;  %12244 = vmatprep.mubr.msk.f32.mxu0 %vm13479_vm2, %v17740_v33 }
0x1f99   :  { %v7193_v35 = vmul.f32 %v13349_v46, %v16829_v32  ;;  %v12962_v32 = vpack.c.bf16 %v9768_v0, %v9767_v63 }
0x1f9b   :  { %12245 = vmatmul.mubr.msk.f32.gmra.mrb[136].mxu0 %vm833_vm5, %v7193_v35 }
0x1f9c   :  { %v13351_v19 = vpop.eup %13350  ;;  %12247 = vmatprep.mubr.msk.f32.mxu0 %vm13479_vm2, %v17740_v33 }
0x1f9d   :  { %v7194_v21 = vmul.f32 %v13351_v19, %v16833_v58  ;;  %v9770_v58 = vld [vmem:[%s17721_s4 + $0x2f8] sm:$0xff] }
0x1f9e   :  { %v12965_v9 = vpack.c.bf16 %v9770_v58, %v9769_v44 }
0x1f9f   :  { %12248 = vmatmul.mubr.msk.f32.gmra.mrb[138].mxu0 %vm833_vm5, %v7194_v21 }
0x1fa0   :  { %12287 = vmatprep.mubr.msk.f32.mxu0 %vm13479_vm2, %v17740_v33 }
0x1fa3   :  { %12288 = vmatmul.mubr.msk.f32.vlgmr.msra.gmra.mrb[140].mxu0 %vm57_vm1, %v15703_v47 }
0x1fa4   :  { %12290 = vmatprep.mubr.msk.f32.mxu0 %vm13479_vm2, %v17740_v33  ;;  %12963 = vmatpush3.bf16.msra.mxu0 %v12962_v32 }
0x1fa5   :  { %12964 = vmatprep.subr.bf16.mxu0 %v13478_v24 }
0x1fa7   :  { %12291 = vmatmul.mubr.msk.f32.gmra.mrb[142].mxu0 %vm57_vm1, %v15722_v14 }
0x1fa8   :  { %12293 = vmatprep.mubr.msk.f32.mxu0 %vm13479_vm2, %v17740_v33  ;;  %12966 = vmatpush3.bf16.msra.mxu0 %v12965_v9 }
0x1fa9   :  { %12983 = vmatprep.subr.bf16.mxu0 %v13478_v24 }
0x1fab   :  { %12294 = vmatmul.mubr.msk.f32.gmra.mrb[144].mxu0 %vm57_vm1, %v15736_v25 }
0x1fac   :  { %12296 = vmatprep.mubr.msk.f32.mxu0 %vm13479_vm2, %v17740_v33 }
0x1faf   :  { %12297 = vmatmul.mubr.msk.f32.gmra.mrb[146].mxu0 %vm57_vm1, %v15750_v15 }
0x1fb0   :  { %12299 = vmatprep.mubr.msk.f32.mxu0 %vm13479_vm2, %v17740_v33 }
0x1fb3   :  { %12300 = vmatmul.mubr.msk.f32.gmra.mrb[148].mxu0 %vm57_vm1, %v15763_v6 }
0x1fb4   :  { %12302 = vmatprep.mubr.msk.f32.mxu0 %vm13479_vm2, %v17740_v33 }
0x1fb7   :  { %12303 = vmatmul.mubr.msk.f32.gmra.mrb[150].mxu0 %vm57_vm1, %v15776_v8 }
0x1fb8   :  { %12305 = vmatprep.mubr.msk.f32.mxu0 %vm13479_vm2, %v17740_v33 }
0x1fbb   :  { %12306 = vmatmul.mubr.msk.f32.gmra.mrb[152].mxu0 %vm57_vm1, %v15789_v29 }
0x1fbc   :  { %12308 = vmatprep.mubr.msk.f32.mxu0 %vm13479_vm2, %v17740_v33 }
0x1fbf   :  { %12309 = vmatmul.mubr.msk.f32.gmra.mrb[154].mxu0 %vm57_vm1, %v15802_v62 }
0x1fc0   :  { %12311 = vmatprep.mubr.msk.f32.mxu0 %vm13479_vm2, %v17740_v33 }
0x1fc3   :  { %12312 = vmatmul.mubr.msk.f32.gmra.mrb[156].mxu0 %vm57_vm1, %v15815_v53 }
0x1fc4   :  { %12357 = vmatprep.mubr.msk.f32.mxu0 %vm13479_vm2, %v17740_v33 }
0x1fc7   :  { %12358 = vmatmul.mubr.msk.f32.vlgmr.msra.gmra.mrb[158].mxu0 %vm57_vm1, %v15703_v47 }
0x1fc8   :  { %12360 = vmatprep.mubr.msk.f32.mxu0 %vm13479_vm2, %v17740_v33 }
0x1fcb   :  { %12361 = vmatmul.mubr.msk.f32.gmra.mrb[160].mxu0 %vm57_vm1, %v15722_v14 }
0x1fcc   :  { %12363 = vmatprep.mubr.msk.f32.mxu0 %vm13479_vm2, %v17740_v33 }
0x1fcf   :  { %12364 = vmatmul.mubr.msk.f32.gmra.mrb[162].mxu0 %vm57_vm1, %v15736_v25 }
0x1fd0   :  { %12366 = vmatprep.mubr.msk.f32.mxu0 %vm13479_vm2, %v17740_v33 }
0x1fd3   :  { %12367 = vmatmul.mubr.msk.f32.gmra.mrb[164].mxu0 %vm57_vm1, %v15750_v15 }
0x1fd4   :  { %12369 = vmatprep.mubr.msk.f32.mxu0 %vm13479_vm2, %v17740_v33 }
0x1fd7   :  { %12370 = vmatmul.mubr.msk.f32.gmra.mrb[166].mxu0 %vm57_vm1, %v15763_v6 }
0x1fd8   :  { %12372 = vmatprep.mubr.msk.f32.mxu0 %vm13479_vm2, %v17740_v33 }
0x1fdb   :  { %12373 = vmatmul.mubr.msk.f32.gmra.mrb[168].mxu0 %vm57_vm1, %v15776_v8 }
0x1fdc   :  { %12375 = vmatprep.mubr.msk.f32.mxu0 %vm13479_vm2, %v17740_v33 }
0x1fdf   :  { %12376 = vmatmul.mubr.msk.f32.gmra.mrb[170].mxu0 %vm57_vm1, %v15789_v29 }
0x1fe0   :  { %12378 = vmatprep.mubr.msk.f32.mxu0 %vm13479_vm2, %v17740_v33 }
0x1fe3   :  { %12379 = vmatmul.mubr.msk.f32.gmra.mrb[172].mxu0 %vm57_vm1, %v15802_v62 }
0x1fe4   :  { %12381 = vmatprep.mubr.msk.f32.mxu0 %vm13479_vm2, %v17740_v33 }
0x1fe7   :  { %12382 = vmatmul.mubr.msk.f32.gmra.mrb[174].mxu0 %vm57_vm1, %v15815_v53 }
0x1fe8   :  { %12447 = vmatprep.mubr.msk.f32.mxu0 %vm13479_vm2, %v17740_v33 }
0x2052   :  { %v7288_v26 = vpop.f32.mrb[122].mxu0 }
0x2053   :  { %v12225_v3 = vpop.f32.mrb[123].mxu0  ;;  %12253 = vmatmul.mubr.msk.f32.vlgmr.msra.gmra.mrb[122].mxu1 %vm650_vm3, %v7288_v26 }
0x2054   :  { %12255 = vmatprep.mubr.msk.f32.mxu1 %vm13479_vm2, %v17740_v33  ;;  %12957 = vmatpush3.bf16.msra.mxu1 %v12956_v51 }
0x2055   :  { %12958 = vmatprep.subr.bf16.mxu1 %v13478_v24 }
0x2056   :  { %v7293_v11 = vpop.f32.mrb[124].mxu0 }
0x2057   :  { %v12228_v54 = vpop.f32.mrb[125].mxu0  ;;  %12256 = vmatmul.mubr.msk.f32.gmra.mrb[124].mxu1 %vm650_vm3, %v7293_v11 }
0x2058   :  { %12258 = vmatprep.mubr.msk.f32.mxu1 %vm13479_vm2, %v17740_v33  ;;  %12960 = vmatpush3.bf16.msra.mxu1 %v12959_v20 }
0x2059   :  { %12967 = vmatprep.subr.bf16.mxu1 %v13478_v24 }
0x205a   :  { %v7298_v22 = vpop.f32.mrb[126].mxu0 }
0x205b   :  { %v12231_v48 = vpop.f32.mrb[127].mxu0  ;;  %12259 = vmatmul.mubr.msk.f32.gmra.mrb[126].mxu1 %vm650_vm3, %v7298_v22 }
0x205c   :  { %12261 = vmatprep.mubr.msk.f32.mxu1 %vm13479_vm2, %v17740_v33  ;;  %v9772_v48 = vld [vmem:[%s17723_s5 + $0x17] ss:$0 sm:$0xff] }
0x205e   :  { %v7303_v56 = vpop.f32.mrb[128].mxu0 }
0x205f   :  { %v12234_v27 = vpop.f32.mrb[129].mxu0  ;;  %12262 = vmatmul.mubr.msk.f32.gmra.mrb[128].mxu1 %vm650_vm3, %v7303_v56 }
0x2060   :  { %12264 = vmatprep.mubr.msk.f32.mxu1 %vm13479_vm2, %v17740_v33 }
0x2062   :  { %v7308_v30 = vpop.f32.mrb[130].mxu0 }
0x2063   :  { %v12237_v45 = vpop.f32.mrb[131].mxu0  ;;  %12265 = vmatmul.mubr.msk.f32.gmra.mrb[130].mxu1 %vm650_vm3, %v7308_v30 }
0x2064   :  { %12267 = vmatprep.mubr.msk.f32.mxu1 %vm13479_vm2, %v17740_v33 }
0x2066   :  { %v7313_v46 = vpop.f32.mrb[132].mxu0 }
0x2067   :  { %v12240_v35 = vpop.f32.mrb[133].mxu0  ;;  %12268 = vmatmul.mubr.msk.f32.gmra.mrb[132].mxu1 %vm650_vm3, %v7313_v46 }
0x2068   :  { %12270 = vmatprep.mubr.msk.f32.mxu1 %vm13479_vm2, %v17740_v33 }
0x206a   :  { %v7318_v19 = vpop.f32.mrb[134].mxu0 }
0x206b   :  { %v12243_v21 = vpop.f32.mrb[135].mxu0  ;;  %12271 = vmatmul.mubr.msk.f32.gmra.mrb[134].mxu1 %vm650_vm3, %v7318_v19 }
0x206c   :  { %12273 = vmatprep.mubr.msk.f32.mxu1 %vm13479_vm2, %v17740_v33 }
0x206e   :  { %v7323_v63 = vpop.f32.mrb[136].mxu0 }
0x206f   :  { %v12246_v0 = vpop.f32.mrb[137].mxu0  ;;  %12274 = vmatmul.mubr.msk.f32.gmra.mrb[136].mxu1 %vm650_vm3, %v7323_v63 }
0x2070   :  { %12276 = vmatprep.mubr.msk.f32.mxu1 %vm13479_vm2, %v17740_v33 }
0x2072   :  { %v7328_v32 = vpop.f32.mrb[138].mxu0 }
0x2073   :  { %v12249_v44 = vpop.f32.mrb[139].mxu0  ;;  %12277 = vmatmul.mubr.msk.f32.gmra.mrb[138].mxu1 %vm650_vm3, %v7328_v32 }
0x2074   :  { %12322 = vmatprep.mubr.msk.f32.mxu1 %vm13479_vm2, %v17740_v33 }
0x2076   :  { %v17017_v58 = vpop.f32.mrb[140].mxu0 }
0x2077   :  { %v12289_v9 = vpop.f32.mrb[141].mxu0  ;;  %12323 = vmatmul.mubr.msk.f32.vlgmr.msra.gmra.mrb[140].mxu1 %vm57_vm1, %v15703_v47 }
0x2078   :  { %12325 = vmatprep.mubr.msk.f32.mxu1 %vm13479_vm2, %v17740_v33 }
0x207a   :  { %v17023_v16 = vpop.f32.mrb[142].mxu0 }
0x207b   :  { %v12292_v41 = vpop.f32.mrb[143].mxu0  ;;  %12326 = vmatmul.mubr.msk.f32.gmra.mrb[142].mxu1 %vm57_vm1, %v15722_v14 }
0x207c   :  { %12328 = vmatprep.mubr.msk.f32.mxu1 %vm13479_vm2, %v17740_v33 }
0x207e   :  { %v17029_v51 = vpop.f32.mrb[144].mxu0 }
0x207f   :  { %v12295_v49 = vpop.f32.mrb[145].mxu0  ;;  %12329 = vmatmul.mubr.msk.f32.gmra.mrb[144].mxu1 %vm57_vm1, %v15736_v25 }
0x2080   :  { %12331 = vmatprep.mubr.msk.f32.mxu1 %vm13479_vm2, %v17740_v33 }
0x2082   :  { %v17035_v47 = vpop.f32.mrb[146].mxu0 }
0x2083   :  { %v12298_v1 = vpop.f32.mrb[147].mxu0  ;;  %12332 = vmatmul.mubr.msk.f32.gmra.mrb[146].mxu1 %vm57_vm1, %v15750_v15 }
0x2084   :  { %12334 = vmatprep.mubr.msk.f32.mxu1 %vm13479_vm2, %v17740_v33 }
0x2086   :  { %v17041_v14 = vpop.f32.mrb[148].mxu0 }
0x2087   :  { %v12301_v26 = vpop.f32.mrb[149].mxu0  ;;  %12335 = vmatmul.mubr.msk.f32.gmra.mrb[148].mxu1 %vm57_vm1, %v15763_v6 }
0x2088   :  { %12337 = vmatprep.mubr.msk.f32.mxu1 %vm13479_vm2, %v17740_v33 }
0x208a   :  { %v17047_v25 = vpop.f32.mrb[150].mxu0 }
0x208b   :  { %v12304_v3 = vpop.f32.mrb[151].mxu0  ;;  %12338 = vmatmul.mubr.msk.f32.gmra.mrb[150].mxu1 %vm57_vm1, %v15776_v8 }
0x208c   :  { %12340 = vmatprep.mubr.msk.f32.mxu1 %vm13479_vm2, %v17740_v33 }
0x208e   :  { %v17053_v15 = vpop.f32.mrb[152].mxu0 }
0x208f   :  { %v12307_v20 = vpop.f32.mrb[153].mxu0  ;;  %12341 = vmatmul.mubr.msk.f32.gmra.mrb[152].mxu1 %vm57_vm1, %v15789_v29 }
0x2090   :  { %12343 = vmatprep.mubr.msk.f32.mxu1 %vm13479_vm2, %v17740_v33 }
0x2092   :  { %v17059_v6 = vpop.f32.mrb[154].mxu0 }
0x2093   :  { %v12310_v11 = vpop.f32.mrb[155].mxu0  ;;  %12344 = vmatmul.mubr.msk.f32.gmra.mrb[154].mxu1 %vm57_vm1, %v15802_v62 }
0x2094   :  { %12346 = vmatprep.mubr.msk.f32.mxu1 %vm13479_vm2, %v17740_v33 }
0x2096   :  { %v17065_v8 = vpop.f32.mrb[156].mxu0 }
0x2097   :  { %v12313_v54 = vpop.f32.mrb[157].mxu0  ;;  %12347 = vmatmul.mubr.msk.f32.gmra.mrb[156].mxu1 %vm57_vm1, %v15815_v53 }
0x2098   :  { %12402 = vmatprep.mubr.msk.f32.mxu1 %vm13479_vm2, %v17740_v33 }
0x209a   :  { %v7805_v29 = vpop.f32.mrb[158].mxu0 }
0x209b   :  { %v12359_v22 = vpop.f32.mrb[159].mxu0  ;;  %v7806_v62 = vadd.f32 %v9772_v48, %v7805_v29 }
0x209e   :  { %v7810_v56 = vpop.f32.mrb[160].mxu0 }
0x209f   :  { %v7811_v27 = vadd.f32 %v9772_v48, %v7810_v56  ;;  %v12362_v30 = vpop.f32.mrb[161].mxu0 }
0x20a1   :  { %v12984_v45 = vpack.c.bf16 %v7811_v27, %v7806_v62 }
0x20a2   :  { %v7815_v46 = vpop.f32.mrb[162].mxu0 }
0x20a3   :  { %v12365_v35 = vpop.f32.mrb[163].mxu0  ;;  %12985 = vmatpush3.bf16.msra.mxu0 %v12984_v45  ;;  %v7816_v19 = vadd.f32 %v9772_v48, %v7815_v46 }
0x20a4   :  { %12986 = vmatprep.subr.bf16.mxu0 %v13478_v24 }
0x20a6   :  { %v7820_v53 = vpop.f32.mrb[164].mxu0 }
0x20a7   :  { %v7821_v21 = vadd.f32 %v9772_v48, %v7820_v53  ;;  %v12368_v63 = vpop.f32.mrb[165].mxu0 }
0x20a9   :  { %v12987_v0 = vpack.c.bf16 %v7821_v21, %v7816_v19 }
0x20aa   :  { %v7825_v32 = vpop.f32.mrb[166].mxu0 }
0x20ab   :  { %v12371_v44 = vpop.f32.mrb[167].mxu0  ;;  %12988 = vmatpush3.bf16.msra.mxu0 %v12987_v0  ;;  %v7826_v41 = vadd.f32 %v9772_v48, %v7825_v32 }
0x20ac   :  { %12989 = vmatprep.subr.bf16.mxu0 %v13478_v24 }
0x20ae   :  { %v7830_v9 = vpop.f32.mrb[168].mxu0 }
0x20af   :  { %v7831_v49 = vadd.f32 %v9772_v48, %v7830_v9  ;;  %v12374_v1 = vpop.f32.mrb[169].mxu0 }
0x20b1   :  { %v12990_v26 = vpack.c.bf16 %v7831_v49, %v7826_v41 }
0x20b2   :  { %v7835_v3 = vpop.f32.mrb[170].mxu0 }
0x20b3   :  { %v12377_v20 = vpop.f32.mrb[171].mxu0  ;;  %12991 = vmatpush3.bf16.msra.mxu0 %v12990_v26  ;;  %v7836_v54 = vadd.f32 %v9772_v48, %v7835_v3 }
0x20b4   :  { %12992 = vmatprep.subr.bf16.mxu0 %v13478_v24 }
0x20b6   :  { %v7840_v11 = vpop.f32.mrb[172].mxu0 }
0x20b7   :  { %v7841_v29 = vadd.f32 %v9772_v48, %v7840_v11  ;;  %v12380_v22 = vpop.f32.mrb[173].mxu0 }
0x20b9   :  { %v12993_v56 = vpack.c.bf16 %v7841_v29, %v7836_v54 }
0x20ba   :  { %v7845_v62 = vpop.f32.mrb[174].mxu0 }
0x20bb   :  { %v12383_v27 = vpop.f32.mrb[175].mxu0  ;;  %12994 = vmatpush3.bf16.msra.mxu0 %v12993_v56  ;;  %v7846_v30 = vadd.f32 %v9772_v48, %v7845_v62 }
0x20bc   :  { %12445 = vmatprep.subr.mxu0 %v17740_v33 }
0x20bf   :  { %12446 = vmatpush3.msra.mxu0 %v7846_v30 }
0x20c0   :  { %12995 = vmatprep.subr.bf16.mxu0 %v13478_v24 }
0x2126   :  { %v7427_v45 = vpop.f32.mrb[122].mxu1 }
0x2127   :  { %v17080_v46 = vadd.f32 %v7427_v45, %v16677_v55  ;;  %v12254_v35 = vpop.f32.mrb[123].mxu1 }
0x212a   :  { %v7432_v53 = vpop.f32.mrb[124].mxu1 }
0x212b   :  { %v17083_v19 = vadd.f32 %v7432_v53, %v16680_v60  ;;  %v12257_v21 = vpop.f32.mrb[125].mxu1 }
0x212e   :  { %v7437_v63 = vpop.f32.mrb[126].mxu1 }
0x212f   :  { %v17086_v0 = vadd.f32 %v7437_v63, %v16683_v42  ;;  %v12260_v32 = vpop.f32.mrb[127].mxu1 }
0x2132   :  { %v7442_v44 = vpop.f32.mrb[128].mxu1 }
0x2133   :  { %v17089_v48 = vadd.f32 %v7442_v44, %v16686_v59  ;;  %v12263_v9 = vpop.f32.mrb[129].mxu1 }
0x2136   :  { %v7447_v41 = vpop.f32.mrb[130].mxu1 }
0x2137   :  { %v17092_v55 = vadd.f32 %v7447_v41, %v16689_v36  ;;  %v12266_v49 = vpop.f32.mrb[131].mxu1 }
0x213a   :  { %v7452_v1 = vpop.f32.mrb[132].mxu1 }
0x213b   :  { %v17095_v60 = vadd.f32 %v7452_v1, %v16692_v18  ;;  %v12269_v26 = vpop.f32.mrb[133].mxu1  ;;  %v9757_v18 = vld [vmem:[%s17723_s5 + $0x13] ss:$0 sm:$0xff] }
0x213e   :  { %v7457_v3 = vpop.f32.mrb[134].mxu1 }
0x213f   :  { %v17098_v42 = vadd.f32 %v7457_v3, %v16695_v2  ;;  %v12272_v20 = vpop.f32.mrb[135].mxu1 }
0x2142   :  { %v7462_v11 = vpop.f32.mrb[136].mxu1 }
0x2143   :  { %v17101_v59 = vadd.f32 %v7462_v11, %v16698_v28  ;;  %v12275_v54 = vpop.f32.mrb[137].mxu1 }
0x2146   :  { %v7467_v29 = vpop.f32.mrb[138].mxu1 }
0x2147   :  { %v17104_v36 = vadd.f32 %v7467_v29, %v16701_v17  ;;  %v12278_v22 = vpop.f32.mrb[139].mxu1 }
0x214a   :  { %v7682_v56 = vpop.f32.mrb[140].mxu1 }
0x214b   :  { %v12324_v62 = vpop.f32.mrb[141].mxu1  ;;  %v7683_v2 = vadd.f32 %v9757_v18, %v7682_v56 }
0x214e   :  { %v7687_v27 = vpop.f32.mrb[142].mxu1 }
0x214f   :  { %v7688_v30 = vadd.f32 %v9757_v18, %v7687_v27  ;;  %v12327_v45 = vpop.f32.mrb[143].mxu1 }
0x2150   :  { %v9742_v45 = vld [vmem:[%s17723_s5 + $0xf] ss:$0 sm:$0xff] }
0x2151   :  { %v12968_v35 = vpack.c.bf16 %v7688_v30, %v7683_v2  ;;  %v7565_v57 = vadd.f32 %v9742_v45, %v17023_v16  ;;  %v7580_v16 = vadd.f32 %v9742_v45, %v17041_v14  ;;  %v7595_v14 = vadd.f32 %v9742_v45, %v17059_v6 }
0x2152   :  { %v7692_v53 = vpop.f32.mrb[144].mxu1 }
0x2153   :  { %v12330_v28 = vpop.f32.mrb[145].mxu1  ;;  %12970 = vmatpush3.bf16.xpose.msk.msra.mxu1 %vm13884_vm4, %v12968_v35  ;;  %v7693_v21 = vadd.f32 %v9757_v18, %v7692_v53  ;;  %v7560_v53 = vadd.f32 %v9742_v45, %v17017_v58  ;;  %v7575_v58 = vadd.f32 %v9742_v45, %v17035_v47  ;;  %v7590_v47 = vadd.f32 %v9742_v45, %v17053_v15 }
0x2154   :  { %12971 = vmatprep.subr.bf16.mxu1 %v13478_v24 }
0x2156   :  { %v7697_v17 = vpop.f32.mrb[146].mxu1 }
0x2157   :  { %v7698_v63 = vadd.f32 %v9757_v18, %v7697_v17  ;;  %v12333_v32 = vpop.f32.mrb[147].mxu1 }
0x2159   :  { %v12972_v44 = vpack.c.bf16 %v7698_v63, %v7693_v21 }
0x215a   :  { %v7702_v9 = vpop.f32.mrb[148].mxu1 }
0x215b   :  { %v12336_v41 = vpop.f32.mrb[149].mxu1  ;;  %12974 = vmatpush3.bf16.xpose.msk.msra.mxu1 %vm13884_vm4, %v12972_v44  ;;  %v7703_v1 = vadd.f32 %v9757_v18, %v7702_v9 }
0x215c   :  { %12975 = vmatprep.subr.bf16.mxu1 %v13478_v24 }
0x215e   :  { %v7707_v49 = vpop.f32.mrb[150].mxu1 }
0x215f   :  { %v7708_v26 = vadd.f32 %v9757_v18, %v7707_v49  ;;  %v12339_v3 = vpop.f32.mrb[151].mxu1 }
0x2161   :  { %v12976_v20 = vpack.c.bf16 %v7708_v26, %v7703_v1 }
0x2162   :  { %v7712_v11 = vpop.f32.mrb[152].mxu1 }
0x2163   :  { %v12342_v54 = vpop.f32.mrb[153].mxu1  ;;  %12978 = vmatpush3.bf16.xpose.msk.msra.mxu1 %vm13884_vm4, %v12976_v20  ;;  %v7713_v22 = vadd.f32 %v9757_v18, %v7712_v11 }
0x2164   :  { %12979 = vmatprep.subr.bf16.mxu1 %v13478_v24 }
0x2166   :  { %v7717_v29 = vpop.f32.mrb[154].mxu1 }
0x2167   :  { %v7718_v56 = vadd.f32 %v9757_v18, %v7717_v29  ;;  %v12345_v62 = vpop.f32.mrb[155].mxu1 }
0x2169   :  { %v12980_v27 = vpack.c.bf16 %v7718_v56, %v7713_v22 }
0x216a   :  { %v7722_v2 = vpop.f32.mrb[156].mxu1 }
0x216b   :  { %v12348_v30 = vpop.f32.mrb[157].mxu1  ;;  %12982 = vmatpush3.bf16.xpose.msk.msra.mxu1 %vm13884_vm4, %v12980_v27  ;;  %v7723_v35 = vadd.f32 %v9757_v18, %v7722_v2  ;;  %v7570_v18 = vadd.f32 %v9742_v45, %v17029_v51  ;;  %v7585_v51 = vadd.f32 %v9742_v45, %v17047_v25  ;;  %v7600_v25 = vadd.f32 %v9742_v45, %v17065_v8 }
0x216c   :  { %12400 = vmatprep.subr.mxu1 %v17740_v33 }
0x2173   :  { %12401 = vmatpush3.xpose.msk.msra.mxu1 %vm650_vm3, %v7723_v35 }
0x2174   :  { %12474 = vmatprep.subr.mxu1 %v17740_v33 }
0x2176   :  { %12403 = vmatmul.mubr.msk.f32.vlgmr.msra.gmra.mrb[158].mxu1 %vm650_vm3, %v7560_v53 }
0x2177   :  { %12405 = vmatprep.mubr.msk.f32.mxu1 %vm13479_vm2, %v17740_v33 }
0x217a   :  { %12406 = vmatmul.mubr.msk.f32.gmra.mrb[160].mxu1 %vm650_vm3, %v7565_v57 }
0x217b   :  { %12408 = vmatprep.mubr.msk.f32.mxu1 %vm13479_vm2, %v17740_v33 }
0x217e   :  { %12409 = vmatmul.mubr.msk.f32.gmra.mrb[162].mxu1 %vm650_vm3, %v7570_v18 }
0x217f   :  { %12411 = vmatprep.mubr.msk.f32.mxu1 %vm13479_vm2, %v17740_v33 }
0x2182   :  { %12412 = vmatmul.mubr.msk.f32.gmra.mrb[164].mxu1 %vm650_vm3, %v7575_v58 }
0x2183   :  { %12414 = vmatprep.mubr.msk.f32.mxu1 %vm13479_vm2, %v17740_v33 }
0x2186   :  { %12415 = vmatmul.mubr.msk.f32.gmra.mrb[166].mxu1 %vm650_vm3, %v7580_v16 }
0x2187   :  { %12417 = vmatprep.mubr.msk.f32.mxu1 %vm13479_vm2, %v17740_v33 }
0x218a   :  { %12418 = vmatmul.mubr.msk.f32.gmra.mrb[168].mxu1 %vm650_vm3, %v7585_v51 }
0x218b   :  { %12420 = vmatprep.mubr.msk.f32.mxu1 %vm13479_vm2, %v17740_v33 }
0x218e   :  { %12421 = vmatmul.mubr.msk.f32.gmra.mrb[170].mxu1 %vm650_vm3, %v7590_v47 }
0x218f   :  { %12423 = vmatprep.mubr.msk.f32.mxu1 %vm13479_vm2, %v17740_v33 }
0x2192   :  { %12424 = vmatmul.mubr.msk.f32.gmra.mrb[172].mxu1 %vm650_vm3, %v7595_v14 }
0x2193   :  { %12426 = vmatprep.mubr.msk.f32.mxu1 %vm13479_vm2, %v17740_v33 }
0x2196   :  { %12427 = vmatmul.mubr.msk.f32.gmra.mrb[174].mxu1 %vm650_vm3, %v7600_v25 }
0x2197   :  { %12476 = vmatprep.mubr.msk.f32.mxu1 %vm13479_vm2, %v17740_v33 }
0x2249   :  { %v7969_v15 = vpop.f32.mrb[158].mxu1 }
0x224a   :  { %v8013_v28 = vmul.f32 0.35355338, %v7969_v15  ;;  %v12404_v17 = vpop.f32.mrb[159].mxu1 }
0x224c   :  { %v8022_v21 = vadd.f32 %v16744_v4, %v8013_v28 }
0x224d   :  { %v7974_v63 = vpop.f32.mrb[160].mxu1 }
0x224e   :  { %v8014_v32 = vmul.f32 0.35355338, %v7974_v63  ;;  %v12407_v6 = vpop.f32.mrb[161].mxu1  ;;  %v8031_v44 = vsel %vm833_vm5, %v8022_v21, -inf }
0x224f   :  { %8032 = vmax.xlane.f32.xlu0 %v8031_v44 }
0x2250   :  { %v8023_v9 = vadd.f32 %v16751_v34, %v8014_v32 }
0x2251   :  { %v7979_v41 = vpop.f32.mrb[162].mxu1 }
0x2252   :  { %v8015_v8 = vmul.f32 0.35355338, %v7979_v41  ;;  %v12410_v49 = vpop.f32.mrb[163].mxu1  ;;  %v8034_v1 = vsel %vm833_vm5, %v8023_v9, -inf }
0x2253   :  { %8035 = vmax.xlane.f32.xlu1 %v8034_v1 }
0x2254   :  { %v8024_v26 = vadd.f32 %v16758_v23, %v8015_v8 }
0x2255   :  { %v7984_v3 = vpop.f32.mrb[164].mxu1 }
0x2256   :  { %v8016_v20 = vmul.f32 0.35355338, %v7984_v3  ;;  %v12413_v11 = vpop.f32.mrb[165].mxu1  ;;  %v8037_v4 = vsel %vm833_vm5, %v8024_v26, -inf }
0x2257   :  { %8038 = vmax.xlane.f32.xlu0 %v8037_v4 }
0x2258   :  { %v8025_v54 = vadd.f32 %v16765_v10, %v8016_v20 }
0x2259   :  { %v7989_v29 = vpop.f32.mrb[166].mxu1 }
0x225a   :  { %v8017_v22 = vmul.f32 0.35355338, %v7989_v29  ;;  %v12416_v56 = vpop.f32.mrb[167].mxu1  ;;  %v8040_v34 = vsel %vm833_vm5, %v8025_v54, -inf }
0x225b   :  { %8041 = vmax.xlane.f32.xlu1 %v8040_v34 }
0x225c   :  { %v8026_v62 = vadd.f32 %v16772_v52, %v8017_v22 }
0x225d   :  { %v7994_v27 = vpop.f32.mrb[168].mxu1 }
0x225e   :  { %v8018_v2 = vmul.f32 0.35355338, %v7994_v27  ;;  %v12419_v30 = vpop.f32.mrb[169].mxu1  ;;  %v8043_v23 = vsel %vm833_vm5, %v8026_v62, -inf }
0x225f   :  { %8044 = vmax.xlane.f32.xlu0 %v8043_v23 }
0x2260   :  { %v8027_v45 = vadd.f32 %v16779_v50, %v8018_v2 }
0x2261   :  { %v7999_v35 = vpop.f32.mrb[170].mxu1 }
0x2262   :  { %v8019_v53 = vmul.f32 0.35355338, %v7999_v35  ;;  %v12422_v57 = vpop.f32.mrb[171].mxu1  ;;  %v8046_v10 = vsel %vm833_vm5, %v8027_v45, -inf }
0x2263   :  { %8047 = vmax.xlane.f32.xlu1 %v8046_v10 }
0x2264   :  { %v8028_v18 = vadd.f32 %v16786_v37, %v8019_v53 }
0x2265   :  { %v8004_v58 = vpop.f32.mrb[172].mxu1 }
0x2266   :  { %v8020_v16 = vmul.f32 0.35355338, %v8004_v58  ;;  %v12425_v51 = vpop.f32.mrb[173].mxu1  ;;  %v8049_v52 = vsel %vm833_vm5, %v8028_v18, -inf }
0x2267   :  { %8050 = vmax.xlane.f32.xlu0 %v8049_v52 }
0x2268   :  { %v8029_v47 = vadd.f32 %v16793_v61, %v8020_v16 }
0x2269   :  { %v8009_v14 = vpop.f32.mrb[174].mxu1 }
0x226a   :  { %v8021_v25 = vmul.f32 0.35355338, %v8009_v14  ;;  %v12428_v15 = vpop.f32.mrb[175].mxu1  ;;  %v8052_v50 = vsel %vm833_vm5, %v8029_v47, -inf }
0x226b   :  { %8053 = vmax.xlane.f32.xlu1 %v8052_v50 }
0x226c   :  { %v8030_v28 = vadd.f32 %v16800_v40, %v8021_v25 }
0x226e   :  { %v8055_v17 = vsel %vm833_vm5, %v8030_v28, -inf }
0x226f   :  { %8056 = vmax.xlane.f32.xlu0 %v8055_v17 }
0x22dc   :  { %v8033_v37 = vpop.xlane.xlu0 %8032 }
0x22dd   :  { %v8058_v63 = vsub.f32 %v8022_v21, %v8033_v37 }
0x22df   :  { %v8067_v32 = vmul.f32 1.442695, %v8058_v63 }
0x22e0   :  { %v8036_v6 = vpop.xlane.xlu1 %8035 }
0x22e1   :  { %13352 = vpow2.f32 %v8067_v32  ;;  %v8059_v44 = vsub.f32 %v8023_v9, %v8036_v6 }
0x22e3   :  { %v8069_v41 = vmul.f32 1.442695, %v8059_v44 }
0x22e4   :  { %v8039_v8 = vpop.xlane.xlu0 %8038 }
0x22e5   :  { %13354 = vpow2.f32 %v8069_v41  ;;  %v8060_v61 = vsub.f32 %v8024_v26, %v8039_v8 }
0x22e7   :  { %v8071_v49 = vmul.f32 1.442695, %v8060_v61 }
0x22e8   :  { %v8042_v1 = vpop.xlane.xlu1 %8041 }
0x22e9   :  { %13356 = vpow2.f32 %v8071_v49  ;;  %v8061_v3 = vsub.f32 %v8025_v54, %v8042_v1 }
0x22eb   :  { %v13353_v20 = vpop.eup %13352  ;;  %v8073_v11 = vmul.f32 1.442695, %v8061_v3 }
0x22ec   :  { %v8045_v40 = vpop.xlane.xlu0 %8044  ;;  %v8085_v4 = vsel %vm833_vm5, %v13353_v20, 0.0 }
0x22ed   :  { %13358 = vpow2.f32 %v8073_v11  ;;  %v8062_v29 = vsub.f32 %v8026_v62, %v8045_v40  ;;  %8086 = vadd.xlane.f32.xlu1 %v8085_v4 }
0x22ef   :  { %v13355_v21 = vpop.eup %13354  ;;  %v8075_v22 = vmul.f32 1.442695, %v8062_v29 }
0x22f0   :  { %v8048_v56 = vpop.xlane.xlu1 %8047  ;;  %v8088_v9 = vsel %vm833_vm5, %v13355_v21, 0.0 }
0x22f1   :  { %13360 = vpow2.f32 %v8075_v22  ;;  %v8063_v34 = vsub.f32 %v8027_v45, %v8048_v56  ;;  %8089 = vadd.xlane.f32.xlu0 %v8088_v9 }
0x22f3   :  { %v13357_v26 = vpop.eup %13356  ;;  %v8077_v27 = vmul.f32 1.442695, %v8063_v34 }
0x22f4   :  { %v8051_v2 = vpop.xlane.xlu0 %8050  ;;  %v8091_v54 = vsel %vm833_vm5, %v13357_v26, 0.0 }
0x22f5   :  { %13362 = vpow2.f32 %v8077_v27  ;;  %v8064_v30 = vsub.f32 %v8028_v18, %v8051_v2  ;;  %8092 = vadd.xlane.f32.xlu1 %v8091_v54 }
0x22f7   :  { %v13359_v23 = vpop.eup %13358  ;;  %v8079_v35 = vmul.f32 1.442695, %v8064_v30 }
0x22f8   :  { %v8054_v62 = vpop.xlane.xlu1 %8053  ;;  %v8094_v53 = vsel %vm833_vm5, %v13359_v23, 0.0 }
0x22f9   :  { %13364 = vpow2.f32 %v8079_v35  ;;  %v8065_v57 = vsub.f32 %v8029_v47, %v8054_v62  ;;  %8095 = vadd.xlane.f32.xlu0 %v8094_v53 }
0x22fb   :  { %v13361_v10 = vpop.eup %13360  ;;  %v8081_v58 = vmul.f32 1.442695, %v8065_v57 }
0x22fc   :  { %v8057_v45 = vpop.xlane.xlu0 %8056  ;;  %v8097_v16 = vsel %vm833_vm5, %v13361_v10, 0.0 }
0x22fd   :  { %13366 = vpow2.f32 %v8081_v58  ;;  %v8066_v51 = vsub.f32 %v8030_v28, %v8057_v45  ;;  %8098 = vadd.xlane.f32.xlu1 %v8097_v16  ;;  %v9809_v28 = vld [vmem:[%s17725_s6 + $0x38] sm:$0xff] }
0x22fe   :  { %12475 = vmatpush3.msra.mxu1 %v9809_v28 }
0x22ff   :  { %v13363_v52 = vpop.eup %13362  ;;  %v8083_v14 = vmul.f32 1.442695, %v8066_v51  ;;  %13001 = vmatprep.subr.bf16.mxu1 %v13478_v24 }
0x2300   :  { %v8100_v18 = vsel %vm833_vm5, %v13363_v52, 0.0 }
0x2301   :  { %13368 = vpow2.f32 %v8083_v14  ;;  %8101 = vadd.xlane.f32.xlu0 %v8100_v18 }
0x2303   :  { %v13365_v25 = vpop.eup %13364 }
0x2304   :  { %v8103_v15 = vsel %vm833_vm5, %v13365_v25, 0.0 }
0x2305   :  { %8104 = vadd.xlane.f32.xlu1 %v8103_v15 }
0x2307   :  { %v13367_v47 = vpop.eup %13366 }
0x2308   :  { %v8106_v50 = vsel %vm833_vm5, %v13367_v47, 0.0 }
0x2309   :  { %8107 = vadd.xlane.f32.xlu0 %v8106_v50 }
0x230b   :  { %v13369_v17 = vpop.eup %13368 }
0x230c   :  { %v8109_v37 = vsel %vm833_vm5, %v13369_v17, 0.0 }
0x230d   :  { %8110 = vadd.xlane.f32.xlu1 %v8109_v37 }
0x237a   :  { %v8087_v63 = vpop.xlane.xlu1 %8086 }
0x237b   :  { %13370 = vrcp.f32 %v8087_v63 }
0x237e   :  { %v8090_v32 = vpop.xlane.xlu0 %8089 }
0x237f   :  { %13372 = vrcp.f32 %v8090_v32 }
0x2382   :  { %v8093_v6 = vpop.xlane.xlu1 %8092 }
0x2383   :  { %13374 = vrcp.f32 %v8093_v6 }
0x2385   :  { %v13371_v44 = vpop.eup %13370 }
0x2386   :  { %v8121_v41 = vmul.f32 %v13371_v44, %v13353_v20  ;;  %v8096_v8 = vpop.xlane.xlu0 %8095  ;;  %v9820_v44 = vld [vmem:[%s17726_s7 + $0x1] ss:$0 sm:$0xff] }
0x2387   :  { %13376 = vrcp.f32 %v8096_v8 }
0x2388   :  { %12448 = vmatmul.mubr.msk.f32.vlgmr.msra.gmra.mrb[176].mxu0 %vm833_vm5, %v8121_v41 }
0x2389   :  { %v13373_v61 = vpop.eup %13372  ;;  %12450 = vmatprep.mubr.msk.f32.mxu0 %vm13479_vm2, %v17740_v33 }
0x238a   :  { %v8122_v49 = vmul.f32 %v13373_v61, %v13355_v21  ;;  %v8099_v1 = vpop.xlane.xlu1 %8098 }
0x238b   :  { %13378 = vrcp.f32 %v8099_v1 }
0x238c   :  { %12451 = vmatmul.mubr.msk.f32.gmra.mrb[178].mxu0 %vm833_vm5, %v8122_v49 }
0x238d   :  { %v13375_v3 = vpop.eup %13374  ;;  %12453 = vmatprep.mubr.msk.f32.mxu0 %vm13479_vm2, %v17740_v33 }
0x238e   :  { %v8123_v11 = vmul.f32 %v13375_v3, %v13357_v26  ;;  %v8102_v40 = vpop.xlane.xlu0 %8101 }
0x238f   :  { %13380 = vrcp.f32 %v8102_v40 }
0x2390   :  { %12454 = vmatmul.mubr.msk.f32.gmra.mrb[180].mxu0 %vm833_vm5, %v8123_v11 }
0x2391   :  { %v13377_v20 = vpop.eup %13376  ;;  %12456 = vmatprep.mubr.msk.f32.mxu0 %vm13479_vm2, %v17740_v33 }
0x2392   :  { %v8124_v4 = vmul.f32 %v13377_v20, %v13359_v23  ;;  %v8105_v29 = vpop.xlane.xlu1 %8104 }
0x2393   :  { %13382 = vrcp.f32 %v8105_v29 }
0x2394   :  { %12457 = vmatmul.mubr.msk.f32.gmra.mrb[182].mxu0 %vm833_vm5, %v8124_v4 }
0x2395   :  { %v13379_v21 = vpop.eup %13378  ;;  %12459 = vmatprep.mubr.msk.f32.mxu0 %vm13479_vm2, %v17740_v33 }
0x2396   :  { %v8125_v22 = vmul.f32 %v13379_v21, %v13361_v10  ;;  %v8108_v56 = vpop.xlane.xlu0 %8107 }
0x2397   :  { %13384 = vrcp.f32 %v8108_v56 }
0x2398   :  { %12460 = vmatmul.mubr.msk.f32.gmra.mrb[184].mxu0 %vm833_vm5, %v8125_v22 }
0x2399   :  { %v13381_v9 = vpop.eup %13380  ;;  %12462 = vmatprep.mubr.msk.f32.mxu0 %vm13479_vm2, %v17740_v33 }
0x239a   :  { %v8126_v34 = vmul.f32 %v13381_v9, %v13363_v52  ;;  %v8111_v26 = vpop.xlane.xlu1 %8110 }
0x239b   :  { %13386 = vrcp.f32 %v8111_v26 }
0x239c   :  { %12463 = vmatmul.mubr.msk.f32.gmra.mrb[186].mxu0 %vm833_vm5, %v8126_v34 }
0x239d   :  { %v13383_v27 = vpop.eup %13382  ;;  %12465 = vmatprep.mubr.msk.f32.mxu0 %vm13479_vm2, %v17740_v33 }
0x239e   :  { %v8127_v2 = vmul.f32 %v13383_v27, %v13365_v25 }
0x23a0   :  { %12466 = vmatmul.mubr.msk.f32.gmra.mrb[188].mxu0 %vm833_vm5, %v8127_v2 }
0x23a1   :  { %v13385_v54 = vpop.eup %13384  ;;  %12468 = vmatprep.mubr.msk.f32.mxu0 %vm13479_vm2, %v17740_v33 }
0x23a2   :  { %v8128_v30 = vmul.f32 %v13385_v54, %v13367_v47 }
0x23a4   :  { %12469 = vmatmul.mubr.msk.f32.gmra.mrb[190].mxu0 %vm833_vm5, %v8128_v30 }
0x23a5   :  { %v13387_v23 = vpop.eup %13386  ;;  %12471 = vmatprep.mubr.msk.f32.mxu0 %vm13479_vm2, %v17740_v33 }
0x23a6   :  { %v8129_v35 = vmul.f32 %v13387_v23, %v13369_v17 }
0x23a8   :  { %12472 = vmatmul.mubr.msk.f32.gmra.mrb[192].mxu0 %vm833_vm5, %v8129_v35 }
0x23a9   :  { %12511 = vmatprep.mubr.msk.f32.mxu0 %vm13479_vm2, %v17740_v33 }
0x245b   :  { %v8223_v62 = vpop.f32.mrb[176].mxu0 }
0x245c   :  { %v12449_v53 = vpop.f32.mrb[177].mxu0  ;;  %12477 = vmatmul.mubr.msk.f32.vlgmr.msra.gmra.mrb[176].mxu1 %vm650_vm3, %v8223_v62 }
0x245d   :  { %12479 = vmatprep.mubr.msk.f32.mxu1 %vm13479_vm2, %v17740_v33 }
0x245f   :  { %v8228_v57 = vpop.f32.mrb[178].mxu0 }
0x2460   :  { %v12452_v10 = vpop.f32.mrb[179].mxu0  ;;  %12480 = vmatmul.mubr.msk.f32.gmra.mrb[178].mxu1 %vm650_vm3, %v8228_v57 }
0x2461   :  { %12482 = vmatprep.mubr.msk.f32.mxu1 %vm13479_vm2, %v17740_v33 }
0x2463   :  { %v8233_v58 = vpop.f32.mrb[180].mxu0 }
0x2464   :  { %v12455_v45 = vpop.f32.mrb[181].mxu0  ;;  %12483 = vmatmul.mubr.msk.f32.gmra.mrb[180].mxu1 %vm650_vm3, %v8233_v58 }
0x2465   :  { %12485 = vmatprep.mubr.msk.f32.mxu1 %vm13479_vm2, %v17740_v33 }
0x2467   :  { %v8238_v16 = vpop.f32.mrb[182].mxu0 }
0x2468   :  { %v12458_v51 = vpop.f32.mrb[183].mxu0  ;;  %12486 = vmatmul.mubr.msk.f32.gmra.mrb[182].mxu1 %vm650_vm3, %v8238_v16 }
0x2469   :  { %12488 = vmatprep.mubr.msk.f32.mxu1 %vm13479_vm2, %v17740_v33 }
0x246b   :  { %v8243_v52 = vpop.f32.mrb[184].mxu0 }
0x246c   :  { %v12461_v14 = vpop.f32.mrb[185].mxu0  ;;  %12489 = vmatmul.mubr.msk.f32.gmra.mrb[184].mxu1 %vm650_vm3, %v8243_v52 }
0x246d   :  { %12491 = vmatprep.mubr.msk.f32.mxu1 %vm13479_vm2, %v17740_v33 }
0x246f   :  { %v8248_v18 = vpop.f32.mrb[186].mxu0 }
0x2470   :  { %v12464_v25 = vpop.f32.mrb[187].mxu0  ;;  %12492 = vmatmul.mubr.msk.f32.gmra.mrb[186].mxu1 %vm650_vm3, %v8248_v18  ;;  %v17741_v18 = vld [vmem:[#allocation3_spill] sm:$0xff] }
0x2471   :  { %12494 = vmatprep.mubr.msk.f32.mxu1 %vm13479_vm2, %v17740_v33 }
0x2473   :  { %v8253_v15 = vpop.f32.mrb[188].mxu0 }
0x2474   :  { %v12467_v47 = vpop.f32.mrb[189].mxu0  ;;  %12495 = vmatmul.mubr.msk.f32.gmra.mrb[188].mxu1 %vm650_vm3, %v8253_v15 }
0x2475   :  { %12497 = vmatprep.mubr.msk.f32.mxu1 %vm13479_vm2, %v17740_v33  ;;  %v9825_v47 = vld [vmem:[%s17727_s9 + $0x20] sm:$0xff] }
0x2477   :  { %v8258_v50 = vpop.f32.mrb[190].mxu0 }
0x2478   :  { %v12470_v17 = vpop.f32.mrb[191].mxu0  ;;  %12498 = vmatmul.mubr.msk.f32.gmra.mrb[190].mxu1 %vm650_vm3, %v8258_v50 }
0x2479   :  { %12500 = vmatprep.mubr.msk.f32.mxu1 %vm13479_vm2, %v17740_v33 }
0x247b   :  { %v8263_v37 = vpop.f32.mrb[192].mxu0 }
0x247c   :  { %v12473_v28 = vpop.f32.mrb[193].mxu0  ;;  %12501 = vmatmul.mubr.msk.f32.gmra.mrb[192].mxu1 %vm650_vm3, %v8263_v37 }
0x247d   :  { %12570 = vmatprep.mubr.msk.f32.mxu1 %vm13479_vm2, %v17740_v33 }
0x252f   :  { %v8362_v63 = vpop.f32.mrb[176].mxu1 }
0x2530   :  { %v8406_v32 = vadd.f32 %v8362_v63, %v17080_v46  ;;  %v12478_v6 = vpop.f32.mrb[177].mxu1 }
0x2532   :  { %v8415_v41 = vadd.f32 %v8406_v32, %v15558_v7 }
0x2533   :  { %v8367_v8 = vpop.f32.mrb[178].mxu1 }
0x2534   :  { %v17252_v61 = vadd.f32 %v9820_v44, %v8415_v41  ;;  %v8407_v49 = vadd.f32 %v8367_v8, %v17083_v19  ;;  %v12481_v1 = vpop.f32.mrb[179].mxu1 }
0x2536   :  { %v8416_v3 = vadd.f32 %v8407_v49, %v15563_v31  ;;  %v8445_v11 = vsel %vm57_vm1, %v17252_v61, 0.0 }
0x2537   :  { %8446 = vadd.xlane.f32.xlu0 %v8445_v11  ;;  %v8372_v46 = vpop.f32.mrb[180].mxu1 }
0x2538   :  { %v17258_v40 = vadd.f32 %v9820_v44, %v8416_v3  ;;  %v8408_v20 = vadd.f32 %v8372_v46, %v17086_v0  ;;  %v12484_v4 = vpop.f32.mrb[181].mxu1 }
0x253a   :  { %v8417_v7 = vadd.f32 %v8408_v20, %v15568_v12  ;;  %v8448_v29 = vsel %vm57_vm1, %v17258_v40, 0.0 }
0x253b   :  { %8449 = vadd.xlane.f32.xlu1 %v8448_v29  ;;  %v8377_v19 = vpop.f32.mrb[182].mxu1 }
0x253c   :  { %v17264_v21 = vadd.f32 %v9820_v44, %v8417_v7  ;;  %v8409_v31 = vadd.f32 %v8377_v19, %v17089_v48  ;;  %v12487_v22 = vpop.f32.mrb[183].mxu1 }
0x253e   :  { %v8418_v56 = vadd.f32 %v8409_v31, %v15573_v5  ;;  %v8451_v9 = vsel %vm57_vm1, %v17264_v21, 0.0 }
0x253f   :  { %8452 = vadd.xlane.f32.xlu0 %v8451_v9  ;;  %v8382_v0 = vpop.f32.mrb[184].mxu1 }
0x2540   :  { %v17270_v34 = vadd.f32 %v9820_v44, %v8418_v56  ;;  %v8410_v12 = vadd.f32 %v8382_v0, %v17092_v55  ;;  %v12490_v26 = vpop.f32.mrb[185].mxu1 }
0x2542   :  { %v8419_v27 = vadd.f32 %v8410_v12, %v15578_v39  ;;  %v8454_v2 = vsel %vm57_vm1, %v17270_v34, 0.0 }
0x2543   :  { %8455 = vadd.xlane.f32.xlu1 %v8454_v2  ;;  %v8387_v48 = vpop.f32.mrb[186].mxu1 }
0x2544   :  { %v17276_v54 = vadd.f32 %v9820_v44, %v8419_v27  ;;  %v8411_v5 = vadd.f32 %v8387_v48, %v17095_v60  ;;  %v12493_v30 = vpop.f32.mrb[187].mxu1 }
0x2546   :  { %v8420_v23 = vadd.f32 %v8411_v5, %v15583_v43  ;;  %v8457_v35 = vsel %vm57_vm1, %v17276_v54, 0.0 }
0x2547   :  { %8458 = vadd.xlane.f32.xlu0 %v8457_v35  ;;  %v8392_v55 = vpop.f32.mrb[188].mxu1 }
0x2548   :  { %v17282_v62 = vadd.f32 %v9820_v44, %v8420_v23  ;;  %v8412_v39 = vadd.f32 %v8392_v55, %v17098_v42  ;;  %v12496_v53 = vpop.f32.mrb[189].mxu1 }
0x254a   :  { %v8421_v57 = vadd.f32 %v8412_v39, %v15588_v13  ;;  %v8460_v10 = vsel %vm57_vm1, %v17282_v62, 0.0 }
0x254b   :  { %8461 = vadd.xlane.f32.xlu1 %v8460_v10  ;;  %v8397_v60 = vpop.f32.mrb[190].mxu1 }
0x254c   :  { %v17288_v58 = vadd.f32 %v9820_v44, %v8421_v57  ;;  %v8413_v43 = vadd.f32 %v8397_v60, %v17101_v59  ;;  %v12499_v45 = vpop.f32.mrb[191].mxu1 }
0x254e   :  { %v8422_v16 = vadd.f32 %v8413_v43, %v15593_v38  ;;  %v8463_v51 = vsel %vm57_vm1, %v17288_v58, 0.0 }
0x254f   :  { %8464 = vadd.xlane.f32.xlu0 %v8463_v51  ;;  %v8402_v42 = vpop.f32.mrb[192].mxu1 }
0x2550   :  { %v17294_v52 = vadd.f32 %v9820_v44, %v8422_v16  ;;  %v8414_v13 = vadd.f32 %v8402_v42, %v17104_v36  ;;  %v12502_v14 = vpop.f32.mrb[193].mxu1  ;;  %v9826_v36 = vld [vmem:[%s17727_s9 + $0x28] sm:$0xff] }
0x2551   :  { %v12996_v50 = vpack.c.bf16 %v9826_v36, %v9825_v47  ;;  %v9828_v14 = vld [vmem:[%s17727_s9 + $0x38] sm:$0xff]  ;;  %v9842_v47 = vld [vmem:[%s17728_s11 + $0x90] sm:$0xff] }
0x2552   :  { %v8423_v25 = vadd.f32 %v8414_v13, %v17741_v18  ;;  %v8466_v15 = vsel %vm57_vm1, %v17294_v52, 0.0  ;;  %v9827_v13 = vld [vmem:[%s17727_s9 + $0x30] sm:$0xff] }
0x2553   :  { %8467 = vadd.xlane.f32.xlu1 %v8466_v15  ;;  %12997 = vmatpush3.bf16.msra.mxu0 %v12996_v50  ;;  %v12999_v18 = vpack.c.bf16 %v9828_v14, %v9827_v13  ;;  %v9840_v15 = vld [vmem:[%s17728_s11 + $0x80] sm:$0xff]  ;;  %v9843_v50 = vld [vmem:[%s17728_s11 + $0x98] sm:$0xff] }
0x2554   :  { %v17300_v59 = vadd.f32 %v9820_v44, %v8423_v25  ;;  %12998 = vmatprep.subr.bf16.mxu0 %v13478_v24 }
0x2556   :  { %v8469_v38 = vsel %vm57_vm1, %v17300_v59, 0.0 }
0x2557   :  { %8470 = vadd.xlane.f32.xlu0 %v8469_v38  ;;  %13000 = vmatpush3.bf16.msra.mxu0 %v12999_v18  ;;  %v9841_v38 = vld [vmem:[%s17728_s11 + $0x88] sm:$0xff] }
0x2558   :  { %v13002_v36 = vpack.c.bf16 %v9841_v38, %v9840_v15 }
0x255a   :  { %13003 = vmatpush3.bf16.msra.mxu1 %v13002_v36 }
0x255b   :  { %13004 = vmatprep.subr.bf16.mxu1 %v13478_v24 }
0x25c4   :  { %v8447_v17 = vpop.xlane.xlu0 %8446 }
0x25c5   :  { %v8472_v37 = vmul.f32 0.03125, %v8447_v17  ;;  %v13005_v17 = vpack.c.bf16 %v9843_v50, %v9842_v47 }
0x25c7   :  { %v17312_v28 = vsub.f32 %v17252_v61, %v8472_v37  ;;  %v9844_v37 = vld [vmem:[%s17728_s11 + $0xa0] sm:$0xff]  ;;  %13006 = vmatpush3.bf16.msra.mxu1 %v13005_v17 }
0x25c8   :  { %v8450_v63 = vpop.xlane.xlu1 %8449  ;;  %13007 = vmatprep.subr.bf16.mxu1 %v13478_v24 }
0x25c9   :  { %v8473_v32 = vmul.f32 0.03125, %v8450_v63  ;;  %v8490_v6 = vmul.f32 %v17312_v28, %v17312_v28  ;;  %v9845_v63 = vld [vmem:[%s17728_s11 + $0xa8] sm:$0xff] }
0x25cb   :  { %v17317_v44 = vsub.f32 %v17258_v40, %v8473_v32  ;;  %v8499_v41 = vsel %vm57_vm1, %v8490_v6, 0.0  ;;  %v13008_v32 = vpack.c.bf16 %v9845_v63, %v9844_v37 }
0x25cc   :  { %v8453_v8 = vpop.xlane.xlu0 %8452  ;;  %8500 = vadd.xlane.f32.xlu1 %v8499_v41 }
0x25cd   :  { %v8474_v49 = vmul.f32 0.03125, %v8453_v8  ;;  %v8491_v1 = vmul.f32 %v17317_v44, %v17317_v44  ;;  %13009 = vmatpush3.bf16.msra.mxu1 %v13008_v32 }
0x25ce   :  { %13010 = vmatprep.subr.bf16.mxu1 %v13478_v24 }
0x25cf   :  { %v17323_v3 = vsub.f32 %v17264_v21, %v8474_v49  ;;  %v8502_v11 = vsel %vm57_vm1, %v8491_v1, 0.0 }
0x25d0   :  { %v8456_v46 = vpop.xlane.xlu1 %8455  ;;  %8503 = vadd.xlane.f32.xlu0 %v8502_v11 }
0x25d1   :  { %v8475_v20 = vmul.f32 0.03125, %v8456_v46  ;;  %v8492_v4 = vmul.f32 %v17323_v3, %v17323_v3 }
0x25d3   :  { %v17329_v7 = vsub.f32 %v17270_v34, %v8475_v20  ;;  %v8505_v29 = vsel %vm57_vm1, %v8492_v4, 0.0 }
0x25d4   :  { %v8459_v19 = vpop.xlane.xlu0 %8458  ;;  %8506 = vadd.xlane.f32.xlu1 %v8505_v29 }
0x25d5   :  { %v8476_v31 = vmul.f32 0.03125, %v8459_v19  ;;  %v8493_v22 = vmul.f32 %v17329_v7, %v17329_v7 }
0x25d7   :  { %v17335_v56 = vsub.f32 %v17276_v54, %v8476_v31  ;;  %v8508_v9 = vsel %vm57_vm1, %v8493_v22, 0.0  ;;  %v17395_v22 = vld [vmem:[%s17722_s8 + $0x6] ss:$0 sm:$0xff] }
0x25d8   :  { %v8462_v0 = vpop.xlane.xlu1 %8461  ;;  %8509 = vadd.xlane.f32.xlu0 %v8508_v9 }
0x25d9   :  { %v8477_v12 = vmul.f32 0.03125, %v8462_v0  ;;  %v8494_v26 = vmul.f32 %v17335_v56, %v17335_v56 }
0x25db   :  { %v17341_v27 = vsub.f32 %v17282_v62, %v8477_v12  ;;  %v8511_v2 = vsel %vm57_vm1, %v8494_v26, 0.0  ;;  %v17401_v26 = vld [vmem:[%s17722_s8 + $0x7] ss:$0 sm:$0xff] }
0x25dc   :  { %v8465_v48 = vpop.xlane.xlu0 %8464  ;;  %8512 = vadd.xlane.f32.xlu1 %v8511_v2 }
0x25dd   :  { %v8478_v5 = vmul.f32 0.03125, %v8465_v48  ;;  %v8495_v30 = vmul.f32 %v17341_v27, %v17341_v27 }
0x25df   :  { %v17347_v23 = vsub.f32 %v17288_v58, %v8478_v5  ;;  %v8514_v35 = vsel %vm57_vm1, %v8495_v30, 0.0 }
0x25e0   :  { %v8468_v55 = vpop.xlane.xlu1 %8467  ;;  %8515 = vadd.xlane.f32.xlu0 %v8514_v35 }
0x25e1   :  { %v8479_v39 = vmul.f32 0.03125, %v8468_v55  ;;  %v8496_v53 = vmul.f32 %v17347_v23, %v17347_v23 }
0x25e3   :  { %v17353_v57 = vsub.f32 %v17294_v52, %v8479_v39  ;;  %v8517_v10 = vsel %vm57_vm1, %v8496_v53, 0.0 }
0x25e4   :  { %8518 = vadd.xlane.f32.xlu1 %v8517_v10  ;;  %v8471_v60 = vpop.xlane.xlu0 %8470 }
0x25e5   :  { %v8480_v43 = vmul.f32 0.03125, %v8471_v60  ;;  %v8497_v45 = vmul.f32 %v17353_v57, %v17353_v57 }
0x25e7   :  { %v17359_v16 = vsub.f32 %v17300_v59, %v8480_v43  ;;  %v8520_v51 = vsel %vm57_vm1, %v8497_v45, 0.0 }
0x25e8   :  { %8521 = vadd.xlane.f32.xlu0 %v8520_v51 }
0x25e9   :  { %v8498_v42 = vmul.f32 %v17359_v16, %v17359_v16 }
0x25eb   :  { %v8523_v25 = vsel %vm57_vm1, %v8498_v42, 0.0 }
0x25ec   :  { %8524 = vadd.xlane.f32.xlu1 %v8523_v25 }
0x2659   :  { %v8501_v6 = vpop.xlane.xlu1 %8500 }
0x265a   :  { %v8526_v41 = vmul.f32 0.03125, %v8501_v6 }
0x265c   :  { %v8535_v8 = vadd.f32 1e-05, %v8526_v41 }
0x265d   :  { %v8504_v49 = vpop.xlane.xlu0 %8503 }
0x265e   :  { %13388 = vrsqrt.f32 %v8535_v8  ;;  %v8527_v1 = vmul.f32 0.03125, %v8504_v49 }
0x2660   :  { %v8536_v11 = vadd.f32 1e-05, %v8527_v1 }
0x2661   :  { %v8507_v46 = vpop.xlane.xlu1 %8506 }
0x2662   :  { %13390 = vrsqrt.f32 %v8536_v11  ;;  %v8528_v20 = vmul.f32 0.03125, %v8507_v46 }
0x2664   :  { %v8537_v4 = vadd.f32 1e-05, %v8528_v20 }
0x2665   :  { %v8510_v29 = vpop.xlane.xlu0 %8509 }
0x2666   :  { %13392 = vrsqrt.f32 %v8537_v4  ;;  %v8529_v19 = vmul.f32 0.03125, %v8510_v29 }
0x2668   :  { %v13389_v31 = vpop.eup %13388  ;;  %v8538_v9 = vadd.f32 1e-05, %v8529_v19 }
0x2669   :  { %v8553_v0 = vmul.f32 %v13389_v31, %v17312_v28  ;;  %v8513_v12 = vpop.xlane.xlu1 %8512 }
0x266a   :  { %13394 = vrsqrt.f32 %v8538_v9  ;;  %v8530_v2 = vmul.f32 0.03125, %v8513_v12  ;;  %v9847_v12 = vld [vmem:[%s17728_s11 + $0xb8] sm:$0xff] }
0x266b   :  { %v8568_v48 = vmul.f32 %v17395_v22, %v8553_v0  ;;  %v9846_v0 = vld [vmem:[%s17728_s11 + $0xb0] sm:$0xff] }
0x266c   :  { %v13391_v5 = vpop.eup %13390  ;;  %v8539_v30 = vadd.f32 1e-05, %v8530_v2 }
0x266d   :  { %v8583_v35 = vadd.f32 %v17401_v26, %v8568_v48  ;;  %v8554_v55 = vmul.f32 %v13391_v5, %v17317_v44  ;;  %v8516_v39 = vpop.xlane.xlu0 %8515  ;;  %v9850_v48 = vld [vmem:[%s17728_s11 + $0xd0] sm:$0xff]  ;;  %v9851_v5 = vld [vmem:[%s17728_s11 + $0xd8] sm:$0xff] }
0x266e   :  { %13396 = vrsqrt.f32 %v8539_v30  ;;  %v8531_v53 = vmul.f32 0.03125, %v8516_v39  ;;  %v13017_v30 = vpack.c.bf16 %v9851_v5, %v9850_v48 }
0x266f   :  { %v8569_v28 = vmul.f32 %v17395_v22, %v8554_v55  ;;  %12512 = vmatmul.mubr.msk.f32.vlgmr.msra.gmra.mrb[194].mxu0 %vm57_vm1, %v8583_v35  ;;  %v9852_v35 = vld [vmem:[%s17728_s11 + $0xe0] sm:$0xff]  ;;  %v9853_v55 = vld [vmem:[%s17728_s11 + $0xe8] sm:$0xff] }
0x2670   :  { %v13393_v10 = vpop.eup %13392  ;;  %v8540_v60 = vadd.f32 1e-05, %v8531_v53  ;;  %12514 = vmatprep.mubr.msk.f32.mxu0 %vm13479_vm2, %v17740_v33  ;;  %v13020_v39 = vpack.c.bf16 %v9853_v55, %v9852_v35  ;;  %v9854_v53 = vld [vmem:[%s17728_s11 + $0xf0] sm:$0xff] }
0x2671   :  { %v8584_v43 = vadd.f32 %v17401_v26, %v8569_v28  ;;  %v8555_v45 = vmul.f32 %v13393_v10, %v17323_v3  ;;  %v8519_v51 = vpop.xlane.xlu1 %8518  ;;  %v9855_v28 = vld [vmem:[%s17728_s11 + $0xf8] sm:$0xff] }
0x2672   :  { %13398 = vrsqrt.f32 %v8540_v60  ;;  %v8532_v42 = vmul.f32 0.03125, %v8519_v51  ;;  %v13023_v10 = vpack.c.bf16 %v9855_v28, %v9854_v53  ;;  %v17491_v60 = vld [vmem:[%s17729_s10 + $0x1] ss:$0 sm:$0xff] }
0x2673   :  { %v8570_v44 = vmul.f32 %v17395_v22, %v8555_v45  ;;  %12515 = vmatmul.mubr.msk.f32.gmra.mrb[196].mxu0 %vm57_vm1, %v8584_v43 }
0x2674   :  { %v13395_v13 = vpop.eup %13394  ;;  %v8541_v14 = vadd.f32 1e-05, %v8532_v42  ;;  %12517 = vmatprep.mubr.msk.f32.mxu0 %vm13479_vm2, %v17740_v33 }
0x2675   :  { %v8585_v18 = vadd.f32 %v17401_v26, %v8570_v44  ;;  %v8556_v25 = vmul.f32 %v13395_v13, %v17329_v7  ;;  %v8522_v15 = vpop.xlane.xlu0 %8521 }
0x2676   :  { %13400 = vrsqrt.f32 %v8541_v14  ;;  %v8533_v38 = vmul.f32 0.03125, %v8522_v15 }
0x2677   :  { %v8571_v3 = vmul.f32 %v17395_v22, %v8556_v25  ;;  %12518 = vmatmul.mubr.msk.f32.gmra.mrb[198].mxu0 %vm57_vm1, %v8585_v18 }
0x2678   :  { %v13397_v47 = vpop.eup %13396  ;;  %v8542_v36 = vadd.f32 1e-05, %v8533_v38  ;;  %12520 = vmatprep.mubr.msk.f32.mxu0 %vm13479_vm2, %v17740_v33 }
0x2679   :  { %v8586_v50 = vadd.f32 %v17401_v26, %v8571_v3  ;;  %v8557_v17 = vmul.f32 %v13397_v47, %v17335_v56  ;;  %v8525_v37 = vpop.xlane.xlu1 %8524 }
0x267a   :  { %13402 = vrsqrt.f32 %v8542_v36  ;;  %v8534_v63 = vmul.f32 0.03125, %v8525_v37 }
0x267b   :  { %v8572_v7 = vmul.f32 %v17395_v22, %v8557_v17  ;;  %12521 = vmatmul.mubr.msk.f32.gmra.mrb[200].mxu0 %vm57_vm1, %v8586_v50 }
0x267c   :  { %v13399_v32 = vpop.eup %13398  ;;  %v8543_v6 = vadd.f32 1e-05, %v8534_v63  ;;  %12523 = vmatprep.mubr.msk.f32.mxu0 %vm13479_vm2, %v17740_v33 }
0x267d   :  { %v8587_v41 = vadd.f32 %v17401_v26, %v8572_v7  ;;  %v8558_v8 = vmul.f32 %v13399_v32, %v17341_v27 }
0x267e   :  { %13404 = vrsqrt.f32 %v8543_v6 }
0x267f   :  { %v8573_v49 = vmul.f32 %v17395_v22, %v8558_v8  ;;  %12524 = vmatmul.mubr.msk.f32.gmra.mrb[202].mxu0 %vm57_vm1, %v8587_v41 }
0x2680   :  { %v13401_v56 = vpop.eup %13400  ;;  %12526 = vmatprep.mubr.msk.f32.mxu0 %vm13479_vm2, %v17740_v33 }
0x2681   :  { %v8588_v1 = vadd.f32 %v17401_v26, %v8573_v49  ;;  %v8559_v11 = vmul.f32 %v13401_v56, %v17347_v23 }
0x2683   :  { %v8574_v46 = vmul.f32 %v17395_v22, %v8559_v11  ;;  %12527 = vmatmul.mubr.msk.f32.gmra.mrb[204].mxu0 %vm57_vm1, %v8588_v1 }
0x2684   :  { %v13403_v20 = vpop.eup %13402  ;;  %12529 = vmatprep.mubr.msk.f32.mxu0 %vm13479_vm2, %v17740_v33 }
0x2685   :  { %v8589_v27 = vadd.f32 %v17401_v26, %v8574_v46  ;;  %v8560_v4 = vmul.f32 %v13403_v20, %v17353_v57 }
0x2687   :  { %v8575_v29 = vmul.f32 %v17395_v22, %v8560_v4  ;;  %12530 = vmatmul.mubr.msk.f32.gmra.mrb[206].mxu0 %vm57_vm1, %v8589_v27 }
0x2688   :  { %v13405_v19 = vpop.eup %13404  ;;  %12532 = vmatprep.mubr.msk.f32.mxu0 %vm13479_vm2, %v17740_v33 }
0x2689   :  { %v8590_v23 = vadd.f32 %v17401_v26, %v8575_v29  ;;  %v8561_v31 = vmul.f32 %v13405_v19, %v17359_v16  ;;  %v13011_v16 = vpack.c.bf16 %v9847_v12, %v9846_v0 }
0x268b   :  { %v8576_v9 = vmul.f32 %v17395_v22, %v8561_v31  ;;  %12533 = vmatmul.mubr.msk.f32.gmra.mrb[208].mxu0 %vm57_vm1, %v8590_v23  ;;  %13012 = vmatpush3.bf16.msra.mxu1 %v13011_v16  ;;  %v9848_v22 = vld [vmem:[%s17728_s11 + $0xc0] sm:$0xff] }
0x268c   :  { %12535 = vmatprep.mubr.msk.f32.mxu0 %vm13479_vm2, %v17740_v33  ;;  %13013 = vmatprep.subr.bf16.mxu1 %v13478_v24 }
0x268d   :  { %v8591_v57 = vadd.f32 %v17401_v26, %v8576_v9  ;;  %v9849_v26 = vld [vmem:[%s17728_s11 + $0xc8] sm:$0xff] }
0x268e   :  { %v13014_v2 = vpack.c.bf16 %v9849_v26, %v9848_v22 }
0x268f   :  { %12536 = vmatmul.mubr.msk.f32.gmra.mrb[210].mxu0 %vm57_vm1, %v8591_v57 }
0x2690   :  { %13015 = vmatpush3.bf16.msra.mxu1 %v13014_v2 }
0x2691   :  { %13016 = vmatprep.subr.bf16.mxu1 %v13478_v24 }
0x2694   :  { %13018 = vmatpush3.bf16.msra.mxu1 %v13017_v30 }
0x2695   :  { %13019 = vmatprep.subr.bf16.mxu1 %v13478_v24 }
0x2698   :  { %13021 = vmatpush3.bf16.msra.mxu1 %v13020_v39 }
0x2699   :  { %13022 = vmatprep.subr.bf16.mxu1 %v13478_v24 }
0x269c   :  { %13024 = vmatpush3.bf16.msra.mxu1 %v13023_v10 }
0x2742   :  { %v8698_v43 = vpop.f32.mrb[194].mxu0 }
0x2743   :  { %v8699_v45 = vadd.f32 %v17491_v60, %v8698_v43  ;;  %v12513_v51 = vpop.f32.mrb[195].mxu0 }
0x2745   :  { %v8751_v24 = vmul.f32 0.70710677, %v8699_v45  ;;  %v8742_v37 = vmul.f32 0.5, %v8699_v45 }
0x2746   :  { %v8703_v42 = vpop.f32.mrb[196].mxu0 }
0x2747   :  { %13406 = verf.f32 %v8751_v24  ;;  %v8704_v44 = vadd.f32 %v17491_v60, %v8703_v42  ;;  %v12516_v13 = vpop.f32.mrb[197].mxu0 }
0x2749   :  { %v8752_v14 = vmul.f32 0.70710677, %v8704_v44  ;;  %v8743_v56 = vmul.f32 0.5, %v8704_v44 }
0x274a   :  { %v8708_v18 = vpop.f32.mrb[198].mxu0 }
0x274b   :  { %13408 = verf.f32 %v8752_v14  ;;  %v8709_v25 = vadd.f32 %v17491_v60, %v8708_v18  ;;  %v12519_v15 = vpop.f32.mrb[199].mxu0 }
0x274d   :  { %v8753_v38 = vmul.f32 0.70710677, %v8709_v25  ;;  %v8744_v19 = vmul.f32 0.5, %v8709_v25 }
0x274e   :  { %v8713_v3 = vpop.f32.mrb[200].mxu0 }
0x274f   :  { %13410 = verf.f32 %v8753_v38  ;;  %v8714_v47 = vadd.f32 %v17491_v60, %v8713_v3  ;;  %v12522_v36 = vpop.f32.mrb[201].mxu0 }
0x2751   :  { %v13407_v50 = vpop.eup %13406  ;;  %v8754_v17 = vmul.f32 0.70710677, %v8714_v47  ;;  %v8745_v22 = vmul.f32 0.5, %v8714_v47 }
0x2752   :  { %v8769_v63 = vadd.f32 1.0, %v13407_v50  ;;  %v8718_v7 = vpop.f32.mrb[202].mxu0 }
0x2753   :  { %13412 = verf.f32 %v8754_v17  ;;  %v8719_v32 = vadd.f32 %v17491_v60, %v8718_v7  ;;  %v12525_v6 = vpop.f32.mrb[203].mxu0 }
0x2754   :  { %v8778_v41 = vmul.f32 %v8769_v63, %v8742_v37  ;;  %v9857_v63 = vld [vmem:[%s17730_s12 + $0x1] ss:$0 sm:$0xff] }
0x2755   :  { %v13409_v8 = vpop.eup %13408  ;;  %v8755_v49 = vmul.f32 0.70710677, %v8719_v32  ;;  %v8746_v39 = vmul.f32 0.5, %v8719_v32 }
0x2756   :  { %v8770_v1 = vadd.f32 1.0, %v13409_v8  ;;  %v8723_v11 = vpop.f32.mrb[204].mxu0  ;;  %12571 = vmatmul.mubr.f32.vlgmr.msra.gmra.mrb[194].mxu1 %v8778_v41 }
0x2757   :  { %13414 = verf.f32 %v8755_v49  ;;  %v8724_v46 = vadd.f32 %v17491_v60, %v8723_v11  ;;  %v12528_v20 = vpop.f32.mrb[205].mxu0  ;;  %12573 = vmatprep.mubr.msk.f32.mxu1 %vm13479_vm2, %v17740_v33 }
0x2758   :  { %v8779_v27 = vmul.f32 %v8770_v1, %v8743_v56 }
0x2759   :  { %v13411_v4 = vpop.eup %13410  ;;  %v8756_v29 = vmul.f32 0.70710677, %v8724_v46  ;;  %v8747_v42 = vmul.f32 0.5, %v8724_v46 }
0x275a   :  { %v8771_v23 = vadd.f32 1.0, %v13411_v4  ;;  %v8728_v31 = vpop.f32.mrb[206].mxu0  ;;  %12574 = vmatmul.mubr.f32.gmra.mrb[196].mxu1 %v8779_v27 }
0x275b   :  { %13416 = verf.f32 %v8756_v29  ;;  %v8729_v9 = vadd.f32 %v17491_v60, %v8728_v31  ;;  %v12531_v57 = vpop.f32.mrb[207].mxu0  ;;  %12576 = vmatprep.mubr.msk.f32.mxu1 %vm13479_vm2, %v17740_v33 }
0x275c   :  { %v8780_v0 = vmul.f32 %v8771_v23, %v8744_v19 }
0x275d   :  { %v13413_v12 = vpop.eup %13412  ;;  %v8757_v16 = vmul.f32 0.70710677, %v8729_v9  ;;  %v8748_v18 = vmul.f32 0.5, %v8729_v9 }
0x275e   :  { %v8772_v26 = vadd.f32 1.0, %v13413_v12  ;;  %v8733_v2 = vpop.f32.mrb[208].mxu0  ;;  %12577 = vmatmul.mubr.f32.gmra.mrb[198].mxu1 %v8780_v0 }
0x275f   :  { %13418 = verf.f32 %v8757_v16  ;;  %v8734_v48 = vadd.f32 %v17491_v60, %v8733_v2  ;;  %v12534_v5 = vpop.f32.mrb[209].mxu0  ;;  %12579 = vmatprep.mubr.msk.f32.mxu1 %vm13479_vm2, %v17740_v33 }
0x2760   :  { %v8781_v30 = vmul.f32 %v8772_v26, %v8745_v22 }
0x2761   :  { %v13415_v35 = vpop.eup %13414  ;;  %v8758_v55 = vmul.f32 0.70710677, %v8734_v48  ;;  %v8749_v38 = vmul.f32 0.5, %v8734_v48 }
0x2762   :  { %v8773_v53 = vadd.f32 1.0, %v13415_v35  ;;  %v8738_v28 = vpop.f32.mrb[210].mxu0  ;;  %12580 = vmatmul.mubr.f32.gmra.mrb[200].mxu1 %v8781_v30 }
0x2763   :  { %13420 = verf.f32 %v8758_v55  ;;  %v8739_v10 = vadd.f32 %v17491_v60, %v8738_v28  ;;  %v12537_v43 = vpop.f32.mrb[211].mxu0  ;;  %12582 = vmatprep.mubr.msk.f32.mxu1 %vm13479_vm2, %v17740_v33 }
0x2764   :  { %v8782_v45 = vmul.f32 %v8773_v53, %v8746_v39 }
0x2765   :  { %v13417_v51 = vpop.eup %13416  ;;  %v8759_v24 = vmul.f32 0.70710677, %v8739_v10  ;;  %v8750_v50 = vmul.f32 0.5, %v8739_v10 }
0x2766   :  { %v8774_v44 = vadd.f32 1.0, %v13417_v51  ;;  %12583 = vmatmul.mubr.f32.gmra.mrb[202].mxu1 %v8782_v45 }
0x2767   :  { %13422 = verf.f32 %v8759_v24  ;;  %12585 = vmatprep.mubr.msk.f32.mxu1 %vm13479_vm2, %v17740_v33 }
0x2768   :  { %v8783_v13 = vmul.f32 %v8774_v44, %v8747_v42 }
0x2769   :  { %v13419_v14 = vpop.eup %13418 }
0x276a   :  { %v8775_v25 = vadd.f32 1.0, %v13419_v14  ;;  %12586 = vmatmul.mubr.f32.gmra.mrb[204].mxu1 %v8783_v13 }
0x276b   :  { %12588 = vmatprep.mubr.msk.f32.mxu1 %vm13479_vm2, %v17740_v33 }
0x276c   :  { %v8784_v60 = vmul.f32 %v8775_v25, %v8748_v18 }
0x276d   :  { %v13421_v15 = vpop.eup %13420 }
0x276e   :  { %v8776_v3 = vadd.f32 1.0, %v13421_v15  ;;  %12589 = vmatmul.mubr.f32.gmra.mrb[206].mxu1 %v8784_v60 }
0x276f   :  { %12591 = vmatprep.mubr.msk.f32.mxu1 %vm13479_vm2, %v17740_v33 }
0x2770   :  { %v8785_v47 = vmul.f32 %v8776_v3, %v8749_v38 }
0x2771   :  { %v13423_v36 = vpop.eup %13422 }
0x2772   :  { %v8777_v17 = vadd.f32 1.0, %v13423_v36  ;;  %12592 = vmatmul.mubr.f32.gmra.mrb[208].mxu1 %v8785_v47 }
0x2773   :  { %12594 = vmatprep.mubr.msk.f32.mxu1 %vm13479_vm2, %v17740_v33 }
0x2774   :  { %v8786_v37 = vmul.f32 %v8777_v17, %v8750_v50 }
0x2776   :  { %12595 = vmatmul.mubr.f32.gmra.mrb[210].mxu1 %v8786_v37 }
0x2829   :  { %v8878_v7 = vpop.f32.mrb[194].mxu1 }
0x282a   :  { %v8879_v32 = vadd.f32 %v9857_v63, %v8878_v7  ;;  %v12572_v6 = vpop.f32.mrb[195].mxu1 }
0x282c   :  { %v8922_v41 = vadd.f32 %v8879_v32, %v17252_v61 }
0x282d   :  { %v8883_v8 = vpop.f32.mrb[196].mxu1 }
0x282e   :  { %v8884_v49 = vadd.f32 %v9857_v63, %v8883_v8  ;;  %v12575_v56 = vpop.f32.mrb[197].mxu1  ;;  %v8934_v1 = vsel %vm57_vm1, %v8922_v41, 0.0 }
0x282f   :  { %8935 = vadd.xlane.f32.xlu0 %v8934_v1 }
0x2830   :  { %v8923_v11 = vadd.f32 %v8884_v49, %v17258_v40 }
0x2831   :  { %v8888_v33 = vpop.f32.mrb[198].mxu1 }
0x2832   :  { %v8889_v46 = vadd.f32 %v9857_v63, %v8888_v33  ;;  %v12578_v20 = vpop.f32.mrb[199].mxu1  ;;  %v8937_v27 = vsel %vm57_vm1, %v8923_v11, 0.0 }
0x2833   :  { %8938 = vadd.xlane.f32.xlu1 %v8937_v27 }
0x2834   :  { %v8924_v4 = vadd.f32 %v8889_v46, %v17264_v21 }
0x2835   :  { %v8893_v29 = vpop.f32.mrb[200].mxu1 }
0x2836   :  { %v8894_v19 = vadd.f32 %v9857_v63, %v8893_v29  ;;  %v12581_v23 = vpop.f32.mrb[201].mxu1  ;;  %v8940_v61 = vsel %vm57_vm1, %v8924_v4, 0.0 }
0x2837   :  { %8941 = vadd.xlane.f32.xlu0 %v8940_v61 }
0x2838   :  { %v8925_v31 = vadd.f32 %v8894_v19, %v17270_v34 }
0x2839   :  { %v8898_v9 = vpop.f32.mrb[202].mxu1 }
0x283a   :  { %v8899_v57 = vadd.f32 %v9857_v63, %v8898_v9  ;;  %v12584_v0 = vpop.f32.mrb[203].mxu1  ;;  %v8943_v40 = vsel %vm57_vm1, %v8925_v31, 0.0 }
0x283b   :  { %8944 = vadd.xlane.f32.xlu1 %v8943_v40 }
0x283c   :  { %v8926_v12 = vadd.f32 %v8899_v57, %v17276_v54 }
0x283d   :  { %v8903_v16 = vpop.f32.mrb[204].mxu1 }
0x283e   :  { %v8904_v22 = vadd.f32 %v9857_v63, %v8903_v16  ;;  %v12587_v26 = vpop.f32.mrb[205].mxu1  ;;  %v8946_v21 = vsel %vm57_vm1, %v8926_v12, 0.0 }
0x283f   :  { %8947 = vadd.xlane.f32.xlu0 %v8946_v21 }
0x2840   :  { %v8927_v2 = vadd.f32 %v8904_v22, %v17282_v62 }
0x2841   :  { %v8908_v48 = vpop.f32.mrb[206].mxu1 }
0x2842   :  { %v8909_v5 = vadd.f32 %v9857_v63, %v8908_v48  ;;  %v12590_v30 = vpop.f32.mrb[207].mxu1  ;;  %v8949_v34 = vsel %vm57_vm1, %v8927_v2, 0.0 }
0x2843   :  { %8950 = vadd.xlane.f32.xlu1 %v8949_v34 }
0x2844   :  { %v8928_v35 = vadd.f32 %v8909_v5, %v17288_v58 }
0x2845   :  { %v8913_v55 = vpop.f32.mrb[208].mxu1 }
0x2846   :  { %v8914_v39 = vadd.f32 %v9857_v63, %v8913_v55  ;;  %v12593_v53 = vpop.f32.mrb[209].mxu1  ;;  %v8952_v54 = vsel %vm57_vm1, %v8928_v35, 0.0 }
0x2847   :  { %8953 = vadd.xlane.f32.xlu0 %v8952_v54 }
0x2848   :  { %v8929_v28 = vadd.f32 %v8914_v39, %v17294_v52 }
0x2849   :  { %v8918_v10 = vpop.f32.mrb[210].mxu1 }
0x284a   :  { %v8919_v43 = vadd.f32 %v9857_v63, %v8918_v10  ;;  %v12596_v45 = vpop.f32.mrb[211].mxu1  ;;  %v8955_v62 = vsel %vm57_vm1, %v8929_v28, 0.0 }
0x284b   :  { %8956 = vadd.xlane.f32.xlu1 %v8955_v62  ;;  %v17593_v62 = vld [vmem:[%s17731_s13 + $0x1] ss:$0 sm:$0xff] }
0x284c   :  { %v8930_v51 = vadd.f32 %v8919_v43, %v17300_v59 }
0x284e   :  { %v8958_v24 = vsel %vm57_vm1, %v8930_v51, 0.0 }
0x284f   :  { %8959 = vadd.xlane.f32.xlu0 %v8958_v24 }
0x28bc   :  { %v8936_v58 = vpop.xlane.xlu0 %8935 }
0x28bd   :  { %v8961_v42 = vmul.f32 0.03125, %v8936_v58 }
0x28bf   :  { %v17539_v44 = vsub.f32 %v8922_v41, %v8961_v42 }
0x28c0   :  { %v8939_v13 = vpop.xlane.xlu1 %8938 }
0x28c1   :  { %v8962_v14 = vmul.f32 0.03125, %v8939_v13  ;;  %v8979_v52 = vmul.f32 %v17539_v44, %v17539_v44 }
0x28c3   :  { %v17543_v18 = vsub.f32 %v8923_v11, %v8962_v14  ;;  %v8988_v25 = vsel %vm57_vm1, %v8979_v52, 0.0 }
0x28c4   :  { %v8942_v60 = vpop.xlane.xlu0 %8941  ;;  %8989 = vadd.xlane.f32.xlu1 %v8988_v25 }
0x28c5   :  { %v8963_v15 = vmul.f32 0.03125, %v8942_v60  ;;  %v8980_v59 = vmul.f32 %v17543_v18, %v17543_v18 }
0x28c7   :  { %v17548_v38 = vsub.f32 %v8924_v4, %v8963_v15  ;;  %v8991_v3 = vsel %vm57_vm1, %v8980_v59, 0.0 }
0x28c8   :  { %v8945_v47 = vpop.xlane.xlu1 %8944  ;;  %8992 = vadd.xlane.f32.xlu0 %v8991_v3 }
0x28c9   :  { %v8964_v36 = vmul.f32 0.03125, %v8945_v47  ;;  %v8981_v50 = vmul.f32 %v17548_v38, %v17548_v38 }
0x28cb   :  { %v17553_v17 = vsub.f32 %v8925_v31, %v8964_v36  ;;  %v8994_v37 = vsel %vm57_vm1, %v8981_v50, 0.0 }
0x28cc   :  { %v8948_v63 = vpop.xlane.xlu0 %8947  ;;  %8995 = vadd.xlane.f32.xlu1 %v8994_v37 }
0x28cd   :  { %v8965_v7 = vmul.f32 0.03125, %v8948_v63  ;;  %v8982_v32 = vmul.f32 %v17553_v17, %v17553_v17 }
0x28cf   :  { %v17558_v6 = vsub.f32 %v8926_v12, %v8965_v7  ;;  %v8997_v41 = vsel %vm57_vm1, %v8982_v32, 0.0 }
0x28d0   :  { %v8951_v8 = vpop.xlane.xlu1 %8950  ;;  %8998 = vadd.xlane.f32.xlu0 %v8997_v41 }
0x28d1   :  { %v8966_v49 = vmul.f32 0.03125, %v8951_v8  ;;  %v8983_v56 = vmul.f32 %v17558_v6, %v17558_v6 }
0x28d3   :  { %v17563_v1 = vsub.f32 %v8927_v2, %v8966_v49  ;;  %v9000_v11 = vsel %vm57_vm1, %v8983_v56, 0.0  ;;  %v9093_v56 = vld [vmem:[%s17718_s0] sm:$0xff] }
0x28d4   :  { %v8954_v33 = vpop.xlane.xlu0 %8953  ;;  %9001 = vadd.xlane.f32.xlu1 %v9000_v11 }
0x28d5   :  { %v8967_v46 = vmul.f32 0.03125, %v8954_v33  ;;  %v8984_v20 = vmul.f32 %v17563_v1, %v17563_v1 }
0x28d7   :  { %v17568_v27 = vsub.f32 %v8928_v35, %v8967_v46  ;;  %v9003_v4 = vsel %vm57_vm1, %v8984_v20, 0.0 }
0x28d8   :  { %v8957_v29 = vpop.xlane.xlu1 %8956  ;;  %9004 = vadd.xlane.f32.xlu0 %v9003_v4 }
0x28d9   :  { %v8968_v19 = vmul.f32 0.03125, %v8957_v29  ;;  %v8985_v23 = vmul.f32 %v17568_v27, %v17568_v27 }
0x28db   :  { %v17573_v61 = vsub.f32 %v8929_v28, %v8968_v19  ;;  %v9006_v31 = vsel %vm57_vm1, %v8985_v23, 0.0  ;;  %v17587_v28 = vld [vmem:[%s17731_s13] ss:$0 sm:$0xff] }
0x28dc   :  { %9007 = vadd.xlane.f32.xlu1 %v9006_v31  ;;  %v8960_v9 = vpop.xlane.xlu0 %8959 }
0x28dd   :  { %v8969_v57 = vmul.f32 0.03125, %v8960_v9  ;;  %v8986_v0 = vmul.f32 %v17573_v61, %v17573_v61 }
0x28df   :  { %v17578_v40 = vsub.f32 %v8930_v51, %v8969_v57  ;;  %v9009_v12 = vsel %vm57_vm1, %v8986_v0, 0.0 }
0x28e0   :  { %9010 = vadd.xlane.f32.xlu0 %v9009_v12 }
0x28e1   :  { %v8987_v16 = vmul.f32 %v17578_v40, %v17578_v40 }
0x28e3   :  { %v9012_v22 = vsel %vm57_vm1, %v8987_v16, 0.0 }
0x28e4   :  { %9013 = vadd.xlane.f32.xlu1 %v9012_v22 }
0x2951   :  { %v8990_v26 = vpop.xlane.xlu1 %8989 }
0x2952   :  { %v9015_v21 = vmul.f32 0.03125, %v8990_v26 }
0x2954   :  { %v9024_v2 = vadd.f32 1e-05, %v9015_v21 }
0x2955   :  { %v8993_v48 = vpop.xlane.xlu0 %8992 }
0x2956   :  { %13424 = vrsqrt.f32 %v9024_v2  ;;  %v9016_v5 = vmul.f32 0.03125, %v8993_v48  ;;  %v9105_v2 = vld [vmem:[%s17718_s0 + $0x10] sm:$0xff] }
0x2958   :  { %v9025_v30 = vadd.f32 1e-05, %v9016_v5 }
0x2959   :  { %v8996_v34 = vpop.xlane.xlu1 %8995 }
0x295a   :  { %13426 = vrsqrt.f32 %v9025_v30  ;;  %v9017_v35 = vmul.f32 0.03125, %v8996_v34 }
0x295c   :  { %v9026_v55 = vadd.f32 1e-05, %v9017_v35 }
0x295d   :  { %v8999_v39 = vpop.xlane.xlu0 %8998 }
0x295e   :  { %13428 = vrsqrt.f32 %v9026_v55  ;;  %v9018_v53 = vmul.f32 0.03125, %v8999_v39  ;;  %v9111_v39 = vld [vmem:[%s17718_s0 + $0x18] sm:$0xff] }
0x2960   :  { %v13425_v54 = vpop.eup %13424  ;;  %v9027_v10 = vadd.f32 1e-05, %v9018_v53 }
0x2961   :  { %v9042_v43 = vmul.f32 %v13425_v54, %v17539_v44  ;;  %v9002_v45 = vpop.xlane.xlu1 %9001 }
0x2962   :  { %13430 = vrsqrt.f32 %v9027_v10  ;;  %v9019_v51 = vmul.f32 0.03125, %v9002_v45 }
0x2963   :  { %v9057_v24 = vmul.f32 %v17587_v28, %v9042_v43 }
0x2964   :  { %v13427_v58 = vpop.eup %13426  ;;  %v9028_v42 = vadd.f32 1e-05, %v9019_v51 }
0x2965   :  { %v9072_v13 = vadd.f32 %v17593_v62, %v9057_v24  ;;  %v9043_v14 = vmul.f32 %v13427_v58, %v17543_v18  ;;  %v9005_v52 = vpop.xlane.xlu0 %9004  ;;  %v9117_v24 = vld [vmem:[%s17718_s0 + $0x20] sm:$0xff] }
0x2966   :  { %13432 = vrsqrt.f32 %v9028_v42  ;;  %v9020_v25 = vmul.f32 0.03125, %v9005_v52 }
0x2967   :  { %9081 = vst.msk [vmem:[#allocation2] sm:$0xff] %vm57_vm1, %v9072_v13  ;;  %v9058_v44 = vmul.f32 %v17587_v28, %v9043_v14 }
0x2968   :  { %v13429_v60 = vpop.eup %13428  ;;  %v9029_v15 = vadd.f32 1e-05, %v9020_v25  ;;  %v9123_v25 = vld [vmem:[%s17718_s0 + $0x28] sm:$0xff] }
0x2969   :  { %v9073_v59 = vadd.f32 %v17593_v62, %v9058_v44  ;;  %v9044_v3 = vmul.f32 %v13429_v60, %v17548_v38  ;;  %v9008_v47 = vpop.xlane.xlu1 %9007 }
0x296a   :  { %13434 = vrsqrt.f32 %v9029_v15  ;;  %v9021_v36 = vmul.f32 0.03125, %v9008_v47  ;;  %v9135_v47 = vld [vmem:[%s17718_s0 + $0x38] sm:$0xff] }
0x296b   :  { %9082 = vst.msk [vmem:[#allocation2 + $0x8] sm:$0xff] %vm57_vm1, %v9073_v59  ;;  %v9059_v18 = vmul.f32 %v17587_v28, %v9044_v3 }
0x296c   :  { %v13431_v50 = vpop.eup %13430  ;;  %v9030_v37 = vadd.f32 1e-05, %v9021_v36 }
0x296d   :  { %v9074_v63 = vadd.f32 %v17593_v62, %v9059_v18  ;;  %v9045_v7 = vmul.f32 %v13431_v50, %v17553_v17  ;;  %v9011_v32 = vpop.xlane.xlu0 %9010 }
0x296e   :  { %v9090_v41 = vld [vmem:[#allocation2] sm:$0x1]  ;;  %13436 = vrsqrt.f32 %v9030_v37  ;;  %v9022_v8 = vmul.f32 0.03125, %v9011_v32 }
0x296f   :  { %9091 = vst.msk [vmem:[%s17732_s15] sm:$0x1] %vm53_vm0, %v9090_v41  ;;  %v9060_v38 = vmul.f32 %v17587_v28, %v9045_v7 }
0x2970   :  { %9083 = vst.msk [vmem:[#allocation2 + $0x10] sm:$0xff] %vm57_vm1, %v9074_v63  ;;  %v13433_v49 = vpop.eup %13432  ;;  %v9031_v11 = vadd.f32 1e-05, %v9022_v8 }
0x2971   :  { %v9075_v17 = vadd.f32 %v17593_v62, %v9060_v38  ;;  %v9046_v33 = vmul.f32 %v13433_v49, %v17558_v6  ;;  %v9014_v46 = vpop.xlane.xlu1 %9013  ;;  %v9099_v6 = vld [vmem:[%s17718_s0 + $0x8] sm:$0xff] }
0x2972   :  { %v9092_v20 = vld [vmem:[#allocation2 + $0x1] sm:$0xff]  ;;  %v9096_v4 = vld [vmem:[#allocation2 + $0x9] sm:$0x1]  ;;  %13438 = vrsqrt.f32 %v9031_v11  ;;  %v9023_v29 = vmul.f32 0.03125, %v9014_v46 }
0x2973   :  { %v9094_v19 = vadd.f32 %v9093_v56, %v9092_v20  ;;  %9097 = vst.msk [vmem:[%s17732_s15 + $0x1] sm:$0x1] %vm53_vm0, %v9096_v4  ;;  %v9061_v23 = vmul.f32 %v17587_v28, %v9046_v33 }
0x2974   :  { %9084 = vst.msk [vmem:[#allocation2 + $0x18] sm:$0xff] %vm57_vm1, %v9075_v17  ;;  %v13435_v31 = vpop.eup %13434  ;;  %v9032_v9 = vadd.f32 1e-05, %v9023_v29 }
0x2975   :  { %9095 = vst.msk [vmem:[%s17733_s14] sm:$0xff] %vm57_vm1, %v9094_v19  ;;  %v9076_v57 = vadd.f32 %v17593_v62, %v9061_v23  ;;  %v9047_v0 = vmul.f32 %v13435_v31, %v17563_v1 }
0x2976   :  { %13440 = vrsqrt.f32 %v9032_v9 }
0x2977   :  { %v9098_v12 = vld [vmem:[#allocation2 + $0xa] sm:$0xff]  ;;  %v9102_v16 = vld [vmem:[#allocation2 + $0x12] sm:$0x1]  ;;  %9085 = vst.msk [vmem:[#allocation2 + $0x20] sm:$0xff] %vm57_vm1, %v9076_v57  ;;  %v9062_v26 = vmul.f32 %v17587_v28, %v9047_v0 }
0x2978   :  { %v9100_v22 = vadd.f32 %v9099_v6, %v9098_v12  ;;  %9103 = vst.msk [vmem:[%s17732_s15 + $0x2] sm:$0x1] %vm53_vm0, %v9102_v16  ;;  %v13437_v21 = vpop.eup %13436 }
0x2979   :  { %v9077_v1 = vadd.f32 %v17593_v62, %v9062_v26  ;;  %v9048_v48 = vmul.f32 %v13437_v21, %v17568_v27 }
0x297a   :  { %9101 = vst.msk [vmem:[%s17733_s14 + $0x8] sm:$0xff] %vm57_vm1, %v9100_v22 }
0x297b   :  { %v9104_v5 = vld [vmem:[#allocation2 + $0x13] sm:$0xff]  ;;  %v9108_v30 = vld [vmem:[#allocation2 + $0x1b] sm:$0x1]  ;;  %9086 = vst.msk [vmem:[#allocation2 + $0x28] sm:$0xff] %vm57_vm1, %v9077_v1  ;;  %v9063_v35 = vmul.f32 %v17587_v28, %v9048_v48 }
0x297c   :  { %v9106_v34 = vadd.f32 %v9105_v2, %v9104_v5  ;;  %9109 = vst.msk [vmem:[%s17732_s15 + $0x3] sm:$0x1] %vm53_vm0, %v9108_v30  ;;  %v13439_v55 = vpop.eup %13438 }
0x297d   :  { %v9078_v27 = vadd.f32 %v17593_v62, %v9063_v35  ;;  %v9049_v53 = vmul.f32 %v13439_v55, %v17573_v61 }
0x297e   :  { %9107 = vst.msk [vmem:[%s17733_s14 + $0x10] sm:$0xff] %vm57_vm1, %v9106_v34  ;;  %v9110_v54 = vld [vmem:[#allocation2 + $0x1c] sm:$0xff]  ;;  %v9114_v10 = vld [vmem:[#allocation2 + $0x24] sm:$0x1] }
0x297f   :  { %v9112_v43 = vadd.f32 %v9111_v39, %v9110_v54  ;;  %9115 = vst.msk [vmem:[%s17732_s15 + $0x4] sm:$0x1] %vm53_vm0, %v9114_v10  ;;  %v9064_v45 = vmul.f32 %v17587_v28, %v9049_v53 }
0x2980   :  { %9087 = vst.msk [vmem:[#allocation2 + $0x30] sm:$0xff] %vm57_vm1, %v9078_v27  ;;  %v13441_v51 = vpop.eup %13440 }
0x2981   :  { %9113 = vst.msk [vmem:[%s17733_s14 + $0x18] sm:$0xff] %vm57_vm1, %v9112_v43  ;;  %v9079_v61 = vadd.f32 %v17593_v62, %v9064_v45  ;;  %v9050_v58 = vmul.f32 %v13441_v51, %v17578_v40 }
0x2982   :  { %v9116_v42 = vld [vmem:[#allocation2 + $0x25] sm:$0xff]  ;;  %v9120_v13 = vld [vmem:[#allocation2 + $0x2d] sm:$0x1] }
0x2983   :  { %v9118_v14 = vadd.f32 %v9117_v24, %v9116_v42  ;;  %9121 = vst.msk [vmem:[%s17732_s15 + $0x5] sm:$0x1] %vm53_vm0, %v9120_v13  ;;  %v9065_v52 = vmul.f32 %v17587_v28, %v9050_v58  ;;  %v9129_v28 = vld [vmem:[%s17718_s0 + $0x30] sm:$0xff] }
0x2984   :  { %9088 = vst.msk [vmem:[#allocation2 + $0x38] sm:$0xff] %vm57_vm1, %v9079_v61 }
0x2985   :  { %9119 = vst.msk [vmem:[%s17733_s14 + $0x20] sm:$0xff] %vm57_vm1, %v9118_v14  ;;  %v9080_v40 = vadd.f32 %v17593_v62, %v9065_v52 }
0x2987   :  { %v9122_v44 = vld [vmem:[#allocation2 + $0x2e] sm:$0xff]  ;;  %v9126_v60 = vld [vmem:[#allocation2 + $0x36] sm:$0x1]  ;;  %9089 = vst.msk [vmem:[#allocation2 + $0x40] sm:$0xff] %vm57_vm1, %v9080_v40 }
0x2988   :  { %v9124_v15 = vadd.f32 %v9123_v25, %v9122_v44  ;;  %9127 = vst.msk [vmem:[%s17732_s15 + $0x6] sm:$0x1] %vm53_vm0, %v9126_v60 }
0x298a   :  { %9125 = vst.msk [vmem:[%s17733_s14 + $0x28] sm:$0xff] %vm57_vm1, %v9124_v15 }
0x298b   :  { %v9128_v62 = vld [vmem:[#allocation2 + $0x37] sm:$0xff]  ;;  %v9132_v59 = vld [vmem:[#allocation2 + $0x3f] sm:$0x1] }
0x298c   :  { %v9130_v3 = vadd.f32 %v9129_v28, %v9128_v62  ;;  %9133 = vst.msk [vmem:[%s17732_s15 + $0x7] sm:$0x1] %vm53_vm0, %v9132_v59 }
0x298e   :  { %9131 = vst.msk [vmem:[%s17733_s14 + $0x30] sm:$0xff] %vm57_vm1, %v9130_v3  ;;  %v9134_v36 = vld [vmem:[#allocation2 + $0x40] sm:$0xff] }
0x298f   :  { %v9136_v18 = vadd.f32 %v9135_v47, %v9134_v36 }
0x2991   :  { %9137 = vst.msk [vmem:[%s17733_s14 + $0x38] sm:$0xff] %vm57_vm1, %v9136_v18 }

</bundles_post_ra>
